<compile_context>
chip_gen: v7x
topology: tpu7x:2x2x1
jax: 0.10.0
libtpu: 0.0.40
codegen_flags: <defaults>
</compile_context>

<pallas_src>
import jax
import jax.numpy as jnp
from jax.experimental import pallas as pl
from jax.experimental.pallas import tpu as pltpu


# ---------------------------------------------------------------------------
# Fixed dims for the canonical 32x32x3 input of BaseModel.
# ---------------------------------------------------------------------------
H0 = W0 = 32
C0, C1, C2, C3 = 3, 32, 64, 128
K1, K2, K3 = 7, 3, 3
H1, W1 = H0 - K1 + 1, W0 - K1 + 1          # 26, 26   (conv1 valid output)
W1P = 32                                    # conv1 out width padded; mult of 8 (aligned reshape)
H2, W2 = H1 - K2 + 1, W1 - K2 + 1           # 24, 24   (conv2 output)
HP2, WP2 = H2 // 2, W2 // 2                 # 12, 12   (after max-pool #1)
H3, W3 = HP2 - K3 + 1, WP2 - K3 + 1         # 10, 10   (conv3 valid output)
W3P = 16                                    # conv3 out width padded; mult of 8 (aligned reshape)
HP3, WP3 = H3 // 2, W3 // 2                 # 5, 5     (after max-pool #2)
NBIAS = 4

assert W1P % 8 == 0 and W1P >= W1           # aligned img1 reshape, cols >= W1 are padding
assert W2 % 8 == 0 and W3P % 8 == 0         # aligned pool reshapes
assert W1P >= W2 + K2 - 1                   # conv2 slabs read only cols 0..25 (all valid)
assert W2 >= W3P + K3 - 1                   # conv3 slabs stay inside the (12,24,64) image buffer


# ---------------------------------------------------------------------------
# Single fused kernel: one grid step == one image.
# ---------------------------------------------------------------------------
def _fused_kernel(p1_ref, w1_ref, w2_ref, w3_ref, wf_ref, bias_ref,
                  out_ref, s2_ref, pimg_ref, s3_ref, s3b_ref):
    f32 = jnp.float32
    bf16 = jnp.bfloat16
    nc = out_ref.shape[2]

    b1 = bias_ref[0:1, 0:C1]
    b2 = bias_ref[1:2, 0:C2]
    b3 = bias_ref[2:3, 0:C3]
    bfc = bias_ref[3:4, 0:nc]

    # ---- conv1 (7x7, 3->32): one deep-K im2col matmul, K = 147, bf16 operands ----
    h1 = jnp.dot(p1_ref[0], w1_ref[...], preferred_element_type=f32) + b1
    h1 = jnp.maximum(h1, 0.0)                               # (832, 32) f32
    # NOTE: cols 26..31 of img1 come from zero-padded p1 patches -> relu(b1) garbage.
    # conv2 below only reads cols 0..(W2+K2-2)=25, i.e. valid data only.
    img1 = h1.reshape(H1, W1P, C1)                          # (26, 32, 32)

    # ---- conv2 (3x3, 32->64): kh AND kw folded into K (K = 288), single matmul ----
    pat2 = jnp.concatenate(
        [img1[kh:kh + H2, kw:kw + W2, :] for kh in range(K2) for kw in range(K2)],
        axis=-1)                                            # (24, 24, 288) f32
    acc2 = jnp.dot(pat2.reshape(H2 * W2, K2 * K2 * C1).astype(bf16), w2_ref[...],
                   preferred_element_type=f32)              # (576, 64) f32
    h2 = jnp.maximum(acc2 + b2, 0.0)                        # rows = 24*ho + wo

    # ---- 2x2 max pool #1: (24,24,64) -> (12,12,64), no per-row store loops ----
    # H-pool: expose the row parity as an outer axis (tile-aligned reshape, 24 % 8 == 0).
    s2_ref[...] = h2.reshape(HP2, 2, W2, C2)
    hmax = jnp.maximum(s2_ref[:, 0, :, :], s2_ref[:, 1, :, :])          # (12, 24, 64)
    # W-pool: two stride-2 sublane reads + one max.
    pimg_ref[...] = hmax
    pooled1 = jnp.maximum(pimg_ref[:, pl.ds(0, WP2, stride=2), :],
                          pimg_ref[:, pl.ds(1, WP2, stride=2), :])      # (12, 12, 64)
    # ONE wide store of the pooled image into cols 0..11.  Cols 12..23 keep the stale
    # (finite) hmax values; they only reach conv3 outputs with wo >= 10, and pool #2
    # never reads those rows, so no zero-fill is needed.
    pimg_ref[:, 0:WP2, :] = pooled1

    # ---- conv3 (3x3, 64->128): kh AND kw folded into K (K = 576), single matmul ----
    img2 = pimg_ref[...]                                    # (12, 24, 64) f32
    pat3 = jnp.concatenate(
        [img2[kh:kh + H3, kw:kw + W3P, :] for kh in range(K3) for kw in range(K3)],
        axis=-1)                                            # (10, 16, 576) f32
    acc3 = jnp.dot(pat3.reshape(H3 * W3P, K3 * K3 * C2).astype(bf16), w3_ref[...],
                   preferred_element_type=f32)              # (160, 128) f32
    h3 = jnp.maximum(acc3 + b3, 0.0)                        # rows = 16*ho + wo; wo >= 10 garbage

    # ---- 2x2 max pool #2 (valid 10x10 block only) + global average pool ----
    s3_ref[...] = h3.reshape(HP3, 2, W3P, C3)               # aligned reshape (16 % 8 == 0)
    hmax3 = jnp.maximum(s3_ref[:, 0, :, :], s3_ref[:, 1, :, :])         # (5, 16, 128)
    s3b_ref[...] = hmax3
    # Strided reads pick wo in {0,2,4,6,8} and {1,3,5,7,9}: the garbage cols >= 10 are
    # never read.
    pooled2 = jnp.maximum(s3b_ref[:, pl.ds(0, WP3, stride=2), :],
                          s3b_ref[:, pl.ds(1, WP3, stride=2), :])       # (5, 5, 128)
    red = jnp.sum(pooled2, axis=0)                                      # (5, 128)
    pooled = jnp.sum(red, axis=0, keepdims=True) * (1.0 / float(HP3 * WP3))  # (1, 128)

    # ---- fc (dropout layers are identity in inference mode) ----
    logits = jnp.dot(pooled.astype(bf16), wf_ref[...],
                     preferred_element_type=f32) + bfc
    out_ref[0] = logits.astype(out_ref.dtype)


def _fused_forward_call(p1, w1f, w2f, w3f, wf, bias_pack):
    n = p1.shape[0]
    nc = wf.shape[1]
    biasw = bias_pack.shape[1]
    return pl.pallas_call(
        _fused_kernel,
        out_shape=jax.ShapeDtypeStruct((n, 1, nc), jnp.float32),
        grid=(n,),
        in_specs=[
            pl.BlockSpec((1, H1 * W1P, K1 * K1 * C0), lambda i: (i, 0, 0)),  # p1 (bf16)
            pl.BlockSpec((K1 * K1 * C0, C1), lambda i: (0, 0)),              # w1 (bf16)
            pl.BlockSpec((K2 * K2 * C1, C2), lambda i: (0, 0)),              # w2 (bf16)
            pl.BlockSpec((K3 * K3 * C2, C3), lambda i: (0, 0)),              # w3 (bf16)
            pl.BlockSpec((C3, nc), lambda i: (0, 0)),                        # wf (bf16)
            pl.BlockSpec((NBIAS, biasw), lambda i: (0, 0)),                  # packed biases f32
        ],
        out_specs=pl.BlockSpec((1, 1, nc), lambda i: (i, 0, 0)),
        scratch_shapes=[
            pltpu.VMEM((HP2, 2, W2, C2), jnp.float32),   # conv2 out, row-parity exposed
            pltpu.VMEM((HP2, W2, C2), jnp.float32),      # H-pooled rows / pooled conv3 input
            pltpu.VMEM((HP3, 2, W3P, C3), jnp.float32),  # conv3 out, row-parity exposed
            pltpu.VMEM((HP3, W3P, C3), jnp.float32),     # H-pooled conv3 rows
        ],
        compiler_params=pltpu.CompilerParams(
            dimension_semantics=("parallel",)),          # v7x: shard batch over 2 TCs
    )(p1, w1f, w2f, w3f, wf, bias_pack)


# ---------------------------------------------------------------------------
# Parameters (deterministic, He-style scaling) and the jitted forward pass.
# ---------------------------------------------------------------------------
def init_params(key, num_classes):
    ks = jax.random.split(key, 8)

    def conv_w(k, kh, kw, cin, cout):
        scale = 1.0 / jnp.sqrt(kh * kw * cin)
        return jax.random.normal(k, (kh, kw, cin, cout), jnp.float32) * scale

    return {
        "w1": conv_w(ks[0], K1, K1, C0, C1),
        "b1": jax.random.normal(ks[1], (1, C1), jnp.float32) * 0.01,
        "w2": conv_w(ks[2], K2, K2, C1, C2),
        "b2": jax.random.normal(ks[3], (1, C2), jnp.float32) * 0.01,
        "w3": conv_w(ks[4], K3, K3, C2, C3),
        "b3": jax.random.normal(ks[5], (1, C3), jnp.float32) * 0.01,
        "wf": jax.random.normal(ks[6], (C3, num_classes), jnp.float32)
              * (1.0 / jnp.sqrt(float(C3))),
        "bf": jax.random.normal(ks[7], (1, num_classes), jnp.float32) * 0.01,
    }


@jax.jit
def base_model_forward(params, x_nchw):
    # NCHW -> NHWC, bf16, conv1 im2col: pure layout plumbing fused into the same
    # jitted program that launches the single fused Pallas kernel.
    x = jnp.transpose(x_nchw, (0, 2, 3, 1)).astype(jnp.bfloat16)  # (N, 32, 32, 3)
    n = x.shape[0]
    cols = [x[:, kh:kh + H1, kw:kw + W1, :]
            for kh in range(K1) for kw in range(K1)]
    p1 = jnp.concatenate(cols, axis=-1)                           # (N, 26, 26, 147) bf16
    p1 = jnp.pad(p1, ((0, 0), (0, 0), (0, W1P - W1), (0, 0)))     # pad Wo 26 -> 32
    p1 = p1.reshape(n, H1 * W1P, K1 * K1 * C0)                    # (N, 832, 147) bf16

    num_classes = params["wf"].shape[1]
    w1f = params["w1"].reshape(K1 * K1 * C0, C1).astype(jnp.bfloat16)   # (147, 32)
    w2f = params["w2"].reshape(K2 * K2 * C1, C2).astype(jnp.bfloat16)   # (288, 64)
    w3f = params["w3"].reshape(K3 * K3 * C2, C3).astype(jnp.bfloat16)   # (576, 128)
    wf = params["wf"].astype(jnp.bfloat16)                              # (128, nc)

    # Pack the four biases (kept f32 for VPU adds) into one operand -> fewer DMAs.
    biasw = max(C3, num_classes)
    bias_pack = jnp.zeros((NBIAS, biasw), jnp.float32)
    bias_pack = bias_pack.at[0, :C1].set(params["b1"][0])
    bias_pack = bias_pack.at[1, :C2].set(params["b2"][0])
    bias_pack = bias_pack.at[2, :C3].set(params["b3"][0])
    bias_pack = bias_pack.at[3, :num_classes].set(params["bf"][0])

    out = _fused_forward_call(p1, w1f, w2f, w3f, wf, bias_pack)
    return out.reshape(n, -1)


if __name__ == "__main__":
    num_classes = 10
    key = jax.random.PRNGKey(0)
    k_x, k_p = jax.random.split(key)

    # PyTorch-convention NCHW input (batch=2, C=3 required by conv1, 32x32 spatial)
    x = jax.random.normal(k_x, (2, 3, 32, 32), jnp.float32)
    params = init_params(k_p, num_classes)

    out = base_model_forward(params, x)
    out = jax.block_until_ready(out)
    assert out.shape == (2, num_classes), out.shape
    assert bool(jnp.all(jnp.isfinite(out)))
    print("KERNEL_OK")
</pallas_src>

<mosaic_0001>
module attributes {stable_mosaic.version = 11 : i64} {
  func.func @_fused_kernel(%arg0: i32, %arg1: memref<1x832x147xbf16, #tpu.memory_space<vmem>>, %arg2: memref<147x32xbf16, #tpu.memory_space<vmem>>, %arg3: memref<288x64xbf16, #tpu.memory_space<vmem>>, %arg4: memref<576x128xbf16, #tpu.memory_space<vmem>>, %arg5: memref<128x10xbf16, #tpu.memory_space<vmem>>, %arg6: memref<4x128xf32, #tpu.memory_space<vmem>>, %arg7: memref<1x1x10xf32, #tpu.memory_space<vmem>>, %arg8: memref<12x2x24x64xf32, #tpu.memory_space<vmem>>, %arg9: memref<12x24x64xf32, #tpu.memory_space<vmem>>, %arg10: memref<5x2x16x128xf32, #tpu.memory_space<vmem>>, %arg11: memref<5x16x128xf32, #tpu.memory_space<vmem>>) attributes {dimension_semantics = [#tpu.dimension_semantics<parallel>], iteration_bounds = array<i64: 2>, scalar_prefetch = 0 : i64, scratch_operands = 4 : i64, tpu.core_type = #tpu.core_type<tc>, window_params = [{transform_indices = @transform_0, window_bounds = array<i64: 1, 832, 147>}, {pipeline_mode = #tpu.pipeline_mode<synchronous>, transform_indices = @transform_1, window_bounds = array<i64: 147, 32>}, {pipeline_mode = #tpu.pipeline_mode<synchronous>, transform_indices = @transform_2, window_bounds = array<i64: 288, 64>}, {pipeline_mode = #tpu.pipeline_mode<synchronous>, transform_indices = @transform_3, window_bounds = array<i64: 576, 128>}, {pipeline_mode = #tpu.pipeline_mode<synchronous>, transform_indices = @transform_4, window_bounds = array<i64: 128, 10>}, {pipeline_mode = #tpu.pipeline_mode<synchronous>, transform_indices = @transform_5, window_bounds = array<i64: 4, 128>}, {transform_indices = @transform_6, window_bounds = array<i64: 1, 1, 10>}]} {
    %c0 = arith.constant 0 : index
    %c0_0 = arith.constant 0 : index
    %0 = vector.load %arg6[%c0, %c0_0] : memref<4x128xf32, #tpu.memory_space<vmem>>, vector<1x32xf32>
    %c1 = arith.constant 1 : index
    %c0_1 = arith.constant 0 : index
    %1 = vector.load %arg6[%c1, %c0_1] : memref<4x128xf32, #tpu.memory_space<vmem>>, vector<1x64xf32>
    %c2 = arith.constant 2 : index
    %c0_2 = arith.constant 0 : index
    %2 = vector.load %arg6[%c2, %c0_2] : memref<4x128xf32, #tpu.memory_space<vmem>>, vector<1x128xf32>
    %c3 = arith.constant 3 : index
    %c0_3 = arith.constant 0 : index
    %3 = vector.load %arg6[%c3, %c0_3] : memref<4x128xf32, #tpu.memory_space<vmem>>, vector<1x10xf32>
    %c0_4 = arith.constant 0 : index
    %c0_5 = arith.constant 0 : index
    %c0_6 = arith.constant 0 : index
    %4 = vector.load %arg1[%c0_4, %c0_5, %c0_6] : memref<1x832x147xbf16, #tpu.memory_space<vmem>>, vector<1x832x147xbf16>
    %5 = vector.shape_cast %4 : vector<1x832x147xbf16> to vector<832x147xbf16>
    %c0_7 = arith.constant 0 : index
    %c0_8 = arith.constant 0 : index
    %6 = vector.load %arg2[%c0_7, %c0_8] : memref<147x32xbf16, #tpu.memory_space<vmem>>, vector<147x32xbf16>
    %cst = arith.constant dense<0.000000e+00> : vector<832x32xf32>
    %7 = tpu.matmul %5, %6, %cst {dimension_numbers = #tpu.dot_dimension_numbers<[1], [0], [0], [1], [0, 0, 1, 1], [], []>} : vector<832x147xbf16>, vector<147x32xbf16>, vector<832x32xf32> -> vector<832x32xf32>
    %8 = vector.broadcast %0 : vector<1x32xf32> to vector<832x32xf32>
    %9 = arith.addf %7, %8 : vector<832x32xf32>
    %cst_9 = arith.constant 0.000000e+00 : f32
    %10 = vector.broadcast %cst_9 : f32 to vector<832x32xf32>
    %11 = arith.maximumf %9, %10 : vector<832x32xf32>
    %12 = vector.shape_cast %11 : vector<832x32xf32> to vector<26x32x32xf32>
    %13 = vector.extract_strided_slice %12 {offsets = [0, 0, 0], sizes = [24, 24, 32], strides = [1, 1, 1]} : vector<26x32x32xf32> to vector<24x24x32xf32>
    %14 = vector.extract_strided_slice %12 {offsets = [0, 1, 0], sizes = [24, 24, 32], strides = [1, 1, 1]} : vector<26x32x32xf32> to vector<24x24x32xf32>
    %15 = vector.extract_strided_slice %12 {offsets = [0, 2, 0], sizes = [24, 24, 32], strides = [1, 1, 1]} : vector<26x32x32xf32> to vector<24x24x32xf32>
    %16 = vector.extract_strided_slice %12 {offsets = [1, 0, 0], sizes = [24, 24, 32], strides = [1, 1, 1]} : vector<26x32x32xf32> to vector<24x24x32xf32>
    %17 = vector.extract_strided_slice %12 {offsets = [1, 1, 0], sizes = [24, 24, 32], strides = [1, 1, 1]} : vector<26x32x32xf32> to vector<24x24x32xf32>
    %18 = vector.extract_strided_slice %12 {offsets = [1, 2, 0], sizes = [24, 24, 32], strides = [1, 1, 1]} : vector<26x32x32xf32> to vector<24x24x32xf32>
    %19 = vector.extract_strided_slice %12 {offsets = [2, 0, 0], sizes = [24, 24, 32], strides = [1, 1, 1]} : vector<26x32x32xf32> to vector<24x24x32xf32>
    %20 = vector.extract_strided_slice %12 {offsets = [2, 1, 0], sizes = [24, 24, 32], strides = [1, 1, 1]} : vector<26x32x32xf32> to vector<24x24x32xf32>
    %21 = vector.extract_strided_slice %12 {offsets = [2, 2, 0], sizes = [24, 24, 32], strides = [1, 1, 1]} : vector<26x32x32xf32> to vector<24x24x32xf32>
    %22 = tpu.concatenate %13, %14, %15, %16, %17, %18, %19, %20, %21 in 2 : vector<24x24x32xf32>, vector<24x24x32xf32>, vector<24x24x32xf32>, vector<24x24x32xf32>, vector<24x24x32xf32>, vector<24x24x32xf32>, vector<24x24x32xf32>, vector<24x24x32xf32>, vector<24x24x32xf32> -> vector<24x24x288xf32>
    %23 = vector.shape_cast %22 : vector<24x24x288xf32> to vector<576x288xf32>
    %24 = arith.truncf %23 : vector<576x288xf32> to vector<576x288xbf16>
    %c0_10 = arith.constant 0 : index
    %c0_11 = arith.constant 0 : index
    %25 = vector.load %arg3[%c0_10, %c0_11] : memref<288x64xbf16, #tpu.memory_space<vmem>>, vector<288x64xbf16>
    %cst_12 = arith.constant dense<0.000000e+00> : vector<576x64xf32>
    %26 = tpu.matmul %24, %25, %cst_12 {dimension_numbers = #tpu.dot_dimension_numbers<[1], [0], [0], [1], [0, 0, 1, 1], [], []>} : vector<576x288xbf16>, vector<288x64xbf16>, vector<576x64xf32> -> vector<576x64xf32>
    %27 = vector.broadcast %1 : vector<1x64xf32> to vector<576x64xf32>
    %28 = arith.addf %26, %27 : vector<576x64xf32>
    %cst_13 = arith.constant 0.000000e+00 : f32
    %29 = vector.broadcast %cst_13 : f32 to vector<576x64xf32>
    %30 = arith.maximumf %28, %29 : vector<576x64xf32>
    %31 = vector.shape_cast %30 : vector<576x64xf32> to vector<12x2x24x64xf32>
    %c0_14 = arith.constant 0 : index
    %c0_15 = arith.constant 0 : index
    %c0_16 = arith.constant 0 : index
    %c0_17 = arith.constant 0 : index
    %32 = vector.load %arg8[%c0_14, %c0_15, %c0_16, %c0_17] : memref<12x2x24x64xf32, #tpu.memory_space<vmem>>, vector<12x2x24x64xf32>
    tpu.vector_store %arg8[%c0_14, %c0_15, %c0_16, %c0_17], %31 {strides = array<i32>} : memref<12x2x24x64xf32, #tpu.memory_space<vmem>>, vector<12x2x24x64xf32>,
    %c0_18 = arith.constant 0 : index
    %c0_19 = arith.constant 0 : index
    %c0_20 = arith.constant 0 : index
    %c0_21 = arith.constant 0 : index
    %33 = vector.load %arg8[%c0_18, %c0_19, %c0_20, %c0_21] : memref<12x2x24x64xf32, #tpu.memory_space<vmem>>, vector<12x1x24x64xf32>
    %34 = vector.shape_cast %33 : vector<12x1x24x64xf32> to vector<12x24x64xf32>
    %c0_22 = arith.constant 0 : index
    %c1_23 = arith.constant 1 : index
    %c0_24 = arith.constant 0 : index
    %c0_25 = arith.constant 0 : index
    %35 = vector.load %arg8[%c0_22, %c1_23, %c0_24, %c0_25] : memref<12x2x24x64xf32, #tpu.memory_space<vmem>>, vector<12x1x24x64xf32>
    %36 = vector.shape_cast %35 : vector<12x1x24x64xf32> to vector<12x24x64xf32>
    %37 = arith.maximumf %34, %36 : vector<12x24x64xf32>
    %c0_26 = arith.constant 0 : index
    %c0_27 = arith.constant 0 : index
    %c0_28 = arith.constant 0 : index
    %38 = vector.load %arg9[%c0_26, %c0_27, %c0_28] : memref<12x24x64xf32, #tpu.memory_space<vmem>>, vector<12x24x64xf32>
    tpu.vector_store %arg9[%c0_26, %c0_27, %c0_28], %37 {strides = array<i32>} : memref<12x24x64xf32, #tpu.memory_space<vmem>>, vector<12x24x64xf32>,
    %c0_29 = arith.constant 0 : index
    %c0_30 = arith.constant 0 : index
    %c0_31 = arith.constant 0 : index
    %39 = tpu.strided_load %arg9[%c0_29, %c0_30, %c0_31] {strides = array<i32: 1, 2, 1>} : memref<12x24x64xf32, #tpu.memory_space<vmem>>, vector<12x12x64xf32>
    %c0_32 = arith.constant 0 : index
    %c1_33 = arith.constant 1 : index
    %c0_34 = arith.constant 0 : index
    %40 = tpu.strided_load %arg9[%c0_32, %c1_33, %c0_34] {strides = array<i32: 1, 2, 1>} : memref<12x24x64xf32, #tpu.memory_space<vmem>>, vector<12x12x64xf32>
    %41 = arith.maximumf %39, %40 : vector<12x12x64xf32>
    %c0_35 = arith.constant 0 : index
    %c0_36 = arith.constant 0 : index
    %c0_37 = arith.constant 0 : index
    %42 = vector.load %arg9[%c0_35, %c0_36, %c0_37] : memref<12x24x64xf32, #tpu.memory_space<vmem>>, vector<12x12x64xf32>
    tpu.vector_store %arg9[%c0_35, %c0_36, %c0_37], %41 {strides = array<i32>} : memref<12x24x64xf32, #tpu.memory_space<vmem>>, vector<12x12x64xf32>,
    %c0_38 = arith.constant 0 : index
    %c0_39 = arith.constant 0 : index
    %c0_40 = arith.constant 0 : index
    %43 = vector.load %arg9[%c0_38, %c0_39, %c0_40] : memref<12x24x64xf32, #tpu.memory_space<vmem>>, vector<12x24x64xf32>
    %44 = vector.extract_strided_slice %43 {offsets = [0, 0, 0], sizes = [10, 16, 64], strides = [1, 1, 1]} : vector<12x24x64xf32> to vector<10x16x64xf32>
    %45 = vector.extract_strided_slice %43 {offsets = [0, 1, 0], sizes = [10, 16, 64], strides = [1, 1, 1]} : vector<12x24x64xf32> to vector<10x16x64xf32>
    %46 = vector.extract_strided_slice %43 {offsets = [0, 2, 0], sizes = [10, 16, 64], strides = [1, 1, 1]} : vector<12x24x64xf32> to vector<10x16x64xf32>
    %47 = vector.extract_strided_slice %43 {offsets = [1, 0, 0], sizes = [10, 16, 64], strides = [1, 1, 1]} : vector<12x24x64xf32> to vector<10x16x64xf32>
    %48 = vector.extract_strided_slice %43 {offsets = [1, 1, 0], sizes = [10, 16, 64], strides = [1, 1, 1]} : vector<12x24x64xf32> to vector<10x16x64xf32>
    %49 = vector.extract_strided_slice %43 {offsets = [1, 2, 0], sizes = [10, 16, 64], strides = [1, 1, 1]} : vector<12x24x64xf32> to vector<10x16x64xf32>
    %50 = vector.extract_strided_slice %43 {offsets = [2, 0, 0], sizes = [10, 16, 64], strides = [1, 1, 1]} : vector<12x24x64xf32> to vector<10x16x64xf32>
    %51 = vector.extract_strided_slice %43 {offsets = [2, 1, 0], sizes = [10, 16, 64], strides = [1, 1, 1]} : vector<12x24x64xf32> to vector<10x16x64xf32>
    %52 = vector.extract_strided_slice %43 {offsets = [2, 2, 0], sizes = [10, 16, 64], strides = [1, 1, 1]} : vector<12x24x64xf32> to vector<10x16x64xf32>
    %53 = tpu.concatenate %44, %45, %46, %47, %48, %49, %50, %51, %52 in 2 : vector<10x16x64xf32>, vector<10x16x64xf32>, vector<10x16x64xf32>, vector<10x16x64xf32>, vector<10x16x64xf32>, vector<10x16x64xf32>, vector<10x16x64xf32>, vector<10x16x64xf32>, vector<10x16x64xf32> -> vector<10x16x576xf32>
    %54 = vector.shape_cast %53 : vector<10x16x576xf32> to vector<160x576xf32>
    %55 = arith.truncf %54 : vector<160x576xf32> to vector<160x576xbf16>
    %c0_41 = arith.constant 0 : index
    %c0_42 = arith.constant 0 : index
    %56 = vector.load %arg4[%c0_41, %c0_42] : memref<576x128xbf16, #tpu.memory_space<vmem>>, vector<576x128xbf16>
    %cst_43 = arith.constant dense<0.000000e+00> : vector<160x128xf32>
    %57 = tpu.matmul %55, %56, %cst_43 {dimension_numbers = #tpu.dot_dimension_numbers<[1], [0], [0], [1], [0, 0, 1, 1], [], []>} : vector<160x576xbf16>, vector<576x128xbf16>, vector<160x128xf32> -> vector<160x128xf32>
    %58 = vector.broadcast %2 : vector<1x128xf32> to vector<160x128xf32>
    %59 = arith.addf %57, %58 : vector<160x128xf32>
    %cst_44 = arith.constant 0.000000e+00 : f32
    %60 = vector.broadcast %cst_44 : f32 to vector<160x128xf32>
    %61 = arith.maximumf %59, %60 : vector<160x128xf32>
    %62 = vector.shape_cast %61 : vector<160x128xf32> to vector<5x2x16x128xf32>
    %c0_45 = arith.constant 0 : index
    %c0_46 = arith.constant 0 : index
    %c0_47 = arith.constant 0 : index
    %c0_48 = arith.constant 0 : index
    %63 = vector.load %arg10[%c0_45, %c0_46, %c0_47, %c0_48] : memref<5x2x16x128xf32, #tpu.memory_space<vmem>>, vector<5x2x16x128xf32>
    tpu.vector_store %arg10[%c0_45, %c0_46, %c0_47, %c0_48], %62 {strides = array<i32>} : memref<5x2x16x128xf32, #tpu.memory_space<vmem>>, vector<5x2x16x128xf32>,
    %c0_49 = arith.constant 0 : index
    %c0_50 = arith.constant 0 : index
    %c0_51 = arith.constant 0 : index
    %c0_52 = arith.constant 0 : index
    %64 = vector.load %arg10[%c0_49, %c0_50, %c0_51, %c0_52] : memref<5x2x16x128xf32, #tpu.memory_space<vmem>>, vector<5x1x16x128xf32>
    %65 = vector.shape_cast %64 : vector<5x1x16x128xf32> to vector<5x16x128xf32>
    %c0_53 = arith.constant 0 : index
    %c1_54 = arith.constant 1 : index
    %c0_55 = arith.constant 0 : index
    %c0_56 = arith.constant 0 : index
    %66 = vector.load %arg10[%c0_53, %c1_54, %c0_55, %c0_56] : memref<5x2x16x128xf32, #tpu.memory_space<vmem>>, vector<5x1x16x128xf32>
    %67 = vector.shape_cast %66 : vector<5x1x16x128xf32> to vector<5x16x128xf32>
    %68 = arith.maximumf %65, %67 : vector<5x16x128xf32>
    %c0_57 = arith.constant 0 : index
    %c0_58 = arith.constant 0 : index
    %c0_59 = arith.constant 0 : index
    %69 = vector.load %arg11[%c0_57, %c0_58, %c0_59] : memref<5x16x128xf32, #tpu.memory_space<vmem>>, vector<5x16x128xf32>
    tpu.vector_store %arg11[%c0_57, %c0_58, %c0_59], %68 {strides = array<i32>} : memref<5x16x128xf32, #tpu.memory_space<vmem>>, vector<5x16x128xf32>,
    %c0_60 = arith.constant 0 : index
    %c0_61 = arith.constant 0 : index
    %c0_62 = arith.constant 0 : index
    %70 = tpu.strided_load %arg11[%c0_60, %c0_61, %c0_62] {strides = array<i32: 1, 2, 1>} : memref<5x16x128xf32, #tpu.memory_space<vmem>>, vector<5x5x128xf32>
    %c0_63 = arith.constant 0 : index
    %c1_64 = arith.constant 1 : index
    %c0_65 = arith.constant 0 : index
    %71 = tpu.strided_load %arg11[%c0_63, %c1_64, %c0_65] {strides = array<i32: 1, 2, 1>} : memref<5x16x128xf32, #tpu.memory_space<vmem>>, vector<5x5x128xf32>
    %72 = arith.maximumf %70, %71 : vector<5x5x128xf32>
    %cst_66 = arith.constant dense<0.000000e+00> : vector<5x128xf32>
    %73 = vector.multi_reduction <add>, %72, %cst_66 [0] : vector<5x5x128xf32> to vector<5x128xf32>
    %cst_67 = arith.constant dense<0.000000e+00> : vector<128xf32>
    %74 = vector.multi_reduction <add>, %73, %cst_67 [0] : vector<5x128xf32> to vector<128xf32>
    %75 = vector.shape_cast %74 : vector<128xf32> to vector<1x128xf32>
    %cst_68 = arith.constant 4.000000e-02 : f32
    %76 = vector.broadcast %cst_68 : f32 to vector<1x128xf32>
    %77 = arith.mulf %75, %76 : vector<1x128xf32>
    %78 = arith.truncf %77 : vector<1x128xf32> to vector<1x128xbf16>
    %c0_69 = arith.constant 0 : index
    %c0_70 = arith.constant 0 : index
    %79 = vector.load %arg5[%c0_69, %c0_70] : memref<128x10xbf16, #tpu.memory_space<vmem>>, vector<128x10xbf16>
    %cst_71 = arith.constant dense<0.000000e+00> : vector<1x10xf32>
    %80 = tpu.matmul %78, %79, %cst_71 {dimension_numbers = #tpu.dot_dimension_numbers<[1], [0], [0], [1], [0, 0, 1, 1], [], []>} : vector<1x128xbf16>, vector<128x10xbf16>, vector<1x10xf32> -> vector<1x10xf32>
    %81 = arith.addf %80, %3 : vector<1x10xf32>
    %c0_72 = arith.constant 0 : index
    %c0_73 = arith.constant 0 : index
    %c0_74 = arith.constant 0 : index
    %82 = vector.load %arg7[%c0_72, %c0_73, %c0_74] : memref<1x1x10xf32, #tpu.memory_space<vmem>>, vector<1x1x10xf32>
    %83 = vector.shape_cast %82 : vector<1x1x10xf32> to vector<1x10xf32>
    %84 = vector.shape_cast %81 : vector<1x10xf32> to vector<1x1x10xf32>
    tpu.vector_store %arg7[%c0_72, %c0_73, %c0_74], %84 {strides = array<i32>} : memref<1x1x10xf32, #tpu.memory_space<vmem>>, vector<1x1x10xf32>,
    return
  }
  func.func @transform_0(%arg0: i32) -> (i32, i32, i32) {
    %c0_i32 = arith.constant 0 : i32
    %c0_i32_0 = arith.constant 0 : i32
    %c0_i32_1 = arith.constant 0 : i32
    return %arg0, %c0_i32, %c0_i32_0 : i32, i32, i32
  }
  func.func @transform_1(%arg0: i32) -> (i32, i32) {
    %c0_i32 = arith.constant 0 : i32
    %c0_i32_0 = arith.constant 0 : i32
    %c0_i32_1 = arith.constant 0 : i32
    return %c0_i32, %c0_i32_0 : i32, i32
  }
  func.func @transform_2(%arg0: i32) -> (i32, i32) {
    %c0_i32 = arith.constant 0 : i32
    %c0_i32_0 = arith.constant 0 : i32
    %c0_i32_1 = arith.constant 0 : i32
    return %c0_i32, %c0_i32_0 : i32, i32
  }
  func.func @transform_3(%arg0: i32) -> (i32, i32) {
    %c0_i32 = arith.constant 0 : i32
    %c0_i32_0 = arith.constant 0 : i32
    %c0_i32_1 = arith.constant 0 : i32
    return %c0_i32, %c0_i32_0 : i32, i32
  }
  func.func @transform_4(%arg0: i32) -> (i32, i32) {
    %c0_i32 = arith.constant 0 : i32
    %c0_i32_0 = arith.constant 0 : i32
    %c0_i32_1 = arith.constant 0 : i32
    return %c0_i32, %c0_i32_0 : i32, i32
  }
  func.func @transform_5(%arg0: i32) -> (i32, i32) {
    %c0_i32 = arith.constant 0 : i32
    %c0_i32_0 = arith.constant 0 : i32
    %c0_i32_1 = arith.constant 0 : i32
    return %c0_i32, %c0_i32_0 : i32, i32
  }
  func.func @transform_6(%arg0: i32) -> (i32, i32, i32) {
    %c0_i32 = arith.constant 0 : i32
    %c0_i32_0 = arith.constant 0 : i32
    %c0_i32_1 = arith.constant 0 : i32
    return %arg0, %c0_i32, %c0_i32_0 : i32, i32, i32
  }
}

</mosaic_0001>

<bundles_post_ra>
// kernel: base_model_forward.1
= control target key start
LH: loop header
LB: loop body
LE: loop exit
PB: predicated region body
PF: predicated region fallthrough
CT: control target
= control target key end

     0   :  { %11 = vsyncpa [#allocation7], 0  ;;  %s13921_s0 = inlined_call_operand.vmem [shape: bf16[2,832,147], index: 0, kind: input, shape index: {}]   ;;  %s13922_s1 = inlined_call_operand.vmem [shape: bf16[147,32], index: 1, kind: input, shape index: {}]   ;;  %s13923_s2 = inlined_call_operand.vmem [shape: bf16[288,64], index: 2, kind: input, shape index: {}]   ;;  %s13924_s3 = inlined_call_operand.vmem [shape: bf16[576,128], index: 3, kind: input, shape index: {}]   ;;  %s13925_s4 = inlined_call_operand.vmem [shape: bf16[128,10], index: 4, kind: input, shape index: {}]   ;;  %s13926_s5 = inlined_call_operand.vmem [shape: f32[4,128], index: 5, kind: input, shape index: {}]   ;;  %s13927_s6 = inlined_call_operand.hbm [shape: f32[2,1,10], index: 6, kind: output, shape index: {}]  }
   0x1   :  { %13 = vsyncpa [#allocation7 + $0x1], 0  ;;  %s9158_s21 = smov 0   ;;  %s9160_s22 = smov 0  }
   0x2   :  { %s9162_s23 = smov 0   ;;  %s9164_s24 = smov 0  }
   0x3 LB: > { %s9179_s25 = sadd.s32 4294967295, %s9113_s24   ;;  %s6900_s26 = sadd.s32 4294967294, %s9113_s24   ;;  %s9113_s24 = sphi %s9164_s24, %s14591_s24   ;;  %s9109_s23 = sphi %s9162_s23, %s14590_s23   ;;  %s9105_s22 = sphi %s9160_s22, %s14589_s22   ;;  %s9101_s21 = sphi %s9158_s21, %s14588_s21  }
   0x4   : > { %s9183_s27 = sadd.s32 1, %s9113_s24   ;;  %s157_s28 = sadd.s32 1, %s9109_s23 }
   0x5   : > { %s154_s29 = ssub.s32 %s9113_s24, %s9183_s27  ;;  %p167_p0 = scmp.ne.s32.totalorder %s9109_s23, %s9105_s22 }
   0x6   : > { %p155_p1 = scmp.eq.s32.totalorder %s154_s29, 0  ;;  %p168_p2 = scmp.eq.s32.totalorder %s9179_s25, 1 }
   0x7   : > { %p173_p3 = scmp.ne.s32.totalorder %s9105_s22, %s9101_s21  ;;  %p174_p4 = scmp.eq.s32.totalorder %s6900_s26, 1 }
   0x8   : > { %s9194_s30 = scalar_select %p155_p1, %s9109_s23, %s157_s28  }
   0x9   : > { %p9196_p5 = por %p168_p2, %p167_p0  ;;  %p9200_p6 = por %p174_p4, %p173_p3 }
   0xa   : > { %p6903_p7 = scmp.ge.s32.totalorder %s9113_s24, 1  ;;  %p215_p8 = scmp.lt.s32.totalorder %s9113_s24, 3 }
   0xc   : > { %p216_p9 = pnand %p6903_p7, %p215_p8 }
   0xe   : > { %219 = sbr.rel (%p216_p9) target bundleno = 1892 (0x764), region = 44 }
  0x15   : > { %v8809_v0 = vld [vmem:[%s13922_s1] sm:$0xff]   ;;  %v9115_v1 = vmov 0   ;;  %v8810_v2 = vld [vmem:[%s13922_s1 + $0x8] sm:$0xff]   ;;  %v8811_v3 = vld [vmem:[%s13922_s1 + $0x10] sm:$0xff]   ;;  %p244_p10 = scmp.lt.s32.totalorder %s9179_s25, 1  ;;  %vm906_vm0 = vcmask 154624  }
  0x16   : > { %1070 = vmatprep.subr.bf16.mxu0 %v9115_v1  ;;  %4332 = vmatprep.subr.bf16.mxu1 %v9115_v1  ;;  %v8812_v4 = vld [vmem:[%s13922_s1 + $0x18] sm:$0xff]   ;;  %v8813_v5 = vld [vmem:[%s13922_s1 + $0x20] sm:$0xff]   ;;  %v8814_v7 = vld [vmem:[%s13922_s1 + $0x28] sm:$0xff]   ;;  %vm1063_vm1 = vcmask 1040384   ;;  %vm1064_vm2 = vcmask 1041408   ;;  %v9116_v10 = vmov 65535  }
  0x17   : > { %1071 = vmatpush1.bf16.msra.mxu0 %v8809_v0  ;;  %s245_s15 = scalar_select %p244_p10, %s9179_s25, 1  ;;  %v8815_v8 = vld [vmem:[%s13922_s1 + $0x30] sm:$0xff]   ;;  %v8816_v9 = vld [vmem:[%s13922_s1 + $0x38] sm:$0xff]   ;;  %v1065_v11 = vsel %vm1063_vm1, 4294967295, %v9116_v10  ;;  %v8817_v12 = vld [vmem:[%s13922_s1 + $0x40] sm:$0xff]   ;;  %vm2104_vm3 = vcmask 1045504  }
  0x18   : > { %1072 = vmatprep.subr.bf16.mxu0 %v9115_v1  ;;  %v8818_v13 = vld [vmem:[%s13922_s1 + $0x48] ss:$0 sps:$4 sm:$0x33]   ;;  %v1066_v14 = vsel %vm1064_vm2, %v1065_v11, 0  ;;  %v8942_v11 = vld [vmem:[%s13923_s2 + $0x20] sm:$0xff]   ;;  %vm1719_vm4 = vcmask 1046528  }
  0x19   : > { %s7522_s18 = smul.u32 832, %s245_s15  ;;  %v1068_v15 = vand.u32 %v8818_v13, %v1066_v14  ;;  %v9363_v14 = vld [vmem:[%s13926_s5] ss:$0 sm:$0xff]  ;;  %s9117_s13 = smov 64   ;;  %vm3533_vm5 = vcmask 261120   ;;  %vm3606_vm6 = vcmask 523264  }
  0x1a   : > { %s9118_s14 = smov 32   ;;  %s9119_s19 = smov 96   ;;  %vm3679_vm7 = vcmask 785408   ;;  %vm5383_vm8 = vcmask 519168   ;;  %vm9121_vm9 = vmmov 0   ;;  %vm6707_vm10 = vcmask 1044480  }
  0x1b   : > { %1073 = vmatpush1.bf16.msra.mxu0 %v8810_v2  ;;  %s9228_s26 = scalar_lea.vmem %s13921_s0, %s7522_s18  ;;  %s242_s29 = sand.u32 1, %s9105_s22   ;;  %vm6830_vm11 = vcmask 73728  }
  0x1c   : > { %1074 = vmatprep.subr.bf16.mxu0 %v9115_v1  ;;  %v8821_v6 = vld [vmem:[%s9228_s26 + $0x4] ss:$8 sps:$4 sm:$0xff]   ;;  %v8819_v16 = vld [vmem:[%s9228_s26] ss:$8 sps:$4 sm:$0xff]   ;;  %v8822_v17 = vld [vmem:[%s9228_s26 + $0x14] ss:$8 sps:$4 sm:$0xff]  }
  0x1d   : > { %7020 = vmatprep.mubr.msk.bf16.mxu0 %vm906_vm0, %v8821_v6  ;;  %v8824_v18 = vld [vmem:[%s9228_s26 + $0x10] ss:$8 sps:$4 sm:$0xff]   ;;  %v8825_v19 = vld [vmem:[%s9228_s26 + $0x24] ss:$8 sps:$4 sm:$0xff]   ;;  %v8827_v20 = vld [vmem:[%s9228_s26 + $0x20] ss:$8 sps:$4 sm:$0xff]  }
  0x1e   : > { %v8828_v21 = vld [vmem:[%s9228_s26 + $0x34] ss:$8 sps:$4 sm:$0xff]   ;;  %v8830_v22 = vld [vmem:[%s9228_s26 + $0x30] ss:$8 sps:$4 sm:$0xff]   ;;  %v8831_v23 = vld [vmem:[%s9228_s26 + $0x44] ss:$8 sps:$4 sm:$0xff]  }
  0x1f   : > { %1075 = vmatpush1.bf16.msra.mxu0 %v8811_v3  ;;  %v8833_v24 = vld [vmem:[%s9228_s26 + $0x40] ss:$8 sps:$4 sm:$0xff]   ;;  %v8834_v25 = vld [vmem:[%s9228_s26 + $0x54] ss:$8 sps:$4 sm:$0xff]   ;;  %v8836_v26 = vld [vmem:[%s9228_s26 + $0x50] ss:$8 sps:$4 sm:$0xff]  }
  0x20   : > { %1076 = vmatprep.subr.bf16.mxu0 %v9115_v1  ;;  %v8837_v27 = vld [vmem:[%s9228_s26 + $0x64] ss:$8 sps:$4 sm:$0xff]   ;;  %v8839_v28 = vld [vmem:[%s9228_s26 + $0x60] ss:$8 sps:$4 sm:$0xff]   ;;  %v8840_v29 = vld [vmem:[%s9228_s26 + $0x74] ss:$8 sps:$4 sm:$0xff]  }
  0x21   : > { %v8842_v30 = vld [vmem:[%s9228_s26 + $0x70] ss:$8 sps:$4 sm:$0xff]   ;;  %v8843_v31 = vld [vmem:[%s9228_s26 + $0x84] ss:$8 sps:$4 sm:$0xff]   ;;  %v8845_v32 = vld [vmem:[%s9228_s26 + $0x80] ss:$8 sps:$4 sm:$0xff]  }
  0x22   : > { %v8846_v33 = vld [vmem:[%s9228_s26 + $0x94] ss:$8 sps:$4 sm:$0xff]   ;;  %v8848_v34 = vld [vmem:[%s9228_s26 + $0x90] ss:$8 sps:$4 sm:$0xff]   ;;  %v8849_v35 = vld [vmem:[%s9228_s26 + $0xa4] ss:$8 sps:$4 sm:$0xff]  }
  0x23   : > { %1077 = vmatpush1.bf16.msra.mxu0 %v8812_v4  ;;  %v8851_v36 = vld [vmem:[%s9228_s26 + $0xa0] ss:$8 sps:$4 sm:$0xff]   ;;  %v8852_v37 = vld [vmem:[%s9228_s26 + $0xb4] ss:$8 sps:$4 sm:$0xff]   ;;  %v8854_v38 = vld [vmem:[%s9228_s26 + $0xb0] ss:$8 sps:$4 sm:$0xff]  }
  0x24   : > { %1078 = vmatprep.subr.bf16.mxu0 %v9115_v1  ;;  %v8855_v39 = vld [vmem:[%s9228_s26 + $0xc4] ss:$8 sps:$4 sm:$0xff]   ;;  %v8857_v40 = vld [vmem:[%s9228_s26 + $0xc0] ss:$8 sps:$4 sm:$0xff]   ;;  %v8858_v41 = vld [vmem:[%s9228_s26 + $0xd4] ss:$8 sps:$4 sm:$0xff]  }
  0x25   : > { %v8860_v42 = vld [vmem:[%s9228_s26 + $0xd0] ss:$8 sps:$4 sm:$0xff]   ;;  %v8861_v43 = vld [vmem:[%s9228_s26 + $0xe4] ss:$8 sps:$4 sm:$0xff]   ;;  %v8863_v44 = vld [vmem:[%s9228_s26 + $0xe0] ss:$8 sps:$4 sm:$0xff]  }
  0x26   : > { %v8864_v45 = vld [vmem:[%s9228_s26 + $0xf4] ss:$8 sps:$4 sm:$0xff]   ;;  %v8866_v46 = vld [vmem:[%s9228_s26 + $0xf0] ss:$8 sps:$4 sm:$0xff]   ;;  %v8867_v47 = vld [vmem:[%s9228_s26 + $0x104] ss:$8 sps:$4 sm:$0xff]  }
  0x27   : > { %1079 = vmatpush1.bf16.msra.mxu0 %v8813_v5  ;;  %v8869_v48 = vld [vmem:[%s9228_s26 + $0x100] ss:$8 sps:$4 sm:$0xff]   ;;  %v8870_v49 = vld [vmem:[%s9228_s26 + $0x114] ss:$8 sps:$4 sm:$0xff]   ;;  %v8872_v50 = vld [vmem:[%s9228_s26 + $0x110] ss:$8 sps:$4 sm:$0xff]  }
  0x28   : > { %1080 = vmatprep.subr.bf16.mxu0 %v9115_v1  ;;  %v8873_v51 = vld [vmem:[%s9228_s26 + $0x124] ss:$8 sps:$4 sm:$0xff]   ;;  %v8875_v52 = vld [vmem:[%s9228_s26 + $0x120] ss:$8 sps:$4 sm:$0xff]   ;;  %v8876_v53 = vld [vmem:[%s9228_s26 + $0x134] ss:$8 sps:$4 sm:$0xff]  }
  0x29   : > { %v8878_v54 = vld [vmem:[%s9228_s26 + $0x130] ss:$8 sps:$4 sm:$0xff]   ;;  %v8879_v55 = vld [vmem:[%s9228_s26 + $0x144] ss:$8 sps:$4 sm:$0xff]   ;;  %v8881_v56 = vld [vmem:[%s9228_s26 + $0x140] ss:$8 sps:$4 sm:$0xff]  }
  0x2a   : > { %v8882_v57 = vld [vmem:[%s9228_s26 + $0x154] ss:$8 sps:$4 sm:$0xff]   ;;  %v8884_v58 = vld [vmem:[%s9228_s26 + $0x150] ss:$8 sps:$4 sm:$0xff]   ;;  %v8885_v59 = vld [vmem:[%s9228_s26 + $0x164] ss:$8 sps:$4 sm:$0xff]  }
  0x2b   : > { %1081 = vmatpush1.bf16.msra.mxu0 %v8814_v7  ;;  %v8887_v60 = vld [vmem:[%s9228_s26 + $0x160] ss:$8 sps:$4 sm:$0xff]   ;;  %v8888_v61 = vld [vmem:[%s9228_s26 + $0x174] ss:$8 sps:$4 sm:$0xff]   ;;  %v8890_v62 = vld [vmem:[%s9228_s26 + $0x170] ss:$8 sps:$4 sm:$0xff]  }
  0x2c   : > { %1082 = vmatprep.subr.bf16.mxu0 %v9115_v1  ;;  %v8891_v63 = vld [vmem:[%s9228_s26 + $0x184] ss:$8 sps:$4 sm:$0xff]   ;;  %v8893_v0 = vld [vmem:[%s9228_s26 + $0x180] ss:$8 sps:$4 sm:$0xff]   ;;  %v8894_v2 = vld [vmem:[%s9228_s26 + $0x194] ss:$8 sps:$4 sm:$0xff]  }
  0x2d   : > { %v8933_v3 = vld [vmem:[%s13923_s2] sm:$0xff]   ;;  %v8934_v4 = vld [vmem:[%s13923_s2 + $0x8] sm:$0xff]   ;;  %v8896_v5 = vld [vmem:[%s9228_s26 + $0x190] ss:$8 sps:$4 sm:$0xff]   ;;  %s7182_s11 = sshll.u32 %s9179_s25, 4  ;;  %s243_s12 = scalar_lea.vmem [#allocation6], %s242_s29 }
  0x2e   : > { %4333 = vmatpush1.bf16.msra.mxu1 %v8933_v3  ;;  %v8897_v6 = vld [vmem:[%s9228_s26 + $0x1a4] ss:$8 sps:$4 sm:$0xff]   ;;  %v8938_v7 = vld [vmem:[%s13923_s2 + $0x10] sm:$0xff]   ;;  %s6845_s15 = sshll.u32 %s243_s12, 4  ;;  %s13879_s16 = scalar_lea.hbm %s13927_s6, %s7182_s11  ;;  %s13881_s15 = int_to_ptr.vmem [resolvable:$true] %s6845_s15 }
  0x2f   : > { %1083 = vmatpush1.bf16.msra.mxu0 %v8815_v8  ;;  %4334 = vmatprep.subr.bf16.mxu1 %v9115_v1  ;;  %v8939_v8 = vld [vmem:[%s13923_s2 + $0x18] sm:$0xff]   ;;  %s6833_s25 = scalar_lea.sflag [#allocation7], %s242_s29  ;;  %s9051_s17 = scalar_lea.vmem %s13881_s15, 16 }
  0x30   : > { %1084 = vmatprep.subr.bf16.mxu0 %v9115_v1  ;;  %v8900_v10 = vld [vmem:[%s9228_s26 + $0x1b4] ss:$8 sps:$4 sm:$0xff]   ;;  %p9052_p11 = scmp.ne.s32.totalorder %s13881_s15, %s9051_s17  ;;  %s9122_s18 = smov [#allocation6]  }
  0x31   : > { %s9055_s20 = sshll.u32 %s9122_s18, 4  ;;  %s9056_s20 = int_to_ptr.vmem [resolvable:$false] %s9055_s20 }
  0x32   : > { %4335 = vmatpush1.bf16.msra.mxu1 %v8934_v4  ;;  %p9053_p12 = pnand %p9052_p11, %p9196_p5  ;;  %p9058_p0 = scmp.lt.s32.totalorder %s13881_s15, %s9056_s20 }
  0x33   : > { %1085 = vmatpush1.bf16.msra.mxu0 %v8816_v9  ;;  %4336 = vmatprep.subr.bf16.mxu1 %v9115_v1  ;;  %v8899_v9 = vld [vmem:[%s9228_s26 + $0x1a0] ss:$8 sps:$4 sm:$0xff]  }
  0x34   : > { %1086 = vmatprep.subr.bf16.mxu0 %v9115_v1  ;;  %p9054_p13 = pneg %p9053_p12 }
  0x36   : > { %4337 = vmatpush1.bf16.msra.mxu1 %v8938_v7 }
  0x37   : > { %1087 = vmatpush1.bf16.msra.mxu0 %v8817_v12  ;;  %4338 = vmatprep.subr.bf16.mxu1 %v9115_v1  ;;  %v8944_v12 = vld [vmem:[%s13923_s2 + $0x28] sm:$0xff]  }
  0x38   : > { %1088 = vmatprep.subr.bf16.mxu0 %v9115_v1 }
  0x3a   : > { %4339 = vmatpush1.bf16.msra.mxu1 %v8939_v8 }
  0x3b   : > { %1089 = vmatpush1.bf16.msra.mxu0 %v1068_v15  ;;  %4340 = vmatprep.subr.bf16.mxu1 %v9115_v1 }
  0x3e   : > { %1103 = vmatmul.mubr.bf16.vlgmr.msra.gmra.mrb[0].mxu0 %v8819_v16  ;;  %4341 = vmatpush1.bf16.msra.mxu1 %v8942_v11  ;;  %v8902_v16 = vld [vmem:[%s9228_s26 + $0x1b0] ss:$8 sps:$4 sm:$0xff]  }
  0x3f   : > { %7021 = vmatprep.mubr.msk.bf16.mxu0 %vm906_vm0, %v8822_v17  ;;  %4342 = vmatprep.subr.bf16.mxu1 %v9115_v1 }
  0x42   : > { %4343 = vmatpush1.bf16.msra.mxu1 %v8944_v12 }
  0x43   : > { %4344 = vmatprep.subr.bf16.mxu1 %v9115_v1 }
  0x46   : > { %1111 = vmatmul.mubr.bf16.gmra.mrb[4].mxu0 %v8824_v18  ;;  %v8903_v18 = vld [vmem:[%s9228_s26 + $0x1c4] ss:$8 sps:$4 sm:$0xff]  }
  0x47   : > { %7022 = vmatprep.mubr.msk.bf16.mxu0 %vm906_vm0, %v8825_v19  ;;  %v8945_v19 = vld [vmem:[%s13923_s2 + $0x30] sm:$0xff]  }
  0x48   : > { %4345 = vmatpush1.bf16.msra.mxu1 %v8945_v19  ;;  %v8960_v19 = vld [vmem:[%s13923_s2 + $0x60] sm:$0xff]  }
  0x49   : > { %4346 = vmatprep.subr.bf16.mxu1 %v9115_v1 }
  0x4e   : > { %1119 = vmatmul.mubr.bf16.gmra.mrb[8].mxu0 %v8827_v20 }
  0x4f   : > { %7023 = vmatprep.mubr.msk.bf16.mxu0 %vm906_vm0, %v8828_v21 }
  0x56   : > { %1127 = vmatmul.mubr.bf16.gmra.mrb[12].mxu0 %v8830_v22 }
  0x57   : > { %7024 = vmatprep.mubr.msk.bf16.mxu0 %vm906_vm0, %v8831_v23 }
  0x5e   : > { %1135 = vmatmul.mubr.bf16.gmra.mrb[16].mxu0 %v8833_v24  ;;  %v8949_v24 = vld [vmem:[%s13923_s2 + $0x38] sm:$0xff]  }
  0x5f   : > { %7025 = vmatprep.mubr.msk.bf16.mxu0 %vm906_vm0, %v8834_v25  ;;  %4347 = vmatpush1.bf16.msra.mxu1 %v8949_v24 }
  0x60   : > { %4348 = vmatprep.subr.bf16.mxu1 %v9115_v1 }
  0x66   : > { %1143 = vmatmul.mubr.bf16.gmra.mrb[20].mxu0 %v8836_v26 }
  0x67   : > { %7026 = vmatprep.mubr.msk.bf16.mxu0 %vm906_vm0, %v8837_v27 }
  0x6e   : > { %1151 = vmatmul.mubr.bf16.gmra.mrb[24].mxu0 %v8839_v28 }
  0x6f   : > { %7027 = vmatprep.mubr.msk.bf16.mxu0 %vm906_vm0, %v8840_v29  ;;  %v8905_v29 = vld [vmem:[%s9228_s26 + $0x1c0] ss:$8 sps:$4 sm:$0xff]  }
  0x76   : > { %1159 = vmatmul.mubr.bf16.gmra.mrb[28].mxu0 %v8842_v30 }
  0x77   : > { %7028 = vmatprep.mubr.msk.bf16.mxu0 %vm906_vm0, %v8843_v31  ;;  %v8906_v31 = vld [vmem:[%s9228_s26 + $0x1d4] ss:$8 sps:$4 sm:$0xff]  }
  0x7e   : > { %1167 = vmatmul.mubr.bf16.gmra.mrb[32].mxu0 %v8845_v32 }
  0x7f   : > { %7029 = vmatprep.mubr.msk.bf16.mxu0 %vm906_vm0, %v8846_v33 }
  0x86   : > { %1175 = vmatmul.mubr.bf16.gmra.mrb[36].mxu0 %v8848_v34 }
  0x87   : > { %7030 = vmatprep.mubr.msk.bf16.mxu0 %vm906_vm0, %v8849_v35 }
  0x8e   : > { %1183 = vmatmul.mubr.bf16.gmra.mrb[40].mxu0 %v8851_v36  ;;  %v8950_v36 = vld [vmem:[%s13923_s2 + $0x40] sm:$0xff]  }
  0x8f   : > { %7031 = vmatprep.mubr.msk.bf16.mxu0 %vm906_vm0, %v8852_v37  ;;  %4349 = vmatpush1.bf16.msra.mxu1 %v8950_v36 }
  0x90   : > { %4350 = vmatprep.subr.bf16.mxu1 %v9115_v1 }
  0x96   : > { %1191 = vmatmul.mubr.bf16.gmra.mrb[44].mxu0 %v8854_v38 }
  0x97   : > { %7032 = vmatprep.mubr.msk.bf16.mxu0 %vm906_vm0, %v8855_v39 }
  0x9e   : > { %1199 = vmatmul.mubr.bf16.gmra.mrb[48].mxu0 %v8857_v40 }
  0x9f   : > { %7033 = vmatprep.mubr.msk.bf16.mxu0 %vm906_vm0, %v8858_v41 }
  0xa6   : > { %1207 = vmatmul.mubr.bf16.gmra.mrb[52].mxu0 %v8860_v42 }
  0xa7   : > { %7034 = vmatprep.mubr.msk.bf16.mxu0 %vm906_vm0, %v8861_v43 }
  0xae   : > { %1215 = vmatmul.mubr.bf16.gmra.mrb[56].mxu0 %v8863_v44 }
  0xaf   : > { %7035 = vmatprep.mubr.msk.bf16.mxu0 %vm906_vm0, %v8864_v45 }
  0xb6   : > { %1223 = vmatmul.mubr.bf16.gmra.mrb[60].mxu0 %v8866_v46  ;;  %v8954_v46 = vld [vmem:[%s13923_s2 + $0x48] sm:$0xff]  }
  0xb7   : > { %7036 = vmatprep.mubr.msk.bf16.mxu0 %vm906_vm0, %v8867_v47  ;;  %4351 = vmatpush1.bf16.msra.mxu1 %v8954_v46  ;;  %v8965_v46 = vld [vmem:[%s13923_s2 + $0x70] sm:$0xff]  }
  0xb8   : > { %4352 = vmatprep.subr.bf16.mxu1 %v9115_v1 }
  0xbe   : > { %1231 = vmatmul.mubr.bf16.gmra.mrb[64].mxu0 %v8869_v48 }
  0xbf   : > { %7037 = vmatprep.mubr.msk.bf16.mxu0 %vm906_vm0, %v8870_v49 }
  0xc6   : > { %1239 = vmatmul.mubr.bf16.gmra.mrb[68].mxu0 %v8872_v50 }
  0xc7   : > { %7038 = vmatprep.mubr.msk.bf16.mxu0 %vm906_vm0, %v8873_v51 }
  0xce   : > { %1247 = vmatmul.mubr.bf16.gmra.mrb[72].mxu0 %v8875_v52 }
  0xcf   : > { %7039 = vmatprep.mubr.msk.bf16.mxu0 %vm906_vm0, %v8876_v53  ;;  %v8908_v53 = vld [vmem:[%s9228_s26 + $0x1d0] ss:$8 sps:$4 sm:$0xff]  }
  0xd6   : > { %1255 = vmatmul.mubr.bf16.gmra.mrb[76].mxu0 %v8878_v54 }
  0xd7   : > { %7040 = vmatprep.mubr.msk.bf16.mxu0 %vm906_vm0, %v8879_v55  ;;  %v8909_v55 = vld [vmem:[%s9228_s26 + $0x1e4] ss:$8 sps:$4 sm:$0xff]  }
  0xde   : > { %1263 = vmatmul.mubr.bf16.gmra.mrb[80].mxu0 %v8881_v56 }
  0xdf   : > { %7041 = vmatprep.mubr.msk.bf16.mxu0 %vm906_vm0, %v8882_v57 }
  0xe6   : > { %1271 = vmatmul.mubr.bf16.gmra.mrb[84].mxu0 %v8884_v58 }
  0xe7   : > { %7042 = vmatprep.mubr.msk.bf16.mxu0 %vm906_vm0, %v8885_v59  ;;  %v8955_v59 = vld [vmem:[%s13923_s2 + $0x50] sm:$0xff]  }
  0xe8   : > { %4353 = vmatpush1.bf16.msra.mxu1 %v8955_v59 }
  0xe9   : > { %4354 = vmatprep.subr.bf16.mxu1 %v9115_v1 }
  0xee   : > { %1279 = vmatmul.mubr.bf16.gmra.mrb[88].mxu0 %v8887_v60 }
  0xef   : > { %7043 = vmatprep.mubr.msk.bf16.mxu0 %vm906_vm0, %v8888_v61 }
  0xf6   : > { %1287 = vmatmul.mubr.bf16.gmra.mrb[92].mxu0 %v8890_v62 }
  0xf7   : > { %7044 = vmatprep.mubr.msk.bf16.mxu0 %vm906_vm0, %v8891_v63 }
  0xfe   : > { %1295 = vmatmul.mubr.bf16.gmra.mrb[96].mxu0 %v8893_v0 }
  0xff   : > { %7045 = vmatprep.mubr.msk.bf16.mxu0 %vm906_vm0, %v8894_v2  ;;  %v8959_v2 = vld [vmem:[%s13923_s2 + $0x58] sm:$0xff]  }
 0x100   : > { %4355 = vmatpush1.bf16.msra.mxu1 %v8959_v2 }
 0x101   : > { %4356 = vmatprep.subr.bf16.mxu1 %v9115_v1 }
 0x104   : > { %4357 = vmatpush1.bf16.msra.mxu1 %v8960_v19 }
 0x105   : > { %4358 = vmatprep.subr.bf16.mxu1 %v9115_v1 }
 0x106   : > { %1303 = vmatmul.mubr.bf16.gmra.mrb[100].mxu0 %v8896_v5 }
 0x107   : > { %7046 = vmatprep.mubr.msk.bf16.mxu0 %vm906_vm0, %v8897_v6 }
 0x10e   : > { %1311 = vmatmul.mubr.bf16.gmra.mrb[104].mxu0 %v8899_v9  ;;  %v8911_v9 = vld [vmem:[%s9228_s26 + $0x1e0] ss:$8 sps:$4 sm:$0xff]  }
 0x10f   : > { %7047 = vmatprep.mubr.msk.bf16.mxu0 %vm906_vm0, %v8900_v10 }
 0x111   : > { %v1104_v13 = vpop.f32.mrb[0].mxu0 }
 0x112   : > { %v1106_v15 = vpop.f32.mrb[1].mxu0  ;;  %v1105_v22 = vadd.f32 %v9363_v14, %v1104_v13 }
 0x113   : > { %v1107_v17 = vpop.f32.mrb[2].mxu0  ;;  %v8912_v15 = vld [vmem:[%s9228_s26 + $0x1f4] ss:$8 sps:$4 sm:$0xff]  }
 0x114   : > { %v1108_v20 = vadd.f32 %v9363_v14, %v1107_v17  ;;  %v1109_v21 = vpop.f32.mrb[3].mxu0  ;;  %v9380_v25 = vmax.f32 %v1105_v22, 0.0 }
 0x116   : > { %1319 = vmatmul.mubr.bf16.gmra.mrb[108].mxu0 %v8902_v16  ;;  %v9375_v23 = vmax.f32 %v1108_v20, 0.0  ;;  %v2105_v37 = vrot.slane %v9380_v25, 2  ;;  %v1720_v40 = vrot.slane %v9380_v25, 1 }
 0x117   : > { %7048 = vmatprep.mubr.msk.bf16.mxu0 %vm906_vm0, %v8903_v18 }
 0x118   : > { %v2106_v34 = vrot.slane %v9375_v23, 2  ;;  %v1721_v35 = vrot.slane %v9375_v23, 1 }
 0x119   : > { %v1112_v26 = vpop.f32.mrb[4].mxu0 }
 0x11a   : > { %v1113_v27 = vadd.f32 %v9363_v14, %v1112_v26  ;;  %v1114_v28 = vpop.f32.mrb[5].mxu0  ;;  %v2107_v42 = vsel %vm2104_vm3, %v2105_v37, %v2106_v34  ;;  %v1722_v44 = vsel %vm1719_vm4, %v1720_v40, %v1721_v35 }
 0x11b   : > { %v1115_v30 = vpop.f32.mrb[6].mxu0 }
 0x11c   : > { %v9386_v32 = vmax.f32 %v1113_v27, 0.0  ;;  %v1117_v33 = vpop.f32.mrb[7].mxu0  ;;  %v1116_v38 = vadd.f32 %v9363_v14, %v1115_v30  ;;  %v8963_v30 = vld [vmem:[%s13923_s2 + $0x68] sm:$0xff]  }
 0x11d   : > { %4359 = vmatpush1.bf16.msra.mxu1 %v8963_v30 }
 0x11e   : > { %v2108_v39 = vrot.slane %v9386_v32, 2  ;;  %v1723_v41 = vrot.slane %v9386_v32, 1  ;;  %1327 = vmatmul.mubr.bf16.gmra.mrb[112].mxu0 %v8905_v29  ;;  %v1522_v50 = vmax.f32 %v1116_v38, 0.0  ;;  %4360 = vmatprep.subr.bf16.mxu1 %v9115_v1 }
 0x11f   : > { %7049 = vmatprep.mubr.msk.bf16.mxu0 %vm906_vm0, %v8906_v31 }
 0x120   : > { %v2109_v43 = vsel %vm2104_vm3, %v2106_v34, %v2108_v39  ;;  %v1724_v45 = vsel %vm1719_vm4, %v1721_v35, %v1723_v41  ;;  %v1725_v60 = vrot.slane %v1522_v50, 1  ;;  %v2110_v10 = vrot.slane %v1522_v50, 2 }
 0x121   : > { %v1120_v47 = vpop.f32.mrb[8].mxu0  ;;  %v7574_v48 = vpack.i.bf16 %v2109_v43, %v2107_v42  ;;  %v7569_v49 = vpack.i.bf16 %v1724_v45, %v1722_v44  ;;  %v8915_v42 = vld [vmem:[%s9228_s26 + $0x204] ss:$8 sps:$4 sm:$0xff]   ;;  %4361 = vmatpush1.bf16.msra.mxu1 %v8965_v46 }
 0x122   : > { %v1121_v51 = vadd.f32 %v9363_v14, %v1120_v47  ;;  %v1122_v52 = vpop.f32.mrb[9].mxu0  ;;  %v1726_v7 = vsel %vm1719_vm4, %v1723_v41, %v1725_v60  ;;  %v2111_v26 = vsel %vm2104_vm3, %v2108_v39, %v2110_v10  ;;  %v8914_v39 = vld [vmem:[%s9228_s26 + $0x1f0] ss:$8 sps:$4 sm:$0xff]   ;;  %4362 = vmatprep.subr.bf16.mxu1 %v9115_v1 }
 0x123   : > { %v1123_v54 = vpop.f32.mrb[10].mxu0  ;;  %7575 = vrot.lane.b32.xlu1 %v7574_v48, %s9117_s13  ;;  %7570 = vrot.lane.b32.xlu0 %v7569_v49, %s9118_s14  ;;  %v8966_v52 = vld [vmem:[%s13923_s2 + $0x78] sm:$0xff]  }
 0x124   : > { %v9414_v56 = vmax.f32 %v1121_v51, 0.0  ;;  %v1124_v57 = vadd.f32 %v9363_v14, %v1123_v54  ;;  %v1125_v58 = vpop.f32.mrb[11].mxu0 }
 0x125   : > { %v8917_v58 = vld [vmem:[%s9228_s26 + $0x200] ss:$8 sps:$4 sm:$0xff]   ;;  %4363 = vmatpush1.bf16.msra.mxu1 %v8966_v52  ;;  %v8924_v52 = vld [vmem:[%s9228_s26 + $0x234] ss:$8 sps:$4 sm:$0xff]  }
 0x126   : > { %v9421_v61 = vmax.f32 %v1124_v57, 0.0  ;;  %1335 = vmatmul.mubr.bf16.gmra.mrb[116].mxu0 %v8908_v53  ;;  %v1727_v63 = vrot.slane %v9414_v56, 1  ;;  %v2112_v13 = vrot.slane %v9414_v56, 2 }
 0x127   : > { %7050 = vmatprep.mubr.msk.bf16.mxu0 %vm906_vm0, %v8909_v55 }
 0x128   : > { %v7579_v62 = vpack.i.bf16 %v9421_v61, %v9414_v56  ;;  %v1728_v0 = vrot.slane %v9421_v61, 1  ;;  %v2113_v4 = vrot.slane %v9421_v61, 2 }
 0x129   : > { %v1128_v3 = vpop.f32.mrb[12].mxu0 }
 0x12a   : > { %v1129_v5 = vadd.f32 %v9363_v14, %v1128_v3  ;;  %v1130_v6 = vpop.f32.mrb[13].mxu0  ;;  %7580 = vrot.lane.b32.xlu1 %v7579_v62, %s9119_s19  ;;  %v9437_v8 = vsel %vm1719_vm4, %v1727_v63, %v1728_v0  ;;  %v2114_v20 = vsel %vm2104_vm3, %v2112_v13, %v2113_v4  ;;  %v8918_v62 = vld [vmem:[%s9228_s26 + $0x214] ss:$8 sps:$4 sm:$0xff]  }
 0x12b   : > { %v1131_v11 = vpop.f32.mrb[14].mxu0  ;;  %v7584_v12 = vpack.i.bf16 %v9437_v8, %v1726_v7  ;;  %v7589_v28 = vpack.i.bf16 %v2114_v20, %v2111_v26  ;;  %v8921_v26 = vld [vmem:[%s9228_s26 + $0x224] ss:$8 sps:$4 sm:$0xff]  }
 0x12c   : > { %v9444_v16 = vmax.f32 %v1129_v5, 0.0  ;;  %v1132_v17 = vadd.f32 %v9363_v14, %v1131_v11  ;;  %v1133_v18 = vpop.f32.mrb[15].mxu0 }
 0x12d   : > { %v8953_v18 = vld [vmem:[%s9228_s26 + $0x290] ss:$8 sps:$4 sm:$0xff]  }
 0x12e   : > { %v1526_v21 = vmax.f32 %v1132_v17, 0.0  ;;  %7585 = vrot.lane.b32.xlu1 %v7584_v12, %s9118_s14  ;;  %v2115_v22 = vrot.slane %v9444_v16, 2  ;;  %v1730_v24 = vrot.slane %v9444_v16, 1  ;;  %1343 = vmatmul.mubr.bf16.gmra.mrb[120].mxu0 %v8911_v9 }
 0x12f   : > { %7051 = vmatprep.mubr.msk.bf16.mxu0 %vm906_vm0, %v8912_v15 }
 0x130   : > { %v1732_v27 = vrot.slane %v1526_v21, 1  ;;  %v2116_v29 = vsel %vm2104_vm3, %v2113_v4, %v2115_v22  ;;  %v2117_v31 = vrot.slane %v1526_v21, 2  ;;  %v9466_v37 = vsel %vm1719_vm4, %v1728_v0, %v1730_v24 }
 0x131   : > { %v1136_v33 = vpop.f32.mrb[16].mxu0  ;;  %v7594_v34 = vpack.i.bf16 %v2116_v29, %v2114_v20 }
 0x132   : > { %v1137_v35 = vadd.f32 %v9363_v14, %v1136_v33  ;;  %v1138_v36 = vpop.f32.mrb[17].mxu0  ;;  %7590 = vrot.lane.b32.xlu1 %v7589_v28, %s9117_s13  ;;  %v9469_v38 = vsel %vm1719_vm4, %v1730_v24, %v1732_v27  ;;  %v2118_v47 = vsel %vm2104_vm3, %v2115_v22, %v2117_v31  ;;  %v8920_v22 = vld [vmem:[%s9228_s26 + $0x210] ss:$8 sps:$4 sm:$0xff]  }
 0x133   : > { %v1139_v40 = vpop.f32.mrb[18].mxu0  ;;  %7595 = vrot.lane.b32.xlu0 %v7594_v34, %s9118_s14  ;;  %v7599_v41 = vpack.i.bf16 %v9469_v38, %v9466_v37  ;;  %v7604_v49 = vpack.i.bf16 %v2118_v47, %v2116_v29 }
 0x134   : > { %v9476_v43 = vmax.f32 %v1137_v35, 0.0  ;;  %v1140_v44 = vadd.f32 %v9363_v14, %v1139_v40  ;;  %v1141_v45 = vpop.f32.mrb[19].mxu0 }
 0x136   : > { %v9484_v48 = vmax.f32 %v1140_v44, 0.0  ;;  %7600 = vrot.lane.b32.xlu1 %v7599_v41, %s9118_s14  ;;  %1351 = vmatmul.mubr.bf16.gmra.mrb[124].mxu0 %v8914_v39  ;;  %v2119_v50 = vrot.slane %v9476_v43, 2  ;;  %v7609_v2 = vpack.i.bf16 %v9476_v43, %v9444_v16  ;;  %v1734_v5 = vrot.slane %v9476_v43, 1 }
 0x137   : > { %7052 = vmatprep.mubr.msk.bf16.mxu0 %vm906_vm0, %v8915_v42 }
 0x138   : > { %v2120_v51 = vrot.slane %v9484_v48, 2  ;;  %v1735_v3 = vrot.slane %v9484_v48, 1  ;;  %v7614_v9 = vpack.i.bf16 %v9484_v48, %v9476_v43 }
 0x139   : > { %v1144_v53 = vpop.f32.mrb[20].mxu0 }
 0x13a   : > { %v1145_v54 = vadd.f32 %v9363_v14, %v1144_v53  ;;  %v1146_v55 = vpop.f32.mrb[21].mxu0  ;;  %7605 = vrot.lane.b32.xlu1 %v7604_v49, %s9117_s13  ;;  %v9497_v57 = vsel %vm2104_vm3, %v2119_v50, %v2120_v51  ;;  %v9517_v11 = vsel %vm1719_vm4, %v1734_v5, %v1735_v3  ;;  %v8923_v49 = vld [vmem:[%s9228_s26 + $0x220] ss:$8 sps:$4 sm:$0xff]  }
 0x13b   : > { %14092 = vst [vmem:[#allocation9_spill] sm:$0xff] %v9497_v57  ;;  %v1147_v59 = vpop.f32.mrb[22].mxu0  ;;  %v7619_v60 = vpack.i.bf16 %v9497_v57, %v2118_v47 }
 0x13c   : > { %v9502_v1 = vmax.f32 %v1145_v54, 0.0  ;;  %v1148_v63 = vadd.f32 %v9363_v14, %v1147_v59  ;;  %v1149_v0 = vpop.f32.mrb[23].mxu0 }
 0x13d   : > { %7620 = vrot.lane.b32.xlu0 %v7619_v60, %s9118_s14 }
 0x13e   : > { %v1530_v4 = vmax.f32 %v1148_v63, 0.0  ;;  %7610 = vrot.lane.b32.xlu1 %v7609_v2, %s9119_s19  ;;  %v1737_v6 = vrot.slane %v9502_v1, 1  ;;  %v2122_v7 = vrot.slane %v9502_v1, 2  ;;  %1359 = vmatmul.mubr.bf16.gmra.mrb[128].mxu0 %v8917_v58  ;;  %v7624_v30 = vpack.i.bf16 %v9502_v1, %v9484_v48 }
 0x13f   : > { %7053 = vmatprep.mubr.msk.bf16.mxu0 %vm906_vm0, %v8918_v62 }
 0x140   : > { %v2124_v10 = vrot.slane %v1530_v4, 2  ;;  %v9520_v12 = vsel %vm1719_vm4, %v1735_v3, %v1737_v6  ;;  %v9523_v13 = vsel %vm2104_vm3, %v2120_v51, %v2122_v7  ;;  %v1739_v36 = vrot.slane %v1530_v4, 1 }
 0x141   : > { %14093 = vst [vmem:[#allocation10_spill] sm:$0xff] %v9523_v13  ;;  %v1152_v15 = vpop.f32.mrb[24].mxu0  ;;  %v7629_v17 = vpack.i.bf16 %v9520_v12, %v9517_v11  ;;  %v7639_v58 = vpack.i.bf16 %v9523_v13, %v9497_v57 }
 0x142   : > { %v1153_v19 = vadd.f32 %v9363_v14, %v1152_v15  ;;  %v1154_v20 = vpop.f32.mrb[25].mxu0  ;;  %7615 = vrot.lane.b32.xlu1 %v7614_v9, %s9117_s13  ;;  %v9532_v21 = vsel %vm2104_vm3, %v2122_v7, %v2124_v10  ;;  %v9574_v59 = vsel %vm1719_vm4, %v1737_v6, %v1739_v36  ;;  %v8926_v10 = vld [vmem:[%s9228_s26 + $0x230] ss:$8 sps:$4 sm:$0xff]  }
 0x143   : > { %14094 = vst [vmem:[#allocation11_spill] sm:$0xff] %v9532_v21  ;;  %v1155_v24 = vpop.f32.mrb[26].mxu0  ;;  %7630 = vrot.lane.b32.xlu0 %v7629_v17, %s9119_s19  ;;  %v7644_v31 = vpack.i.bf16 %v9532_v21, %v9523_v13 }
 0x144   : > { %v9537_v27 = vmax.f32 %v1153_v19, 0.0  ;;  %v1156_v28 = vadd.f32 %v9363_v14, %v1155_v24  ;;  %v1157_v29 = vpop.f32.mrb[27].mxu0 }
 0x146   : > { %v9544_v33 = vmax.f32 %v1156_v28, 0.0  ;;  %7625 = vrot.lane.b32.xlu1 %v7624_v30, %s9119_s19  ;;  %v1741_v34 = vrot.slane %v9537_v27, 1  ;;  %v2126_v35 = vrot.slane %v9537_v27, 2  ;;  %1367 = vmatmul.mubr.bf16.gmra.mrb[132].mxu0 %v8920_v22  ;;  %v7649_v42 = vpack.i.bf16 %v9537_v27, %v9502_v1 }
 0x147   : > { %7645 = vrot.lane.b32.xlu0 %v7644_v31, %s9118_s14  ;;  %7054 = vmatprep.mubr.msk.bf16.mxu0 %vm906_vm0, %v8921_v26 }
 0x148   : > { %v1742_v39 = vrot.slane %v9544_v33, 1  ;;  %v2127_v40 = vrot.slane %v9544_v33, 2  ;;  %v7654_v2 = vpack.i.bf16 %v9544_v33, %v9537_v27 }
 0x149   : > { %v1160_v41 = vpop.f32.mrb[28].mxu0 }
 0x14a   : > { %v1161_v44 = vadd.f32 %v9363_v14, %v1160_v41  ;;  %v1162_v45 = vpop.f32.mrb[29].mxu0  ;;  %7635 = vrot.lane.b32.xlu1 %v7629_v17, %s9118_s14  ;;  %v9558_v46 = vsel %vm1719_vm4, %v1741_v34, %v1742_v39  ;;  %v9561_v47 = vsel %vm2104_vm3, %v2126_v35, %v2127_v40  ;;  %v8927_v17 = vld [vmem:[%s9228_s26 + $0x244] ss:$8 sps:$4 sm:$0xff]  }
 0x14b   : > { %14095 = vst [vmem:[#allocation12_spill] sm:$0xff] %v9561_v47  ;;  %v1163_v50 = vpop.f32.mrb[30].mxu0  ;;  %7650 = vrot.lane.b32.xlu0 %v7649_v42, %s9117_s13  ;;  %v7659_v60 = vpack.i.bf16 %v9558_v46, %v9574_v59  ;;  %v7669_v34 = vpack.i.bf16 %v9561_v47, %v9532_v21 }
 0x14c   : > { %v9568_v53 = vmax.f32 %v1161_v44, 0.0  ;;  %v1164_v54 = vadd.f32 %v9363_v14, %v1163_v50  ;;  %v1165_v55 = vpop.f32.mrb[31].mxu0 }
 0x14e   : > { %v1534_v62 = vmax.f32 %v1164_v54, 0.0  ;;  %7640 = vrot.lane.b32.xlu1 %v7639_v58, %s9117_s13  ;;  %v2129_v63 = vrot.slane %v9568_v53, 2  ;;  %1375 = vmatmul.mubr.bf16.gmra.mrb[136].mxu0 %v8923_v49  ;;  %v7674_v4 = vpack.i.bf16 %v9568_v53, %v9544_v33  ;;  %v1744_v26 = vrot.slane %v9568_v53, 1  ;;  %v8929_v49 = vld [vmem:[%s9228_s26 + $0x240] ss:$8 sps:$4 sm:$0xff]  }
 0x14f   : > { %7660 = vrot.lane.b32.xlu0 %v7659_v60, %s9119_s19  ;;  %7055 = vmatprep.mubr.msk.bf16.mxu0 %vm906_vm0, %v8924_v52  ;;  %v8930_v52 = vld [vmem:[%s9228_s26 + $0x254] ss:$8 sps:$4 sm:$0xff]  }
 0x150   : > { %v2131_v0 = vrot.slane %v1534_v62, 2  ;;  %v1746_v5 = vrot.slane %v1534_v62, 1  ;;  %v9588_v7 = vsel %vm2104_vm3, %v2127_v40, %v2129_v63  ;;  %v9616_v35 = vsel %vm1719_vm4, %v1742_v39, %v1744_v26 }
 0x151   : > { %v1168_v3 = vpop.f32.mrb[32].mxu0  ;;  %14096 = vst [vmem:[#allocation13_spill] sm:$0xff] %v9588_v7  ;;  %v7679_v28 = vpack.i.bf16 %v9588_v7, %v9561_v47 }
 0x152   : > { %v1170_v6 = vpop.f32.mrb[33].mxu0  ;;  %7655 = vrot.lane.b32.xlu1 %v7654_v2, %s9119_s19  ;;  %v9591_v9 = vsel %vm2104_vm3, %v2129_v63, %v2131_v0  ;;  %v1169_v20 = vadd.f32 %v9363_v14, %v1168_v3  ;;  %v9607_v30 = vsel %vm1719_vm4, %v1744_v26, %v1746_v5  ;;  %v8932_v26 = vld [vmem:[%s9228_s26 + $0x250] ss:$8 sps:$4 sm:$0xff]  }
 0x153   : > { %14097 = vst [vmem:[#allocation14_spill] sm:$0xff] %v9591_v9  ;;  %v1171_v15 = vpop.f32.mrb[34].mxu0  ;;  %7675 = vrot.lane.b32.xlu0 %v7674_v4, %s9117_s13  ;;  %v7684_v40 = vpack.i.bf16 %v9607_v30, %v9616_v35  ;;  %v7694_v2 = vpack.i.bf16 %v9591_v9, %v9588_v7 }
 0x154   : > { %v1172_v22 = vadd.f32 %v9363_v14, %v1171_v15  ;;  %v1173_v24 = vpop.f32.mrb[35].mxu0  ;;  %v9611_v31 = vmax.f32 %v1169_v20, 0.0 }
 0x156   : > { %v9603_v29 = vmax.f32 %v1172_v22, 0.0  ;;  %7665 = vrot.lane.b32.xlu1 %v7659_v60, %s9118_s14  ;;  %1383 = vmatmul.mubr.bf16.gmra.mrb[140].mxu0 %v8926_v10  ;;  %v2133_v44 = vrot.slane %v9611_v31, 2  ;;  %v1748_v3 = vrot.slane %v9611_v31, 1 }
 0x157   : > { %7680 = vrot.lane.b32.xlu0 %v7679_v28, %s9118_s14  ;;  %7056 = vmatprep.mubr.msk.bf16.mxu0 %vm906_vm0, %v8927_v17 }
 0x158   : > { %v2134_v45 = vrot.slane %v9603_v29, 2  ;;  %v7704_v58 = vpack.i.bf16 %v9603_v29, %v9611_v31  ;;  %v1749_v4 = vrot.slane %v9603_v29, 1 }
 0x159   : > { %v1176_v36 = vpop.f32.mrb[36].mxu0 }
 0x15a   : > { %v1177_v41 = vadd.f32 %v9363_v14, %v1176_v36  ;;  %v1178_v42 = vpop.f32.mrb[37].mxu0  ;;  %7670 = vrot.lane.b32.xlu1 %v7669_v34, %s9117_s13  ;;  %v9634_v62 = vsel %vm2104_vm3, %v2133_v44, %v2134_v45  ;;  %v8935_v34 = vld [vmem:[%s9228_s26 + $0x264] ss:$8 sps:$4 sm:$0xff]   ;;  %v9667_v44 = vsel %vm1719_vm4, %v1748_v3, %v1749_v4 }
 0x15b   : > { %v1179_v50 = vpop.f32.mrb[38].mxu0  ;;  %7685 = vrot.lane.b32.xlu0 %v7684_v40, %s9119_s19  ;;  %14099 = vst [vmem:[#allocation16_spill] sm:$0xff] %v9634_v62  ;;  %v7709_v10 = vpack.i.bf16 %v9634_v62, %v9591_v9 }
 0x15c   : > { %v9627_v39 = vmax.f32 %v1177_v41, 0.0  ;;  %v1180_v54 = vadd.f32 %v9363_v14, %v1179_v50  ;;  %v1181_v55 = vpop.f32.mrb[39].mxu0  ;;  %v7699_v41 = vpack.i.bf16 %v9611_v31, %v9568_v53 }
 0x15e   : > { %14098 = vst [vmem:[#allocation15_spill] sm:$0xff] %v9627_v39  ;;  %v1538_v60 = vmax.f32 %v1180_v54, 0.0  ;;  %7690 = vrot.lane.b32.xlu1 %v7684_v40, %s9118_s14  ;;  %v1751_v63 = vrot.slane %v9627_v39, 1  ;;  %v2136_v0 = vrot.slane %v9627_v39, 2  ;;  %1391 = vmatmul.mubr.bf16.gmra.mrb[144].mxu0 %v8929_v49  ;;  %v7714_v54 = vpack.i.bf16 %v9627_v39, %v9603_v29 }
 0x15f   : > { %7705 = vrot.lane.b32.xlu0 %v7704_v58, %s9117_s13  ;;  %7057 = vmatprep.mubr.msk.bf16.mxu0 %vm906_vm0, %v8930_v52 }
 0x160   : > { %v9645_v5 = vsel %vm2104_vm3, %v2134_v45, %v2136_v0  ;;  %v2138_v17 = vrot.slane %v1538_v60, 2  ;;  %v9656_v24 = vsel %vm1719_vm4, %v1749_v4, %v1751_v63 }
 0x161   : > { %14100 = vst [vmem:[#allocation17_spill] sm:$0xff] %v9645_v5  ;;  %v1184_v6 = vpop.f32.mrb[40].mxu0  ;;  %v7719_v45 = vpack.i.bf16 %v9656_v24, %v9667_v44 }
 0x162   : > { %v1185_v20 = vadd.f32 %v9363_v14, %v1184_v6  ;;  %v1186_v22 = vpop.f32.mrb[41].mxu0  ;;  %7695 = vrot.lane.b32.xlu1 %v7694_v2, %s9117_s13  ;;  %v9675_v50 = vsel %vm2104_vm3, %v2136_v0, %v2138_v17  ;;  %v8937_v17 = vld [vmem:[%s9228_s26 + $0x260] ss:$8 sps:$4 sm:$0xff]  }
 0x163   : > { %v1187_v28 = vpop.f32.mrb[42].mxu0  ;;  %7710 = vrot.lane.b32.xlu0 %v7709_v10, %s9118_s14  ;;  %14103 = vst [vmem:[#allocation20_spill] sm:$0xff] %v9675_v50  ;;  %v7734_v2 = vpack.i.bf16 %v9675_v50, %v9645_v5  ;;  %v8940_v22 = vld [vmem:[%s9228_s26 + $0x274] ss:$8 sps:$4 sm:$0xff]  }
 0x164   : > { %v9661_v36 = vmax.f32 %v1185_v20, 0.0  ;;  %v1188_v40 = vadd.f32 %v9363_v14, %v1187_v28  ;;  %v1189_v42 = vpop.f32.mrb[43].mxu0  ;;  %v1753_v28 = vrot.slane %v1538_v60, 1 }
 0x166   : > { %14101 = vst [vmem:[#allocation18_spill] sm:$0xff] %v9661_v36  ;;  %v9671_v49 = vmax.f32 %v1188_v40, 0.0  ;;  %7700 = vrot.lane.b32.xlu1 %v7699_v41, %s9119_s19  ;;  %v2140_v52 = vrot.slane %v9661_v36, 2  ;;  %1399 = vmatmul.mubr.bf16.gmra.mrb[148].mxu0 %v8932_v26  ;;  %v1755_v4 = vrot.slane %v9661_v36, 1  ;;  %v7739_v42 = vpack.i.bf16 %v9661_v36, %v9627_v39 }
 0x167   : > { %7720 = vrot.lane.b32.xlu0 %v7719_v45, %s9119_s19  ;;  %7058 = vmatprep.mubr.msk.bf16.mxu0 %vm906_vm0, %v8935_v34 }
 0x168   : > { %14102 = vst [vmem:[#allocation19_spill] sm:$0xff] %v9671_v49  ;;  %v2141_v55 = vrot.slane %v9671_v49, 2  ;;  %v1756_v6 = vrot.slane %v9671_v49, 1 }
 0x169   : > { %v1192_v58 = vpop.f32.mrb[44].mxu0 }
 0x16a   : > { %v1193_v0 = vadd.f32 %v9363_v14, %v1192_v58  ;;  %v1194_v3 = vpop.f32.mrb[45].mxu0  ;;  %7715 = vrot.lane.b32.xlu1 %v7714_v54, %s9119_s19  ;;  %v9690_v10 = vsel %vm2104_vm3, %v2140_v52, %v2141_v55  ;;  %v9704_v52 = vsel %vm1719_vm4, %v1755_v4, %v1756_v6 }
 0x16b   : > { %14104 = vst [vmem:[#allocation21_spill] sm:$0xff] %v9690_v10  ;;  %v1195_v20 = vpop.f32.mrb[46].mxu0  ;;  %7735 = vrot.lane.b32.xlu0 %v7734_v2, %s9118_s14  ;;  %14106 = vst [vmem:[#allocation23_spill] sm:$0xff] %v9704_v52  ;;  %v7729_v2 = vpack.i.bf16 %v9645_v5, %v9634_v62 }
 0x16c   : > { %v9697_v34 = vmax.f32 %v1193_v0, 0.0  ;;  %v1196_v40 = vadd.f32 %v9363_v14, %v1195_v20  ;;  %v1197_v41 = vpop.f32.mrb[47].mxu0  ;;  %v9714_v0 = vsel %vm1719_vm4, %v1751_v63, %v1753_v28 }
 0x16d   : > { %v7749_v3 = vpack.i.bf16 %v9704_v52, %v9714_v0  ;;  %v8946_v41 = vld [vmem:[%s9228_s26 + $0x284] ss:$8 sps:$4 sm:$0xff]  }
 0x16e   : > { %14105 = vst [vmem:[#allocation22_spill] sm:$0xff] %v9697_v34  ;;  %v1542_v54 = vmax.f32 %v1196_v40, 0.0  ;;  %7725 = vrot.lane.b32.xlu1 %v7719_v45, %s9118_s14  ;;  %v2143_v58 = vrot.slane %v9697_v34, 2  ;;  %1407 = vmatmul.mubr.bf16.gmra.mrb[152].mxu0 %v8937_v17 }
 0x16f   : > { %7740 = vrot.lane.b32.xlu0 %v7739_v42, %s9117_s13  ;;  %7059 = vmatprep.mubr.msk.bf16.mxu0 %vm906_vm0, %v8940_v22  ;;  %v8943_v22 = vld [vmem:[%s9228_s26 + $0x270] ss:$8 sps:$4 sm:$0xff]   ;;  %v7744_v42 = vpack.i.bf16 %v9671_v49, %v9661_v36 }
 0x170   : > { %v2145_v60 = vrot.slane %v1542_v54, 2  ;;  %v9720_v17 = vsel %vm2104_vm3, %v2141_v55, %v2143_v58  ;;  %v7764_v55 = vpack.i.bf16 %v9697_v34, %v9671_v49  ;;  %v8976_v49 = vld [vmem:[%s9228_s26 + $0x2f4] ss:$8 sps:$4 sm:$0xff]  }
 0x171   : > { %v1200_v45 = vpop.f32.mrb[48].mxu0  ;;  %14107 = vst [vmem:[#allocation24_spill] sm:$0xff] %v9720_v17  ;;  %v7769_v63 = vpack.i.bf16 %v9720_v17, %v9690_v10 }
 0x172   : > { %v1202_v4 = vpop.f32.mrb[49].mxu0  ;;  %7730 = vrot.lane.b32.xlu1 %v7729_v2, %s9117_s13  ;;  %v9723_v20 = vsel %vm2104_vm3, %v2143_v58, %v2145_v60  ;;  %v1760_v58 = vrot.slane %v1542_v54, 1  ;;  %v1201_v60 = vadd.f32 %v9363_v14, %v1200_v45 }
 0x173   : > { %14108 = vst [vmem:[#allocation25_spill] sm:$0xff] %v9723_v20  ;;  %v1203_v40 = vpop.f32.mrb[50].mxu0  ;;  %7750 = vrot.lane.b32.xlu0 %v7749_v3, %s9119_s19 }
 0x174   : > { %v1204_v28 = vadd.f32 %v9363_v14, %v1203_v40  ;;  %v1205_v2 = vpop.f32.mrb[51].mxu0  ;;  %v1758_v40 = vrot.slane %v9697_v34, 1  ;;  %v9744_v26 = vmax.f32 %v1201_v60, 0.0 }
 0x176   : > { %7745 = vrot.lane.b32.xlu1 %v7744_v42, %s9119_s19  ;;  %1415 = vmatmul.mubr.bf16.gmra.mrb[156].mxu0 %v8943_v22  ;;  %v9739_v4 = vmax.f32 %v1204_v28, 0.0  ;;  %14110 = vst [vmem:[#allocation27_spill] sm:$0xff] %v9744_v26  ;;  %v9749_v22 = vsel %vm1719_vm4, %v1758_v40, %v1760_v58  ;;  %v8948_v42 = vld [vmem:[%s9228_s26 + $0x280] ss:$8 sps:$4 sm:$0xff]   ;;  %v7759_v28 = vpack.i.bf16 %v9690_v10, %v9675_v50  ;;  %v8956_v10 = vld [vmem:[%s9228_s26 + $0x2a4] ss:$8 sps:$4 sm:$0xff]  }
 0x177   : > { %7765 = vrot.lane.b32.xlu0 %v7764_v55, %s9117_s13  ;;  %7060 = vmatprep.mubr.msk.bf16.mxu0 %vm906_vm0, %v8946_v41  ;;  %14111 = vst [vmem:[#allocation28_spill] sm:$0xff] %v9749_v22  ;;  %v8951_v55 = vld [vmem:[%s9228_s26 + $0x294] ss:$8 sps:$4 sm:$0xff]   ;;  %v9759_v60 = vsel %vm1719_vm4, %v1756_v6, %v1758_v40 }
 0x178   : > { %14109 = vst [vmem:[#allocation26_spill] sm:$0xff] %v9739_v4  ;;  %14113 = vst [vmem:[#allocation30_spill] sm:$0xff] %v9759_v60  ;;  %v7774_v58 = vpack.i.bf16 %v9749_v22, %v9759_v60 }
 0x179   : > { %v1208_v2 = vpop.f32.mrb[52].mxu0 }
 0x17a   : > { %v1209_v54 = vadd.f32 %v9363_v14, %v1208_v2  ;;  %v1210_v45 = vpop.f32.mrb[53].mxu0  ;;  %7755 = vrot.lane.b32.xlu1 %v7749_v3, %s9118_s14  ;;  %v2148_v3 = vrot.slane %v9739_v4, 2 }
 0x17b   : > { %v1211_v41 = vpop.f32.mrb[54].mxu0  ;;  %7770 = vrot.lane.b32.xlu0 %v7769_v63, %s9118_s14  ;;  %v2147_v45 = vrot.slane %v9744_v26, 2 }
 0x17c   : > { %v9756_v15 = vmax.f32 %v1209_v54, 0.0  ;;  %v1213_v2 = vpop.f32.mrb[55].mxu0  ;;  %v9766_v19 = vadd.f32 %v9363_v14, %v1211_v41  ;;  %v7794_v41 = vpack.i.bf16 %v9739_v4, %v9744_v26 }
 0x17d   : > { %v9773_v6 = vsel %vm2104_vm3, %v2147_v45, %v2148_v3  ;;  %v1763_v2 = vrot.slane %v9739_v4, 1 }
 0x17e   : > { %14112 = vst [vmem:[#allocation29_spill] sm:$0xff] %v9756_v15  ;;  %7760 = vrot.lane.b32.xlu1 %v7759_v28, %s9117_s13  ;;  %v2150_v63 = vrot.slane %v9756_v15, 2  ;;  %1423 = vmatmul.mubr.bf16.gmra.mrb[160].mxu0 %v8948_v42  ;;  %14114 = vst [vmem:[#allocation31_spill] sm:$0xff] %v9773_v6  ;;  %v1762_v28 = vrot.slane %v9744_v26, 1  ;;  %v7784_v42 = vpack.i.bf16 %v9723_v20, %v9720_v17 }
 0x17f   : > { %7775 = vrot.lane.b32.xlu0 %v7774_v58, %s9119_s19  ;;  %7061 = vmatprep.mubr.msk.bf16.mxu0 %vm906_vm0, %v8951_v55  ;;  %v1546_v55 = vmax.f32 %v9766_v19, 0.0 }
 0x180   : > { %v9776_v40 = vsel %vm2104_vm3, %v2148_v3, %v2150_v63  ;;  %v1765_v3 = vrot.slane %v9756_v15, 1 }
 0x181   : > { %14115 = vst [vmem:[#allocation32_spill] sm:$0xff] %v9776_v40  ;;  %v1216_v54 = vpop.f32.mrb[56].mxu0 }
 0x182   : > { %v1217_v51 = vadd.f32 %v9363_v14, %v1216_v54  ;;  %v1218_v45 = vpop.f32.mrb[57].mxu0  ;;  %7780 = vrot.lane.b32.xlu1 %v7774_v58, %s9118_s14  ;;  %v7799_v54 = vpack.i.bf16 %v9773_v6, %v9723_v20  ;;  %v9799_v58 = vsel %vm1719_vm4, %v1762_v28, %v1763_v2  ;;  %v8961_v20 = vld [vmem:[%s9228_s26 + $0x2b4] ss:$8 sps:$4 sm:$0xff]  }
 0x183   : > { %v1219_v50 = vpop.f32.mrb[58].mxu0  ;;  %7795 = vrot.lane.b32.xlu0 %v7794_v41, %s9117_s13  ;;  %14117 = vst [vmem:[#allocation34_spill] sm:$0xff] %v9799_v58  ;;  %v2152_v45 = vrot.slane %v1546_v55, 2  ;;  %v7789_v41 = vpack.i.bf16 %v9744_v26, %v9697_v34 }
 0x184   : > { %v9791_v62 = vmax.f32 %v1217_v51, 0.0  ;;  %v1220_v5 = vadd.f32 %v9363_v14, %v1219_v50  ;;  %v1221_v19 = vpop.f32.mrb[59].mxu0  ;;  %v9805_v51 = vsel %vm1719_vm4, %v1763_v2, %v1765_v3 }
 0x185   : > { %14119 = vst [vmem:[#allocation36_spill] sm:$0xff] %v9805_v51 }
 0x186   : > { %14116 = vst [vmem:[#allocation33_spill] sm:$0xff] %v9791_v62  ;;  %v9801_v7 = vmax.f32 %v1220_v5, 0.0  ;;  %7785 = vrot.lane.b32.xlu1 %v7784_v42, %s9117_s13  ;;  %v2154_v50 = vrot.slane %v9791_v62, 2  ;;  %1431 = vmatmul.mubr.bf16.gmra.mrb[164].mxu0 %v8953_v18  ;;  %v7809_v42 = vpack.i.bf16 %v9805_v51, %v9799_v58  ;;  %v9818_v18 = vsel %vm2104_vm3, %v2150_v63, %v2152_v45 }
 0x187   : > { %7800 = vrot.lane.b32.xlu0 %v7799_v54, %s9118_s14  ;;  %7062 = vmatprep.mubr.msk.bf16.mxu0 %vm906_vm0, %v8956_v10  ;;  %14120 = vst [vmem:[#allocation37_spill] sm:$0xff] %v9818_v18  ;;  %v8958_v10 = vld [vmem:[%s9228_s26 + $0x2a0] ss:$8 sps:$4 sm:$0xff]   ;;  %v7824_v45 = vpack.i.bf16 %v9818_v18, %v9776_v40 }
 0x188   : > { %14118 = vst [vmem:[#allocation35_spill] sm:$0xff] %v9801_v7  ;;  %v2155_v5 = vrot.slane %v9801_v7, 2  ;;  %v1770_v47 = vrot.slane %v9801_v7, 1 }
 0x189   : > { %v1224_v28 = vpop.f32.mrb[60].mxu0 }
 0x18a   : > { %v1225_v2 = vadd.f32 %v9363_v14, %v1224_v28  ;;  %v1226_v19 = vpop.f32.mrb[61].mxu0  ;;  %7790 = vrot.lane.b32.xlu1 %v7789_v41, %s9119_s19  ;;  %v9821_v54 = vsel %vm2104_vm3, %v2154_v50, %v2155_v5  ;;  %v7804_v41 = vpack.i.bf16 %v9756_v15, %v9739_v4 }
 0x18b   : > { %14121 = vst [vmem:[#allocation38_spill] sm:$0xff] %v9821_v54  ;;  %v1227_v17 = vpop.f32.mrb[62].mxu0  ;;  %7810 = vrot.lane.b32.xlu0 %v7809_v42, %s9119_s19  ;;  %v1769_v19 = vrot.slane %v9791_v62, 1 }
 0x18c   : > { %v9828_v21 = vmax.f32 %v1225_v2, 0.0  ;;  %v1228_v28 = vadd.f32 %v9363_v14, %v1227_v17  ;;  %v1229_v63 = vpop.f32.mrb[63].mxu0  ;;  %v1767_v17 = vrot.slane %v1546_v55, 1  ;;  %v8967_v55 = vld [vmem:[%s9228_s26 + $0x2c4] ss:$8 sps:$4 sm:$0xff]  }
 0x18d   : > { %v9848_v13 = vsel %vm1719_vm4, %v1769_v19, %v1770_v47 }
 0x18e   : > { %14122 = vst [vmem:[#allocation39_spill] sm:$0xff] %v9828_v21  ;;  %v1550_v50 = vmax.f32 %v1228_v28, 0.0  ;;  %7805 = vrot.lane.b32.xlu1 %v7804_v41, %s9119_s19  ;;  %v2157_v2 = vrot.slane %v9828_v21, 2  ;;  %1439 = vmatmul.mubr.bf16.gmra.mrb[168].mxu0 %v8958_v10  ;;  %v7829_v41 = vpack.i.bf16 %v9791_v62, %v9756_v15  ;;  %14124 = vst [vmem:[#allocation41_spill] sm:$0xff] %v9848_v13 }
 0x18f   : > { %7825 = vrot.lane.b32.xlu0 %v7824_v45, %s9118_s14  ;;  %7063 = vmatprep.mubr.msk.bf16.mxu0 %vm906_vm0, %v8961_v20  ;;  %v8964_v45 = vld [vmem:[%s9228_s26 + $0x2b0] ss:$8 sps:$4 sm:$0xff]   ;;  %v7819_v15 = vpack.i.bf16 %v9776_v40, %v9773_v6 }
 0x190   : > { %v2159_v63 = vrot.slane %v1550_v50, 2  ;;  %v9842_v9 = vsel %vm2104_vm3, %v2155_v5, %v2157_v2  ;;  %v8969_v5 = vld [vmem:[%s9228_s26 + $0x2c0] ss:$8 sps:$4 sm:$0xff]  }
 0x191   : > { %14123 = vst [vmem:[#allocation40_spill] sm:$0xff] %v9842_v9  ;;  %v1232_v28 = vpop.f32.mrb[64].mxu0 }
 0x192   : > { %7815 = vrot.lane.b32.xlu1 %v7809_v42, %s9118_s14  ;;  %v1234_v57 = vpop.f32.mrb[65].mxu0  ;;  %v9851_v10 = vsel %vm2104_vm3, %v2157_v2, %v2159_v63  ;;  %v9861_v42 = vsel %vm1719_vm4, %v1765_v3, %v1767_v17  ;;  %v1233_v2 = vadd.f32 %v9363_v14, %v1232_v28  ;;  %v7834_v3 = vpack.i.bf16 %v9801_v7, %v9791_v62  ;;  %v8970_v62 = vld [vmem:[%s9228_s26 + $0x2d4] ss:$8 sps:$4 sm:$0xff]  }
 0x193   : > { %14125 = vst [vmem:[#allocation42_spill] sm:$0xff] %v9851_v10  ;;  %7830 = vrot.lane.b32.xlu0 %v7829_v41, %s9117_s13  ;;  %v1235_v20 = vpop.f32.mrb[66].mxu0  ;;  %14126 = vst [vmem:[#allocation43_spill] sm:$0xff] %v9861_v42  ;;  %v7839_v19 = vpack.i.bf16 %v9848_v13, %v9861_v42 }
 0x194   : > { %v1237_v57 = vpop.f32.mrb[67].mxu0  ;;  %v1236_v63 = vadd.f32 %v9363_v14, %v1235_v20  ;;  %v1772_v20 = vrot.slane %v9828_v21, 1  ;;  %v9880_v6 = vmax.f32 %v1233_v2, 0.0 }
 0x195   : > { %v9870_v41 = vpop.permute.xlu1 %7575  ;;  %v7854_v57 = vpack.i.bf16 %v9828_v21, %v9801_v7 }
 0x196   : > { %7820 = vrot.lane.b32.xlu1 %v7819_v15, %s9117_s13  ;;  %1447 = vmatmul.mubr.bf16.gmra.mrb[172].mxu0 %v8964_v45  ;;  %v1774_v15 = vrot.slane %v1550_v50, 1  ;;  %14127 = vst [vmem:[#allocation44_spill] sm:$0xff] %v9880_v6  ;;  %v7578_v39 = vunpack.i.h.bf16 %v9870_v41 }
 0x197   : > { %7840 = vrot.lane.b32.xlu0 %v7839_v19, %s9119_s19  ;;  %7064 = vmatprep.mubr.msk.bf16.mxu0 %vm906_vm0, %v8967_v55  ;;  %v9882_v55 = vmax.f32 %v1236_v63, 0.0 }
 0x198   : > { %v9897_v2 = vsel %vm1719_vm4, %v1772_v20, %v1774_v15  ;;  %v7849_v15 = vpack.i.bf16 %v9821_v54, %v9818_v18  ;;  %v8973_v18 = vld [vmem:[%s9228_s26 + $0x2e4] ss:$8 sps:$4 sm:$0xff]  }
 0x199   : > { %v1240_v17 = vpop.f32.mrb[68].mxu0  ;;  %14128 = vst [vmem:[#allocation45_spill] sm:$0xff] %v9882_v55  ;;  %14131 = vst [vmem:[#allocation48_spill] sm:$0xff] %v9897_v2 }
 0x19a   : > { %7835 = vrot.lane.b32.xlu1 %v7834_v3, %s9119_s19  ;;  %v1241_v28 = vadd.f32 %v9363_v14, %v1240_v17  ;;  %v1242_v45 = vpop.f32.mrb[69].mxu0  ;;  %v7859_v3 = vpack.i.bf16 %v9842_v9, %v9821_v54  ;;  %v9894_v17 = vsel %vm1719_vm4, %v1770_v47, %v1772_v20 }
 0x19b   : > { %7855 = vrot.lane.b32.xlu0 %v7854_v57, %s9117_s13  ;;  %v1243_v40 = vpop.f32.mrb[70].mxu0  ;;  %14130 = vst [vmem:[#allocation47_spill] sm:$0xff] %v9894_v17  ;;  %v2161_v57 = vrot.slane %v9880_v6, 2 }
 0x19c   : > { %v9886_v13 = vmax.f32 %v1241_v28, 0.0  ;;  %v9888_v7 = vpop.permute.xlu1 %7580  ;;  %v1245_v50 = vpop.f32.mrb[71].mxu0  ;;  %v2162_v28 = vrot.slane %v9882_v55, 2 }
 0x19d   : > { %v7582_v34 = vunpack.i.l.bf16 %v9888_v7 }
 0x19e   : > { %14129 = vst [vmem:[#allocation46_spill] sm:$0xff] %v9886_v13  ;;  %7845 = vrot.lane.b32.xlu1 %v7839_v19, %s9118_s14  ;;  %v2164_v63 = vrot.slane %v9886_v13, 2  ;;  %1455 = vmatmul.mubr.bf16.gmra.mrb[176].mxu0 %v8969_v5  ;;  %v9905_v19 = vadd.f32 %v9363_v14, %v1243_v40  ;;  %v7864_v5 = vpack.i.bf16 %v9897_v2, %v9894_v17 }
 0x19f   : > { %7860 = vrot.lane.b32.xlu0 %v7859_v3, %s9118_s14  ;;  %7065 = vmatprep.mubr.msk.bf16.mxu0 %vm906_vm0, %v8970_v62  ;;  %v8972_v3 = vld [vmem:[%s9228_s26 + $0x2d0] ss:$8 sps:$4 sm:$0xff]   ;;  %v9921_v26 = vsel %vm2104_vm3, %v2161_v57, %v2162_v28  ;;  %v1776_v57 = vrot.slane %v9880_v6, 1 }
 0x1a0   : > { %v9907_v47 = vpop.permute.xlu1 %7585  ;;  %v9914_v20 = vsel %vm2104_vm3, %v2162_v28, %v2164_v63  ;;  %14133 = vst [vmem:[#allocation50_spill] sm:$0xff] %v9921_v26  ;;  %v1554_v54 = vmax.f32 %v9905_v19, 0.0  ;;  %v1777_v28 = vrot.slane %v9882_v55, 1  ;;  %v13959_v19 = vrot.slane %v9886_v13, 1 }
 0x1a1   : > { %v1248_v45 = vpop.f32.mrb[72].mxu0  ;;  %14132 = vst [vmem:[#allocation49_spill] sm:$0xff] %v9914_v20 }
 0x1a2   : > { %7850 = vrot.lane.b32.xlu1 %v7849_v15, %s9117_s13  ;;  %v1249_v50 = vadd.f32 %v9363_v14, %v1248_v45  ;;  %v1250_v62 = vpop.f32.mrb[73].mxu0  ;;  %v9957_v42 = vsel %vm1719_vm4, %v1777_v28, %v13959_v19 }
 0x1a3   : > { %7865 = vrot.lane.b32.xlu0 %v7864_v5, %s9119_s19  ;;  %v1251_v40 = vpop.f32.mrb[74].mxu0  ;;  %v7884_v62 = vpack.i.bf16 %v9882_v55, %v9880_v6  ;;  %14135 = vst [vmem:[#allocation52_spill] sm:$0xff] %v9957_v42 }
 0x1a4   : > { %v9925_v4 = vmax.f32 %v1249_v50, 0.0  ;;  %v9927_v2 = vpop.permute.xlu1 %7590  ;;  %v1252_v17 = vadd.f32 %v9363_v14, %v1251_v40  ;;  %v1253_v15 = vpop.f32.mrb[75].mxu0  ;;  %v2166_v50 = vrot.slane %v1554_v54, 2 }
 0x1a5   : > { %v7571_v14 = vpop.permute.xlu0 %7570  ;;  %v7889_v15 = vpack.i.bf16 %v9921_v26, %v9851_v10 }
 0x1a6   : > { %v9934_v51 = vmax.f32 %v1252_v17, 0.0  ;;  %7870 = vrot.lane.b32.xlu1 %v7864_v5, %s9118_s14  ;;  %1463 = vmatmul.mubr.bf16.gmra.mrb[180].mxu0 %v8972_v3  ;;  %v7874_v17 = vpack.i.bf16 %v9851_v10, %v9842_v9  ;;  %v2168_v5 = vrot.slane %v9925_v4, 2  ;;  %v8975_v9 = vld [vmem:[%s9228_s26 + $0x2e0] ss:$8 sps:$4 sm:$0xff]   ;;  %v7573_v22 = vunpack.i.h.bf16 %v7571_v14 }
 0x1a7   : > { %7885 = vrot.lane.b32.xlu0 %v7884_v62, %s9117_s13  ;;  %7066 = vmatprep.mubr.msk.bf16.mxu0 %vm906_vm0, %v8973_v18  ;;  %v9952_v18 = vsel %vm1719_vm4, %v1776_v57, %v1777_v28  ;;  %v7572_v58 = vunpack.i.l.bf16 %v7571_v14  ;;  %v9967_v57 = vsel %vm2104_vm3, %v2164_v63, %v2166_v50  ;;  %v9983_v63 = vld [vmem:[%s13926_s5] ss:$0 sm:$0xff] }
 0x1a8   : > { %v9942_v40 = vpop.permute.xlu1 %7600  ;;  %14134 = vst [vmem:[#allocation51_spill] sm:$0xff] %v9952_v18  ;;  %14136 = vst [vmem:[#allocation53_spill] sm:$0xff] %v9967_v57  ;;  %v14137_v28 = vrot.slane %v9934_v51, 2 }
 0x1a9   : > { %v1256_v45 = vpop.f32.mrb[76].mxu0  ;;  %v7596_v14 = vpop.permute.xlu0 %7595 }
 0x1aa   : > { %7875 = vrot.lane.b32.xlu1 %v7874_v17, %s9117_s13  ;;  %v1258_v62 = vpop.f32.mrb[77].mxu0  ;;  %v7879_v17 = vpack.i.bf16 %v9880_v6, %v9828_v21  ;;  %v9972_v19 = vsel %vm2104_vm3, %v2168_v5, %v14137_v28  ;;  %v7577_v6 = vunpack.i.l.bf16 %v9870_v41  ;;  %v1257_v50 = vadd.f32 %v9983_v63, %v1256_v45 }
 0x1ab   : > { %7890 = vrot.lane.b32.xlu0 %v7889_v15, %s9118_s14  ;;  %v1259_v10 = vpop.f32.mrb[78].mxu0  ;;  %14138 = vst [vmem:[#allocation54_spill] sm:$0xff] %v9972_v19  ;;  %v7899_v15 = vpack.i.bf16 %v9957_v42, %v9952_v18  ;;  %v3534_v28 = vsel %vm3533_vm5, %v9380_v25, %v7572_v58  ;;  %v7583_v41 = vunpack.i.h.bf16 %v9888_v7  ;;  %v1781_v45 = vrot.slane %v1554_v54, 1  ;;  %v8978_v18 = vld [vmem:[%s9228_s26 + $0x2f0] ss:$8 sps:$4 sm:$0xff]  }
 0x1ac   : > { %v9962_v3 = vpop.permute.xlu1 %7605  ;;  %v1261_v62 = vpop.f32.mrb[79].mxu0  ;;  %v9988_v5 = vadd.f32 %v9983_v63, %v1259_v10  ;;  %v7914_v25 = vpack.i.bf16 %v9967_v57, %v9914_v20  ;;  %v1783_v58 = vrot.slane %v9925_v4, 1  ;;  %v10008_v54 = vmax.f32 %v1257_v50, 0.0 }
 0x1ad   : > { %v3535_v62 = vsel %vm3533_vm5, %v9375_v23, %v7573_v22  ;;  %v7598_v23 = vunpack.i.h.bf16 %v7596_v14  ;;  %v7919_v42 = vpack.i.bf16 %v9925_v4, %v9886_v13 }
 0x1ae   : > { %7880 = vrot.lane.b32.xlu1 %v7879_v17, %s9119_s19  ;;  %1471 = vmatmul.mubr.bf16.gmra.mrb[184].mxu0 %v8975_v9  ;;  %v7597_v17 = vunpack.i.l.bf16 %v7596_v14  ;;  %v7894_v9 = vpack.i.bf16 %v9886_v13, %v9882_v55  ;;  %v3607_v14 = vsel %vm3606_vm6, %v3534_v28, %v7577_v6  ;;  %v3608_v21 = vsel %vm3606_vm6, %v3535_v62, %v7578_v39 }
 0x1af   : > { %7900 = vrot.lane.b32.xlu0 %v7899_v15, %s9119_s19  ;;  %7067 = vmatprep.mubr.msk.bf16.mxu0 %vm906_vm0, %v8976_v49  ;;  %v10002_v22 = vpop.permute.xlu0 %7620  ;;  %v3680_v52 = vsel %vm3679_vm7, %v3607_v14, %v7582_v34  ;;  %v3681_v60 = vsel %vm3679_vm7, %v3608_v21, %v7583_v41  ;;  %v8979_v49 = vld [vmem:[%s9228_s26 + $0x304] ss:$8 sps:$4 sm:$0xff]   ;;  %v14140_v34 = vrot.slane %v9934_v51, 1  ;;  %v3753_v41 = vsel %vm3533_vm5, %v9466_v37, %v7598_v23 }
 0x1b0   : > { %v9998_v10 = vpop.permute.xlu1 %7610  ;;  %v3752_v39 = vsel %vm3533_vm5, %v9437_v8, %v7597_v17  ;;  %v14141_v14 = vmax.f32 %v9988_v5, 0.0  ;;  %v2171_v8 = vrot.slane %v10008_v54, 2  ;;  %v7588_v17 = vunpack.i.h.bf16 %v9907_v47 }
 0x1b1   : > { %v1264_v7 = vpop.f32.mrb[80].mxu0  ;;  %v10031_v21 = vsel %vm1719_vm4, %v1783_v58, %v14140_v34 }
 0x1b2   : > { %7895 = vrot.lane.b32.xlu1 %v7894_v9, %s9119_s19  ;;  %v1266_v55 = vpop.f32.mrb[81].mxu0  ;;  %v14139_v9 = vrot.slane %v9886_v13, 1  ;;  %v2173_v13 = vrot.slane %v14141_v14, 2 }
 0x1b3   : > { %7915 = vrot.lane.b32.xlu0 %v7914_v25, %s9118_s14  ;;  %v1267_v36 = vpop.f32.mrb[82].mxu0 }
 0x1b4   : > { %v7616_v50 = vpop.permute.xlu1 %7615  ;;  %v10024_v55 = vsel %vm1719_vm4, %v14139_v9, %v1781_v45  ;;  %v1269_v6 = vpop.f32.mrb[83].mxu0 }
 0x1b5   : > { %v7618_v62 = vunpack.i.h.bf16 %v7616_v50  ;;  %v7617_v28 = vunpack.i.l.bf16 %v7616_v50  ;;  %v7631_v25 = vpop.permute.xlu0 %7630  ;;  %v7587_v50 = vunpack.i.l.bf16 %v9907_v47 }
 0x1b6   : > { %v7633_v45 = vunpack.i.h.bf16 %v7631_v25  ;;  %v7632_v9 = vunpack.i.l.bf16 %v7631_v25  ;;  %7905 = vrot.lane.b32.xlu1 %v7899_v15, %s9118_s14  ;;  %1479 = vmatmul.mubr.bf16.gmra.mrb[188].mxu0 %v8978_v18  ;;  %v7909_v15 = vpack.i.bf16 %v9914_v20, %v9921_v26 }
 0x1b7   : > { %7920 = vrot.lane.b32.xlu0 %v7919_v42, %s9117_s13  ;;  %v3824_v58 = vsel %vm3606_vm6, %v3752_v39, %v7617_v28  ;;  %v3825_v37 = vsel %vm3606_vm6, %v3753_v41, %v7618_v62  ;;  %7068 = vmatprep.mubr.msk.bf16.mxu0 %vm906_vm0, %v8979_v49  ;;  %v7929_v42 = vpack.i.bf16 %v10031_v21, %v10024_v55  ;;  %v7593_v49 = vunpack.i.h.bf16 %v9927_v2 }
 0x1b8   : > { %v10045_v23 = vpop.permute.xlu1 %7625  ;;  %v3896_v18 = vsel %vm3679_vm7, %v3824_v58, %v7632_v9  ;;  %v3897_v6 = vsel %vm3679_vm7, %v3825_v37, %v7633_v45  ;;  %v3968_v39 = vpack.c.bf16 %v3681_v60, %v3680_v52  ;;  %v7592_v28 = vunpack.i.l.bf16 %v9927_v2  ;;  %v8981_v9 = vld [vmem:[%s9228_s26 + $0x300] ss:$8 sps:$4 sm:$0xff]  }
 0x1b9   : > { %v10051_v25 = vpop.permute.xlu0 %7645  ;;  %v3969_v47 = vpack.c.bf16 %v3897_v6, %v3896_v18  ;;  %v1272_v62 = vpop.f32.mrb[84].mxu0  ;;  %v14142_v41 = vrot.slane %v9934_v51, 2  ;;  %v10064_v45 = vsel %vm2104_vm3, %v2171_v8, %v2173_v13  ;;  %v3537_v52 = vsel %vm3533_vm5, %v9414_v56, %v7588_v17  ;;  %v8982_v17 = vld [vmem:[%s9228_s26 + $0x314] ss:$8 sps:$4 sm:$0xff]  }
 0x1ba   : > { %7910 = vrot.lane.b32.xlu1 %v7909_v15, %s9117_s13  ;;  %v1274_v34 = vpop.f32.mrb[85].mxu0  ;;  %14144 = vst [vmem:[#allocation56_spill] sm:$0xff] %v10064_v45  ;;  %v3536_v60 = vsel %vm3533_vm5, %v9386_v32, %v7587_v50  ;;  %v1265_v58 = vadd.f32 %v9983_v63, %v1264_v7  ;;  %v1268_v37 = vadd.f32 %v9983_v63, %v1267_v36  ;;  %v7623_v32 = vunpack.i.h.bf16 %v10002_v22 }
 0x1bb   : > { %v10061_v14 = vsel %vm2104_vm3, %v14142_v41, %v2171_v8  ;;  %7930 = vrot.lane.b32.xlu0 %v7929_v42, %s9119_s19  ;;  %4364 = vmatprep.mubr.bf16.mxu1 %v3969_v47  ;;  %v1275_v2 = vpop.f32.mrb[86].mxu0  ;;  %v7924_v13 = vpack.i.bf16 %v9934_v51, %v9925_v4  ;;  %v7944_v56 = vpack.i.bf16 %v10008_v54, %v9934_v51  ;;  %v7622_v50 = vunpack.i.l.bf16 %v10002_v22 }
 0x1bc   : > { %14143 = vst [vmem:[#allocation55_spill] sm:$0xff] %v10061_v14  ;;  %v10074_v15 = vpop.permute.xlu1 %7635  ;;  %4365 = vmatmul.mubr.bf16.vlgmr.msra.gmra.mrb[0].mxu1 %v3968_v39  ;;  %v1277_v8 = vpop.f32.mrb[87].mxu0  ;;  %v1786_v7 = vrot.slane %v10008_v54, 1  ;;  %v14145_v47 = vmax.f32 %v9988_v5, 0.0  ;;  %v3609_v34 = vsel %vm3606_vm6, %v3536_v60, %v7592_v28  ;;  %v3610_v41 = vsel %vm3606_vm6, %v3537_v52, %v7593_v49 }
 0x1bd   : > { %v7651_v18 = vpop.permute.xlu0 %7650  ;;  %v7613_v22 = vunpack.i.h.bf16 %v9998_v10  ;;  %v7612_v8 = vunpack.i.l.bf16 %v9998_v10  ;;  %v10095_v36 = vmax.f32 %v1265_v58, 0.0  ;;  %v10097_v6 = vmax.f32 %v1268_v37, 0.0 }
 0x1be   : > { %v1788_v39 = vrot.slane %v14145_v47, 1  ;;  %7925 = vrot.lane.b32.xlu1 %v7924_v13, %s9119_s19  ;;  %1487 = vmatmul.mubr.bf16.gmra.mrb[192].mxu0 %v8981_v9  ;;  %v7653_v26 = vunpack.i.h.bf16 %v7651_v18  ;;  %v7652_v20 = vunpack.i.l.bf16 %v7651_v18  ;;  %v7939_v28 = vpack.i.bf16 %v9972_v19, %v9967_v57  ;;  %v8985_v57 = vld [vmem:[%s9228_s26 + $0x324] ss:$8 sps:$4 sm:$0xff]  }
 0x1bf   : > { %7945 = vrot.lane.b32.xlu0 %v7944_v56, %s9117_s13  ;;  %7069 = vmatprep.mubr.msk.bf16.mxu0 %vm906_vm0, %v8982_v17  ;;  %v3755_v49 = vsel %vm3533_vm5, %v9517_v11, %v7623_v32  ;;  %v3754_v10 = vsel %vm3533_vm5, %v9469_v38, %v7622_v50  ;;  %v7949_v52 = vpack.i.bf16 %v10061_v14, %v9972_v19  ;;  %v14146_v58 = vrot.slane %v9934_v51, 1  ;;  %v8984_v32 = vld [vmem:[%s9228_s26 + $0x310] ss:$8 sps:$4 sm:$0xff]  }
 0x1c0   : > { %v10099_v5 = vpop.permute.xlu1 %7640  ;;  %v1273_v13 = vadd.f32 %v9983_v63, %v1272_v62  ;;  %v10120_v38 = vsel %vm1719_vm4, %v1786_v7, %v1788_v39  ;;  %v3826_v50 = vsel %vm3606_vm6, %v3754_v10, %v7652_v20  ;;  %v3827_v18 = vsel %vm3606_vm6, %v3755_v49, %v7653_v26 }
 0x1c1   : > { %v7661_v9 = vpop.permute.xlu0 %7660  ;;  %v10110_v60 = vpop.f32.mrb[88].mxu0  ;;  %v10115_v37 = vsel %vm1719_vm4, %v14146_v58, %v1786_v7  ;;  %v3682_v47 = vsel %vm3679_vm7, %v3609_v34, %v7612_v8  ;;  %v3683_v62 = vsel %vm3679_vm7, %v3610_v41, %v7613_v22  ;;  %v2175_v39 = vrot.slane %v10095_v36, 2  ;;  %v8991_v8 = vld [vmem:[%s13923_s2 + $0x80] sm:$0xff]  }
 0x1c2   : > { %v7663_v56 = vunpack.i.h.bf16 %v7661_v9  ;;  %v7662_v17 = vunpack.i.l.bf16 %v7661_v9  ;;  %7935 = vrot.lane.b32.xlu1 %v7929_v42, %s9118_s14  ;;  %v1282_v11 = vpop.f32.mrb[89].mxu0  ;;  %v7602_v20 = vunpack.i.l.bf16 %v9942_v40  ;;  %v10137_v26 = vadd.f32 %v9983_v63, %v1275_v2  ;;  %7398 = vmatprep.subr.bf16.mxu1 %v8991_v8 }
 0x1c3   : > { %7950 = vrot.lane.b32.xlu0 %v7949_v52, %s9118_s14  ;;  %v1283_v58 = vpop.f32.mrb[90].mxu0  ;;  %v13974_v11 = vrot.slane %v10097_v6, 2  ;;  %v7954_v41 = vpack.i.bf16 %v10120_v38, %v10115_v37  ;;  %v7608_v49 = vunpack.i.h.bf16 %v9962_v3  ;;  %v7607_v10 = vunpack.i.l.bf16 %v9962_v3  ;;  %7399 = vmatpush3.bf16.msra.mxu1 %v8991_v8 }
 0x1c4   : > { %v10128_v9 = vpop.permute.xlu1 %7655  ;;  %v3898_v42 = vsel %vm3679_vm7, %v3826_v50, %v7662_v17  ;;  %v3899_v7 = vsel %vm3679_vm7, %v3827_v18, %v7663_v56  ;;  %v1285_v52 = vpop.f32.mrb[91].mxu0  ;;  %v10148_v56 = vmax.f32 %v1273_v13, 0.0  ;;  %v3971_v2 = vpack.c.bf16 %v3683_v62, %v3682_v47 }
 0x1c5   : > { %v10139_v34 = vpop.permute.xlu0 %7675  ;;  %v3972_v22 = vpack.c.bf16 %v3899_v7, %v3898_v42  ;;  %v7627_v17 = vunpack.i.l.bf16 %v10045_v23  ;;  %v1790_v50 = vrot.slane %v10095_v36, 1  ;;  %v7648_v18 = vunpack.i.h.bf16 %v10051_v25 }
 0x1c6   : > { %14147 = vst [vmem:[#allocation57_spill] sm:$0xff] %v10148_v56  ;;  %7940 = vrot.lane.b32.xlu1 %v7939_v28, %s9117_s13  ;;  %1495 = vmatmul.mubr.bf16.gmra.mrb[196].mxu0 %v8984_v32  ;;  %v7647_v42 = vunpack.i.l.bf16 %v10051_v25  ;;  %v10161_v3 = vsel %vm2104_vm3, %v2175_v39, %v13974_v11  ;;  %v1791_v28 = vrot.slane %v10097_v6, 1  ;;  %v14149_v13 = vunpack.i.h.bf16 %v9942_v40  ;;  %v8988_v11 = vld [vmem:[%s9228_s26 + $0x334] ss:$8 sps:$4 sm:$0xff]  }
 0x1c7   : > { %7955 = vrot.lane.b32.xlu0 %v7954_v41, %s9119_s19  ;;  %4372 = vmatprep.mubr.bf16.mxu1 %v3972_v22  ;;  %14148 = vst [vmem:[#allocation58_spill] sm:$0xff] %v10161_v3  ;;  %v3538_v25 = vsel %vm3533_vm5, %v9421_v61, %v7602_v20  ;;  %v1562_v47 = vmax.f32 %v10137_v26, 0.0  ;;  %v7974_v39 = vpack.i.bf16 %v10097_v6, %v10095_v36  ;;  %v8987_v26 = vld [vmem:[%s9228_s26 + $0x320] ss:$8 sps:$4 sm:$0xff]   ;;  %v7628_v22 = vunpack.i.h.bf16 %v10045_v23 }
 0x1c8   : > { %v10156_v7 = vpop.permute.xlu1 %7665  ;;  %4373 = vmatmul.mubr.bf16.gmra.mrb[4].mxu1 %v3971_v2  ;;  %7070 = vmatprep.mubr.msk.bf16.mxu0 %vm906_vm0, %v8985_v57  ;;  %v3539_v32 = vsel %vm3533_vm5, %v9444_v16, %v14149_v13  ;;  %v7964_v40 = vpack.i.bf16 %v10064_v45, %v10061_v14  ;;  %v3611_v61 = vsel %vm3606_vm6, %v3538_v25, %v7607_v10  ;;  %v7678_v2 = vunpack.i.h.bf16 %v10139_v34 }
 0x1c9   : > { %v10172_v62 = vpop.permute.xlu0 %7680  ;;  %v10176_v52 = vpop.f32.mrb[92].mxu0  ;;  %v3612_v20 = vsel %vm3606_vm6, %v3539_v32, %v7608_v49  ;;  %v7677_v13 = vunpack.i.l.bf16 %v10139_v34  ;;  %v3757_v10 = vsel %vm3533_vm5, %v9574_v59, %v7648_v18  ;;  %v3756_v8 = vsel %vm3533_vm5, %v9520_v12, %v7647_v42 }
 0x1ca   : > { %7960 = vrot.lane.b32.xlu1 %v7954_v41, %s9118_s14  ;;  %v1290_v16 = vpop.f32.mrb[93].mxu0  ;;  %v7979_v41 = vpack.i.bf16 %v10161_v3, %v10064_v45  ;;  %v10201_v23 = vsel %vm1719_vm4, %v1790_v50, %v1791_v28  ;;  %v3684_v34 = vsel %vm3679_vm7, %v3611_v61, %v7627_v17  ;;  %v7638_v25 = vunpack.i.h.bf16 %v10074_v15 }
 0x1cb   : > { %7975 = vrot.lane.b32.xlu0 %v7974_v39, %s9117_s13  ;;  %v10191_v16 = vpop.f32.mrb[94].mxu0  ;;  %v2180_v39 = vrot.slane %v1562_v47, 2  ;;  %v1281_v57 = vadd.f32 %v9983_v63, %v10110_v60  ;;  %v1284_v14 = vadd.f32 %v9983_v63, %v1283_v58  ;;  %v14150_v12 = vrot.slane %v10148_v56, 1 }
 0x1cc   : > { %v10198_v49 = vpop.permute.xlu1 %7670  ;;  %v1293_v32 = vpop.f32.mrb[95].mxu0  ;;  %v2178_v17 = vrot.slane %v10148_v56, 2  ;;  %v7637_v42 = vunpack.i.l.bf16 %v10074_v15  ;;  %v3828_v60 = vsel %vm3606_vm6, %v3756_v8, %v7677_v13  ;;  %v3829_v58 = vsel %vm3606_vm6, %v3757_v10, %v7678_v2 }
 0x1cd   : > { %v7686_v59 = vpop.permute.xlu0 %7685  ;;  %v10212_v50 = vsel %vm1719_vm4, %v1791_v28, %v14150_v12  ;;  %v3685_v61 = vsel %vm3679_vm7, %v3612_v20, %v7628_v22  ;;  %v7969_v28 = vpack.i.bf16 %v10095_v36, %v10008_v54  ;;  %v10227_v32 = vmax.f32 %v1281_v57, 0.0 }
 0x1ce   : > { %v7688_v18 = vunpack.i.h.bf16 %v7686_v59  ;;  %v7687_v45 = vunpack.i.l.bf16 %v7686_v59  ;;  %7965 = vrot.lane.b32.xlu1 %v7964_v40, %s9117_s13  ;;  %1503 = vmatmul.mubr.bf16.gmra.mrb[200].mxu0 %v8987_v26  ;;  %v7989_v20 = vpack.i.bf16 %v10212_v50, %v10201_v23  ;;  %v1795_v2 = vrot.slane %v1562_v47, 1  ;;  %v8990_v59 = vld [vmem:[%s9228_s26 + $0x330] ss:$8 sps:$4 sm:$0xff]  }
 0x1cf   : > { %7980 = vrot.lane.b32.xlu0 %v7979_v41, %s9118_s14  ;;  %7071 = vmatprep.mubr.msk.bf16.mxu0 %vm906_vm0, %v8988_v11  ;;  %v10229_v41 = vmax.f32 %v1284_v14, 0.0  ;;  %v3974_v10 = vpack.c.bf16 %v3685_v61, %v3684_v34  ;;  %v14152_v8 = vrot.slane %v10097_v6, 2  ;;  %v10242_v57 = vsel %vm2104_vm3, %v2178_v17, %v2180_v39 }
 0x1d0   : > { %v10221_v40 = vpop.permute.xlu1 %7690  ;;  %v3900_v26 = vsel %vm3679_vm7, %v3828_v60, %v7687_v45  ;;  %v3901_v15 = vsel %vm3679_vm7, %v3829_v58, %v7688_v18  ;;  %14154 = vst [vmem:[#allocation61_spill] sm:$0xff] %v10242_v57  ;;  %v3541_v18 = vsel %vm3533_vm5, %v9484_v48, %v7638_v25  ;;  %v3540_v12 = vsel %vm3533_vm5, %v9476_v43, %v7637_v42 }
 0x1d1   : > { %14151 = vst [vmem:[#allocation59_spill] sm:$0xff] %v10229_v41  ;;  %v7706_v13 = vpop.permute.xlu0 %7705  ;;  %v3975_v22 = vpack.c.bf16 %v3901_v15, %v3900_v26  ;;  %v10233_v11 = vpop.f32.mrb[96].mxu0  ;;  %v10239_v45 = vsel %vm2104_vm3, %v14152_v8, %v2178_v17  ;;  %v7642_v47 = vunpack.i.l.bf16 %v10099_v5  ;;  %v7984_v34 = vpack.i.bf16 %v10148_v56, %v10097_v6 }
 0x1d2   : > { %7970 = vrot.lane.b32.xlu1 %v7969_v28, %s9119_s19  ;;  %14153 = vst [vmem:[#allocation60_spill] sm:$0xff] %v10239_v45  ;;  %v1298_v14 = vpop.f32.mrb[97].mxu0  ;;  %v7643_v39 = vunpack.i.h.bf16 %v10099_v5  ;;  %v7658_v17 = vunpack.i.h.bf16 %v10128_v9  ;;  %v7657_v58 = vunpack.i.l.bf16 %v10128_v9  ;;  %v1289_v43 = vadd.f32 %v9983_v63, %v10176_v52 }
 0x1d3   : > { %7990 = vrot.lane.b32.xlu0 %v7989_v20, %s9119_s19  ;;  %4380 = vmatprep.mubr.bf16.mxu1 %v3975_v22  ;;  %v1299_v60 = vpop.f32.mrb[98].mxu0  ;;  %v8004_v42 = vpack.i.bf16 %v10242_v57, %v10239_v45  ;;  %v1797_v28 = vrot.slane %v10227_v32, 1  ;;  %v7683_v26 = vunpack.i.h.bf16 %v10172_v62  ;;  %v7682_v9 = vunpack.i.l.bf16 %v10172_v62 }
 0x1d4   : > { %v10256_v61 = vpop.permute.xlu1 %7695  ;;  %4381 = vmatmul.mubr.bf16.gmra.mrb[8].mxu1 %v3974_v10  ;;  %v1301_v48 = vpop.f32.mrb[99].mxu0  ;;  %v8009_v15 = vpack.i.bf16 %v10227_v32, %v10148_v56  ;;  %v14155_v52 = vrot.slane %v10148_v56, 1  ;;  %v7668_v10 = vunpack.i.h.bf16 %v10156_v7  ;;  %v7708_v8 = vunpack.i.h.bf16 %v7706_v13 }
 0x1d5   : > { %v10260_v25 = vpop.permute.xlu0 %7710  ;;  %v7707_v14 = vunpack.i.l.bf16 %v7706_v13  ;;  %v3613_v48 = vsel %vm3606_vm6, %v3540_v12, %v7642_v47  ;;  %v1292_v62 = vadd.f32 %v9983_v63, %v10191_v16  ;;  %v7999_v5 = vpack.i.bf16 %v10239_v45, %v10161_v3 }
 0x1d6   : > { %7985 = vrot.lane.b32.xlu1 %v7984_v34, %s9119_s19  ;;  %v10274_v22 = vsel %vm1719_vm4, %v14155_v52, %v1795_v2  ;;  %1511 = vmatmul.mubr.bf16.gmra.mrb[204].mxu0 %v8990_v59  ;;  %v3614_v2 = vsel %vm3606_vm6, %v3541_v18, %v7643_v39  ;;  %v3686_v59 = vsel %vm3679_vm7, %v3613_v48, %v7657_v58  ;;  %v7667_v52 = vunpack.i.l.bf16 %v10156_v7 }
 0x1d7   : > { %8005 = vrot.lane.b32.xlu0 %v8004_v42, %s9118_s14  ;;  %v10288_v19 = vmax.f32 %v1289_v43, 0.0  ;;  %v14156_v42 = vrot.slane %v10229_v41, 1  ;;  %v3687_v16 = vsel %vm3679_vm7, %v3614_v2, %v7658_v17  ;;  %v3759_v45 = vsel %vm3533_vm5, %v9616_v35, %v7683_v26 }
 0x1d8   : > { %v10281_v34 = vpop.permute.xlu1 %7700  ;;  %v3758_v18 = vsel %vm3533_vm5, %v9558_v46, %v7682_v9  ;;  %v3543_v43 = vsel %vm3533_vm5, %v9537_v27, %v7668_v10  ;;  %v8014_v35 = vpack.i.bf16 %v10229_v41, %v10227_v32  ;;  %v7672_v46 = vunpack.i.l.bf16 %v10198_v49 }
 0x1d9   : > { %v7721_v13 = vpop.permute.xlu0 %7720  ;;  %v10293_v12 = vsel %vm1719_vm4, %v1797_v28, %v14156_v42  ;;  %v10296_v47 = vpop.f32.mrb[100].mxu0  ;;  %v3830_v17 = vsel %vm3606_vm6, %v3758_v18, %v7707_v14  ;;  %v3831_v28 = vsel %vm3606_vm6, %v3759_v45, %v7708_v8  ;;  %v1566_v9 = vmax.f32 %v1292_v62, 0.0 }
 0x1da   : > { %14157 = vst [vmem:[#allocation62_spill] sm:$0xff] %v10293_v12  ;;  %v7723_v39 = vunpack.i.h.bf16 %v7721_v13  ;;  %v7722_v7 = vunpack.i.l.bf16 %v7721_v13  ;;  %7995 = vrot.lane.b32.xlu1 %v7989_v20, %s9118_s14  ;;  %v1306_v58 = vpop.f32.mrb[101].mxu0  ;;  %v1297_v45 = vadd.f32 %v9983_v63, %v10233_v11  ;;  %v8019_v14 = vpack.i.bf16 %v10293_v12, %v10274_v22 }
 0x1db   : > { %8010 = vrot.lane.b32.xlu0 %v8009_v15, %s9117_s13  ;;  %v10310_v26 = vpop.f32.mrb[102].mxu0  ;;  %v2185_v15 = vrot.slane %v10288_v19, 2  ;;  %v1300_v62 = vadd.f32 %v9983_v63, %v1299_v60  ;;  %v3977_v13 = vpack.c.bf16 %v3687_v16, %v3686_v59  ;;  %v2182_v42 = vrot.slane %v10227_v32, 2 }
 0x1dc   : > { %v10313_v48 = vpop.permute.xlu1 %7715  ;;  %v3902_v20 = vsel %vm3679_vm7, %v3830_v17, %v7722_v7  ;;  %v3903_v27 = vsel %vm3679_vm7, %v3831_v28, %v7723_v39  ;;  %v1309_v10 = vpop.f32.mrb[103].mxu0  ;;  %v2183_v18 = vrot.slane %v10229_v41, 2  ;;  %v3542_v39 = vsel %vm3533_vm5, %v9502_v1, %v7667_v52 }
 0x1dd   : > { %v10320_v8 = vpop.permute.xlu0 %7735  ;;  %v3978_v2 = vpack.c.bf16 %v3903_v27, %v3902_v20  ;;  %v7673_v11 = vunpack.i.h.bf16 %v10198_v49  ;;  %v8034_v7 = vpack.i.bf16 %v10288_v19, %v10229_v41  ;;  %v1802_v58 = vrot.slane %v1566_v9, 1 }
 0x1de   : > { %8000 = vrot.lane.b32.xlu1 %v7999_v5, %s9117_s13  ;;  %v2187_v60 = vrot.slane %v1566_v9, 2  ;;  %v1800_v5 = vrot.slane %v10288_v19, 1  ;;  %v3615_v59 = vsel %vm3606_vm6, %v3542_v39, %v7672_v46  ;;  %v7693_v16 = vunpack.i.h.bf16 %v10221_v40 }
 0x1df   : > { %8020 = vrot.lane.b32.xlu0 %v8019_v14, %s9119_s19  ;;  %4388 = vmatprep.mubr.bf16.mxu1 %v3978_v2  ;;  %v7713_v1 = vunpack.i.h.bf16 %v10260_v25  ;;  %v10340_v49 = vmax.f32 %v1297_v45, 0.0  ;;  %v10343_v28 = vsel %vm2104_vm3, %v2183_v18, %v2185_v15  ;;  %v7692_v9 = vunpack.i.l.bf16 %v10221_v40 }
 0x1e0   : > { %v10334_v17 = vpop.permute.xlu1 %7725  ;;  %4389 = vmatmul.mubr.bf16.gmra.mrb[12].mxu1 %v3977_v13  ;;  %14159 = vst [vmem:[#allocation64_spill] sm:$0xff] %v10343_v28  ;;  %v7712_v27 = vunpack.i.l.bf16 %v10260_v25  ;;  %v10349_v10 = vmax.f32 %v1300_v62, 0.0  ;;  %v10353_v46 = vsel %vm2104_vm3, %v2182_v42, %v2183_v18  ;;  %v7703_v45 = vunpack.i.h.bf16 %v10281_v34 }
 0x1e1   : > { %14158 = vst [vmem:[#allocation63_spill] sm:$0xff] %v10340_v49  ;;  %v7741_v52 = vpop.permute.xlu0 %7740  ;;  %v10345_v20 = vpop.f32.mrb[104].mxu0  ;;  %14161 = vst [vmem:[#allocation66_spill] sm:$0xff] %v10353_v46  ;;  %v7702_v13 = vunpack.i.l.bf16 %v10281_v34  ;;  %v10361_v40 = vsel %vm2104_vm3, %v2185_v15, %v2187_v60  ;;  %v14163_v62 = vrot.slane %v10229_v41, 1  ;;  %v10373_v34 = vsel %vm1719_vm4, %v1800_v5, %v1802_v58 }
 0x1e2   : > { %14160 = vst [vmem:[#allocation65_spill] sm:$0xff] %v10349_v10  ;;  %8015 = vrot.lane.b32.xlu1 %v8014_v35, %s9119_s19  ;;  %v1314_v2 = vpop.f32.mrb[105].mxu0  ;;  %v7743_v39 = vunpack.i.h.bf16 %v7741_v52  ;;  %v7742_v3 = vunpack.i.l.bf16 %v7741_v52  ;;  %14162 = vst [vmem:[#allocation67_spill] sm:$0xff] %v10361_v40  ;;  %v8039_v35 = vpack.i.bf16 %v10343_v28, %v10353_v46  ;;  %v1305_v15 = vadd.f32 %v9983_v63, %v10296_v47 }
 0x1e3   : > { %8035 = vrot.lane.b32.xlu0 %v8034_v7, %s9117_s13  ;;  %v10358_v12 = vpop.f32.mrb[106].mxu0  ;;  %v10370_v42 = vsel %vm1719_vm4, %v14163_v62, %v1800_v5  ;;  %14164 = vst [vmem:[#allocation68_spill] sm:$0xff] %v10373_v34  ;;  %v3761_v7 = vsel %vm3533_vm5, %v9667_v44, %v7713_v1  ;;  %v3616_v52 = vsel %vm3606_vm6, %v3543_v43, %v7673_v11  ;;  %v2189_v2 = vrot.slane %v10340_v49, 2 }
 0x1e4   : > { %v10363_v25 = vpop.permute.xlu1 %7730  ;;  %v1317_v18 = vpop.f32.mrb[107].mxu0  ;;  %v3760_v41 = vsel %vm3533_vm5, %v9607_v30, %v7712_v27  ;;  %v13983_v58 = vrot.slane %v10349_v10, 2  ;;  %v3833_v47 = vsel %vm3606_vm6, %v3761_v7, %v7743_v39  ;;  %v3688_v5 = vsel %vm3679_vm7, %v3615_v59, %v7702_v13 }
 0x1e5   : > { %v7751_v60 = vpop.permute.xlu0 %7750  ;;  %v3832_v44 = vsel %vm3606_vm6, %v3760_v41, %v7742_v3  ;;  %v3689_v43 = vsel %vm3679_vm7, %v3616_v52, %v7703_v45  ;;  %v1308_v11 = vadd.f32 %v9983_v63, %v10310_v26  ;;  %v3545_v3 = vsel %vm3533_vm5, %v9568_v53, %v7693_v16 }
 0x1e6   : > { %v7753_v62 = vunpack.i.h.bf16 %v7751_v60  ;;  %v7752_v56 = vunpack.i.l.bf16 %v7751_v60  ;;  %8025 = vrot.lane.b32.xlu1 %v8019_v14, %s9118_s14  ;;  %v8029_v14 = vpack.i.bf16 %v10353_v46, %v10242_v57  ;;  %v10400_v41 = vmax.f32 %v1305_v15, 0.0 }
 0x1e7   : > { %8040 = vrot.lane.b32.xlu0 %v8039_v35, %s9118_s14  ;;  %v8044_v45 = vpack.i.bf16 %v10373_v34, %v10370_v42  ;;  %v3544_v39 = vsel %vm3533_vm5, %v9544_v33, %v7692_v9  ;;  %v7698_v35 = vunpack.i.h.bf16 %v10256_v61  ;;  %v3980_v18 = vpack.c.bf16 %v3689_v43, %v3688_v5 }
 0x1e8   : > { %v10392_v30 = vpop.permute.xlu1 %7745  ;;  %v3904_v1 = vsel %vm3679_vm7, %v3832_v44, %v7752_v56  ;;  %v3905_v27 = vsel %vm3679_vm7, %v3833_v47, %v7753_v62  ;;  %14165 = vst [vmem:[#allocation69_spill] sm:$0xff] %v10400_v41  ;;  %v7697_v56 = vunpack.i.l.bf16 %v10256_v61  ;;  %v7738_v53 = vunpack.i.h.bf16 %v10320_v8 }
 0x1e9   : > { %v7766_v59 = vpop.permute.xlu0 %7765  ;;  %v3981_v13 = vpack.c.bf16 %v3905_v27, %v3904_v1  ;;  %v1320_v26 = vpop.f32.mrb[108].mxu0  ;;  %v8054_v16 = vpack.i.bf16 %v10361_v40, %v10343_v28  ;;  %v10416_v33 = vsel %vm2104_vm3, %v2189_v2, %v13983_v58  ;;  %v7737_v61 = vunpack.i.l.bf16 %v10320_v8 }
 0x1ea   : > { %8030 = vrot.lane.b32.xlu1 %v8029_v14, %s9117_s13  ;;  %v1322_v7 = vpop.f32.mrb[109].mxu0  ;;  %14166 = vst [vmem:[#allocation70_spill] sm:$0xff] %v10416_v33  ;;  %v1570_v15 = vmax.f32 %v1308_v11, 0.0  ;;  %v8064_v52 = vpack.i.bf16 %v10349_v10, %v10340_v49  ;;  %v8059_v62 = vpack.i.bf16 %v10340_v49, %v10288_v19  ;;  %v7718_v47 = vunpack.i.h.bf16 %v10313_v48 }
 0x1eb   : > { %8045 = vrot.lane.b32.xlu0 %v8044_v45, %s9119_s19  ;;  %4396 = vmatprep.mubr.bf16.mxu1 %v3981_v13  ;;  %v1323_v9 = vpop.f32.mrb[110].mxu0  ;;  %v1807_v5 = vrot.slane %v10400_v41, 1  ;;  %v1804_v43 = vrot.slane %v10340_v49, 1  ;;  %v1805_v8 = vrot.slane %v10349_v10, 1  ;;  %v7717_v11 = vunpack.i.l.bf16 %v10313_v48 }
 0x1ec   : > { %v10419_v60 = vpop.permute.xlu1 %7755  ;;  %4397 = vmatmul.mubr.bf16.gmra.mrb[16].mxu1 %v3980_v18  ;;  %v1325_v44 = vpop.f32.mrb[111].mxu0  ;;  %v2192_v14 = vrot.slane %v10400_v41, 2  ;;  %v1313_v1 = vadd.f32 %v9983_v63, %v10345_v20  ;;  %v8069_v27 = vpack.i.bf16 %v10416_v33, %v10361_v40  ;;  %v3763_v13 = vsel %vm3533_vm5, %v9714_v0, %v7738_v53 }
 0x1ed   : > { %v10427_v2 = vpop.permute.xlu0 %7770  ;;  %v7768_v18 = vunpack.i.h.bf16 %v7766_v59  ;;  %v7767_v7 = vunpack.i.l.bf16 %v7766_v59  ;;  %v3617_v44 = vsel %vm3606_vm6, %v3544_v39, %v7697_v56  ;;  %v3762_v48 = vsel %vm3533_vm5, %v9656_v24, %v7737_v61 }
 0x1ee   : > { %8050 = vrot.lane.b32.xlu1 %v8044_v45, %s9118_s14  ;;  %v1809_v58 = vrot.slane %v1570_v15, 1  ;;  %v2194_v28 = vrot.slane %v1570_v15, 2  ;;  %v1316_v20 = vadd.f32 %v9983_v63, %v10358_v12  ;;  %v7728_v40 = vunpack.i.h.bf16 %v10334_v17 }
 0x1ef   : > { %8065 = vrot.lane.b32.xlu0 %v8064_v52, %s9117_s13  ;;  %v7727_v0 = vunpack.i.l.bf16 %v10334_v17  ;;  %v10451_v59 = vsel %vm1719_vm4, %v1804_v43, %v1805_v8  ;;  %v10454_v39 = vsel %vm1719_vm4, %v1805_v8, %v1807_v5  ;;  %v10458_v24 = vmax.f32 %v1313_v1, 0.0 }
 0x1f0   : > { %v10446_v45 = vpop.permute.xlu1 %7760  ;;  %14167 = vst [vmem:[#allocation71_spill] sm:$0xff] %v10454_v39  ;;  %v3618_v12 = vsel %vm3606_vm6, %v3545_v3, %v7698_v35  ;;  %v3834_v17 = vsel %vm3606_vm6, %v3762_v48, %v7767_v7  ;;  %v3835_v43 = vsel %vm3606_vm6, %v3763_v13, %v7768_v18  ;;  %v3690_v8 = vsel %vm3679_vm7, %v3617_v44, %v7717_v11 }
 0x1f1   : > { %v7776_v53 = vpop.permute.xlu0 %7775  ;;  %v10456_v56 = vpop.f32.mrb[112].mxu0  ;;  %14168 = vst [vmem:[#allocation72_spill] sm:$0xff] %v10458_v24  ;;  %v3691_v46 = vsel %vm3679_vm7, %v3618_v12, %v7718_v47  ;;  %v10469_v1 = vmax.f32 %v1316_v20, 0.0  ;;  %v10477_v7 = vsel %vm1719_vm4, %v1807_v5, %v1809_v58  ;;  %v1324_v11 = vadd.f32 %v9983_v63, %v1323_v9 }
 0x1f2   : > { %v7778_v61 = vunpack.i.h.bf16 %v7776_v53  ;;  %v7777_v15 = vunpack.i.l.bf16 %v7776_v53  ;;  %8055 = vrot.lane.b32.xlu1 %v8054_v16, %s9117_s13  ;;  %v1330_v52 = vpop.f32.mrb[113].mxu0  ;;  %v1321_v16 = vadd.f32 %v9983_v63, %v1320_v26  ;;  %14170 = vst [vmem:[#allocation74_spill] sm:$0xff] %v10477_v7  ;;  %v8079_v47 = vpack.i.bf16 %v10454_v39, %v10451_v59 }
 0x1f3   : > { %8070 = vrot.lane.b32.xlu0 %v8069_v27, %s9118_s14  ;;  %v10467_v57 = vpop.f32.mrb[114].mxu0  ;;  %14169 = vst [vmem:[#allocation73_spill] sm:$0xff] %v10469_v1  ;;  %v3547_v44 = vsel %vm3533_vm5, %v9603_v29, %v7728_v40  ;;  %v10485_v26 = vsel %vm2104_vm3, %v2192_v14, %v2194_v28  ;;  %v3983_v48 = vpack.c.bf16 %v3691_v46, %v3690_v8  ;;  %v14172_v20 = vrot.slane %v10349_v10, 2  ;;  %v14177_v28 = vld [vmem:[#allocation23_spill] sm:$0xff] }
 0x1f4   : > { %v10471_v53 = vpop.permute.xlu1 %7780  ;;  %v3906_v3 = vsel %vm3679_vm7, %v3834_v17, %v7777_v15  ;;  %v3907_v35 = vsel %vm3679_vm7, %v3835_v43, %v7778_v61  ;;  %v1333_v27 = vpop.f32.mrb[115].mxu0  ;;  %14171 = vst [vmem:[#allocation75_spill] sm:$0xff] %v10485_v26  ;;  %v3546_v9 = vsel %vm3533_vm5, %v9611_v31, %v7727_v0  ;;  %v7733_v5 = vunpack.i.h.bf16 %v10363_v25 }
 0x1f5   : > { %v7796_v13 = vpop.permute.xlu0 %7795  ;;  %v3984_v18 = vpack.c.bf16 %v3907_v35, %v3906_v3  ;;  %v10491_v58 = vsel %vm2104_vm3, %v14172_v20, %v2192_v14  ;;  %v7732_v61 = vunpack.i.l.bf16 %v10363_v25  ;;  %v1811_v29 = vrot.slane %v10458_v24, 1 }
 0x1f6   : > { %8060 = vrot.lane.b32.xlu1 %v8059_v62, %s9119_s19  ;;  %14173 = vst [vmem:[#allocation76_spill] sm:$0xff] %v10491_v58  ;;  %v1812_v46 = vrot.slane %v10469_v1, 1  ;;  %v10501_v40 = vmax.f32 %v1321_v16, 0.0  ;;  %v8074_v31 = vpack.i.bf16 %v10400_v41, %v10349_v10  ;;  %v7773_v14 = vunpack.i.h.bf16 %v10427_v2 }
 0x1f7   : > { %8080 = vrot.lane.b32.xlu0 %v8079_v47, %s9119_s19  ;;  %4404 = vmatprep.mubr.bf16.mxu1 %v3984_v18  ;;  %v7772_v25 = vunpack.i.l.bf16 %v10427_v2  ;;  %v1574_v0 = vmax.f32 %v1324_v11, 0.0  ;;  %v8094_v12 = vpack.i.bf16 %v10485_v26, %v10491_v58  ;;  %v7748_v17 = vunpack.i.h.bf16 %v10392_v30 }
 0x1f8   : > { %14174 = vst [vmem:[#allocation77_spill] sm:$0xff] %v10501_v40  ;;  %v10503_v62 = vpop.permute.xlu1 %7785  ;;  %4405 = vmatmul.mubr.bf16.gmra.mrb[20].mxu1 %v3983_v48  ;;  %v7747_v43 = vunpack.i.l.bf16 %v10392_v30  ;;  %v8099_v8 = vpack.i.bf16 %v10458_v24, %v10400_v41  ;;  %v7758_v2 = vunpack.i.h.bf16 %v10419_v60  ;;  %v7798_v3 = vunpack.i.h.bf16 %v7796_v13 }
 0x1f9   : > { %v10509_v15 = vpop.permute.xlu0 %7800  ;;  %v10513_v52 = vpop.f32.mrb[116].mxu0  ;;  %v7797_v35 = vunpack.i.l.bf16 %v7796_v13  ;;  %v8089_v27 = vpack.i.bf16 %v10491_v58, %v10416_v33  ;;  %v7757_v18 = vunpack.i.l.bf16 %v10419_v60  ;;  %v10531_v20 = vsel %vm1719_vm4, %v1811_v29, %v1812_v46 }
 0x1fa   : > { %8075 = vrot.lane.b32.xlu1 %v8074_v31, %s9119_s19  ;;  %v1338_v16 = vpop.f32.mrb[117].mxu0  ;;  %14175 = vst [vmem:[#allocation78_spill] sm:$0xff] %v10531_v20  ;;  %v3619_v31 = vsel %vm3606_vm6, %v3546_v9, %v7732_v61  ;;  %v3764_v58 = vsel %vm3533_vm5, %v14177_v28, %v7772_v25  ;;  %v1816_v33 = vrot.slane %v1574_v0, 1  ;;  %v2199_v60 = vrot.slane %v10501_v40, 2 }
 0x1fb   : > { %8095 = vrot.lane.b32.xlu0 %v8094_v12, %s9118_s14  ;;  %v1339_v11 = vpop.f32.mrb[118].mxu0  ;;  %v14176_v16 = vld [vmem:[#allocation30_spill] sm:$0xff]  ;;  %v2201_v41 = vrot.slane %v1574_v0, 2  ;;  %v3620_v29 = vsel %vm3606_vm6, %v3547_v44, %v7733_v5  ;;  %v3836_v9 = vsel %vm3606_vm6, %v3764_v58, %v7797_v35  ;;  %v1329_v25 = vadd.f32 %v9983_v63, %v10456_v56 }
 0x1fc   : > { %v10526_v48 = vpop.permute.xlu1 %7790  ;;  %v1341_v13 = vpop.f32.mrb[119].mxu0  ;;  %v3765_v12 = vsel %vm3533_vm5, %v14176_v16, %v7773_v14  ;;  %v3692_v14 = vsel %vm3679_vm7, %v3619_v31, %v7747_v43  ;;  %v3693_v28 = vsel %vm3679_vm7, %v3620_v29, %v7748_v17  ;;  %v1332_v0 = vadd.f32 %v9983_v63, %v10467_v57  ;;  %v14178_v5 = vld [vmem:[#allocation18_spill] sm:$0xff]  ;;  %v14179_v57 = vld [vmem:[#allocation15_spill] sm:$0xff] }
 0x1fd   : > { %v7811_v30 = vpop.permute.xlu0 %7810  ;;  %v3837_v61 = vsel %vm3606_vm6, %v3765_v12, %v7798_v3  ;;  %v3549_v58 = vsel %vm3533_vm5, %v14178_v5, %v7758_v2  ;;  %v8109_v17 = vpack.i.bf16 %v10531_v20, %v10477_v7  ;;  %v3548_v35 = vsel %vm3533_vm5, %v14179_v57, %v7757_v18 }
 0x1fe   : > { %v7813_v49 = vunpack.i.h.bf16 %v7811_v30  ;;  %v7812_v10 = vunpack.i.l.bf16 %v7811_v30  ;;  %8085 = vrot.lane.b32.xlu1 %v8079_v47, %s9118_s14  ;;  %v3986_v2 = vpack.c.bf16 %v3693_v28, %v3692_v14  ;;  %v7762_v13 = vunpack.i.l.bf16 %v10446_v45 }
 0x1ff   : > { %8100 = vrot.lane.b32.xlu0 %v8099_v8, %s9117_s13  ;;  %v2197_v8 = vrot.slane %v10469_v1, 2  ;;  %v14180_v16 = vrot.slane %v10501_v40, 1  ;;  %v10575_v29 = vsel %vm2104_vm3, %v2199_v60, %v2201_v41  ;;  %v8104_v18 = vpack.i.bf16 %v10469_v1, %v10458_v24 }
 0x200   : > { %v10550_v30 = vpop.permute.xlu1 %7805  ;;  %v3908_v47 = vsel %vm3679_vm7, %v3836_v9, %v7812_v10  ;;  %v3909_v44 = vsel %vm3679_vm7, %v3837_v61, %v7813_v49  ;;  %v7763_v10 = vunpack.i.h.bf16 %v10446_v45  ;;  %v7783_v49 = vunpack.i.h.bf16 %v10471_v53  ;;  %14182 = vst [vmem:[#allocation23_spill] sm:$0xff] %v10575_v29 }
 0x201   : > { %v10557_v43 = vpop.permute.xlu0 %7825  ;;  %v3987_v56 = vpack.c.bf16 %v3909_v44, %v3908_v47  ;;  %v10561_v3 = vpop.f32.mrb[120].mxu0  ;;  %v10572_v12 = vsel %vm1719_vm4, %v14180_v16, %v1816_v33  ;;  %v10583_v61 = vmax.f32 %v1329_v25, 0.0  ;;  %v10585_v45 = vmax.f32 %v1332_v0, 0.0 }
 0x202   : > { %8090 = vrot.lane.b32.xlu1 %v8089_v27, %s9117_s13  ;;  %v1346_v31 = vpop.f32.mrb[121].mxu0  ;;  %14181 = vst [vmem:[#allocation30_spill] sm:$0xff] %v10572_v12  ;;  %v7782_v27 = vunpack.i.l.bf16 %v10471_v53  ;;  %v8124_v41 = vpack.i.bf16 %v10501_v40, %v10469_v1  ;;  %v7803_v28 = vunpack.i.h.bf16 %v10509_v15  ;;  %v1337_v44 = vadd.f32 %v9983_v63, %v10513_v52  ;;  %v14186_v53 = vld [vmem:[#allocation22_spill] sm:$0xff] }
 0x203   : > { %8110 = vrot.lane.b32.xlu0 %v8109_v17, %s9119_s19  ;;  %4412 = vmatprep.mubr.bf16.mxu1 %v3987_v56  ;;  %v10580_v9 = vpop.f32.mrb[122].mxu0  ;;  %14183 = vst [vmem:[#allocation18_spill] sm:$0xff] %v10583_v61  ;;  %14184 = vst [vmem:[#allocation15_spill] sm:$0xff] %v10585_v45  ;;  %v10595_v5 = vsel %vm2104_vm3, %v2197_v8, %v2199_v60  ;;  %v10599_v25 = vsel %vm3533_vm5, %v14186_v53, %v7783_v49  ;;  %v7802_v0 = vunpack.i.l.bf16 %v10509_v15  ;;  %v10606_v56 = vld [vmem:[%s13926_s5] ss:$0 sm:$0xff]  ;;  %v14189_v31 = vld [vmem:[#allocation19_spill] sm:$0xff] }
 0x204   : > { %v10587_v14 = vpop.permute.xlu1 %7815  ;;  %4413 = vmatmul.mubr.bf16.gmra.mrb[24].mxu1 %v3986_v2  ;;  %v1349_v33 = vpop.f32.mrb[123].mxu0  ;;  %14185 = vst [vmem:[#allocation79_spill] sm:$0xff] %v10595_v5  ;;  %v1340_v57 = vadd.f32 %v10606_v56, %v1339_v11  ;;  %v14187_v63 = vrot.slane %v10458_v24, 2  ;;  %v7793_v60 = vunpack.i.h.bf16 %v10526_v48  ;;  %v7792_v49 = vunpack.i.l.bf16 %v10526_v48  ;;  %v14193_v24 = vld [vmem:[#allocation28_spill] sm:$0xff] }
 0x205   : > { %v7831_v47 = vpop.permute.xlu0 %7830  ;;  %v10619_v16 = vsel %vm3533_vm5, %v14189_v31, %v7782_v27  ;;  %v14190_v33 = vrot.slane %v10501_v40, 1  ;;  %v10635_v53 = vmax.f32 %v1337_v44, 0.0  ;;  %v3622_v31 = vsel %vm3606_vm6, %v3549_v58, %v7763_v10 }
 0x206   : > { %8105 = vrot.lane.b32.xlu1 %v8104_v18, %s9119_s19  ;;  %v10612_v52 = vsel %vm2104_vm3, %v14187_v63, %v2197_v8  ;;  %v7833_v2 = vunpack.i.h.bf16 %v7831_v47  ;;  %v7832_v15 = vunpack.i.l.bf16 %v7831_v47  ;;  %v2203_v18 = vrot.slane %v10583_v61, 2  ;;  %v14191_v47 = vld [vmem:[#allocation34_spill] sm:$0xff] }
 0x207   : > { %14188 = vst [vmem:[#allocation22_spill] sm:$0xff] %v10612_v52  ;;  %8125 = vrot.lane.b32.xlu0 %v8124_v41, %s9117_s13  ;;  %v8129_v8 = vpack.i.bf16 %v10595_v5, %v10612_v52  ;;  %v10631_v48 = vsel %vm1719_vm4, %v1812_v46, %v14190_v33  ;;  %v3767_v41 = vsel %vm3533_vm5, %v14191_v47, %v7803_v28  ;;  %14192 = vst [vmem:[#allocation19_spill] sm:$0xff] %v10635_v53 }
 0x208   : > { %v10622_v11 = vpop.permute.xlu1 %7820  ;;  %v3621_v63 = vsel %vm3606_vm6, %v3548_v35, %v7762_v13  ;;  %v3766_v39 = vsel %vm3533_vm5, %v14193_v24, %v7802_v0  ;;  %v1578_v7 = vmax.f32 %v1340_v57, 0.0  ;;  %v3839_v44 = vsel %vm3606_vm6, %v3767_v41, %v7833_v2 }
 0x209   : > { %v7841_v27 = vpop.permute.xlu0 %7840  ;;  %v10639_v20 = vpop.f32.mrb[124].mxu0  ;;  %v3838_v28 = vsel %vm3606_vm6, %v3766_v39, %v7832_v15  ;;  %v3694_v35 = vsel %vm3679_vm7, %v3621_v63, %v7792_v49  ;;  %v3695_v58 = vsel %vm3679_vm7, %v3622_v31, %v7793_v60  ;;  %v13999_v13 = vrot.slane %v10585_v45, 2 }
 0x20a   : > { %v7843_v1 = vunpack.i.h.bf16 %v7841_v27  ;;  %v7842_v34 = vunpack.i.l.bf16 %v7841_v27  ;;  %8115 = vrot.lane.b32.xlu1 %v8109_v17, %s9118_s14  ;;  %v1354_v46 = vpop.f32.mrb[125].mxu0  ;;  %v8119_v0 = vpack.i.bf16 %v10612_v52, %v10485_v26  ;;  %v1818_v39 = vrot.slane %v10583_v61, 1 }
 0x20b   : > { %8130 = vrot.lane.b32.xlu0 %v8129_v8, %s9118_s14  ;;  %v1355_v10 = vpop.f32.mrb[126].mxu0  ;;  %v14001_v2 = vrot.slane %v10635_v53, 2  ;;  %v8134_v60 = vpack.i.bf16 %v10572_v12, %v10631_v48  ;;  %v7828_v33 = vunpack.i.h.bf16 %v10557_v43  ;;  %v1823_v47 = vrot.slane %v1578_v7, 1 }
 0x20c   : > { %v10650_v24 = vpop.permute.xlu1 %7835  ;;  %v3910_v17 = vsel %vm3679_vm7, %v3838_v28, %v7842_v34  ;;  %v3911_v57 = vsel %vm3679_vm7, %v3839_v44, %v7843_v1  ;;  %v1357_v8 = vpop.f32.mrb[127].mxu0  ;;  %v2208_v41 = vrot.slane %v1578_v7, 2  ;;  %v3989_v27 = vpack.c.bf16 %v3695_v58, %v3694_v35 }
 0x20d   : > { %v7856_v49 = vpop.permute.xlu0 %7855  ;;  %v3990_v15 = vpack.c.bf16 %v3911_v57, %v3910_v17  ;;  %v7788_v34 = vunpack.i.h.bf16 %v10503_v62  ;;  %v1819_v1 = vrot.slane %v10585_v45, 1  ;;  %v7827_v63 = vunpack.i.l.bf16 %v10557_v43  ;;  %v14195_v57 = vld [vmem:[#allocation43_spill] sm:$0xff] }
 0x20e   : > { %8120 = vrot.lane.b32.xlu1 %v8119_v0, %s9117_s13  ;;  %v1821_v31 = vrot.slane %v10635_v53, 1  ;;  %v1345_v46 = vadd.f32 %v10606_v56, %v10561_v3  ;;  %v1348_v7 = vadd.f32 %v10606_v56, %v10580_v9  ;;  %v10676_v44 = vsel %vm2104_vm3, %v2203_v18, %v13999_v13 }
 0x20f   : > { %8135 = vrot.lane.b32.xlu0 %v8134_v60, %s9119_s19  ;;  %4420 = vmatprep.mubr.bf16.mxu1 %v3990_v15  ;;  %14194 = vst [vmem:[#allocation34_spill] sm:$0xff] %v10676_v44  ;;  %v7787_v43 = vunpack.i.l.bf16 %v10503_v62  ;;  %v7808_v35 = vunpack.i.h.bf16 %v10550_v30  ;;  %v7807_v58 = vunpack.i.l.bf16 %v10550_v30  ;;  %v8154_v3 = vpack.i.bf16 %v10585_v45, %v10583_v61  ;;  %v14198_v15 = vld [vmem:[#allocation36_spill] sm:$0xff] }
 0x210   : > { %v10669_v28 = vpop.permute.xlu1 %7845  ;;  %4421 = vmatmul.mubr.bf16.gmra.mrb[28].mxu1 %v3989_v27  ;;  %v3769_v9 = vsel %vm3533_vm5, %v14195_v57, %v7828_v33  ;;  %v10690_v8 = vsel %vm1719_vm4, %v1821_v31, %v1823_v47  ;;  %v10695_v62 = vsel %vm2104_vm3, %v14001_v2, %v2208_v41  ;;  %v8144_v30 = vpack.i.bf16 %v10575_v29, %v10595_v5 }
 0x211   : > { %v10681_v0 = vpop.permute.xlu0 %7860  ;;  %v10685_v17 = vpop.f32.mrb[128].mxu0  ;;  %14196 = vst [vmem:[#allocation28_spill] sm:$0xff] %v10690_v8  ;;  %14197 = vst [vmem:[#allocation43_spill] sm:$0xff] %v10695_v62  ;;  %v3768_v27 = vsel %vm3533_vm5, %v14198_v15, %v7827_v63  ;;  %v7858_v13 = vunpack.i.h.bf16 %v7856_v49  ;;  %v7857_v52 = vunpack.i.l.bf16 %v7856_v49  ;;  %v8159_v33 = vpack.i.bf16 %v10676_v44, %v10575_v29 }
 0x212   : > { %8140 = vrot.lane.b32.xlu1 %v8134_v60, %s9118_s14  ;;  %v1362_v18 = vpop.f32.mrb[129].mxu0  ;;  %v7818_v41 = vunpack.i.h.bf16 %v10587_v14  ;;  %v7817_v60 = vunpack.i.l.bf16 %v10587_v14  ;;  %v10709_v57 = vmax.f32 %v1345_v46, 0.0  ;;  %v10711_v2 = vmax.f32 %v1348_v7, 0.0 }
 0x213   : > { %8155 = vrot.lane.b32.xlu0 %v8154_v3, %s9117_s13  ;;  %v10705_v47 = vpop.f32.mrb[130].mxu0  ;;  %v1353_v49 = vadd.f32 %v10606_v56, %v10639_v20  ;;  %v10718_v3 = vsel %vm1719_vm4, %v1818_v39, %v1819_v1  ;;  %v10721_v29 = vsel %vm1719_vm4, %v1819_v1, %v1821_v31  ;;  %v3623_v14 = vsel %vm3606_vm6, %v10619_v16, %v7787_v43  ;;  %v14203_v16 = vld [vmem:[#allocation26_spill] sm:$0xff] }
 0x214   : > { %14199 = vst [vmem:[#allocation36_spill] sm:$0xff] %v10709_v57  ;;  %14200 = vst [vmem:[#allocation80_spill] sm:$0xff] %v10711_v2  ;;  %v10713_v18 = vpop.permute.xlu1 %7850  ;;  %v1365_v63 = vpop.f32.mrb[131].mxu0  ;;  %v1356_v7 = vadd.f32 %v10606_v56, %v1355_v10  ;;  %v3840_v20 = vsel %vm3606_vm6, %v3768_v27, %v7857_v52  ;;  %v3841_v39 = vsel %vm3606_vm6, %v3769_v9, %v7858_v13  ;;  %v1825_v13 = vrot.slane %v10709_v57, 1 }
 0x215   : > { %v7866_v15 = vpop.permute.xlu0 %7865  ;;  %14201 = vst [vmem:[#allocation81_spill] sm:$0xff] %v10718_v3  ;;  %14202 = vst [vmem:[#allocation82_spill] sm:$0xff] %v10721_v29  ;;  %v3624_v63 = vsel %vm3606_vm6, %v10599_v25, %v7788_v34  ;;  %v3696_v1 = vsel %vm3679_vm7, %v3623_v14, %v7807_v58  ;;  %v3553_v43 = vsel %vm3533_vm5, %v14203_v16, %v7818_v41  ;;  %v14206_v14 = vrot.slane %v10635_v53, 2 }
 0x216   : > { %v7868_v46 = vunpack.i.h.bf16 %v7866_v15  ;;  %v7867_v5 = vunpack.i.l.bf16 %v7866_v15  ;;  %8145 = vrot.lane.b32.xlu1 %v8144_v30, %s9117_s13  ;;  %v3697_v31 = vsel %vm3679_vm7, %v3624_v63, %v7808_v35  ;;  %v8149_v10 = vpack.i.bf16 %v10583_v61, %v10501_v40  ;;  %v14204_v30 = vld [vmem:[#allocation27_spill] sm:$0xff] }
 0x217   : > { %8160 = vrot.lane.b32.xlu0 %v8159_v33, %s9118_s14  ;;  %v3552_v52 = vsel %vm3533_vm5, %v14204_v30, %v7817_v60  ;;  %v8169_v35 = vpack.i.bf16 %v10721_v29, %v10718_v3  ;;  %v10749_v33 = vmax.f32 %v1353_v49, 0.0  ;;  %v1582_v41 = vmax.f32 %v1356_v7, 0.0 }
 0x218   : > { %v10736_v15 = vpop.permute.xlu1 %7870  ;;  %v3912_v25 = vsel %vm3679_vm7, %v3840_v20, %v7867_v5  ;;  %v3913_v34 = vsel %vm3679_vm7, %v3841_v39, %v7868_v46  ;;  %v3992_v5 = vpack.c.bf16 %v3697_v31, %v3696_v1  ;;  %v14207_v46 = vrot.slane %v10585_v45, 2 }
 0x219   : > { %v7886_v58 = vpop.permute.xlu0 %7885  ;;  %v3993_v9 = vpack.c.bf16 %v3913_v34, %v3912_v25  ;;  %v10747_v27 = vpop.f32.mrb[132].mxu0  ;;  %14205 = vst [vmem:[#allocation26_spill] sm:$0xff] %v10749_v33  ;;  %v7823_v20 = vunpack.i.h.bf16 %v10622_v11  ;;  %v7822_v1 = vunpack.i.l.bf16 %v10622_v11  ;;  %v7838_v31 = vunpack.i.h.bf16 %v10650_v24 }
 0x21a   : > { %8150 = vrot.lane.b32.xlu1 %v8149_v10, %s9119_s19  ;;  %v10757_v60 = vsel %vm2104_vm3, %v14207_v46, %v14206_v14  ;;  %v1370_v63 = vpop.f32.mrb[133].mxu0  ;;  %v7837_v10 = vunpack.i.l.bf16 %v10650_v24  ;;  %v8164_v34 = vpack.i.bf16 %v10635_v53, %v10585_v45  ;;  %v7863_v14 = vunpack.i.h.bf16 %v10681_v0  ;;  %v14211_v45 = vld [vmem:[#allocation47_spill] sm:$0xff] }
 0x21b   : > { %14208 = vst [vmem:[#allocation27_spill] sm:$0xff] %v10757_v60  ;;  %8170 = vrot.lane.b32.xlu0 %v8169_v35, %s9119_s19  ;;  %4428 = vmatprep.mubr.bf16.mxu1 %v3993_v9  ;;  %v1371_v7 = vpop.f32.mrb[134].mxu0  ;;  %v7862_v46 = vunpack.i.l.bf16 %v10681_v0  ;;  %v8184_v11 = vpack.i.bf16 %v10695_v62, %v10757_v60  ;;  %v1361_v9 = vadd.f32 %v10606_v56, %v10685_v17  ;;  %v1830_v39 = vrot.slane %v1582_v41, 1 }
 0x21c   : > { %v10767_v25 = vpop.permute.xlu1 %7875  ;;  %4429 = vmatmul.mubr.bf16.gmra.mrb[32].mxu1 %v3992_v5  ;;  %v1373_v30 = vpop.f32.mrb[135].mxu0  ;;  %v7888_v49 = vunpack.i.h.bf16 %v7886_v58  ;;  %v7887_v16 = vunpack.i.l.bf16 %v7886_v58  ;;  %v2215_v0 = vrot.slane %v1582_v41, 2  ;;  %v7847_v26 = vunpack.i.l.bf16 %v10669_v28  ;;  %v14212_v41 = vld [vmem:[#allocation41_spill] sm:$0xff] }
 0x21d   : > { %v10773_v63 = vpop.permute.xlu0 %7890  ;;  %v7848_v30 = vunpack.i.h.bf16 %v10669_v28  ;;  %v8189_v17 = vpack.i.bf16 %v10709_v57, %v10635_v53  ;;  %v8179_v24 = vpack.i.bf16 %v10757_v60, %v10676_v44  ;;  %v14209_v5 = vrot.slane %v10711_v2, 1 }
 0x21e   : > { %8165 = vrot.lane.b32.xlu1 %v8164_v34, %s9119_s19  ;;  %v3771_v58 = vsel %vm3533_vm5, %v14211_v45, %v7863_v14  ;;  %v10800_v29 = vmax.f32 %v1361_v9, 0.0  ;;  %v1364_v53 = vadd.f32 %v10606_v56, %v10705_v47 }
 0x21f   : > { %8185 = vrot.lane.b32.xlu0 %v8184_v11, %s9118_s14  ;;  %v10794_v34 = vsel %vm1719_vm4, %v1825_v13, %v14209_v5  ;;  %v3770_v11 = vsel %vm3533_vm5, %v14212_v41, %v7862_v46  ;;  %v3625_v13 = vsel %vm3606_vm6, %v3552_v52, %v7822_v1  ;;  %v3626_v5 = vsel %vm3606_vm6, %v3553_v43, %v7823_v20 }
 0x220   : > { %v10785_v61 = vpop.permute.xlu1 %7880  ;;  %14210 = vst [vmem:[#allocation83_spill] sm:$0xff] %v10794_v34  ;;  %14213 = vst [vmem:[#allocation47_spill] sm:$0xff] %v10800_v29  ;;  %v3842_v14 = vsel %vm3606_vm6, %v3770_v11, %v7887_v16  ;;  %v3843_v46 = vsel %vm3606_vm6, %v3771_v58, %v7888_v49  ;;  %v3698_v9 = vsel %vm3679_vm7, %v3625_v13, %v7837_v10  ;;  %v14216_v1 = vrot.slane %v10749_v33, 2  ;;  %v14220_v11 = vld [vmem:[#allocation29_spill] sm:$0xff] }
 0x221   : > { %v7901_v28 = vpop.permute.xlu0 %7900  ;;  %v10804_v12 = vpop.f32.mrb[136].mxu0  ;;  %v3699_v47 = vsel %vm3679_vm7, %v3626_v5, %v7838_v31  ;;  %v1369_v16 = vadd.f32 %v10606_v56, %v10747_v27  ;;  %v10832_v10 = vmax.f32 %v1364_v53, 0.0  ;;  %v3554_v27 = vsel %vm3533_vm5, %v14220_v11, %v7847_v26 }
 0x222   : > { %v7903_v60 = vunpack.i.h.bf16 %v7901_v28  ;;  %v7902_v44 = vunpack.i.l.bf16 %v7901_v28  ;;  %8175 = vrot.lane.b32.xlu1 %v8169_v35, %s9118_s14  ;;  %v1378_v45 = vpop.f32.mrb[137].mxu0  ;;  %v14214_v28 = vrot.slane %v10749_v33, 1  ;;  %v10830_v31 = vsel %vm2104_vm3, %v14216_v1, %v2215_v0 }
 0x223   : > { %8190 = vrot.lane.b32.xlu0 %v8189_v17, %s9117_s13  ;;  %v10814_v41 = vpop.f32.mrb[138].mxu0  ;;  %14217 = vst [vmem:[#allocation84_spill] sm:$0xff] %v10830_v31  ;;  %14218 = vst [vmem:[#allocation85_spill] sm:$0xff] %v10832_v10  ;;  %v3995_v13 = vpack.c.bf16 %v3699_v47, %v3698_v9  ;;  %v1372_v0 = vadd.f32 %v10606_v56, %v1371_v7  ;;  %v7853_v53 = vunpack.i.h.bf16 %v10713_v18  ;;  %v7852_v5 = vunpack.i.l.bf16 %v10713_v18 }
 0x224   : > { %v10819_v35 = vsel %vm1719_vm4, %v14214_v28, %v1830_v39  ;;  %v10821_v52 = vpop.permute.xlu1 %7895  ;;  %v3914_v43 = vsel %vm3679_vm7, %v3842_v14, %v7902_v44  ;;  %v3915_v20 = vsel %vm3679_vm7, %v3843_v46, %v7903_v60  ;;  %v1381_v49 = vpop.f32.mrb[139].mxu0  ;;  %v8199_v39 = vpack.i.bf16 %v10794_v34, %v10690_v8  ;;  %v14219_v44 = vld [vmem:[#allocation33_spill] sm:$0xff]  ;;  %v14225_v14 = vld [vmem:[#allocation51_spill] sm:$0xff] }
 0x225   : > { %14215 = vst [vmem:[#allocation41_spill] sm:$0xff] %v10819_v35  ;;  %v10834_v17 = vpop.permute.xlu0 %7915  ;;  %v3996_v58 = vpack.c.bf16 %v3915_v20, %v3914_v43  ;;  %v3555_v60 = vsel %vm3533_vm5, %v14219_v44, %v7848_v30  ;;  %v7893_v30 = vunpack.i.h.bf16 %v10773_v63  ;;  %v8194_v7 = vpack.i.bf16 %v10711_v2, %v10709_v57 }
 0x226   : > { %8180 = vrot.lane.b32.xlu1 %v8179_v24, %s9117_s13  ;;  %v10855_v24 = vmax.f32 %v1369_v16, 0.0  ;;  %v7873_v18 = vunpack.i.h.bf16 %v10736_v15  ;;  %v7892_v9 = vunpack.i.l.bf16 %v10773_v63  ;;  %v8214_v43 = vpack.i.bf16 %v10749_v33, %v10711_v2 }
 0x227   : > { %8200 = vrot.lane.b32.xlu0 %v8199_v39, %s9119_s19  ;;  %4436 = vmatprep.mubr.bf16.mxu1 %v3996_v58  ;;  %v7872_v49 = vunpack.i.l.bf16 %v10736_v15  ;;  %v1586_v1 = vmax.f32 %v1372_v0, 0.0  ;;  %v14222_v16 = vrot.slane %v10749_v33, 2  ;;  %v14223_v58 = vrot.slane %v10711_v2, 2 }
 0x228   : > { %v10851_v46 = vpop.permute.xlu1 %7905  ;;  %4437 = vmatmul.mubr.bf16.gmra.mrb[36].mxu1 %v3995_v13  ;;  %14221 = vst [vmem:[#allocation33_spill] sm:$0xff] %v10855_v24  ;;  %v7883_v11 = vunpack.i.h.bf16 %v10785_v61  ;;  %v7882_v13 = vunpack.i.l.bf16 %v10785_v61  ;;  %v3773_v0 = vsel %vm3533_vm5, %v14225_v14, %v7893_v30  ;;  %v14229_v61 = vrot.slane %v10749_v33, 1  ;;  %v14231_v14 = vld [vmem:[#allocation48_spill] sm:$0xff] }
 0x229   : > { %v7921_v28 = vpop.permute.xlu0 %7920  ;;  %v10862_v20 = vpop.f32.mrb[140].mxu0  ;;  %v10871_v44 = vsel %vm2104_vm3, %v14223_v58, %v14222_v16  ;;  %v14226_v16 = vmov %v14223_v58  ;;  %v14227_v58 = vrot.slane %v10709_v57, 2  ;;  %v3772_v30 = vsel %vm3533_vm5, %v14231_v14, %v7892_v9 }
 0x22a   : > { %8195 = vrot.lane.b32.xlu1 %v8194_v7, %s9119_s19  ;;  %14224 = vst [vmem:[#allocation29_spill] sm:$0xff] %v10871_v44  ;;  %v1386_v63 = vpop.f32.mrb[141].mxu0  ;;  %v7923_v45 = vunpack.i.h.bf16 %v7921_v28  ;;  %v7922_v26 = vunpack.i.l.bf16 %v7921_v28  ;;  %v14230_v28 = vrot.slane %v10711_v2, 1  ;;  %v1837_v8 = vrot.slane %v1586_v1, 1 }
 0x22b   : > { %8215 = vrot.lane.b32.xlu0 %v8214_v43, %s9117_s13  ;;  %v1387_v15 = vpop.f32.mrb[142].mxu0  ;;  %v10886_v63 = vsel %vm2104_vm3, %v14227_v58, %v14226_v16  ;;  %v1377_v16 = vadd.f32 %v10606_v56, %v10804_v12  ;;  %v3627_v2 = vsel %vm3606_vm6, %v3554_v27, %v7852_v5  ;;  %v2222_v40 = vrot.slane %v1586_v1, 2  ;;  %v14233_v1 = vld [vmem:[#allocation35_spill] sm:$0xff] }
 0x22c   : > { %v10878_v7 = vpop.permute.xlu1 %7910  ;;  %14228 = vst [vmem:[#allocation51_spill] sm:$0xff] %v10886_v63  ;;  %v10893_v43 = vsel %vm1719_vm4, %v14230_v28, %v14229_v61  ;;  %v1389_v34 = vpop.f32.mrb[143].mxu0  ;;  %v8219_v3 = vpack.i.bf16 %v10871_v44, %v10886_v63  ;;  %v3628_v61 = vsel %vm3606_vm6, %v3555_v60, %v7853_v53  ;;  %v3845_v9 = vsel %vm3606_vm6, %v3773_v0, %v7923_v45  ;;  %v14232_v53 = vld [vmem:[#allocation39_spill] sm:$0xff] }
 0x22d   : > { %v7931_v47 = vpop.permute.xlu0 %7930  ;;  %v3844_v34 = vsel %vm3606_vm6, %v3772_v30, %v7922_v26  ;;  %v3700_v28 = vsel %vm3679_vm7, %v3627_v2, %v7882_v13  ;;  %v3701_v14 = vsel %vm3679_vm7, %v3628_v61, %v7883_v11  ;;  %v1835_v5 = vrot.slane %v10855_v24, 1 }
 0x22e   : > { %v7933_v58 = vunpack.i.h.bf16 %v7931_v47  ;;  %v7932_v57 = vunpack.i.l.bf16 %v7931_v47  ;;  %8205 = vrot.lane.b32.xlu1 %v8199_v39, %s9118_s14  ;;  %v8209_v39 = vpack.i.bf16 %v10886_v63, %v10695_v62  ;;  %v8224_v2 = vpack.i.bf16 %v10819_v35, %v10893_v43 }
 0x22f   : > { %8220 = vrot.lane.b32.xlu0 %v8219_v3, %s9118_s14  ;;  %v3557_v3 = vsel %vm3533_vm5, %v14232_v53, %v7873_v18  ;;  %v3556_v11 = vsel %vm3533_vm5, %v14233_v1, %v7872_v49  ;;  %v7878_v13 = vunpack.i.h.bf16 %v10767_v25  ;;  %v3998_v0 = vpack.c.bf16 %v3701_v14, %v3700_v28 }
 0x230   : > { %v10909_v12 = vpop.permute.xlu1 %7925  ;;  %v3916_v27 = vsel %vm3679_vm7, %v3844_v34, %v7932_v57  ;;  %v3917_v60 = vsel %vm3679_vm7, %v3845_v9, %v7933_v58  ;;  %v10926_v57 = vmax.f32 %v1377_v16, 0.0  ;;  %v7877_v30 = vunpack.i.l.bf16 %v10767_v25 }
 0x231   : > { %v7946_v45 = vpop.permute.xlu0 %7945  ;;  %v3999_v26 = vpack.c.bf16 %v3917_v60, %v3916_v27  ;;  %v10920_v47 = vpop.f32.mrb[144].mxu0  ;;  %v7918_v58 = vunpack.i.h.bf16 %v10834_v17  ;;  %v7917_v61 = vunpack.i.l.bf16 %v10834_v17  ;;  %v10932_v34 = vsel %vm1719_vm4, %v1835_v5, %v1837_v8 }
 0x232   : > { %8210 = vrot.lane.b32.xlu1 %v8209_v39, %s9117_s13  ;;  %v1394_v18 = vpop.f32.mrb[145].mxu0  ;;  %v7898_v9 = vunpack.i.h.bf16 %v10821_v52  ;;  %v14234_v16 = vrot.slane %v10855_v24, 2  ;;  %v1380_v17 = vadd.f32 %v10606_v56, %v10814_v41  ;;  %v8244_v39 = vpack.i.bf16 %v10832_v10, %v10800_v29 }
 0x233   : > { %8225 = vrot.lane.b32.xlu0 %v8224_v2, %s9119_s19  ;;  %4444 = vmatprep.mubr.bf16.mxu1 %v3999_v26  ;;  %v10935_v49 = vpop.f32.mrb[146].mxu0  ;;  %v14236_v27 = vrot.slane %v10832_v10, 2  ;;  %v14237_v60 = vrot.slane %v10800_v29, 2  ;;  %v1388_v26 = vadd.f32 %v10606_v56, %v1387_v15  ;;  %v7897_v41 = vunpack.i.l.bf16 %v10821_v52 }
 0x234   : > { %v10941_v28 = vsel %vm2104_vm3, %v14234_v16, %v2222_v40  ;;  %v10943_v25 = vpop.permute.xlu1 %7935  ;;  %4445 = vmatmul.mubr.bf16.gmra.mrb[40].mxu1 %v3998_v0  ;;  %v1397_v8 = vpop.f32.mrb[147].mxu0  ;;  %v1385_v40 = vadd.f32 %v10606_v56, %v10862_v20  ;;  %v8234_v18 = vpack.i.bf16 %v10830_v31, %v10871_v44  ;;  %v3775_v16 = vsel %vm3533_vm5, %v10024_v55, %v7918_v58 }
 0x235   : > { %14235 = vst [vmem:[#allocation48_spill] sm:$0xff] %v10941_v28  ;;  %v10947_v14 = vpop.permute.xlu0 %7950  ;;  %v10956_v53 = vsel %vm2104_vm3, %v14237_v60, %v14236_v27  ;;  %v14239_v8 = vld [vmem:[#allocation52_spill] sm:$0xff]  ;;  %v7948_v20 = vunpack.i.h.bf16 %v7946_v45  ;;  %v7947_v60 = vunpack.i.l.bf16 %v7946_v45  ;;  %v7908_v52 = vunpack.i.h.bf16 %v10851_v46 }
 0x236   : > { %14238 = vst [vmem:[#allocation39_spill] sm:$0xff] %v10956_v53  ;;  %8230 = vrot.lane.b32.xlu1 %v8224_v2, %s9118_s14  ;;  %v3774_v27 = vsel %vm3533_vm5, %v14239_v8, %v7917_v61  ;;  %v7907_v15 = vunpack.i.l.bf16 %v10851_v46  ;;  %v10974_v0 = vmax.f32 %v1380_v17, 0.0  ;;  %v8249_v1 = vpack.i.bf16 %v10956_v53, %v10830_v31 }
 0x237   : > { %8245 = vrot.lane.b32.xlu0 %v8244_v39, %s9117_s13  ;;  %v10980_v55 = vmax.f32 %v1385_v40, 0.0  ;;  %v1590_v58 = vmax.f32 %v1388_v26, 0.0  ;;  %v14240_v61 = vrot.slane %v10832_v10, 1  ;;  %v14241_v45 = vrot.slane %v10800_v29, 1 }
 0x238   : > { %v10976_v2 = vpop.permute.xlu1 %7940  ;;  %v3629_v40 = vsel %vm3606_vm6, %v3556_v11, %v7877_v30  ;;  %v3630_v26 = vsel %vm3606_vm6, %v3557_v3, %v7878_v13  ;;  %v8239_v3 = vpack.i.bf16 %v10800_v29, %v10749_v33 }
 0x239   : > { %v7956_v44 = vpop.permute.xlu0 %7955  ;;  %v10987_v39 = vsel %vm1719_vm4, %v14241_v45, %v14240_v61  ;;  %v14242_v46 = vmov %v14240_v61  ;;  %v10994_v8 = vpop.f32.mrb[148].mxu0  ;;  %v3846_v61 = vsel %vm3606_vm6, %v3774_v27, %v7947_v60  ;;  %v3847_v45 = vsel %vm3606_vm6, %v3775_v16, %v7948_v20 }
 0x23a   : > { %v10992_v17 = vsel %vm1719_vm4, %v14242_v46, %v1835_v5  ;;  %v7958_v63 = vunpack.i.h.bf16 %v7956_v44  ;;  %v7957_v31 = vunpack.i.l.bf16 %v7956_v44  ;;  %8235 = vrot.lane.b32.xlu1 %v8234_v18, %s9117_s13  ;;  %v1402_v62 = vpop.f32.mrb[149].mxu0  ;;  %v3702_v5 = vsel %vm3679_vm7, %v3629_v40, %v7897_v41 }
 0x23b   : > { %14243 = vst [vmem:[#allocation35_spill] sm:$0xff] %v10992_v17  ;;  %8250 = vrot.lane.b32.xlu0 %v8249_v1, %s9118_s14  ;;  %v3703_v46 = vsel %vm3679_vm7, %v3630_v26, %v7898_v9  ;;  %v11004_v35 = vpop.f32.mrb[150].mxu0  ;;  %v14024_v1 = vrot.slane %v10980_v55, 1  ;;  %v14026_v41 = vrot.slane %v10980_v55, 2  ;;  %v8259_v9 = vpack.i.bf16 %v10992_v17, %v10987_v39  ;;  %v14247_v26 = vld [vmem:[#allocation45_spill] sm:$0xff] }
 0x23c   : > { %v11007_v18 = vpop.permute.xlu1 %7960  ;;  %v3918_v62 = vsel %vm3679_vm7, %v3846_v61, %v7957_v31  ;;  %v3919_v11 = vsel %vm3679_vm7, %v3847_v45, %v7958_v63  ;;  %v1405_v13 = vpop.f32.mrb[151].mxu0  ;;  %v1844_v27 = vrot.slane %v1590_v58, 1  ;;  %v2229_v20 = vrot.slane %v1590_v58, 2  ;;  %v14248_v45 = vld [vmem:[#allocation44_spill] sm:$0xff] }
 0x23d   : > { %v7976_v30 = vpop.permute.xlu0 %7975  ;;  %v4002_v16 = vpack.c.bf16 %v3919_v11, %v3918_v62  ;;  %v4001_v60 = vpack.c.bf16 %v3703_v46, %v3702_v5  ;;  %v14244_v40 = vrot.slane %v10855_v24, 2  ;;  %v14245_v31 = vrot.slane %v10832_v10, 2 }
 0x23e   : > { %8240 = vrot.lane.b32.xlu1 %v8239_v3, %s9119_s19  ;;  %v3559_v61 = vsel %vm3533_vm5, %v14247_v26, %v7908_v52  ;;  %v3558_v13 = vsel %vm3533_vm5, %v14248_v45, %v7907_v15  ;;  %v7913_v62 = vunpack.i.h.bf16 %v10878_v7  ;;  %v7912_v58 = vunpack.i.l.bf16 %v10878_v7 }
 0x23f   : > { %v11023_v63 = vsel %vm2104_vm3, %v14245_v31, %v14244_v40  ;;  %8260 = vrot.lane.b32.xlu0 %v8259_v9, %s9119_s19  ;;  %4452 = vmatprep.mubr.bf16.mxu1 %v4002_v16  ;;  %v7938_v5 = vunpack.i.h.bf16 %v10943_v25  ;;  %v8254_v52 = vpack.i.bf16 %v10855_v24, %v10832_v10  ;;  %v1393_v15 = vadd.f32 %v10606_v56, %v10920_v47 }
 0x240   : > { %14246 = vst [vmem:[#allocation52_spill] sm:$0xff] %v11023_v63  ;;  %v11034_v46 = vpop.permute.xlu1 %7965  ;;  %4453 = vmatmul.mubr.bf16.gmra.mrb[44].mxu1 %v4001_v60  ;;  %v7953_v11 = vunpack.i.h.bf16 %v10947_v14  ;;  %v7952_v40 = vunpack.i.l.bf16 %v10947_v14  ;;  %v8274_v7 = vpack.i.bf16 %v10941_v28, %v11023_v63  ;;  %v1396_v16 = vadd.f32 %v10606_v56, %v10935_v49 }
 0x241   : > { %v11042_v31 = vpop.permute.xlu0 %7980  ;;  %v11048_v26 = vpop.f32.mrb[152].mxu0  ;;  %v7928_v60 = vunpack.i.h.bf16 %v10909_v12  ;;  %v7927_v45 = vunpack.i.l.bf16 %v10909_v12  ;;  %v11055_v47 = vsel %vm1719_vm4, %v14024_v1, %v1844_v27  ;;  %v11060_v14 = vsel %vm2104_vm3, %v14026_v41, %v2229_v20 }
 0x242   : > { %14249 = vst [vmem:[#allocation45_spill] sm:$0xff] %v11060_v14  ;;  %8255 = vrot.lane.b32.xlu1 %v8254_v52, %s9119_s19  ;;  %v1410_v3 = vpop.f32.mrb[153].mxu0  ;;  %v7937_v49 = vunpack.i.l.bf16 %v10943_v25  ;;  %v7978_v44 = vunpack.i.h.bf16 %v7976_v30  ;;  %v7977_v29 = vunpack.i.l.bf16 %v7976_v30  ;;  %v11069_v27 = vsel %vm3533_vm5, %v9925_v4, %v7938_v5 }
 0x243   : > { %8275 = vrot.lane.b32.xlu0 %v8274_v7, %s9118_s14  ;;  %v11065_v12 = vpop.f32.mrb[154].mxu0  ;;  %v11073_v10 = vmax.f32 %v1393_v15, 0.0  ;;  %v8279_v20 = vpack.i.bf16 %v10926_v57, %v10855_v24  ;;  %v14251_v3 = vrot.slane %v10974_v0, 1  ;;  %v14252_v25 = vrot.slane %v10926_v57, 1 }
 0x244   : > { %v11071_v1 = vpop.permute.xlu1 %7970  ;;  %v1413_v52 = vpop.f32.mrb[155].mxu0  ;;  %v3777_v7 = vsel %vm3533_vm5, %v10115_v37, %v7953_v11  ;;  %v3776_v4 = vsel %vm3533_vm5, %v10031_v21, %v7952_v40  ;;  %v11088_v15 = vmax.f32 %v1396_v16, 0.0  ;;  %v3631_v41 = vsel %vm3606_vm6, %v3558_v13, %v7912_v58  ;;  %v14254_v58 = vld [vmem:[#allocation46_spill] sm:$0xff] }
 0x245   : > { %14250 = vst [vmem:[#allocation44_spill] sm:$0xff] %v11073_v10  ;;  %v11082_v30 = vsel %vm1719_vm4, %v14252_v25, %v14251_v3  ;;  %v7991_v5 = vpop.permute.xlu0 %7990  ;;  %v3632_v33 = vsel %vm3606_vm6, %v3559_v61, %v7913_v62  ;;  %v1401_v3 = vadd.f32 %v10606_v56, %v10994_v8  ;;  %v3848_v37 = vsel %vm3606_vm6, %v3776_v4, %v7977_v29 }
 0x246   : > { %14253 = vst [vmem:[#allocation86_spill] sm:$0xff] %v11088_v15  ;;  %v7993_v24 = vunpack.i.h.bf16 %v7991_v5  ;;  %v7992_v17 = vunpack.i.l.bf16 %v7991_v5  ;;  %8265 = vrot.lane.b32.xlu1 %v8259_v9, %s9118_s14  ;;  %v3849_v21 = vsel %vm3606_vm6, %v3777_v7, %v7978_v44  ;;  %v3704_v11 = vsel %vm3679_vm7, %v3631_v41, %v7927_v45 }
 0x247   : > { %8280 = vrot.lane.b32.xlu0 %v8279_v20, %s9117_s13  ;;  %v3705_v40 = vsel %vm3679_vm7, %v3632_v33, %v7928_v60  ;;  %v8269_v9 = vpack.i.bf16 %v11023_v63, %v10956_v53  ;;  %v1404_v8 = vadd.f32 %v10606_v56, %v11004_v35  ;;  %v3560_v29 = vsel %vm3533_vm5, %v14254_v58, %v7937_v49 }
 0x248   : > { %v11100_v13 = vpop.permute.xlu1 %7985  ;;  %v3920_v61 = vsel %vm3679_vm7, %v3848_v37, %v7992_v17  ;;  %v3921_v62 = vsel %vm3679_vm7, %v3849_v21, %v7993_v24  ;;  %v7963_v44 = vunpack.i.h.bf16 %v11007_v18  ;;  %v8289_v33 = vpack.i.bf16 %v11082_v30, %v10932_v34 }
 0x249   : > { %v11111_v41 = vpop.permute.xlu0 %8005  ;;  %v4005_v16 = vpack.c.bf16 %v3921_v62, %v3920_v61  ;;  %v11115_v60 = vpop.f32.mrb[156].mxu0  ;;  %v4004_v35 = vpack.c.bf16 %v3705_v40, %v3704_v11  ;;  %v11120_v45 = vmax.f32 %v1401_v3, 0.0  ;;  %v7943_v20 = vunpack.i.h.bf16 %v10976_v2 }
 0x24a   : > { %8270 = vrot.lane.b32.xlu1 %v8269_v9, %s9117_s13  ;;  %v1418_v49 = vpop.f32.mrb[157].mxu0  ;;  %v7942_v25 = vunpack.i.l.bf16 %v10976_v2  ;;  %v7962_v5 = vunpack.i.l.bf16 %v11007_v18  ;;  %v8284_v3 = vpack.i.bf16 %v10974_v0, %v10926_v57  ;;  %v8304_v21 = vpack.i.bf16 %v10980_v55, %v10974_v0 }
 0x24b   : > { %14255 = vst [vmem:[#allocation46_spill] sm:$0xff] %v11120_v45  ;;  %8290 = vrot.lane.b32.xlu0 %v8289_v33, %s9119_s19  ;;  %4460 = vmatprep.mubr.bf16.mxu1 %v4005_v16  ;;  %v1419_v4 = vpop.f32.mrb[158].mxu0  ;;  %v1594_v2 = vmax.f32 %v1404_v8, 0.0  ;;  %v11136_v40 = vsel %vm3533_vm5, %v10008_v54, %v7963_v44  ;;  %v7983_v9 = vunpack.i.h.bf16 %v11042_v31  ;;  %v7982_v61 = vunpack.i.l.bf16 %v11042_v31 }
 0x24c   : > { %v11128_v37 = vpop.permute.xlu1 %7995  ;;  %4461 = vmatmul.mubr.bf16.gmra.mrb[48].mxu1 %v4004_v35  ;;  %v1421_v11 = vpop.f32.mrb[159].mxu0  ;;  %v7972_v62 = vunpack.i.l.bf16 %v11071_v1  ;;  %v14256_v16 = vrot.slane %v10974_v0, 2  ;;  %v14257_v8 = vrot.slane %v10926_v57, 2  ;;  %v14259_v54 = vrot.slane %v10980_v55, 2 }
 0x24d   : > { %v8011_v18 = vpop.permute.xlu0 %8010  ;;  %v7973_v49 = vunpack.i.h.bf16 %v11071_v1  ;;  %v1851_v24 = vrot.slane %v1594_v2, 1  ;;  %v14262_v7 = vrot.slane %v10980_v55, 1  ;;  %v3779_v1 = vsel %vm3533_vm5, %v10201_v23, %v7983_v9 }
 0x24e   : > { %8285 = vrot.lane.b32.xlu1 %v8284_v3, %s9119_s19  ;;  %v11148_v35 = vsel %vm2104_vm3, %v14257_v8, %v14256_v16  ;;  %v14260_v44 = vmov %v14256_v16  ;;  %v8013_v11 = vunpack.i.h.bf16 %v8011_v18  ;;  %v8012_v3 = vunpack.i.l.bf16 %v8011_v18 }
 0x24f   : > { %14258 = vst [vmem:[#allocation87_spill] sm:$0xff] %v11148_v35  ;;  %v11155_v31 = vsel %vm2104_vm3, %v14260_v44, %v14259_v54  ;;  %8305 = vrot.lane.b32.xlu0 %v8304_v21, %s9117_s13  ;;  %v2236_v16 = vrot.slane %v1594_v2, 2  ;;  %v1409_v8 = vadd.f32 %v10606_v56, %v11048_v26  ;;  %v14263_v54 = vrot.slane %v10974_v0, 1 }
 0x250   : > { %14261 = vst [vmem:[#allocation88_spill] sm:$0xff] %v11155_v31  ;;  %v11160_v52 = vpop.permute.xlu1 %8000  ;;  %v3778_v21 = vsel %vm3533_vm5, %v10120_v38, %v7982_v61  ;;  %v8309_v2 = vpack.i.bf16 %v11155_v31, %v11148_v35  ;;  %v3633_v17 = vsel %vm3606_vm6, %v3560_v29, %v7942_v25  ;;  %v3851_v61 = vsel %vm3606_vm6, %v3779_v1, %v8013_v11 }
 0x251   : > { %v11169_v44 = vsel %vm1719_vm4, %v14263_v54, %v14262_v7  ;;  %v8021_v18 = vpop.permute.xlu0 %8020  ;;  %v11178_v26 = vpop.f32.mrb[160].mxu0  ;;  %v3634_v7 = vsel %vm3606_vm6, %v11069_v27, %v7943_v20  ;;  %v3706_v23 = vsel %vm3679_vm7, %v3633_v17, %v7972_v62  ;;  %v3850_v38 = vsel %vm3606_vm6, %v3778_v21, %v8012_v3 }
 0x252   : > { %v8023_v58 = vunpack.i.h.bf16 %v8021_v18  ;;  %v8022_v63 = vunpack.i.l.bf16 %v8021_v18  ;;  %8295 = vrot.lane.b32.xlu1 %v8289_v33, %s9118_s14  ;;  %v1426_v9 = vpop.f32.mrb[161].mxu0  ;;  %v3707_v29 = vsel %vm3679_vm7, %v3634_v7, %v7973_v49  ;;  %v1412_v25 = vadd.f32 %v10606_v56, %v11065_v12  ;;  %v8992_v49 = vld [vmem:[%s13923_s2 + $0x88] sm:$0xff]  }
 0x253   : > { %8310 = vrot.lane.b32.xlu0 %v8309_v2, %s9118_s14  ;;  %v11190_v54 = vpop.f32.mrb[162].mxu0  ;;  %v8299_v27 = vpack.i.bf16 %v11148_v35, %v10941_v28  ;;  %v11196_v17 = vmax.f32 %v1409_v8, 0.0  ;;  %v8314_v12 = vpack.i.bf16 %v11055_v47, %v11169_v44  ;;  %v1417_v21 = vadd.f32 %v10606_v56, %v11115_v60  ;;  %7400 = vmatprep.subr.bf16.mxu1 %v8992_v49 }
 0x254   : > { %v11192_v33 = vpop.permute.xlu1 %8015  ;;  %v3922_v20 = vsel %vm3679_vm7, %v3850_v38, %v8022_v63  ;;  %v3923_v62 = vsel %vm3679_vm7, %v3851_v61, %v8023_v58  ;;  %v1429_v3 = vpop.f32.mrb[163].mxu0  ;;  %v1420_v8 = vadd.f32 %v10606_v56, %v1419_v4  ;;  %v3562_v63 = vsel %vm3533_vm5, %v9934_v51, %v7962_v5  ;;  %7401 = vmatpush3.bf16.msra.mxu1 %v8992_v49 }
 0x255   : > { %14264 = vst [vmem:[#allocation89_spill] sm:$0xff] %v11196_v17  ;;  %v8036_v11 = vpop.permute.xlu0 %8035  ;;  %v4008_v1 = vpack.c.bf16 %v3923_v62, %v3922_v20  ;;  %v7968_v58 = vunpack.i.h.bf16 %v11034_v46  ;;  %v8008_v18 = vunpack.i.h.bf16 %v11111_v41  ;;  %v4007_v2 = vpack.c.bf16 %v3707_v29, %v3706_v23 }
 0x256   : > { %8300 = vrot.lane.b32.xlu1 %v8299_v27, %s9117_s13  ;;  %v7967_v7 = vunpack.i.l.bf16 %v11034_v46  ;;  %v8007_v9 = vunpack.i.l.bf16 %v11111_v41  ;;  %v14265_v38 = vrot.slane %v11120_v45, 1  ;;  %v11221_v51 = vmax.f32 %v1412_v25, 0.0 }
 0x257   : > { %8315 = vrot.lane.b32.xlu0 %v8314_v12, %s9119_s19  ;;  %4468 = vmatprep.mubr.bf16.mxu1 %v4008_v1  ;;  %v14267_v56 = vrot.slane %v11120_v45, 2  ;;  %v14269_v61 = vrot.slane %v11088_v15, 2  ;;  %v14270_v29 = vrot.slane %v11073_v10, 2  ;;  %v1598_v27 = vmax.f32 %v1420_v8, 0.0 }
 0x258   : > { %v11218_v60 = vsel %vm1719_vm4, %v14265_v38, %v1851_v24  ;;  %14266 = vst [vmem:[#allocation90_spill] sm:$0xff] %v11221_v51  ;;  %v11230_v41 = vpop.permute.xlu1 %8025  ;;  %4469 = vmatmul.mubr.bf16.gmra.mrb[52].mxu1 %v4007_v2  ;;  %v8334_v24 = vpack.i.bf16 %v11088_v15, %v11073_v10  ;;  %v7988_v62 = vunpack.i.h.bf16 %v11100_v13  ;;  %v7987_v3 = vunpack.i.l.bf16 %v11100_v13 }
 0x259   : > { %v11226_v4 = vsel %vm2104_vm3, %v14267_v56, %v2236_v16  ;;  %v11232_v23 = vpop.permute.xlu0 %8040  ;;  %v11241_v25 = vsel %vm2104_vm3, %v14270_v29, %v14269_v61  ;;  %v11243_v16 = vmax.f32 %v1417_v21, 0.0  ;;  %v11245_v20 = vpop.f32.mrb[164].mxu0  ;;  %v3781_v1 = vsel %vm3533_vm5, %v10274_v22, %v8008_v18 }
 0x25a   : > { %14268 = vst [vmem:[#allocation91_spill] sm:$0xff] %v11226_v4  ;;  %14271 = vst [vmem:[#allocation92_spill] sm:$0xff] %v11241_v25  ;;  %8320 = vrot.lane.b32.xlu1 %v8314_v12, %s9118_s14  ;;  %v8324_v2 = vpack.i.bf16 %v11060_v14, %v11155_v31  ;;  %v1434_v38 = vpop.f32.mrb[165].mxu0  ;;  %v3780_v21 = vsel %vm3533_vm5, %v10212_v50, %v8007_v9  ;;  %v8038_v8 = vunpack.i.h.bf16 %v8036_v11  ;;  %v8037_v56 = vunpack.i.l.bf16 %v8036_v11 }
 0x25b   : > { %8335 = vrot.lane.b32.xlu0 %v8334_v24, %s9117_s13  ;;  %v11258_v61 = vpop.f32.mrb[166].mxu0  ;;  %v7998_v13 = vunpack.i.h.bf16 %v11128_v37  ;;  %v7997_v22 = vunpack.i.l.bf16 %v11128_v37  ;;  %v8339_v18 = vpack.i.bf16 %v11241_v25, %v11060_v14  ;;  %v8329_v50 = vpack.i.bf16 %v11073_v10, %v10980_v55 }
 0x25c   : > { %v11262_v12 = vpop.permute.xlu1 %8030  ;;  %v1437_v9 = vpop.f32.mrb[167].mxu0  ;;  %v1858_v38 = vrot.slane %v1598_v27, 1  ;;  %v14272_v24 = vrot.slane %v11088_v15, 1  ;;  %v14273_v46 = vrot.slane %v11073_v10, 1  ;;  %v14274_v37 = vrot.slane %v11120_v45, 1 }
 0x25d   : > { %v8046_v11 = vpop.permute.xlu0 %8045  ;;  %v3635_v29 = vsel %vm3606_vm6, %v3562_v63, %v7967_v7  ;;  %v3636_v35 = vsel %vm3606_vm6, %v11136_v40, %v7968_v58  ;;  %v3565_v40 = vsel %vm3533_vm5, %v10097_v6, %v7998_v13 }
 0x25e   : > { %v11274_v5 = vsel %vm1719_vm4, %v14273_v46, %v14272_v24  ;;  %v14275_v49 = vmov %v14272_v24  ;;  %v8048_v31 = vunpack.i.h.bf16 %v8046_v11  ;;  %v8047_v9 = vunpack.i.l.bf16 %v8046_v11  ;;  %8325 = vrot.lane.b32.xlu1 %v8324_v2, %s9117_s13 }
 0x25f   : > { %v11281_v14 = vsel %vm1719_vm4, %v14275_v49, %v14274_v37  ;;  %8340 = vrot.lane.b32.xlu0 %v8339_v18, %s9118_s14  ;;  %v3852_v46 = vsel %vm3606_vm6, %v3780_v21, %v8037_v56  ;;  %v3853_v24 = vsel %vm3606_vm6, %v3781_v1, %v8038_v8  ;;  %v3708_v28 = vsel %vm3679_vm7, %v3635_v29, %v7987_v3  ;;  %v11317_v56 = vld [vmem:[%s13926_s5] ss:$0 sm:$0xff] }
 0x260   : > { %v3709_v49 = vsel %vm3679_vm7, %v3636_v35, %v7988_v62  ;;  %v11292_v37 = vpop.permute.xlu1 %8050  ;;  %v14035_v11 = vrot.slane %v11243_v16, 2  ;;  %v2243_v2 = vrot.slane %v1598_v27, 2  ;;  %v3924_v63 = vsel %vm3679_vm7, %v3852_v46, %v8047_v9 }
 0x261   : > { %v3925_v7 = vsel %vm3679_vm7, %v3853_v24, %v8048_v31  ;;  %v8066_v21 = vpop.permute.xlu0 %8065  ;;  %v8349_v3 = vpack.i.bf16 %v11281_v14, %v11274_v5  ;;  %v11302_v35 = vpop.f32.mrb[168].mxu0  ;;  %v3564_v62 = vsel %vm3533_vm5, %v10095_v36, %v7997_v22  ;;  %v4010_v27 = vpack.c.bf16 %v3709_v49, %v3708_v28 }
 0x262   : > { %v4011_v1 = vpack.c.bf16 %v3925_v7, %v3924_v63  ;;  %8330 = vrot.lane.b32.xlu1 %v8329_v50, %s9119_s19  ;;  %v14276_v31 = vrot.slane %v11120_v45, 2  ;;  %v14277_v8 = vrot.slane %v11088_v15, 2  ;;  %v1425_v13 = vadd.f32 %v11317_v56, %v11178_v26  ;;  %v1442_v18 = vpop.f32.mrb[169].mxu0 }
 0x263   : > { %v8003_v36 = vunpack.i.h.bf16 %v11160_v52  ;;  %v8002_v28 = vunpack.i.l.bf16 %v11160_v52  ;;  %v14279_v22 = vrot.slane %v11243_v16, 1  ;;  %8350 = vrot.lane.b32.xlu0 %v8349_v3, %s9119_s19  ;;  %v8344_v29 = vpack.i.bf16 %v11120_v45, %v11088_v15  ;;  %v11331_v9 = vpop.f32.mrb[170].mxu0 }
 0x264   : > { %v11312_v6 = vsel %vm2104_vm3, %v14277_v8, %v14276_v31  ;;  %4476 = vmatprep.mubr.bf16.mxu1 %v4011_v1  ;;  %v8028_v26 = vunpack.i.h.bf16 %v11230_v41  ;;  %v8027_v46 = vunpack.i.l.bf16 %v11230_v41  ;;  %v8043_v24 = vunpack.i.h.bf16 %v11232_v23  ;;  %v1445_v49 = vpop.f32.mrb[171].mxu0 }
 0x265   : > { %14278 = vst [vmem:[#allocation93_spill] sm:$0xff] %v11312_v6  ;;  %v11326_v50 = vsel %vm1719_vm4, %v14279_v22, %v1858_v38  ;;  %v11339_v52 = vsel %vm2104_vm3, %v14035_v11, %v2243_v2  ;;  %v11341_v38 = vpop.permute.xlu1 %8055  ;;  %4477 = vmatmul.mubr.bf16.gmra.mrb[56].mxu1 %v4010_v27  ;;  %v8018_v63 = vunpack.i.h.bf16 %v11192_v33  ;;  %v8042_v7 = vunpack.i.l.bf16 %v11232_v23  ;;  %v11345_v1 = vpop.permute.xlu0 %8070 }
 0x266   : > { %14280 = vst [vmem:[#allocation94_spill] sm:$0xff] %v11339_v52  ;;  %v8364_v41 = vpack.i.bf16 %v11226_v4, %v11312_v6  ;;  %v1428_v31 = vadd.f32 %v11317_v56, %v11190_v54  ;;  %v8017_v8 = vunpack.i.l.bf16 %v11192_v33  ;;  %8345 = vrot.lane.b32.xlu1 %v8344_v29, %s9119_s19  ;;  %v11353_v2 = vmax.f32 %v1425_v13, 0.0  ;;  %v14285_v29 = vld [vmem:[#allocation57_spill] sm:$0xff] }
 0x267   : > { %v8369_v27 = vpack.i.bf16 %v11196_v17, %v11120_v45  ;;  %v8068_v18 = vunpack.i.h.bf16 %v8066_v21  ;;  %v8067_v22 = vunpack.i.l.bf16 %v8066_v21  ;;  %v8359_v23 = vpack.i.bf16 %v11312_v6, %v11241_v25  ;;  %v14286_v6 = vld [vmem:[#allocation62_spill] sm:$0xff] }
 0x268   : > { %14281 = vst [vmem:[#allocation95_spill] sm:$0xff] %v11353_v2  ;;  %8365 = vrot.lane.b32.xlu0 %v8364_v41, %s9118_s14  ;;  %v14282_v49 = vrot.slane %v11221_v51, 1  ;;  %v14283_v54 = vrot.slane %v11196_v17, 1  ;;  %v11369_v13 = vsel %vm3533_vm5, %v10227_v32, %v8028_v26  ;;  %v11373_v58 = vsel %vm3533_vm5, %v14285_v29, %v8027_v46 }
 0x269   : > { %v3783_v21 = vsel %vm3533_vm5, %v10370_v42, %v8043_v24  ;;  %v11377_v41 = vpop.permute.xlu1 %8060  ;;  %v1433_v11 = vadd.f32 %v11317_v56, %v11245_v20  ;;  %v11383_v25 = vmax.f32 %v1428_v31, 0.0  ;;  %v3637_v32 = vsel %vm3606_vm6, %v3564_v62, %v8002_v28  ;;  %v11387_v46 = vpop.f32.mrb[172].mxu0 }
 0x26a   : > { %v11365_v33 = vsel %vm1719_vm4, %v14283_v54, %v14282_v49  ;;  %v3782_v49 = vsel %vm3533_vm5, %v14286_v6, %v8042_v7  ;;  %v8081_v54 = vpop.permute.xlu0 %8080  ;;  %v3638_v26 = vsel %vm3606_vm6, %v3565_v40, %v8003_v36  ;;  %8355 = vrot.lane.b32.xlu1 %v8349_v3, %s9118_s14  ;;  %v3710_v42 = vsel %vm3679_vm7, %v3637_v32, %v8017_v8  ;;  %v1450_v24 = vpop.f32.mrb[173].mxu0 }
 0x26b   : > { %14284 = vst [vmem:[#allocation96_spill] sm:$0xff] %v11365_v33  ;;  %14287 = vst [vmem:[#allocation57_spill] sm:$0xff] %v11383_v25  ;;  %v8083_v29 = vunpack.i.h.bf16 %v8081_v54  ;;  %v8082_v53 = vunpack.i.l.bf16 %v8081_v54  ;;  %v3711_v20 = vsel %vm3679_vm7, %v3638_v26, %v8018_v63  ;;  %v8053_v6 = vunpack.i.h.bf16 %v11292_v37  ;;  %v11397_v36 = vpop.f32.mrb[174].mxu0 }
 0x26c   : > { %v8052_v7 = vunpack.i.l.bf16 %v11292_v37  ;;  %8370 = vrot.lane.b32.xlu0 %v8369_v27, %s9117_s13  ;;  %v3854_v62 = vsel %vm3606_vm6, %v3782_v49, %v8067_v22  ;;  %v3855_v40 = vsel %vm3606_vm6, %v3783_v21, %v8068_v18  ;;  %v11403_v63 = vmax.f32 %v1433_v11, 0.0  ;;  %v1453_v37 = vpop.f32.mrb[175].mxu0 }
 0x26d   : > { %v11399_v28 = vpop.permute.xlu1 %8075  ;;  %v3926_v3 = vsel %vm3679_vm7, %v3854_v62, %v8082_v53  ;;  %v3927_v31 = vsel %vm3679_vm7, %v3855_v40, %v8083_v29  ;;  %v1436_v8 = vadd.f32 %v11317_v56, %v11258_v61  ;;  %v8379_v18 = vpack.i.bf16 %v11365_v33, %v11218_v60 }
 0x26e   : > { %14288 = vst [vmem:[#allocation62_spill] sm:$0xff] %v11403_v63  ;;  %v11409_v49 = vpop.permute.xlu0 %8095  ;;  %v4014_v21 = vpack.c.bf16 %v3927_v31, %v3926_v3  ;;  %v8033_v53 = vunpack.i.h.bf16 %v11262_v12  ;;  %v8032_v54 = vunpack.i.l.bf16 %v11262_v12  ;;  %8360 = vrot.lane.b32.xlu1 %v8359_v23, %s9117_s13  ;;  %v4013_v61 = vpack.c.bf16 %v3711_v20, %v3710_v42  ;;  %v14289_v12 = vld [vmem:[#allocation59_spill] sm:$0xff] }
 0x26f   : > { %v8374_v26 = vpack.i.bf16 %v11221_v51, %v11196_v17  ;;  %v8394_v29 = vpack.i.bf16 %v11243_v16, %v11221_v51  ;;  %v11425_v24 = vsel %vm3533_vm5, %v10288_v19, %v8053_v6  ;;  %v11429_v62 = vsel %vm3533_vm5, %v14289_v12, %v8052_v7 }
 0x270   : > { %8380 = vrot.lane.b32.xlu0 %v8379_v18, %s9119_s19  ;;  %4484 = vmatprep.mubr.bf16.mxu1 %v4014_v21  ;;  %v1602_v42 = vmax.f32 %v1436_v8, 0.0  ;;  %v8073_v40 = vunpack.i.h.bf16 %v11345_v1  ;;  %v8072_v3 = vunpack.i.l.bf16 %v11345_v1  ;;  %v14290_v19 = vrot.slane %v11243_v16, 2 }
 0x271   : > { %v11431_v23 = vpop.permute.xlu1 %8085  ;;  %4485 = vmatmul.mubr.bf16.gmra.mrb[60].mxu1 %v4013_v61  ;;  %v14291_v6 = vrot.slane %v11221_v51, 2  ;;  %v11444_v21 = vpop.f32.mrb[176].mxu0  ;;  %v14294_v12 = vrot.slane %v11196_v17, 2  ;;  %v1441_v11 = vadd.f32 %v11317_v56, %v11302_v35  ;;  %v8062_v22 = vunpack.i.l.bf16 %v11377_v41 }
 0x272   : > { %v8101_v31 = vpop.permute.xlu0 %8100  ;;  %8375 = vrot.lane.b32.xlu1 %v8374_v26, %s9119_s19  ;;  %v1865_v37 = vrot.slane %v1602_v42, 1  ;;  %v2250_v20 = vrot.slane %v1602_v42, 2  ;;  %v14296_v35 = vrot.slane %v11243_v16, 1  ;;  %v3639_v42 = vsel %vm3606_vm6, %v11373_v58, %v8032_v54 }
 0x273   : > { %v11442_v7 = vsel %vm2104_vm3, %v14291_v6, %v14290_v19  ;;  %v14293_v1 = vmov %v14291_v6  ;;  %v1458_v19 = vpop.f32.mrb[177].mxu0  ;;  %v8063_v6 = vunpack.i.h.bf16 %v11377_v41  ;;  %v8103_v8 = vunpack.i.h.bf16 %v8101_v31 }
 0x274   : > { %14292 = vst [vmem:[#allocation59_spill] sm:$0xff] %v11442_v7  ;;  %v11454_v27 = vsel %vm2104_vm3, %v14294_v12, %v14293_v1  ;;  %v8102_v32 = vunpack.i.l.bf16 %v8101_v31  ;;  %8395 = vrot.lane.b32.xlu0 %v8394_v29, %s9117_s13  ;;  %v11461_v26 = vpop.f32.mrb[178].mxu0  ;;  %v14297_v12 = vrot.slane %v11221_v51, 1  ;;  %v3785_v29 = vsel %vm3533_vm5, %v10451_v59, %v8073_v40  ;;  %v14298_v31 = vld [vmem:[#allocation68_spill] sm:$0xff] }
 0x275   : > { %14295 = vst [vmem:[#allocation97_spill] sm:$0xff] %v11454_v27  ;;  %v11463_v61 = vpop.permute.xlu1 %8090  ;;  %v8399_v1 = vpack.i.bf16 %v11442_v7, %v11454_v27  ;;  %v1461_v41 = vpop.f32.mrb[179].mxu0  ;;  %v3784_v45 = vsel %vm3533_vm5, %v14298_v31, %v8072_v3  ;;  %v1444_v33 = vadd.f32 %v11317_v56, %v11331_v9  ;;  %v3857_v40 = vsel %vm3606_vm6, %v3785_v29, %v8103_v8 }
 0x276   : > { %v11472_v19 = vsel %vm1719_vm4, %v14297_v12, %v14296_v35  ;;  %v8111_v17 = vpop.permute.xlu0 %8110  ;;  %8385 = vrot.lane.b32.xlu1 %v8379_v18, %s9118_s14  ;;  %v11483_v35 = vmax.f32 %v1441_v11, 0.0  ;;  %v3640_v12 = vsel %vm3606_vm6, %v11369_v13, %v8033_v53  ;;  %v3856_v59 = vsel %vm3606_vm6, %v3784_v45, %v8102_v32 }
 0x277   : > { %v8113_v10 = vunpack.i.h.bf16 %v8111_v17  ;;  %v8112_v15 = vunpack.i.l.bf16 %v8111_v17  ;;  %v3712_v58 = vsel %vm3679_vm7, %v3639_v42, %v8062_v22  ;;  %v3713_v54 = vsel %vm3679_vm7, %v3640_v12, %v8063_v6 }
 0x278   : > { %14299 = vst [vmem:[#allocation68_spill] sm:$0xff] %v11483_v35  ;;  %8400 = vrot.lane.b32.xlu0 %v8399_v1, %s9118_s14  ;;  %v8389_v17 = vpack.i.bf16 %v11454_v27, %v11226_v4  ;;  %v1449_v13 = vadd.f32 %v11317_v56, %v11387_v46  ;;  %v8404_v45 = vpack.i.bf16 %v11326_v50, %v11472_v19  ;;  %v11502_v22 = vmax.f32 %v1444_v33, 0.0 }
 0x279   : > { %v11492_v9 = vpop.permute.xlu1 %8105  ;;  %v3928_v18 = vsel %vm3679_vm7, %v3856_v59, %v8112_v15  ;;  %v3929_v11 = vsel %vm3679_vm7, %v3857_v40, %v8113_v10  ;;  %v1452_v3 = vadd.f32 %v11317_v56, %v11397_v36  ;;  %v11506_v8 = vpop.f32.mrb[180].mxu0  ;;  %v8098_v6 = vunpack.i.h.bf16 %v11409_v49 }
 0x27a   : > { %v8126_v53 = vpop.permute.xlu0 %8125  ;;  %v4017_v32 = vpack.c.bf16 %v3929_v11, %v3928_v18  ;;  %14300 = vst [vmem:[#allocation98_spill] sm:$0xff] %v11502_v22  ;;  %v8097_v15 = vunpack.i.l.bf16 %v11409_v49  ;;  %v14301_v10 = vrot.slane %v11403_v63, 1  ;;  %8390 = vrot.lane.b32.xlu1 %v8389_v17, %s9117_s13  ;;  %v4016_v1 = vpack.c.bf16 %v3713_v54, %v3712_v58  ;;  %v1466_v41 = vpop.f32.mrb[181].mxu0 }
 0x27b   : > { %v14303_v33 = vrot.slane %v11403_v63, 2  ;;  %v14305_v49 = vrot.slane %v11383_v25, 2  ;;  %v11531_v12 = vpop.f32.mrb[182].mxu0  ;;  %v8078_v59 = vunpack.i.h.bf16 %v11399_v28  ;;  %v11537_v58 = vmax.f32 %v1449_v13, 0.0  ;;  %v14309_v41 = vld [vmem:[#allocation74_spill] sm:$0xff] }
 0x27c   : > { %v11513_v46 = vsel %vm1719_vm4, %v14301_v10, %v1865_v37  ;;  %8405 = vrot.lane.b32.xlu0 %v8404_v45, %s9119_s19  ;;  %4492 = vmatprep.mubr.bf16.mxu1 %v4017_v32  ;;  %v14306_v37 = vrot.slane %v11353_v2, 2  ;;  %v1469_v54 = vpop.f32.mrb[183].mxu0  ;;  %v8424_v32 = vpack.i.bf16 %v11383_v25, %v11353_v2  ;;  %v1606_v10 = vmax.f32 %v1452_v3, 0.0 }
 0x27d   : > { %14302 = vst [vmem:[#allocation99_spill] sm:$0xff] %v11513_v46  ;;  %v11519_v29 = vsel %vm2104_vm3, %v14303_v33, %v2250_v20  ;;  %v8077_v20 = vunpack.i.l.bf16 %v11399_v28  ;;  %v11535_v40 = vpop.permute.xlu1 %8115  ;;  %4493 = vmatmul.mubr.bf16.gmra.mrb[64].mxu1 %v4016_v1  ;;  %14308 = vst [vmem:[#allocation102_spill] sm:$0xff] %v11537_v58  ;;  %v3787_v33 = vsel %vm3533_vm5, %v14309_v41, %v8098_v6  ;;  %v14310_v28 = vld [vmem:[#allocation71_spill] sm:$0xff]  ;;  %v8087_v54 = vunpack.i.l.bf16 %v11431_v23 }
 0x27e   : > { %14304 = vst [vmem:[#allocation100_spill] sm:$0xff] %v11519_v29  ;;  %v11529_v42 = vsel %vm2104_vm3, %v14306_v37, %v14305_v49  ;;  %v11541_v11 = vpop.permute.xlu0 %8130  ;;  %v3786_v49 = vsel %vm3533_vm5, %v14310_v28, %v8097_v15  ;;  %8410 = vrot.lane.b32.xlu1 %v8404_v45, %s9118_s14  ;;  %v8414_v13 = vpack.i.bf16 %v11339_v52, %v11442_v7  ;;  %v8088_v37 = vunpack.i.h.bf16 %v11431_v23 }
 0x27f   : > { %14307 = vst [vmem:[#allocation101_spill] sm:$0xff] %v11529_v42  ;;  %v8429_v1 = vpack.i.bf16 %v11529_v42, %v11339_v52  ;;  %v8128_v31 = vunpack.i.h.bf16 %v8126_v53  ;;  %v8127_v3 = vunpack.i.l.bf16 %v8126_v53  ;;  %v8419_v15 = vpack.i.bf16 %v11353_v2, %v11243_v16 }
 0x280   : > { %8425 = vrot.lane.b32.xlu0 %v8424_v32, %s9117_s13  ;;  %v14311_v41 = vrot.slane %v11383_v25, 1  ;;  %v14312_v28 = vrot.slane %v11353_v2, 1  ;;  %v14313_v23 = vrot.slane %v11403_v63, 1  ;;  %v1872_v17 = vrot.slane %v1606_v10, 1 }
 0x281   : > { %v11557_v6 = vpop.permute.xlu1 %8120  ;;  %v2257_v7 = vrot.slane %v1606_v10, 2  ;;  %v14316_v45 = vunpack.i.l.bf16 %v11341_v38  ;;  %v11581_v4 = vpop.f32.mrb[184].mxu0  ;;  %v14317_v2 = vunpack.i.h.bf16 %v11341_v38  ;;  %v3858_v52 = vsel %vm3606_vm6, %v3786_v49, %v8127_v3  ;;  %v14318_v38 = vld [vmem:[#allocation65_spill] sm:$0xff] }
 0x282   : > { %v11567_v18 = vsel %vm1719_vm4, %v14312_v28, %v14311_v41  ;;  %v14314_v53 = vmov %v14311_v41  ;;  %v8136_v36 = vpop.permute.xlu0 %8135  ;;  %8415 = vrot.lane.b32.xlu1 %v8414_v13, %s9117_s13  ;;  %v1474_v10 = vpop.f32.mrb[185].mxu0  ;;  %v3571_v51 = vsel %vm3533_vm5, %v14318_v38, %v8088_v37  ;;  %v14321_v37 = vrot.slane %v11383_v25, 2 }
 0x283   : > { %v11574_v32 = vsel %vm1719_vm4, %v14314_v53, %v14313_v23  ;;  %v3641_v27 = vsel %vm3606_vm6, %v11429_v62, %v14316_v45  ;;  %v8138_v41 = vunpack.i.h.bf16 %v8136_v36  ;;  %v8137_v28 = vunpack.i.l.bf16 %v8136_v36  ;;  %v11595_v13 = vpop.f32.mrb[186].mxu0 }
 0x284   : > { %14315 = vst [vmem:[#allocation74_spill] sm:$0xff] %v11574_v32  ;;  %v3642_v23 = vsel %vm3606_vm6, %v11425_v24, %v14317_v2  ;;  %v1457_v53 = vadd.f32 %v11317_v56, %v11444_v21  ;;  %8430 = vrot.lane.b32.xlu0 %v8429_v1, %s9118_s14  ;;  %v3859_v62 = vsel %vm3606_vm6, %v3787_v33, %v8128_v31  ;;  %v14319_v2 = vld [vmem:[#allocation63_spill] sm:$0xff]  ;;  %v1477_v3 = vpop.f32.mrb[187].mxu0  ;;  %v8093_v31 = vunpack.i.h.bf16 %v11463_v61 }
 0x285   : > { %v3714_v45 = vsel %vm3679_vm7, %v3641_v27, %v8077_v20  ;;  %v3715_v36 = vsel %vm3679_vm7, %v3642_v23, %v8078_v59  ;;  %v3570_v24 = vsel %vm3533_vm5, %v14319_v2, %v8087_v54  ;;  %v11601_v21 = vpop.permute.xlu1 %8140  ;;  %v3930_v1 = vsel %vm3679_vm7, %v3858_v52, %v8137_v28 }
 0x286   : > { %v3931_v49 = vsel %vm3679_vm7, %v3859_v62, %v8138_v41  ;;  %v8156_v27 = vpop.permute.xlu0 %8155  ;;  %v8439_v59 = vpack.i.bf16 %v11574_v32, %v11567_v18  ;;  %v14320_v33 = vrot.slane %v11403_v63, 2  ;;  %v8092_v23 = vunpack.i.l.bf16 %v11463_v61  ;;  %8420 = vrot.lane.b32.xlu1 %v8419_v15, %s9119_s19 }
 0x287   : > { %v4020_v20 = vpack.c.bf16 %v3931_v49, %v3930_v1  ;;  %v14323_v52 = vrot.slane %v11537_v58, 1  ;;  %v4019_v28 = vpack.c.bf16 %v3715_v36, %v3714_v45  ;;  %v11622_v10 = vmax.f32 %v1457_v53, 0.0 }
 0x288   : > { %v11613_v54 = vsel %vm2104_vm3, %v14321_v37, %v14320_v33  ;;  %v8118_v62 = vunpack.i.h.bf16 %v11535_v40  ;;  %v8117_v38 = vunpack.i.l.bf16 %v11535_v40  ;;  %v14326_v2 = vrot.slane %v11537_v58, 2  ;;  %8440 = vrot.lane.b32.xlu0 %v8439_v59, %s9119_s19 }
 0x289   : > { %14322 = vst [vmem:[#allocation71_spill] sm:$0xff] %v11613_v54  ;;  %v11620_v41 = vsel %vm1719_vm4, %v14323_v52, %v1872_v17  ;;  %14325 = vst [vmem:[#allocation63_spill] sm:$0xff] %v11622_v10  ;;  %4500 = vmatprep.mubr.bf16.mxu1 %v4020_v20  ;;  %v8434_v61 = vpack.i.bf16 %v11403_v63, %v11383_v25  ;;  %v8108_v17 = vunpack.i.h.bf16 %v11492_v9  ;;  %v8107_v15 = vunpack.i.l.bf16 %v11492_v9  ;;  %v11636_v53 = vpop.permute.xlu1 %8145  ;;  %v11653_v33 = vpop.f32.mrb[188].mxu0 }
 0x28a   : > { %14324 = vst [vmem:[#allocation65_spill] sm:$0xff] %v11620_v41  ;;  %v11629_v1 = vsel %vm2104_vm3, %v14326_v2, %v2257_v7  ;;  %4501 = vmatmul.mubr.bf16.gmra.mrb[68].mxu1 %v4019_v28  ;;  %v8454_v40 = vpack.i.bf16 %v11519_v29, %v11613_v54  ;;  %v1460_v7 = vadd.f32 %v11317_v56, %v11461_v26  ;;  %v8133_v45 = vunpack.i.h.bf16 %v11541_v11  ;;  %v11644_v49 = vpop.permute.xlu0 %8160  ;;  %v1482_v28 = vpop.f32.mrb[189].mxu0  ;;  %v14331_v2 = vld [vmem:[#allocation72_spill] sm:$0xff] }
 0x28b   : > { %14327 = vst [vmem:[#allocation103_spill] sm:$0xff] %v11629_v1  ;;  %v8132_v36 = vunpack.i.l.bf16 %v11541_v11  ;;  %v14328_v3 = vrot.slane %v11502_v22, 1  ;;  %v14329_v20 = vrot.slane %v11483_v35, 1  ;;  %8435 = vrot.lane.b32.xlu1 %v8434_v61, %s9119_s19  ;;  %v8459_v11 = vpack.i.bf16 %v11483_v35, %v11403_v63  ;;  %v11671_v37 = vpop.f32.mrb[190].mxu0 }
 0x28c   : > { %v8449_v52 = vpack.i.bf16 %v11613_v54, %v11529_v42  ;;  %v11664_v25 = vsel %vm3533_vm5, %v14331_v2, %v8118_v62  ;;  %v8158_v61 = vunpack.i.h.bf16 %v8156_v27  ;;  %v8157_v32 = vunpack.i.l.bf16 %v8156_v27  ;;  %8455 = vrot.lane.b32.xlu0 %v8454_v40, %s9118_s14  ;;  %v1485_v2 = vpop.f32.mrb[191].mxu0  ;;  %v14334_v40 = vld [vmem:[#allocation78_spill] sm:$0xff] }
 0x28d   : > { %v11651_v9 = vsel %vm1719_vm4, %v14329_v20, %v14328_v3  ;;  %v14332_v3 = vld [vmem:[#allocation69_spill] sm:$0xff]  ;;  %v11673_v26 = vpop.permute.xlu1 %8150  ;;  %v11675_v63 = vmax.f32 %v1460_v7, 0.0  ;;  %v1465_v62 = vadd.f32 %v11317_v56, %v11506_v8  ;;  %v3789_v27 = vsel %vm3533_vm5, %v10631_v48, %v8133_v45 }
 0x28e   : > { %14330 = vst [vmem:[#allocation104_spill] sm:$0xff] %v11651_v9  ;;  %v11668_v20 = vsel %vm3533_vm5, %v14332_v3, %v8117_v38  ;;  %v11679_v28 = vpack.i.bf16 %v11651_v9, %v11513_v46  ;;  %v1468_v38 = vadd.f32 %v11317_v56, %v11531_v12  ;;  %v3788_v3 = vsel %vm3533_vm5, %v14334_v40, %v8132_v36  ;;  %v8171_v54 = vpop.permute.xlu0 %8170 }
 0x28f   : > { %14333 = vst [vmem:[#allocation72_spill] sm:$0xff] %v11675_v63  ;;  %v3643_v7 = vsel %vm3606_vm6, %v3570_v24, %v8092_v23  ;;  %v3644_v42 = vsel %vm3606_vm6, %v3571_v51, %v8093_v31  ;;  %v8173_v9 = vunpack.i.h.bf16 %v8171_v54  ;;  %v8172_v46 = vunpack.i.l.bf16 %v8171_v54  ;;  %8445 = vrot.lane.b32.xlu1 %v8439_v59, %s9118_s14  ;;  %v11697_v45 = vpop.f32.mrb[0].mxu1 }
 0x290   : > { %v3716_v8 = vsel %vm3679_vm7, %v3643_v7, %v8107_v15  ;;  %v3717_v12 = vsel %vm3679_vm7, %v3644_v42, %v8108_v17  ;;  %v8143_v2 = vunpack.i.h.bf16 %v11601_v21  ;;  %v8142_v48 = vunpack.i.l.bf16 %v11601_v21  ;;  %8460 = vrot.lane.b32.xlu0 %v8459_v11, %s9117_s13  ;;  %14335 = vst [vmem:[#allocation69_spill] sm:$0xff] %v11697_v45  ;;  %v4368_v54 = vpop.f32.mrb[1].mxu1 }
 0x291   : > { %v3860_v24 = vsel %vm3606_vm6, %v3788_v3, %v8157_v32  ;;  %v3861_v51 = vsel %vm3606_vm6, %v3789_v27, %v8158_v61  ;;  %v11701_v31 = vpop.permute.xlu1 %8165  ;;  %v11705_v42 = vmax.f32 %v1465_v62, 0.0  ;;  %v1610_v17 = vmax.f32 %v1468_v38, 0.0  ;;  %v11712_v32 = vpop.f32.mrb[2].mxu1  ;;  %v14339_v3 = vld [vmem:[#allocation73_spill] sm:$0xff] }
 0x292   : > { %v3932_v59 = vsel %vm3679_vm7, %v3860_v24, %v8172_v46  ;;  %v3933_v23 = vsel %vm3679_vm7, %v3861_v51, %v8173_v9  ;;  %v8123_v21 = vunpack.i.h.bf16 %v11557_v6  ;;  %v8122_v15 = vunpack.i.l.bf16 %v11557_v6  ;;  %v11710_v11 = vpop.permute.xlu0 %8185  ;;  %14337 = vst [vmem:[#allocation105_spill] sm:$0xff] %v11712_v32  ;;  %v4371_v27 = vpop.f32.mrb[3].mxu1  ;;  %v14338_v6 = vld [vmem:[#allocation77_spill] sm:$0xff] }
 0x293   : > { %14336 = vst [vmem:[#allocation78_spill] sm:$0xff] %v11705_v42  ;;  %v4023_v61 = vpack.c.bf16 %v3933_v23, %v3932_v59  ;;  %8450 = vrot.lane.b32.xlu1 %v8449_v52, %s9117_s13  ;;  %v4022_v46 = vpack.c.bf16 %v3717_v12, %v3716_v8  ;;  %v8464_v9 = vpack.i.bf16 %v11502_v22, %v11483_v35  ;;  %v11719_v38 = vpop.f32.mrb[192].mxu0  ;;  %v14340_v8 = vrot.slane %v11502_v22, 2 }
 0x294   : > { %v8484_v62 = vpack.i.bf16 %v11537_v58, %v11502_v22  ;;  %v11723_v40 = vsel %vm3533_vm5, %v14338_v6, %v8143_v2  ;;  %v11727_v7 = vsel %vm3533_vm5, %v14339_v3, %v8142_v48  ;;  %8470 = vrot.lane.b32.xlu0 %v11679_v28, %s9119_s19  ;;  %v14341_v12 = vrot.slane %v11483_v35, 2  ;;  %v1490_v51 = vpop.f32.mrb[193].mxu0 }
 0x295   : > { %4508 = vmatprep.mubr.bf16.mxu1 %v4023_v61  ;;  %v11739_v2 = vpop.permute.xlu1 %8175  ;;  %v1879_v54 = vrot.slane %v1610_v17, 1  ;;  %v2264_v23 = vrot.slane %v1610_v17, 2  ;;  %v11743_v27 = vpop.f32.mrb[194].mxu0  ;;  %v8163_v6 = vunpack.i.h.bf16 %v11644_v49  ;;  %v8162_v3 = vunpack.i.l.bf16 %v11644_v49 }
 0x296   : > { %v11737_v24 = vsel %vm2104_vm3, %v14341_v12, %v14340_v8  ;;  %4509 = vmatmul.mubr.bf16.gmra.mrb[72].mxu1 %v4022_v46  ;;  %v8191_v8 = vpop.permute.xlu0 %8190  ;;  %v14343_v12 = vrot.slane %v11537_v58, 2  ;;  %v14344_v51 = vrot.slane %v11502_v22, 2  ;;  %v1493_v36 = vpop.f32.mrb[195].mxu0  ;;  %v1473_v61 = vadd.f32 %v11317_v56, %v11581_v4 }
 0x297   : > { %14342 = vst [vmem:[#allocation77_spill] sm:$0xff] %v11737_v24  ;;  %8465 = vrot.lane.b32.xlu1 %v8464_v9, %s9119_s19  ;;  %v8479_v17 = vpack.i.bf16 %v11737_v24, %v11519_v29  ;;  %v14346_v49 = vrot.slane %v11537_v58, 1  ;;  %v14347_v59 = vrot.slane %v11502_v22, 1  ;;  %v8152_v36 = vunpack.i.l.bf16 %v11673_v26  ;;  %v14353_v29 = vld [vmem:[#allocation30_spill] sm:$0xff] }
 0x298   : > { %v11753_v46 = vsel %vm2104_vm3, %v14344_v51, %v14343_v12  ;;  %v8153_v12 = vunpack.i.h.bf16 %v11673_v26  ;;  %v8193_v51 = vunpack.i.h.bf16 %v8191_v8  ;;  %v8192_v52 = vunpack.i.l.bf16 %v8191_v8  ;;  %8485 = vrot.lane.b32.xlu0 %v8484_v62, %s9117_s13  ;;  %v14352_v8 = vld [vmem:[#allocation81_spill] sm:$0xff] }
 0x299   : > { %14345 = vst [vmem:[#allocation73_spill] sm:$0xff] %v11753_v46  ;;  %v11766_v48 = vsel %vm1719_vm4, %v14347_v59, %v14346_v49  ;;  %v11771_v9 = vpop.permute.xlu1 %8180  ;;  %v14349_v32 = vrot.slane %v11705_v42, 1  ;;  %v14350_v45 = vrot.slane %v11705_v42, 2  ;;  %v8489_v49 = vpack.i.bf16 %v11753_v46, %v11737_v24 }
 0x29a   : > { %14348 = vst [vmem:[#allocation106_spill] sm:$0xff] %v11766_v48  ;;  %v3645_v26 = vsel %vm3606_vm6, %v11668_v20, %v8122_v15  ;;  %v3791_v62 = vsel %vm3533_vm5, %v14352_v8, %v8163_v6  ;;  %v3790_v22 = vsel %vm3533_vm5, %v14353_v29, %v8162_v3  ;;  %v8201_v35 = vpop.permute.xlu0 %8200  ;;  %v11799_v20 = vmax.f32 %v1473_v61, 0.0 }
 0x29b   : > { %v11776_v4 = vsel %vm1719_vm4, %v14349_v32, %v1879_v54  ;;  %v11781_v59 = vsel %vm2104_vm3, %v14350_v45, %v2264_v23  ;;  %v8494_v32 = vpack.i.bf16 %v11620_v41, %v11766_v48  ;;  %v1476_v45 = vadd.f32 %v11317_v56, %v11595_v13  ;;  %v11795_v54 = vpop.f32.mrb[196].mxu0  ;;  %8475 = vrot.lane.b32.xlu1 %v11679_v28, %s9118_s14  ;;  %v11804_v6 = vpop.f32.mrb[4].mxu1 }
 0x29c   : > { %14351 = vst [vmem:[#allocation107_spill] sm:$0xff] %v11781_v59  ;;  %v8203_v23 = vunpack.i.h.bf16 %v8201_v35  ;;  %v8202_v24 = vunpack.i.l.bf16 %v8201_v35  ;;  %v3646_v15 = vsel %vm3606_vm6, %v11664_v25, %v8123_v21  ;;  %v1498_v29 = vpop.f32.mrb[197].mxu0  ;;  %8490 = vrot.lane.b32.xlu0 %v8489_v49, %s9118_s14  ;;  %14354 = vst [vmem:[#allocation81_spill] sm:$0xff] %v11804_v6  ;;  %v3862_v3 = vsel %vm3606_vm6, %v3790_v22, %v8192_v52  ;;  %v4376_v61 = vpop.f32.mrb[5].mxu1 }
 0x29d   : > { %v3863_v13 = vsel %vm3606_vm6, %v3791_v62, %v8193_v51  ;;  %v3718_v8 = vsel %vm3679_vm7, %v3645_v26, %v8152_v36  ;;  %v3719_v35 = vsel %vm3679_vm7, %v3646_v15, %v8153_v12  ;;  %v11810_v41 = vpop.f32.mrb[198].mxu0  ;;  %v11812_v28 = vpop.permute.xlu1 %8195  ;;  %v1481_v49 = vadd.f32 %v11317_v56, %v11653_v33 }
 0x29e   : > { %v3934_v25 = vsel %vm3679_vm7, %v3862_v3, %v8202_v24  ;;  %v3935_v21 = vsel %vm3679_vm7, %v3863_v13, %v8203_v23  ;;  %v11820_v22 = vadd.f32 %v11317_v56, %v11671_v37  ;;  %v8188_v52 = vunpack.i.h.bf16 %v11710_v11  ;;  %v11823_v36 = vpop.permute.xlu0 %8215  ;;  %v11825_v12 = vpop.f32.mrb[6].mxu1 }
 0x29f   : > { %14355 = vst [vmem:[#allocation30_spill] sm:$0xff] %v11825_v12  ;;  %v4026_v51 = vpack.c.bf16 %v3935_v21, %v3934_v25  ;;  %v11827_v26 = vmax.f32 %v1476_v45, 0.0  ;;  %v8187_v24 = vunpack.i.l.bf16 %v11710_v11  ;;  %8480 = vrot.lane.b32.xlu1 %v8479_v17, %s9117_s13  ;;  %v4379_v62 = vpop.f32.mrb[7].mxu1  ;;  %v4025_v23 = vpack.c.bf16 %v3719_v35, %v3718_v8  ;;  %v1501_v15 = vpop.f32.mrb[199].mxu0 }
 0x2a0   : > { %v8514_v37 = vpack.i.bf16 %v11675_v63, %v11622_v10  ;;  %v8168_v29 = vunpack.i.h.bf16 %v11701_v31  ;;  %v8178_v3 = vunpack.i.h.bf16 %v11739_v2  ;;  %8495 = vrot.lane.b32.xlu0 %v8494_v32, %s9119_s19  ;;  %v14357_v11 = vrot.slane %v11675_v63, 2  ;;  %v14360_v62 = vld [vmem:[#allocation28_spill] sm:$0xff] }
 0x2a1   : > { %14356 = vst [vmem:[#allocation108_spill] sm:$0xff] %v11827_v26  ;;  %4516 = vmatprep.mubr.bf16.mxu1 %v4026_v51  ;;  %v14358_v17 = vrot.slane %v11622_v10, 2  ;;  %v8167_v8 = vunpack.i.l.bf16 %v11701_v31  ;;  %v8177_v35 = vunpack.i.l.bf16 %v11739_v2  ;;  %v11847_v61 = vpop.permute.xlu1 %8205  ;;  %v11849_v25 = vmax.f32 %v1481_v49, 0.0  ;;  %v11860_v2 = vpop.f32.mrb[200].mxu0 }
 0x2a2   : > { %4517 = vmatmul.mubr.bf16.gmra.mrb[76].mxu1 %v4025_v23  ;;  %v3793_v51 = vsel %vm3533_vm5, %v14360_v62, %v8188_v52  ;;  %v8504_v31 = vpack.i.bf16 %v11629_v1, %v11753_v46  ;;  %v14362_v52 = vrot.slane %v11675_v63, 1  ;;  %v14363_v62 = vrot.slane %v11622_v10, 1 }
 0x2a3   : > { %v11843_v45 = vsel %vm2104_vm3, %v14358_v17, %v14357_v11  ;;  %v11856_v11 = vpop.permute.xlu0 %8220  ;;  %v14361_v17 = vld [vmem:[#allocation82_spill] sm:$0xff]  ;;  %8500 = vrot.lane.b32.xlu1 %v8494_v32, %s9118_s14  ;;  %v14365_v33 = vrot.slane %v11705_v42, 1  ;;  %v8218_v12 = vunpack.i.h.bf16 %v11823_v36  ;;  %v8217_v6 = vunpack.i.l.bf16 %v11823_v36 }
 0x2a4   : > { %14359 = vst [vmem:[#allocation109_spill] sm:$0xff] %v11843_v45  ;;  %v3792_v49 = vsel %vm3533_vm5, %v14361_v17, %v8187_v24  ;;  %v8519_v23 = vpack.i.bf16 %v11843_v45, %v11629_v1  ;;  %v11872_v13 = vsel %vm1719_vm4, %v14363_v62, %v14362_v52  ;;  %v14366_v15 = vmov %v14362_v52  ;;  %v1506_v24 = vpop.f32.mrb[201].mxu0  ;;  %v14368_v17 = vld [vmem:[#allocation15_spill] sm:$0xff]  ;;  %v14369_v1 = vld [vmem:[#allocation18_spill] sm:$0xff] }
 0x2a5   : > { %14364 = vst [vmem:[#allocation28_spill] sm:$0xff] %v11872_v13  ;;  %v11879_v21 = vsel %vm1719_vm4, %v14366_v15, %v14365_v33  ;;  %v11883_v32 = vsel %vm3533_vm5, %v14368_v17, %v8178_v3  ;;  %8515 = vrot.lane.b32.xlu0 %v8514_v37, %s9117_s13  ;;  %v8509_v52 = vpack.i.bf16 %v11622_v10, %v11537_v58  ;;  %v11890_v62 = vpop.f32.mrb[202].mxu0  ;;  %v11896_v15 = vpop.permute.xlu1 %8210  ;;  %v14370_v24 = vmax.f32 %v11820_v22, 0.0 }
 0x2a6   : > { %14367 = vst [vmem:[#allocation82_spill] sm:$0xff] %v11879_v21  ;;  %v11894_v33 = vsel %vm3533_vm5, %v14369_v1, %v8177_v35  ;;  %v1509_v46 = vpop.f32.mrb[203].mxu0  ;;  %v11905_v10 = vpack.i.bf16 %v11879_v21, %v11872_v13  ;;  %v14371_v1 = vunpack.i.l.bf16 %v11636_v53  ;;  %v14372_v3 = vunpack.i.h.bf16 %v11636_v53 }
 0x2a7   : > { %v1886_v17 = vrot.slane %v14370_v24, 1  ;;  %v8226_v48 = vpop.permute.xlu0 %8225  ;;  %8505 = vrot.lane.b32.xlu1 %v8504_v31, %s9117_s13  ;;  %v11920_v13 = vpop.f32.mrb[8].mxu1  ;;  %v3865_v53 = vsel %vm3606_vm6, %v3793_v51, %v8218_v12 }
 0x2a8   : > { %v3647_v35 = vsel %vm3606_vm6, %v11727_v7, %v14371_v1  ;;  %v3648_v24 = vsel %vm3606_vm6, %v11723_v40, %v14372_v3  ;;  %v8228_v58 = vunpack.i.h.bf16 %v8226_v48  ;;  %v8227_v36 = vunpack.i.l.bf16 %v8226_v48  ;;  %14373 = vst [vmem:[#allocation15_spill] sm:$0xff] %v11920_v13  ;;  %v4384_v31 = vpop.f32.mrb[9].mxu1 }
 0x2a9   : > { %v3720_v46 = vsel %vm3679_vm7, %v3647_v35, %v8167_v8  ;;  %v3721_v37 = vsel %vm3679_vm7, %v3648_v24, %v8168_v29  ;;  %8520 = vrot.lane.b32.xlu0 %v8519_v23, %s9118_s14  ;;  %v3864_v7 = vsel %vm3606_vm6, %v3792_v49, %v8217_v6  ;;  %v1497_v40 = vadd.f32 %v11317_v56, %v11795_v54  ;;  %v11926_v48 = vpop.permute.xlu1 %8230  ;;  %v11942_v51 = vpop.f32.mrb[10].mxu1 }
 0x2aa   : > { %v14374_v8 = vrot.slane %v11849_v25, 1  ;;  %v3936_v3 = vsel %vm3679_vm7, %v3864_v7, %v8227_v36  ;;  %v3937_v23 = vsel %vm3679_vm7, %v3865_v53, %v8228_v58  ;;  %v14375_v1 = vrot.slane %v11705_v42, 2  ;;  %14378 = vst [vmem:[#allocation110_spill] sm:$0xff] %v11942_v51  ;;  %v4387_v58 = vpop.f32.mrb[11].mxu1 }
 0x2ab   : > { %v14376_v6 = vrot.slane %v11675_v63, 2  ;;  %v8246_v54 = vpop.permute.xlu0 %8245  ;;  %v4029_v49 = vpack.c.bf16 %v3937_v23, %v3936_v3  ;;  %v4028_v35 = vpack.c.bf16 %v3721_v37, %v3720_v46  ;;  %v11946_v24 = vmax.f32 %v1497_v40, 0.0  ;;  %8510 = vrot.lane.b32.xlu1 %v8509_v52, %s9119_s19  ;;  %v11956_v37 = vpop.f32.mrb[204].mxu0 }
 0x2ac   : > { %v11931_v29 = vsel %vm1719_vm4, %v14374_v8, %v1886_v17  ;;  %v1489_v17 = vadd.f32 %v11317_v56, %v11719_v38  ;;  %v8198_v36 = vunpack.i.h.bf16 %v11812_v28  ;;  %v8524_v7 = vpack.i.bf16 %v11705_v42, %v11675_v63  ;;  %v1514_v40 = vpop.f32.mrb[205].mxu0 }
 0x2ad   : > { %v11940_v12 = vsel %vm2104_vm3, %v14376_v6, %v14375_v1  ;;  %v1492_v53 = vadd.f32 %v11317_v56, %v11743_v27  ;;  %v1500_v31 = vadd.f32 %v11317_v56, %v11810_v41  ;;  %v8197_v38 = vunpack.i.l.bf16 %v11812_v28  ;;  %8530 = vrot.lane.b32.xlu0 %v11905_v10, %s9119_s19  ;;  %4524 = vmatprep.mubr.bf16.mxu1 %v4029_v49  ;;  %v11967_v41 = vpop.permute.xlu1 %8235  ;;  %v11970_v23 = vpop.f32.mrb[206].mxu0 }
 0x2ae   : > { %14377 = vst [vmem:[#allocation18_spill] sm:$0xff] %v11940_v12  ;;  %v8544_v52 = vpack.i.bf16 %v11781_v59, %v11940_v12  ;;  %v8549_v46 = vpack.i.bf16 %v11799_v20, %v11705_v42  ;;  %v8208_v27 = vunpack.i.h.bf16 %v11847_v61  ;;  %v8207_v8 = vunpack.i.l.bf16 %v11847_v61  ;;  %4525 = vmatmul.mubr.bf16.gmra.mrb[80].mxu1 %v4028_v35  ;;  %v1517_v61 = vpop.f32.mrb[207].mxu0 }
 0x2af   : > { %v1618_v3 = vmax.f32 %v1500_v31, 0.0  ;;  %v8223_v1 = vunpack.i.h.bf16 %v11856_v11  ;;  %v8222_v6 = vunpack.i.l.bf16 %v11856_v11  ;;  %v11974_v49 = vpop.permute.xlu0 %8250  ;;  %v11976_v58 = vmax.f32 %v1489_v17, 0.0  ;;  %8525 = vrot.lane.b32.xlu1 %v8524_v7, %s9119_s19  ;;  %v14382_v31 = vld [vmem:[#allocation19_spill] sm:$0xff] }
 0x2b0   : > { %v8539_v40 = vpack.i.bf16 %v11940_v12, %v11843_v45  ;;  %v11981_v35 = vmax.f32 %v1492_v53, 0.0  ;;  %v8248_v51 = vunpack.i.h.bf16 %v8246_v54  ;;  %v8247_v13 = vunpack.i.l.bf16 %v8246_v54  ;;  %v14381_v53 = vld [vmem:[#allocation36_spill] sm:$0xff] }
 0x2b1   : > { %v2714_v21 = vrot.slane %v1618_v3, 1  ;;  %v2793_v28 = vrot.slane %v1618_v3, 2  ;;  %8545 = vrot.lane.b32.xlu0 %v8544_v52, %s9118_s14  ;;  %v14379_v11 = vrot.slane %v11827_v26, 1  ;;  %v14380_v17 = vrot.slane %v11799_v20, 1  ;;  %v12002_v54 = vpop.permute.xlu1 %8240 }
 0x2b2   : > { %v1505_v7 = vadd.f32 %v11317_v56, %v11860_v2  ;;  %v11996_v61 = vsel %vm3533_vm5, %v14381_v53, %v8208_v27  ;;  %v12000_v3 = vsel %vm3533_vm5, %v14382_v31, %v8207_v8  ;;  %v14383_v52 = vrot.slane %v11946_v24, 1  ;;  %v14385_v27 = vld [vmem:[#allocation83_spill] sm:$0xff] }
 0x2b3   : > { %v11990_v42 = vsel %vm1719_vm4, %v14380_v17, %v14379_v11  ;;  %v14384_v11 = vrot.slane %v11946_v24, 2  ;;  %v3795_v2 = vsel %vm3533_vm5, %v10893_v43, %v8223_v1  ;;  %v3794_v53 = vsel %vm3533_vm5, %v14385_v27, %v8222_v6  ;;  %v8261_v8 = vpop.permute.xlu0 %8260  ;;  %8535 = vrot.lane.b32.xlu1 %v11905_v10, %s9118_s14  ;;  %v12032_v6 = vpop.f32.mrb[12].mxu1 }
 0x2b4   : > { %v12007_v12 = vsel %vm1719_vm4, %v14383_v52, %v2714_v21  ;;  %v14386_v31 = vunpack.i.l.bf16 %v11771_v9  ;;  %v12022_v63 = vmax.f32 %v1505_v7, 0.0  ;;  %v8263_v21 = vunpack.i.h.bf16 %v8261_v8  ;;  %14388 = vst [vmem:[#allocation36_spill] sm:$0xff] %v12032_v6 }
 0x2b5   : > { %v12012_v17 = vsel %vm2104_vm3, %v14384_v11, %v2793_v28  ;;  %v8262_v52 = vunpack.i.l.bf16 %v8261_v8  ;;  %v14387_v28 = vunpack.i.h.bf16 %v11771_v9  ;;  %8550 = vrot.lane.b32.xlu0 %v8549_v46, %s9117_s13  ;;  %v3867_v7 = vsel %vm3606_vm6, %v3795_v2, %v8248_v51 }
 0x2b6   : > { %v3649_v45 = vsel %vm3606_vm6, %v11894_v33, %v14386_v31  ;;  %v3866_v33 = vsel %vm3606_vm6, %v3794_v53, %v8247_v13  ;;  %v2788_v9 = vrot.slane %v11976_v58, 2  ;;  %v14073_v27 = vrot.slane %v11981_v35, 2 }
 0x2b7   : > { %v3650_v43 = vsel %vm3606_vm6, %v11883_v32, %v14387_v28  ;;  %v3722_v1 = vsel %vm3679_vm7, %v3649_v45, %v8197_v38  ;;  %v12041_v32 = vpop.permute.xlu1 %8255  ;;  %v4392_v45 = vpop.f32.mrb[13].mxu1  ;;  %v3938_v38 = vsel %vm3679_vm7, %v3866_v33, %v8262_v52  ;;  %v3939_v46 = vsel %vm3679_vm7, %v3867_v7, %v8263_v21  ;;  %8540 = vrot.lane.b32.xlu1 %v8539_v40, %s9117_s13 }
 0x2b8   : > { %v3723_v11 = vsel %vm3679_vm7, %v3650_v43, %v8198_v36  ;;  %v2709_v13 = vrot.slane %v11976_v58, 1  ;;  %v2710_v51 = vrot.slane %v11981_v35, 1  ;;  %v12047_v2 = vpop.permute.xlu0 %8275  ;;  %v12049_v36 = vpop.f32.mrb[14].mxu1  ;;  %v8559_v53 = vpack.i.bf16 %v11990_v42, %v11776_v4 }
 0x2b9   : > { %14389 = vst [vmem:[#allocation19_spill] sm:$0xff] %v12049_v36  ;;  %v4032_v8 = vpack.c.bf16 %v3939_v46, %v3938_v38  ;;  %v8213_v31 = vunpack.i.h.bf16 %v11896_v15  ;;  %v8212_v28 = vunpack.i.l.bf16 %v11896_v15  ;;  %v8253_v52 = vunpack.i.h.bf16 %v11974_v49  ;;  %v4395_v21 = vpop.f32.mrb[15].mxu1 }
 0x2ba   : > { %v4031_v43 = vpack.c.bf16 %v3723_v11, %v3722_v1  ;;  %v8252_v33 = vunpack.i.l.bf16 %v11974_v49  ;;  %8560 = vrot.lane.b32.xlu0 %v8559_v53, %s9119_s19  ;;  %v8554_v7 = vpack.i.bf16 %v11827_v26, %v11799_v20  ;;  %v14390_v45 = vrot.slane %v11849_v25, 2 }
 0x2bb   : > { %4532 = vmatprep.mubr.bf16.mxu1 %v4032_v8  ;;  %v14391_v38 = vrot.slane %v11827_v26, 2  ;;  %v12070_v46 = vpop.permute.xlu1 %8265  ;;  %v8574_v49 = vpack.i.bf16 %v11849_v25, %v11827_v26  ;;  %v1508_v1 = vadd.f32 %v11317_v56, %v11890_v62  ;;  %v12079_v11 = vsel %vm2104_vm3, %v2788_v9, %v14073_v27 }
 0x2bc   : > { %4533 = vmatmul.mubr.bf16.gmra.mrb[84].mxu1 %v4031_v43  ;;  %v8243_v8 = vunpack.i.h.bf16 %v12002_v54  ;;  %v8242_v21 = vunpack.i.l.bf16 %v12002_v54  ;;  %v14392_v43 = vrot.slane %v11799_v20, 2  ;;  %v1513_v62 = vadd.f32 %v11317_v56, %v11956_v37  ;;  %8555 = vrot.lane.b32.xlu1 %v8554_v7, %s9119_s19 }
 0x2bd   : > { %v12066_v15 = vsel %vm2104_vm3, %v14391_v38, %v14390_v45  ;;  %v8281_v45 = vpop.permute.xlu0 %8280  ;;  %v3797_v40 = vsel %vm3533_vm5, %v10987_v39, %v8253_v52  ;;  %v14394_v27 = vrot.slane %v11849_v25, 1  ;;  %v14395_v36 = vrot.slane %v11827_v26, 1 }
 0x2be   : > { %v12088_v10 = vsel %vm2104_vm3, %v14392_v43, %v14391_v38  ;;  %v8282_v9 = vunpack.i.l.bf16 %v8281_v45  ;;  %v14396_v38 = vld [vmem:[#allocation41_spill] sm:$0xff]  ;;  %v8283_v56 = vunpack.i.h.bf16 %v8281_v45  ;;  %8575 = vrot.lane.b32.xlu0 %v8574_v49, %s9117_s13  ;;  %v3651_v39 = vsel %vm3606_vm6, %v12000_v3, %v8212_v28 }
 0x2bf   : > { %14393 = vst [vmem:[#allocation83_spill] sm:$0xff] %v12088_v10  ;;  %v8579_v54 = vpack.i.bf16 %v12066_v15, %v12088_v10  ;;  %v12102_v6 = vsel %vm1719_vm4, %v14395_v36, %v14394_v27  ;;  %v3796_v43 = vsel %vm3533_vm5, %v14396_v38, %v8252_v33  ;;  %v12109_v37 = vmax.f32 %v1513_v62, 0.0  ;;  %v12111_v52 = vpop.permute.xlu1 %8270  ;;  %v9040_v27 = vld [vmem:[%s13926_s5] ss:$0 sm:$0xff] }
 0x2c0   : > { %v3652_v7 = vsel %vm3606_vm6, %v11996_v61, %v8213_v31  ;;  %v12115_v26 = vmax.f32 %v1508_v1, 0.0  ;;  %v1516_v36 = vadd.f32 %v9040_v27, %v11970_v23  ;;  %v12122_v33 = vsel %vm1719_vm4, %v2709_v13, %v2710_v51  ;;  %8565 = vrot.lane.b32.xlu1 %v8559_v53, %s9118_s14  ;;  %v12132_v13 = vpop.f32.mrb[16].mxu1 }
 0x2c1   : > { %v8291_v49 = vpop.permute.xlu0 %8290  ;;  %v3868_v3 = vsel %vm3606_vm6, %v3796_v43, %v8282_v9  ;;  %v3724_v28 = vsel %vm3679_vm7, %v3651_v39, %v8242_v21  ;;  %v3725_v45 = vsel %vm3679_vm7, %v3652_v7, %v8243_v8  ;;  %v3234_v61 = vrot.slane %v12109_v37, 1  ;;  %14397 = vst [vmem:[#allocation41_spill] sm:$0xff] %v12132_v13  ;;  %v4400_v39 = vpop.f32.mrb[17].mxu1 }
 0x2c2   : > { %v8293_v31 = vunpack.i.h.bf16 %v8291_v49  ;;  %v8292_v1 = vunpack.i.l.bf16 %v8291_v49  ;;  %v1622_v23 = vmax.f32 %v1516_v36, 0.0  ;;  %8580 = vrot.lane.b32.xlu0 %v8579_v54, %s9118_s14  ;;  %v3869_v9 = vsel %vm3606_vm6, %v3797_v40, %v8283_v56 }
 0x2c3   : > { %v14398_v8 = vrot.slane %v11946_v24, 1  ;;  %v12143_v43 = vpop.permute.xlu1 %8285  ;;  %v8569_v54 = vpack.i.bf16 %v12088_v10, %v11781_v59  ;;  %v14399_v27 = vmax.f32 %v11820_v22, 0.0  ;;  %v3231_v21 = vrot.slane %v12022_v63, 1 }
 0x2c4   : > { %v3940_v7 = vsel %vm3679_vm7, %v3868_v3, %v8292_v1  ;;  %v3941_v40 = vsel %vm3679_vm7, %v3869_v9, %v8293_v31  ;;  %v3236_v56 = vrot.slane %v1622_v23, 1  ;;  %v3459_v53 = vrot.slane %v1622_v23, 2 }
 0x2c5   : > { %v12139_v38 = vsel %vm1719_vm4, %v2710_v51, %v14398_v8  ;;  %v2271_v36 = vrot.slane %v14399_v27, 2  ;;  %v8306_v49 = vpop.permute.xlu0 %8305  ;;  %v12151_v51 = vpop.f32.mrb[18].mxu1  ;;  %v8584_v8 = vpack.i.bf16 %v11931_v29, %v12102_v6  ;;  %v4035_v62 = vpack.c.bf16 %v3941_v40, %v3940_v7  ;;  %8570 = vrot.lane.b32.xlu1 %v8569_v54, %s9117_s13 }
 0x2c6   : > { %14400 = vst [vmem:[#allocation111_spill] sm:$0xff] %v12151_v51  ;;  %v4403_v39 = vpop.f32.mrb[19].mxu1  ;;  %v4034_v3 = vpack.c.bf16 %v3725_v45, %v3724_v28  ;;  %v3232_v31 = vrot.slane %v12115_v26, 1  ;;  %v12159_v1 = vsel %vm1719_vm4, %v3234_v61, %v3236_v56  ;;  %v8233_v22 = vunpack.i.h.bf16 %v11926_v48 }
 0x2c7   : > { %8585 = vrot.lane.b32.xlu0 %v8584_v8, %s9119_s19  ;;  %4540 = vmatprep.mubr.bf16.mxu1 %v4035_v62  ;;  %v14401_v9 = vrot.slane %v12109_v37, 2  ;;  %v8232_v54 = vunpack.i.l.bf16 %v11926_v48  ;;  %v8278_v7 = vunpack.i.h.bf16 %v12047_v2  ;;  %v12170_v28 = vpop.permute.xlu1 %8295  ;;  %v14403_v45 = vrot.slane %v11946_v24, 2 }
 0x2c8   : > { %4541 = vmatmul.mubr.bf16.gmra.mrb[88].mxu1 %v4034_v3  ;;  %v14404_v40 = vrot.slane %v11981_v35, 2  ;;  %v8237_v62 = vunpack.i.l.bf16 %v11967_v41  ;;  %v8277_v27 = vunpack.i.l.bf16 %v12047_v2  ;;  %v14405_v48 = vrot.slane %v11849_v25, 2 }
 0x2c9   : > { %v12166_v23 = vsel %vm2104_vm3, %v14401_v9, %v3459_v53  ;;  %v12181_v53 = vpop.permute.xlu0 %8310  ;;  %v8238_v3 = vunpack.i.h.bf16 %v11967_v41  ;;  %8590 = vrot.lane.b32.xlu1 %v8584_v8, %s9118_s14  ;;  %v12191_v9 = vsel %vm1719_vm4, %v3231_v21, %v3232_v31  ;;  %v8308_v51 = vunpack.i.h.bf16 %v8306_v49  ;;  %v14408_v41 = vld [vmem:[#allocation80_spill] sm:$0xff] }
 0x2ca   : > { %14402 = vst [vmem:[#allocation112_spill] sm:$0xff] %v12166_v23  ;;  %v12177_v56 = vsel %vm2104_vm3, %v14404_v40, %v14403_v45  ;;  %v12186_v39 = vsel %vm2104_vm3, %v14405_v48, %v2271_v36  ;;  %v8258_v45 = vunpack.i.h.bf16 %v12041_v32  ;;  %v8257_v40 = vunpack.i.l.bf16 %v12041_v32  ;;  %v14407_v36 = vld [vmem:[#allocation26_spill] sm:$0xff] }
 0x2cb   : > { %v8307_v2 = vunpack.i.l.bf16 %v8306_v49  ;;  %v14406_v13 = vpack.i.bf16 %v11981_v35, %v11976_v58  ;;  %v3581_v48 = vsel %vm3533_vm5, %v14407_v36, %v8233_v22  ;;  %v3580_v8 = vsel %vm3533_vm5, %v14408_v41, %v8232_v54  ;;  %v12205_v10 = vpop.permute.xlu1 %8300  ;;  %v14409_v49 = vld [vmem:[#allocation35_spill] sm:$0xff] }
 0x2cc   : > { %v3799_v21 = vsel %vm3533_vm5, %v10932_v34, %v8278_v7  ;;  %v8594_v32 = vpack.i.bf16 %v11976_v58, %v11849_v25  ;;  %v3798_v59 = vsel %vm3533_vm5, %v14409_v49, %v8277_v27  ;;  %v3653_v22 = vsel %vm3606_vm6, %v3580_v8, %v8237_v62  ;;  %v12222_v7 = vpop.f32.mrb[20].mxu1 }
 0x2cd   : > { %8605 = vrot.lane.b32.xlu0 %v14406_v13, %s9117_s13  ;;  %v8316_v23 = vpop.permute.xlu0 %8315  ;;  %v8609_v13 = vpack.i.bf16 %v12079_v11, %v12186_v39  ;;  %v12215_v36 = vsel %vm1719_vm4, %v3232_v31, %v3234_v61  ;;  %v3654_v34 = vsel %vm3606_vm6, %v3581_v48, %v8238_v3  ;;  %v3870_v27 = vsel %vm3606_vm6, %v3798_v59, %v8307_v2  ;;  %v4408_v8 = vpop.f32.mrb[21].mxu1 }
 0x2ce   : > { %v8318_v54 = vunpack.i.h.bf16 %v8316_v23  ;;  %v8317_v41 = vunpack.i.l.bf16 %v8316_v23  ;;  %8595 = vrot.lane.b32.xlu1 %v8594_v32, %s9119_s19  ;;  %v8639_v58 = vpack.i.bf16 %v12159_v1, %v12215_v36  ;;  %v3871_v62 = vsel %vm3606_vm6, %v3799_v21, %v8308_v51 }
 0x2cf   : > { %v3726_v61 = vsel %vm3679_vm7, %v3653_v22, %v8257_v40  ;;  %v3727_v31 = vsel %vm3679_vm7, %v3654_v34, %v8258_v45  ;;  %v12228_v23 = vpop.permute.xlu1 %8320  ;;  %v8599_v3 = vpack.i.bf16 %v12186_v39, %v12066_v15  ;;  %v8614_v59 = vpack.i.bf16 %v12139_v38, %v12122_v33 }
 0x2d0   : > { %v3942_v48 = vsel %vm3679_vm7, %v3870_v27, %v8317_v41  ;;  %v3943_v32 = vsel %vm3679_vm7, %v3871_v62, %v8318_v54  ;;  %v4037_v40 = vpack.c.bf16 %v3727_v31, %v3726_v61  ;;  %v8268_v2 = vunpack.i.h.bf16 %v12070_v46 }
 0x2d1   : > { %8610 = vrot.lane.b32.xlu0 %v8609_v13, %s9118_s14  ;;  %v8336_v49 = vpop.permute.xlu0 %8335  ;;  %v12234_v13 = vpop.f32.mrb[22].mxu1  ;;  %v4038_v51 = vpack.c.bf16 %v3943_v32, %v3942_v48  ;;  %v8267_v21 = vunpack.i.l.bf16 %v12070_v46  ;;  %v8273_v54 = vunpack.i.h.bf16 %v12111_v52  ;;  %v8272_v41 = vunpack.i.l.bf16 %v12111_v52  ;;  %v14411_v52 = vld [vmem:[#allocation85_spill] sm:$0xff] }
 0x2d2   : > { %8600 = vrot.lane.b32.xlu1 %v8599_v3, %s9117_s13  ;;  %v4411_v45 = vpop.f32.mrb[23].mxu1  ;;  %v8619_v27 = vpack.i.bf16 %v12012_v17, %v12177_v56  ;;  %v8313_v62 = vunpack.i.h.bf16 %v12181_v53  ;;  %v8312_v61 = vunpack.i.l.bf16 %v12181_v53  ;;  %v14410_v31 = vpack.i.bf16 %v11946_v24, %v11981_v35 }
 0x2d3   : > { %4548 = vmatprep.mubr.bf16.mxu1 %v4038_v51  ;;  %v12242_v22 = vpop.permute.xlu1 %8325  ;;  %v8288_v46 = vunpack.i.h.bf16 %v12143_v43  ;;  %v8287_v8 = vunpack.i.l.bf16 %v12143_v43  ;;  %v8338_v3 = vunpack.i.h.bf16 %v8336_v49  ;;  %v8337_v48 = vunpack.i.l.bf16 %v8336_v49 }
 0x2d4   : > { %4549 = vmatmul.mubr.bf16.gmra.mrb[92].mxu1 %v4037_v40  ;;  %v3583_v32 = vsel %vm3533_vm5, %v14411_v52, %v8268_v2  ;;  %v3800_v43 = vsel %vm3533_vm5, %v11082_v30, %v8312_v61  ;;  %v14413_v2 = vpack.i.bf16 %v12022_v63, %v11946_v24  ;;  %v8323_v36 = vunpack.i.h.bf16 %v12228_v23 }
 0x2d5   : > { %8615 = vrot.lane.b32.xlu0 %v8614_v59, %s9119_s19  ;;  %v8341_v34 = vpop.permute.xlu0 %8340  ;;  %v14412_v59 = vld [vmem:[#allocation47_spill] sm:$0xff]  ;;  %v3656_v35 = vsel %vm3606_vm6, %v3583_v32, %v8273_v54  ;;  %v3872_v52 = vsel %vm3606_vm6, %v3800_v43, %v8337_v48  ;;  %v8629_v48 = vpack.i.bf16 %v12191_v9, %v12007_v12 }
 0x2d6   : > { %8645 = vrot.lane.b32.xlu1 %v14410_v31, %s9119_s19  ;;  %v3582_v51 = vsel %vm3533_vm5, %v14412_v59, %v8267_v21  ;;  %v3801_v31 = vsel %vm3533_vm5, %v11169_v44, %v8313_v62  ;;  %v3729_v44 = vsel %vm3679_vm7, %v3656_v35, %v8288_v46  ;;  %v8298_v46 = vunpack.i.h.bf16 %v12170_v28 }
 0x2d7   : > { %v8331_v53 = vpop.permute.xlu1 %8330  ;;  %v3655_v40 = vsel %vm3606_vm6, %v3582_v51, %v8272_v41  ;;  %v12271_v21 = vpop.f32.mrb[24].mxu1  ;;  %v3873_v41 = vsel %vm3606_vm6, %v3801_v31, %v8338_v3  ;;  %v8303_v35 = vunpack.i.h.bf16 %v12205_v10  ;;  %v8302_v31 = vunpack.i.l.bf16 %v12205_v10 }
 0x2d8   : > { %v3728_v54 = vsel %vm3679_vm7, %v3655_v40, %v8287_v8  ;;  %v4416_v30 = vpop.f32.mrb[25].mxu1  ;;  %v8297_v8 = vunpack.i.l.bf16 %v12170_v28  ;;  %v8342_v9 = vunpack.i.l.bf16 %v8341_v34  ;;  %v3585_v28 = vsel %vm3533_vm5, %v10926_v57, %v8298_v46 }
 0x2d9   : > { %8620 = vrot.lane.b32.xlu0 %v8619_v27, %s9118_s14  ;;  %v8351_v45 = vpop.permute.xlu0 %8350  ;;  %v12283_v24 = vpop.f32.mrb[26].mxu1 }
 0x2da   : > { %v8353_v49 = vunpack.i.h.bf16 %v8351_v45  ;;  %v8352_v27 = vunpack.i.l.bf16 %v8351_v45  ;;  %v4419_v3 = vpop.f32.mrb[27].mxu1  ;;  %v4040_v45 = vpack.c.bf16 %v3729_v44, %v3728_v54  ;;  %v14414_v54 = vpack.i.bf16 %v12109_v37, %v12115_v26  ;;  %v14415_v44 = vld [vmem:[#allocation33_spill] sm:$0xff] }
 0x2db   : > { %v12277_v62 = vpop.permute.xlu1 %8345  ;;  %v3584_v30 = vsel %vm3533_vm5, %v14415_v44, %v8297_v8 }
 0x2dc   : > { %v3944_v61 = vsel %vm3679_vm7, %v3872_v52, %v8352_v27  ;;  %v3945_v32 = vsel %vm3679_vm7, %v3873_v41, %v8353_v49  ;;  %v8343_v49 = vunpack.i.h.bf16 %v8341_v34  ;;  %v8333_v27 = vunpack.i.h.bf16 %v8331_v53 }
 0x2dd   : > { %8625 = vrot.lane.b32.xlu0 %v14413_v2, %s9117_s13  ;;  %v12281_v59 = vpop.permute.xlu0 %8365  ;;  %v4041_v51 = vpack.c.bf16 %v3945_v32, %v3944_v61  ;;  %v8332_v2 = vunpack.i.l.bf16 %v8331_v53  ;;  %v3657_v10 = vsel %vm3606_vm6, %v3584_v30, %v8302_v31  ;;  %v3658_v34 = vsel %vm3606_vm6, %v3585_v28, %v8303_v35 }
 0x2de   : > { %v3803_v32 = vsel %vm3533_vm5, %v11274_v5, %v8343_v49  ;;  %v3731_v5 = vsel %vm3679_vm7, %v3658_v34, %v8333_v27  ;;  %v8328_v27 = vunpack.i.h.bf16 %v12242_v22  ;;  %v8368_v44 = vunpack.i.h.bf16 %v12281_v59 }
 0x2df   : > { %4556 = vmatprep.mubr.bf16.mxu1 %v4041_v51  ;;  %v12290_v40 = vpop.permute.xlu1 %8355  ;;  %v3730_v8 = vsel %vm3679_vm7, %v3657_v10, %v8332_v2  ;;  %v8367_v30 = vunpack.i.l.bf16 %v12281_v59  ;;  %v8348_v10 = vunpack.i.h.bf16 %v12277_v62  ;;  %v8347_v34 = vunpack.i.l.bf16 %v12277_v62  ;;  %v8993_v59 = vld [vmem:[%s13924_s3 + $0x40] sm:$0xff]  }
 0x2e0   : > { %4557 = vmatmul.mubr.bf16.gmra.mrb[96].mxu1 %v4040_v45  ;;  %v4043_v1 = vpack.c.bf16 %v3731_v5, %v3730_v8  ;;  %v8994_v62 = vld [vmem:[%s13924_s3] sm:$0xff]   ;;  %7223 = vmatprep.subr.bf16.mxu0 %v8993_v59 }
 0x2e1   : > { %8630 = vrot.lane.b32.xlu0 %v8629_v48, %s9119_s19  ;;  %v8371_v43 = vpop.permute.xlu0 %8370  ;;  %v3802_v48 = vsel %vm3533_vm5, %v11055_v47, %v8342_v9  ;;  %7224 = vmatpush3.bf16.msra.mxu0 %v8994_v62  ;;  %v14416_v62 = vld [vmem:[#allocation86_spill] sm:$0xff] }
 0x2e2   : > { %v8373_v52 = vunpack.i.h.bf16 %v8371_v43  ;;  %v8372_v41 = vunpack.i.l.bf16 %v8371_v43 }
 0x2e3   : > { %v12302_v61 = vpop.permute.xlu1 %8360  ;;  %v12316_v46 = vpop.f32.mrb[28].mxu1 }
 0x2e4   : > { %v3874_v57 = vsel %vm3606_vm6, %v3802_v48, %v8372_v41  ;;  %v3875_v45 = vsel %vm3606_vm6, %v3803_v32, %v8373_v52  ;;  %v4424_v47 = vpop.f32.mrb[29].mxu1 }
 0x2e5   : > { %8635 = vrot.lane.b32.xlu0 %v14414_v54, %s9117_s13  ;;  %v8381_v53 = vpop.permute.xlu0 %8380  ;;  %v12324_v9 = vpop.f32.mrb[30].mxu1  ;;  %v8327_v54 = vunpack.i.l.bf16 %v12242_v22 }
 0x2e6   : > { %v8383_v51 = vunpack.i.h.bf16 %v8381_v53  ;;  %v8382_v3 = vunpack.i.l.bf16 %v8381_v53  ;;  %v4427_v41 = vpop.f32.mrb[31].mxu1 }
 0x2e7   : > { %v12320_v35 = vpop.permute.xlu1 %8375 }
 0x2e8   : > { %v3946_v31 = vsel %vm3679_vm7, %v3874_v57, %v8382_v3  ;;  %v3947_v43 = vsel %vm3679_vm7, %v3875_v45, %v8383_v51 }
 0x2e9   : > { %8640 = vrot.lane.b32.xlu0 %v8639_v58, %s9119_s19  ;;  %v8396_v49 = vpop.permute.xlu0 %8395  ;;  %v4044_v52 = vpack.c.bf16 %v3947_v43, %v3946_v31  ;;  %v8322_v58 = vunpack.i.l.bf16 %v12228_v23  ;;  %v3587_v23 = vsel %vm3533_vm5, %v10980_v55, %v8323_v36  ;;  %v3805_v55 = vsel %vm3533_vm5, %v11218_v60, %v8368_v44 }
 0x2ea   : > { %v8398_v53 = vunpack.i.h.bf16 %v8396_v49  ;;  %v8397_v32 = vunpack.i.l.bf16 %v8396_v49  ;;  %v3660_v3 = vsel %vm3606_vm6, %v3587_v23, %v8328_v27  ;;  %v8358_v44 = vunpack.i.h.bf16 %v12290_v40 }
 0x2eb   : > { %4564 = vmatprep.mubr.bf16.mxu1 %v4044_v52  ;;  %v12328_v2 = vpop.permute.xlu1 %8385  ;;  %v3586_v48 = vsel %vm3533_vm5, %v10974_v0, %v8322_v58  ;;  %v3804_v0 = vsel %vm3533_vm5, %v11281_v14, %v8367_v30  ;;  %v3733_v49 = vsel %vm3679_vm7, %v3660_v3, %v8348_v10  ;;  %v8357_v30 = vunpack.i.l.bf16 %v12290_v40  ;;  %v14417_v40 = vld [vmem:[#allocation44_spill] sm:$0xff] }
 0x2ec   : > { %4565 = vmatmul.mubr.bf16.gmra.mrb[100].mxu1 %v4043_v1  ;;  %v3659_v22 = vsel %vm3606_vm6, %v3586_v48, %v8327_v54  ;;  %v3876_v5 = vsel %vm3606_vm6, %v3804_v0, %v8397_v32  ;;  %v3877_v47 = vsel %vm3606_vm6, %v3805_v55, %v8398_v53  ;;  %v8362_v53 = vunpack.i.l.bf16 %v12302_v61 }
 0x2ed   : > { %v8401_v28 = vpop.permute.xlu0 %8400  ;;  %v3732_v43 = vsel %vm3679_vm7, %v3659_v22, %v8347_v34  ;;  %v8363_v34 = vunpack.i.h.bf16 %v12302_v61  ;;  %v8378_v22 = vunpack.i.h.bf16 %v12320_v35  ;;  %v8377_v3 = vunpack.i.l.bf16 %v12320_v35 }
 0x2ee   : > { %v4046_v54 = vpack.c.bf16 %v3733_v49, %v3732_v43  ;;  %v8403_v23 = vunpack.i.h.bf16 %v8401_v28  ;;  %v8402_v48 = vunpack.i.l.bf16 %v8401_v28  ;;  %v3589_v55 = vsel %vm3533_vm5, %v14416_v62, %v8358_v44 }
 0x2ef   : > { %v12340_v51 = vpop.permute.xlu1 %8390  ;;  %v12356_v31 = vpop.f32.mrb[32].mxu1  ;;  %v3588_v0 = vsel %vm3533_vm5, %v14417_v40, %v8357_v30  ;;  %v3662_v61 = vsel %vm3606_vm6, %v3589_v55, %v8363_v34 }
 0x2f0   : > { %v4432_v41 = vpop.f32.mrb[33].mxu1  ;;  %v3807_v28 = vsel %vm3533_vm5, %v11472_v19, %v8403_v23  ;;  %v8392_v62 = vunpack.i.l.bf16 %v12340_v51 }
 0x2f1   : > { %v8406_v57 = vpop.permute.xlu0 %8405  ;;  %v12364_v36 = vpop.f32.mrb[34].mxu1 }
 0x2f2   : > { %v8408_v45 = vunpack.i.h.bf16 %v8406_v57  ;;  %v8407_v8 = vunpack.i.l.bf16 %v8406_v57  ;;  %v4435_v27 = vpop.f32.mrb[35].mxu1 }
 0x2f3   : > { %v12360_v52 = vpop.permute.xlu1 %8410 }
 0x2f4   : > { %v3948_v60 = vsel %vm3679_vm7, %v3876_v5, %v8407_v8  ;;  %v3949_v14 = vsel %vm3679_vm7, %v3877_v47, %v8408_v45  ;;  %v3661_v8 = vsel %vm3606_vm6, %v3588_v0, %v8362_v53  ;;  %v14418_v47 = vld [vmem:[#allocation96_spill] sm:$0xff] }
 0x2f5   : > { %v8426_v1 = vpop.permute.xlu0 %8425  ;;  %v4047_v58 = vpack.c.bf16 %v3949_v14, %v3948_v60  ;;  %v3806_v35 = vsel %vm3533_vm5, %v14418_v47, %v8402_v48  ;;  %v14419_v47 = vld [vmem:[#allocation89_spill] sm:$0xff] }
 0x2f6   : > { %v8428_v57 = vunpack.i.h.bf16 %v8426_v1  ;;  %v8427_v59 = vunpack.i.l.bf16 %v8426_v1  ;;  %v3734_v1 = vsel %vm3679_vm7, %v3661_v8, %v8377_v3  ;;  %v8387_v3 = vunpack.i.l.bf16 %v12328_v2 }
 0x2f7   : > { %4572 = vmatprep.mubr.bf16.mxu1 %v4047_v58  ;;  %v12368_v10 = vpop.permute.xlu1 %8415  ;;  %v3735_v58 = vsel %vm3679_vm7, %v3662_v61, %v8378_v22 }
 0x2f8   : > { %4573 = vmatmul.mubr.bf16.gmra.mrb[104].mxu1 %v4046_v54  ;;  %v3878_v41 = vsel %vm3606_vm6, %v3806_v35, %v8427_v59  ;;  %v3879_v60 = vsel %vm3606_vm6, %v3807_v28, %v8428_v57  ;;  %v4049_v48 = vpack.c.bf16 %v3735_v58, %v3734_v1  ;;  %v8388_v57 = vunpack.i.h.bf16 %v12328_v2 }
 0x2f9   : > { %v8431_v32 = vpop.permute.xlu0 %8430  ;;  %v8393_v59 = vunpack.i.h.bf16 %v12340_v51 }
 0x2fa   : > { %v8433_v40 = vunpack.i.h.bf16 %v8431_v32  ;;  %v8432_v0 = vunpack.i.l.bf16 %v8431_v32  ;;  %v3591_v35 = vsel %vm3533_vm5, %v14419_v47, %v8388_v57 }
 0x2fb   : > { %v8421_v45 = vpop.permute.xlu1 %8420  ;;  %v12386_v14 = vpop.f32.mrb[36].mxu1 }
 0x2fc   : > { %v4440_v54 = vpop.f32.mrb[37].mxu1  ;;  %v8423_v8 = vunpack.i.h.bf16 %v8421_v45  ;;  %v8422_v61 = vunpack.i.l.bf16 %v8421_v45  ;;  %v3809_v32 = vsel %vm3533_vm5, %v11567_v18, %v8433_v40  ;;  %v3808_v45 = vsel %vm3533_vm5, %v11326_v50, %v8432_v0 }
 0x2fd   : > { %v8441_v5 = vpop.permute.xlu0 %8440  ;;  %v12396_v34 = vpop.f32.mrb[38].mxu1  ;;  %v8413_v0 = vunpack.i.h.bf16 %v12360_v52 }
 0x2fe   : > { %v8443_v43 = vunpack.i.h.bf16 %v8441_v5  ;;  %v8442_v49 = vunpack.i.l.bf16 %v8441_v5  ;;  %v4443_v23 = vpop.f32.mrb[39].mxu1 }
 0x2ff   : > { %v12390_v27 = vpop.permute.xlu1 %8435 }
 0x300   : > { %v3950_v19 = vsel %vm3679_vm7, %v3878_v41, %v8442_v49  ;;  %v3951_v44 = vsel %vm3679_vm7, %v3879_v60, %v8443_v43  ;;  %v14420_v43 = vld [vmem:[#allocation46_spill] sm:$0xff]  ;;  %v3664_v60 = vsel %vm3606_vm6, %v3591_v35, %v8393_v59 }
 0x301   : > { %v12394_v30 = vpop.permute.xlu0 %8455  ;;  %v4050_v53 = vpack.c.bf16 %v3951_v44, %v3950_v19  ;;  %v3590_v2 = vsel %vm3533_vm5, %v14420_v43, %v8387_v3  ;;  %v3737_v23 = vsel %vm3679_vm7, %v3664_v60, %v8423_v8  ;;  %v8418_v8 = vunpack.i.h.bf16 %v12368_v10 }
 0x302   : > { %v3663_v41 = vsel %vm3606_vm6, %v3590_v2, %v8392_v62  ;;  %v8458_v35 = vunpack.i.h.bf16 %v12394_v30  ;;  %v8457_v43 = vunpack.i.l.bf16 %v12394_v30  ;;  %v8438_v2 = vunpack.i.h.bf16 %v12390_v27  ;;  %v14422_v30 = vld [vmem:[#allocation99_spill] sm:$0xff] }
 0x303   : > { %4580 = vmatprep.mubr.bf16.mxu1 %v4050_v53  ;;  %v12400_v22 = vpop.permute.xlu1 %8445  ;;  %v3736_v53 = vsel %vm3679_vm7, %v3663_v41, %v8422_v61  ;;  %v8412_v61 = vunpack.i.l.bf16 %v12360_v52  ;;  %v8437_v41 = vunpack.i.l.bf16 %v12390_v27  ;;  %v3593_v52 = vsel %vm3533_vm5, %v11243_v16, %v8413_v0 }
 0x304   : > { %4581 = vmatmul.mubr.bf16.gmra.mrb[108].mxu1 %v4049_v48  ;;  %v4052_v40 = vpack.c.bf16 %v3737_v23, %v3736_v53  ;;  %v14423_v53 = vld [vmem:[#allocation74_spill] sm:$0xff] }
 0x305   : > { %v8461_v55 = vpop.permute.xlu0 %8460  ;;  %v3810_v27 = vsel %vm3533_vm5, %v14423_v53, %v8457_v43 }
 0x306   : > { %v8463_v5 = vunpack.i.h.bf16 %v8461_v55  ;;  %v8462_v28 = vunpack.i.l.bf16 %v8461_v55 }
 0x307   : > { %v12408_v49 = vpop.permute.xlu1 %8450  ;;  %v12418_v44 = vpop.f32.mrb[40].mxu1 }
 0x308   : > { %v3880_v54 = vsel %vm3606_vm6, %v3808_v45, %v8462_v28  ;;  %v3881_v19 = vsel %vm3606_vm6, %v3809_v32, %v8463_v5  ;;  %v4448_v57 = vpop.f32.mrb[41].mxu1  ;;  %v8417_v28 = vunpack.i.l.bf16 %v12368_v10  ;;  %v14421_v32 = vld [vmem:[#allocation90_spill] sm:$0xff] }
 0x309   : > { %v8471_v51 = vpop.permute.xlu0 %8470  ;;  %v12426_v59 = vpop.f32.mrb[42].mxu1  ;;  %v3592_v45 = vsel %vm3533_vm5, %v14421_v32, %v8412_v61  ;;  %v8452_v32 = vunpack.i.l.bf16 %v12408_v49 }
 0x30a   : > { %v8473_v1 = vunpack.i.h.bf16 %v8471_v51  ;;  %v8472_v58 = vunpack.i.l.bf16 %v8471_v51  ;;  %v4451_v55 = vpop.f32.mrb[43].mxu1  ;;  %v3665_v10 = vsel %vm3606_vm6, %v3592_v45, %v8417_v28 }
 0x30b   : > { %v12422_v48 = vpop.permute.xlu1 %8465 }
 0x30c   : > { %v3952_v18 = vsel %vm3679_vm7, %v3880_v54, %v8472_v58  ;;  %v3953_v3 = vsel %vm3679_vm7, %v3881_v19, %v8473_v1  ;;  %v3666_v58 = vsel %vm3606_vm6, %v3593_v52, %v8418_v8  ;;  %v3811_v19 = vsel %vm3533_vm5, %v14422_v30, %v8458_v35 }
 0x30d   : > { %v8486_v50 = vpop.permute.xlu0 %8485  ;;  %v4053_v62 = vpack.c.bf16 %v3953_v3, %v3952_v18  ;;  %v8467_v30 = vunpack.i.l.bf16 %v12422_v48 }
 0x30e   : > { %v8488_v60 = vunpack.i.h.bf16 %v8486_v50  ;;  %v8487_v51 = vunpack.i.l.bf16 %v8486_v50  ;;  %v3738_v50 = vsel %vm3679_vm7, %v3665_v10, %v8437_v41  ;;  %v8447_v41 = vunpack.i.l.bf16 %v12400_v22 }
 0x30f   : > { %4588 = vmatprep.mubr.bf16.mxu1 %v4053_v62  ;;  %v12430_v5 = vpop.permute.xlu1 %8475  ;;  %v3739_v62 = vsel %vm3679_vm7, %v3666_v58, %v8438_v2  ;;  %v8453_v2 = vunpack.i.h.bf16 %v12408_v49 }
 0x310   : > { %4589 = vmatmul.mubr.bf16.gmra.mrb[112].mxu1 %v4052_v40  ;;  %v3882_v16 = vsel %vm3606_vm6, %v3810_v27, %v8487_v51  ;;  %v3883_v18 = vsel %vm3606_vm6, %v3811_v19, %v8488_v60  ;;  %v4055_v51 = vpack.c.bf16 %v3739_v62, %v3738_v50  ;;  %v8448_v60 = vunpack.i.h.bf16 %v12400_v22  ;;  %v14424_v27 = vld [vmem:[#allocation57_spill] sm:$0xff]  ;;  %v14425_v22 = vld [vmem:[#allocation95_spill] sm:$0xff]  ;;  %v14426_v62 = vld [vmem:[#allocation106_spill] sm:$0xff] }
 0x311   : > { %v8491_v47 = vpop.permute.xlu0 %8490 }
 0x312   : > { %v8493_v10 = vunpack.i.h.bf16 %v8491_v47  ;;  %v8492_v58 = vunpack.i.l.bf16 %v8491_v47  ;;  %v8995_v47 = vld [vmem:[%s13924_s3 + $0x48] sm:$0xff]  }
 0x313   : > { %v12442_v1 = vpop.permute.xlu1 %8480  ;;  %v12452_v3 = vpop.f32.mrb[44].mxu1  ;;  %7225 = vmatprep.subr.bf16.mxu0 %v8995_v47 }
 0x314   : > { %v4456_v40 = vpop.f32.mrb[45].mxu1 }
 0x315   : > { %v8496_v54 = vpop.permute.xlu0 %8495  ;;  %v12460_v28 = vpop.f32.mrb[46].mxu1  ;;  %v3813_v40 = vsel %vm3533_vm5, %v14426_v62, %v8493_v10 }
 0x316   : > { %v8498_v23 = vunpack.i.h.bf16 %v8496_v54  ;;  %v8497_v57 = vunpack.i.l.bf16 %v8496_v54  ;;  %v4459_v43 = vpop.f32.mrb[47].mxu1  ;;  %v8468_v54 = vunpack.i.h.bf16 %v12422_v48  ;;  %v8996_v48 = vld [vmem:[%s13924_s3 + $0x8] sm:$0xff]  }
 0x317   : > { %v12456_v55 = vpop.permute.xlu1 %8500  ;;  %7226 = vmatpush3.bf16.msra.mxu0 %v8996_v48 }
 0x318   : > { %v3954_v0 = vsel %vm3679_vm7, %v3882_v16, %v8497_v57  ;;  %v3955_v61 = vsel %vm3679_vm7, %v3883_v18, %v8498_v23  ;;  %v3595_v23 = vsel %vm3533_vm5, %v14424_v27, %v8448_v60  ;;  %v3594_v57 = vsel %vm3533_vm5, %v14425_v22, %v8447_v41 }
 0x319   : > { %v8516_v8 = vpop.permute.xlu0 %8515  ;;  %v4056_v35 = vpack.c.bf16 %v3955_v61, %v3954_v0  ;;  %v3667_v18 = vsel %vm3606_vm6, %v3594_v57, %v8452_v32  ;;  %v3668_v49 = vsel %vm3606_vm6, %v3595_v23, %v8453_v2  ;;  %v14427_v0 = vld [vmem:[#allocation104_spill] sm:$0xff] }
 0x31a   : > { %v8518_v19 = vunpack.i.h.bf16 %v8516_v8  ;;  %v8517_v53 = vunpack.i.l.bf16 %v8516_v8  ;;  %v3812_v61 = vsel %vm3533_vm5, %v14427_v0, %v8492_v58  ;;  %v3740_v41 = vsel %vm3679_vm7, %v3667_v18, %v8467_v30 }
 0x31b   : > { %4596 = vmatprep.mubr.bf16.mxu1 %v4056_v35  ;;  %v12464_v52 = vpop.permute.xlu1 %8505  ;;  %v3741_v2 = vsel %vm3679_vm7, %v3668_v49, %v8468_v54  ;;  %v8478_v30 = vunpack.i.h.bf16 %v12430_v5  ;;  %v8477_v54 = vunpack.i.l.bf16 %v12430_v5  ;;  %v8483_v49 = vunpack.i.h.bf16 %v12442_v1 }
 0x31c   : > { %4597 = vmatmul.mubr.bf16.gmra.mrb[116].mxu1 %v4055_v51  ;;  %v3884_v43 = vsel %vm3606_vm6, %v3812_v61, %v8517_v53  ;;  %v3885_v51 = vsel %vm3606_vm6, %v3813_v40, %v8518_v19  ;;  %v4058_v57 = vpack.c.bf16 %v3741_v2, %v3740_v41 }
 0x31d   : > { %v8521_v45 = vpop.permute.xlu0 %8520 }
 0x31e   : > { %v8523_v48 = vunpack.i.h.bf16 %v8521_v45  ;;  %v8522_v62 = vunpack.i.l.bf16 %v8521_v45 }
 0x31f   : > { %v8511_v16 = vpop.permute.xlu1 %8510  ;;  %v12488_v60 = vpop.f32.mrb[48].mxu1 }
 0x320   : > { %v4464_v27 = vpop.f32.mrb[49].mxu1  ;;  %v8513_v40 = vunpack.i.h.bf16 %v8511_v16  ;;  %v8512_v0 = vunpack.i.l.bf16 %v8511_v16 }
 0x321   : > { %v8531_v50 = vpop.permute.xlu0 %8530  ;;  %v12498_v53 = vpop.f32.mrb[50].mxu1 }
 0x322   : > { %v8533_v8 = vunpack.i.h.bf16 %v8531_v50  ;;  %v8532_v35 = vunpack.i.l.bf16 %v8531_v50  ;;  %v4467_v22 = vpop.f32.mrb[51].mxu1  ;;  %v8482_v50 = vunpack.i.l.bf16 %v12442_v1 }
 0x323   : > { %v12492_v32 = vpop.permute.xlu1 %8525 }
 0x324   : > { %v3956_v10 = vsel %vm3679_vm7, %v3884_v43, %v8532_v35  ;;  %v3957_v58 = vsel %vm3679_vm7, %v3885_v51, %v8533_v8  ;;  %v14428_v35 = vld [vmem:[#allocation68_spill] sm:$0xff]  ;;  %v14429_v51 = vld [vmem:[#allocation62_spill] sm:$0xff] }
 0x325   : > { %v12496_v23 = vpop.permute.xlu0 %8545  ;;  %v4059_v19 = vpack.c.bf16 %v3957_v58, %v3956_v10  ;;  %v3597_v43 = vsel %vm3533_vm5, %v14428_v35, %v8478_v30  ;;  %v3596_v5 = vsel %vm3533_vm5, %v14429_v51, %v8477_v54  ;;  %v14430_v10 = vld [vmem:[#allocation28_spill] sm:$0xff]  ;;  %v14431_v58 = vld [vmem:[#allocation65_spill] sm:$0xff] }
 0x326   : > { %v3669_v2 = vsel %vm3606_vm6, %v3596_v5, %v8482_v50  ;;  %v3670_v27 = vsel %vm3606_vm6, %v3597_v43, %v8483_v49  ;;  %v3815_v45 = vsel %vm3533_vm5, %v14430_v10, %v8523_v48  ;;  %v3814_v16 = vsel %vm3533_vm5, %v14431_v58, %v8522_v62 }
 0x327   : > { %4604 = vmatprep.mubr.bf16.mxu1 %v4059_v19  ;;  %v12502_v18 = vpop.permute.xlu1 %8535  ;;  %v3743_v50 = vsel %vm3679_vm7, %v3670_v27, %v8513_v40  ;;  %v8508_v40 = vunpack.i.h.bf16 %v12464_v52  ;;  %v8507_v27 = vunpack.i.l.bf16 %v12464_v52  ;;  %v8547_v58 = vunpack.i.l.bf16 %v12496_v23 }
 0x328   : > { %4605 = vmatmul.mubr.bf16.gmra.mrb[120].mxu1 %v4058_v57 }
 0x329   : > { %v8551_v47 = vpop.permute.xlu0 %8550 }
 0x32a   : > { %v8553_v61 = vunpack.i.h.bf16 %v8551_v47  ;;  %v8552_v8 = vunpack.i.l.bf16 %v8551_v47  ;;  %v3742_v47 = vsel %vm3679_vm7, %v3669_v2, %v8512_v0  ;;  %v8502_v0 = vunpack.i.l.bf16 %v12456_v55 }
 0x32b   : > { %v12510_v41 = vpop.permute.xlu1 %8540  ;;  %v12520_v54 = vpop.f32.mrb[52].mxu1 }
 0x32c   : > { %v3886_v57 = vsel %vm3606_vm6, %v3814_v16, %v8552_v8  ;;  %v3887_v30 = vsel %vm3606_vm6, %v3815_v45, %v8553_v61  ;;  %v4472_v35 = vpop.f32.mrb[53].mxu1  ;;  %v8503_v61 = vunpack.i.h.bf16 %v12456_v55  ;;  %v8548_v45 = vunpack.i.h.bf16 %v12496_v23 }
 0x32d   : > { %v8561_v1 = vpop.permute.xlu0 %8560  ;;  %v12528_v51 = vpop.f32.mrb[54].mxu1  ;;  %v8528_v16 = vunpack.i.h.bf16 %v12492_v32 }
 0x32e   : > { %v8563_v19 = vunpack.i.h.bf16 %v8561_v1  ;;  %v8562_v22 = vunpack.i.l.bf16 %v8561_v1  ;;  %v4475_v8 = vpop.f32.mrb[55].mxu1  ;;  %v4061_v1 = vpack.c.bf16 %v3743_v50, %v3742_v47  ;;  %v14433_v47 = vld [vmem:[#allocation98_spill] sm:$0xff]  ;;  %v3817_v23 = vsel %vm3533_vm5, %v11776_v4, %v8548_v45 }
 0x32f   : > { %v12524_v49 = vpop.permute.xlu1 %8555  ;;  %v3598_v50 = vsel %vm3533_vm5, %v14433_v47, %v8502_v0 }
 0x330   : > { %v3958_v48 = vsel %vm3679_vm7, %v3886_v57, %v8562_v22  ;;  %v3959_v43 = vsel %vm3679_vm7, %v3887_v30, %v8563_v19  ;;  %v8527_v19 = vunpack.i.l.bf16 %v12492_v32  ;;  %v14432_v30 = vld [vmem:[#allocation102_spill] sm:$0xff]  ;;  %v3671_v35 = vsel %vm3606_vm6, %v3598_v50, %v8507_v27 }
 0x331   : > { %v8576_v62 = vpop.permute.xlu0 %8575  ;;  %v4062_v5 = vpack.c.bf16 %v3959_v43, %v3958_v48  ;;  %v3599_v55 = vsel %vm3533_vm5, %v14432_v30, %v8503_v61  ;;  %v14434_v43 = vld [vmem:[#allocation82_spill] sm:$0xff] }
 0x332   : > { %v8578_v22 = vunpack.i.h.bf16 %v8576_v62  ;;  %v8577_v57 = vunpack.i.l.bf16 %v8576_v62  ;;  %v3672_v52 = vsel %vm3606_vm6, %v3599_v55, %v8508_v40  ;;  %v3744_v27 = vsel %vm3679_vm7, %v3671_v35, %v8527_v19 }
 0x333   : > { %4612 = vmatprep.mubr.bf16.mxu1 %v4062_v5  ;;  %v12532_v2 = vpop.permute.xlu1 %8565  ;;  %v3816_v5 = vsel %vm3533_vm5, %v14434_v43, %v8547_v58  ;;  %v3745_v40 = vsel %vm3679_vm7, %v3672_v52, %v8528_v16  ;;  %v8543_v16 = vunpack.i.h.bf16 %v12510_v41  ;;  %v8542_v19 = vunpack.i.l.bf16 %v12510_v41 }
 0x334   : > { %4613 = vmatmul.mubr.bf16.gmra.mrb[124].mxu1 %v4061_v1  ;;  %v3888_v1 = vsel %vm3606_vm6, %v3816_v5, %v8577_v57  ;;  %v3889_v61 = vsel %vm3606_vm6, %v3817_v23, %v8578_v22  ;;  %v8538_v22 = vunpack.i.h.bf16 %v12502_v18  ;;  %v8537_v57 = vunpack.i.l.bf16 %v12502_v18  ;;  %v14436_v18 = vld [vmem:[#allocation63_spill] sm:$0xff] }
 0x335   : > { %v8581_v10 = vpop.permute.xlu0 %8580  ;;  %v8558_v5 = vunpack.i.h.bf16 %v12524_v49 }
 0x336   : > { %v8583_v52 = vunpack.i.h.bf16 %v8581_v10  ;;  %v8582_v43 = vunpack.i.l.bf16 %v8581_v10 }
 0x337   : > { %v12550_v32 = vpop.permute.xlu1 %8570 }
 0x338   : > { %v12554_v0 = vpop.f32.mrb[56].mxu1  ;;  %v3819_v10 = vsel %vm3533_vm5, %v12102_v6, %v8583_v52 }
 0x339   : > { %v8586_v48 = vpop.permute.xlu0 %8585  ;;  %v4480_v30 = vpop.f32.mrb[57].mxu1 }
 0x33a   : > { %v8588_v62 = vunpack.i.h.bf16 %v8586_v48  ;;  %v8587_v8 = vunpack.i.l.bf16 %v8586_v48  ;;  %v12560_v55 = vpop.f32.mrb[58].mxu1  ;;  %v4064_v48 = vpack.c.bf16 %v3745_v40, %v3744_v27  ;;  %v3600_v40 = vsel %vm3533_vm5, %v14436_v18, %v8537_v57 }
 0x33b   : > { %v4483_v50 = vpop.f32.mrb[59].mxu1  ;;  %v12564_v23 = vpop.permute.xlu1 %8590  ;;  %v3673_v30 = vsel %vm3606_vm6, %v3600_v40, %v8542_v19  ;;  %v8567_v18 = vunpack.i.l.bf16 %v12532_v2  ;;  %v3455_v40 = vrot.slane %v12115_v26, 2 }
 0x33c   : > { %v3960_v4 = vsel %vm3679_vm7, %v3888_v1, %v8587_v8  ;;  %v3961_v45 = vsel %vm3679_vm7, %v3889_v61, %v8588_v62  ;;  %v8557_v62 = vunpack.i.l.bf16 %v12524_v49  ;;  %v14435_v61 = vld [vmem:[#allocation72_spill] sm:$0xff] }
 0x33d   : > { %v4065_v47 = vpack.c.bf16 %v3961_v45, %v3960_v4  ;;  %v3601_v27 = vsel %vm3533_vm5, %v14435_v61, %v8538_v22  ;;  %v3818_v45 = vsel %vm3533_vm5, %v11990_v42, %v8582_v43 }
 0x33e   : > { %v3674_v4 = vsel %vm3606_vm6, %v3601_v27, %v8543_v16  ;;  %v3746_v57 = vsel %vm3679_vm7, %v3673_v30, %v8557_v62  ;;  %v8573_v30 = vunpack.i.h.bf16 %v12550_v32 }
 0x33f   : > { %v8606_v58 = vpop.permute.xlu0 %8605  ;;  %4620 = vmatprep.mubr.bf16.mxu1 %v4065_v47  ;;  %v3747_v16 = vsel %vm3679_vm7, %v3674_v4, %v8558_v5  ;;  %v3454_v5 = vrot.slane %v12022_v63, 2  ;;  %v8572_v4 = vunpack.i.l.bf16 %v12550_v32 }
 0x340   : > { %4621 = vmatmul.mubr.bf16.gmra.mrb[128].mxu1 %v4064_v48  ;;  %v8608_v8 = vunpack.i.h.bf16 %v8606_v58  ;;  %v8607_v1 = vunpack.i.l.bf16 %v8606_v58  ;;  %v8596_v49 = vpop.permute.xlu1 %8595 }
 0x342   : > { %v3890_v50 = vsel %vm3606_vm6, %v3818_v45, %v8607_v1  ;;  %v3891_v48 = vsel %vm3606_vm6, %v3819_v10, %v8608_v8  ;;  %v4067_v1 = vpack.c.bf16 %v3747_v16, %v3746_v57  ;;  %v8568_v8 = vunpack.i.h.bf16 %v12532_v2  ;;  %v14437_v57 = vld [vmem:[#allocation78_spill] sm:$0xff] }
 0x343   : > { %v8611_v35 = vpop.permute.xlu0 %8610  ;;  %v3602_v16 = vsel %vm3533_vm5, %v14437_v57, %v8567_v18 }
 0x344   : > { %v12582_v22 = vpop.f32.mrb[60].mxu1  ;;  %v8601_v62 = vpop.permute.xlu1 %8600  ;;  %v8613_v10 = vunpack.i.h.bf16 %v8611_v35  ;;  %v8612_v45 = vunpack.i.l.bf16 %v8611_v35  ;;  %v3603_v2 = vsel %vm3533_vm5, %v11799_v20, %v8568_v8  ;;  %v3675_v63 = vsel %vm3606_vm6, %v3602_v16, %v8572_v4 }
 0x345   : > { %v4488_v19 = vpop.f32.mrb[61].mxu1  ;;  %v3676_v26 = vsel %vm3606_vm6, %v3603_v2, %v8573_v30  ;;  %v8593_v30 = vunpack.i.h.bf16 %v12564_v23  ;;  %v8602_v4 = vunpack.i.l.bf16 %v8601_v62 }
 0x346   : > { %v12590_v42 = vpop.f32.mrb[62].mxu1  ;;  %v8592_v19 = vunpack.i.l.bf16 %v12564_v23  ;;  %v3821_v35 = vsel %vm3533_vm5, %v12122_v33, %v8613_v10  ;;  %v8603_v10 = vunpack.i.h.bf16 %v8601_v62 }
 0x347   : > { %v8616_v41 = vpop.permute.xlu0 %8615  ;;  %v4491_v27 = vpop.f32.mrb[63].mxu1  ;;  %v3605_v62 = vsel %vm3533_vm5, %v11849_v25, %v8593_v30  ;;  %v8997_v25 = vld [vmem:[%s13924_s3 + $0x50] sm:$0xff]  }
 0x348   : > { %v8618_v47 = vunpack.i.h.bf16 %v8616_v41  ;;  %v8617_v58 = vunpack.i.l.bf16 %v8616_v41  ;;  %v8646_v20 = vpop.permute.xlu1 %8645  ;;  %7227 = vmatprep.subr.bf16.mxu0 %v8997_v25  ;;  %v14454_v25 = vld [vmem:[#allocation20_spill] sm:$0xff] }
 0x34a   : > { %v3962_v61 = vsel %vm3679_vm7, %v3890_v50, %v8617_v58  ;;  %v3963_v6 = vsel %vm3679_vm7, %v3891_v48, %v8618_v47  ;;  %v8598_v47 = vunpack.i.h.bf16 %v8596_v49  ;;  %v8597_v58 = vunpack.i.l.bf16 %v8596_v49 }
 0x34b   : > { %v12588_v52 = vpop.permute.xlu0 %8620  ;;  %v4068_v43 = vpack.c.bf16 %v3963_v6, %v3962_v61  ;;  %v12606_v61 = vsel %vm2104_vm3, %v3454_v5, %v3455_v40  ;;  %v3820_v49 = vsel %vm3533_vm5, %v11931_v29, %v8612_v45  ;;  %v8647_v45 = vunpack.i.l.bf16 %v8646_v20 }
 0x34c   : > { %v3748_v18 = vsel %vm3679_vm7, %v3675_v63, %v8597_v58  ;;  %v3749_v5 = vsel %vm3679_vm7, %v3676_v26, %v8598_v47  ;;  %v8623_v57 = vunpack.i.h.bf16 %v12588_v52  ;;  %v8622_v58 = vunpack.i.l.bf16 %v12588_v52  ;;  %v14438_v63 = vld [vmem:[#allocation108_spill] sm:$0xff] }
 0x34d   : > { %4628 = vmatprep.mubr.bf16.mxu1 %v4068_v43  ;;  %v4070_v47 = vpack.c.bf16 %v3749_v5, %v3748_v18  ;;  %v3604_v23 = vsel %vm3533_vm5, %v14438_v63, %v8592_v19  ;;  %v8648_v26 = vunpack.i.h.bf16 %v8646_v20  ;;  %v8998_v18 = vld [vmem:[%s13924_s3 + $0x10] sm:$0xff]  }
 0x34e   : > { %4629 = vmatmul.mubr.bf16.gmra.mrb[132].mxu1 %v4067_v1  ;;  %v3822_v19 = vsel %vm3533_vm5, %v12139_v38, %v8622_v58  ;;  %7228 = vmatpush3.bf16.msra.mxu0 %v8998_v18  ;;  %v14442_v58 = vld [vmem:[#allocation9_spill] sm:$0xff]  ;;  %v14444_v63 = vld [vmem:[#allocation12_spill] sm:$0xff] }
 0x34f   : > { %v8626_v41 = vpop.permute.xlu0 %8625 }
 0x350   : > { %v8628_v50 = vunpack.i.h.bf16 %v8626_v41  ;;  %v8627_v48 = vunpack.i.l.bf16 %v8626_v41  ;;  %v12614_v8 = vpop.f32.mrb[64].mxu1 }
 0x351   : > { %v4496_v33 = vpop.f32.mrb[65].mxu1 }
 0x352   : > { %v3892_v27 = vsel %vm3606_vm6, %v3820_v49, %v8627_v48  ;;  %v3893_v1 = vsel %vm3606_vm6, %v3821_v35, %v8628_v50  ;;  %v12621_v48 = vpop.f32.mrb[66].mxu1  ;;  %v3677_v49 = vsel %vm3606_vm6, %v3604_v23, %v8602_v4  ;;  %v14445_v23 = vld [vmem:[#allocation11_spill] sm:$0xff] }
 0x353   : > { %v8631_v32 = vpop.permute.xlu0 %8630  ;;  %v4499_v16 = vpop.f32.mrb[67].mxu1  ;;  %v3750_v52 = vsel %vm3679_vm7, %v3677_v49, %v8647_v45 }
 0x354   : > { %v8633_v6 = vunpack.i.h.bf16 %v8631_v32  ;;  %v8632_v43 = vunpack.i.l.bf16 %v8631_v32 }
 0x356   : > { %v3964_v41 = vsel %vm3679_vm7, %v3892_v27, %v8632_v43  ;;  %v3965_v29 = vsel %vm3679_vm7, %v3893_v1, %v8633_v6  ;;  %v3678_v6 = vsel %vm3606_vm6, %v3605_v62, %v8603_v10  ;;  %v3823_v27 = vsel %vm3533_vm5, %v12007_v12, %v8623_v57 }
 0x357   : > { %v8636_v2 = vpop.permute.xlu0 %8635  ;;  %v4071_v50 = vpack.c.bf16 %v3965_v29, %v3964_v41  ;;  %v3751_v4 = vsel %vm3679_vm7, %v3678_v6, %v8648_v26  ;;  %v14439_v12 = vrot.slane %v12109_v37, 2  ;;  %v14440_v29 = vld [vmem:[#allocation112_spill] sm:$0xff]  ;;  %v14446_v26 = vpack.c.bf16 %v14444_v63, %v14445_v23  ;;  %v14465_v63 = vld [vmem:[#allocation42_spill] sm:$0xff] }
 0x358   : > { %v8638_v32 = vunpack.i.h.bf16 %v8636_v2  ;;  %v8637_v35 = vunpack.i.l.bf16 %v8636_v2  ;;  %v4073_v2 = vpack.c.bf16 %v3751_v4, %v3750_v52  ;;  %v14456_v4 = vld [vmem:[#allocation25_spill] sm:$0xff]  ;;  %v14466_v23 = vld [vmem:[#allocation40_spill] sm:$0xff] }
 0x359   : > { %4636 = vmatprep.mubr.bf16.mxu1 %v4071_v50  ;;  %v12648_v38 = vsel %vm2104_vm3, %v3455_v40, %v14439_v12  ;;  %v14441_v40 = vld [vmem:[#allocation10_spill] sm:$0xff]  ;;  %v14457_v12 = vld [vmem:[#allocation24_spill] sm:$0xff] }
 0x35a   : > { %4637 = vmatmul.mubr.bf16.gmra.mrb[136].mxu1 %v4070_v47  ;;  %v3894_v5 = vsel %vm3606_vm6, %v3822_v19, %v8637_v35  ;;  %v3895_v30 = vsel %vm3606_vm6, %v3823_v27, %v8638_v32  ;;  %v14443_v16 = vpack.c.bf16 %v14441_v40, %v14442_v58  ;;  %v14447_v32 = vld [vmem:[#allocation14_spill] sm:$0xff]  ;;  %v14448_v35 = vld [vmem:[#allocation13_spill] sm:$0xff]  ;;  %v14451_v19 = vld [vmem:[#allocation16_spill] sm:$0xff] }
 0x35b   : > { %v8641_v43 = vpop.permute.xlu0 %8640  ;;  %v14449_v62 = vpack.c.bf16 %v14447_v32, %v14448_v35  ;;  %v14450_v27 = vld [vmem:[#allocation17_spill] sm:$0xff]  ;;  %v14462_v58 = vld [vmem:[#allocation38_spill] sm:$0xff] }
 0x35c   : > { %v8643_v20 = vunpack.i.h.bf16 %v8641_v43  ;;  %v8642_v1 = vunpack.i.l.bf16 %v8641_v43 }
 0x35d   : > { %v12654_v50 = vpop.f32.mrb[68].mxu1 }
 0x35e   : > { %v3966_v33 = vsel %vm3679_vm7, %v3894_v5, %v8642_v1  ;;  %v3967_v41 = vsel %vm3679_vm7, %v3895_v30, %v8643_v20  ;;  %v4504_v57 = vpop.f32.mrb[69].mxu1  ;;  %v14452_v20 = vpack.c.bf16 %v14450_v27, %v14451_v19  ;;  %v14453_v1 = vld [vmem:[#allocation21_spill] sm:$0xff]  ;;  %v14469_v27 = vld [vmem:[#allocation50_spill] sm:$0xff] }
 0x35f   : > { %v4074_v45 = vpack.c.bf16 %v3967_v41, %v3966_v33  ;;  %v12656_v37 = vpop.f32.mrb[70].mxu1  ;;  %v14455_v18 = vpack.c.bf16 %v14453_v1, %v14454_v25  ;;  %v14458_v33 = vpack.c.bf16 %v14456_v4, %v14457_v12  ;;  %v14472_v1 = vld [vmem:[#allocation53_spill] sm:$0xff]  ;;  %v14474_v12 = vld [vmem:[#allocation58_spill] sm:$0xff] }
 0x360   : > { %v4507_v47 = vpop.f32.mrb[71].mxu1 }
 0x361   : > { %4644 = vmatprep.mubr.bf16.mxu1 %v4074_v45  ;;  %v14459_v45 = vld [vmem:[#allocation32_spill] sm:$0xff] }
 0x362   : > { %4645 = vmatmul.mubr.bf16.gmra.mrb[140].mxu1 %v4073_v2  ;;  %v14460_v2 = vld [vmem:[#allocation31_spill] sm:$0xff] }
 0x363   : > { %7402 = vmatprep.mubr.msk.bf16.mxu1 %vm3533_vm5, %v14443_v16  ;;  %v14461_v57 = vpack.c.bf16 %v14459_v45, %v14460_v2  ;;  %v14463_v16 = vld [vmem:[#allocation37_spill] sm:$0xff] }
 0x364   : > { %v14464_v47 = vpack.c.bf16 %v14462_v58, %v14463_v16 }
 0x369   : > { %v12670_v49 = vpop.f32.mrb[72].mxu1 }
 0x36a   : > { %7403 = vmatmul.mubr.msk.bf16.vlgmr.msra.gmra.mrb[144].mxu1 %vm3533_vm5, %v14446_v26  ;;  %v4512_v6 = vpop.f32.mrb[73].mxu1  ;;  %v14467_v26 = vpack.c.bf16 %v14465_v63, %v14466_v23  ;;  %v14479_v63 = vld [vmem:[#allocation61_spill] sm:$0xff]  ;;  %v14480_v23 = vld [vmem:[#allocation66_spill] sm:$0xff] }
 0x36b   : > { %7406 = vmatprep.mubr.msk.bf16.mxu1 %vm3533_vm5, %v14449_v62  ;;  %v12672_v43 = vpop.f32.mrb[74].mxu1 }
 0x36c   : > { %v4515_v52 = vpop.f32.mrb[75].mxu1 }
 0x36d   : > { %v14468_v52 = vld [vmem:[#allocation49_spill] sm:$0xff] }
 0x36e   : > { %v14470_v19 = vpack.c.bf16 %v14468_v52, %v14469_v27 }
 0x372   : > { %7407 = vmatmul.mubr.msk.bf16.gmra.mrb[148].mxu1 %vm3533_vm5, %v14452_v20  ;;  %v14471_v20 = vld [vmem:[#allocation54_spill] sm:$0xff] }
 0x373   : > { %7410 = vmatprep.mubr.msk.bf16.mxu1 %vm3533_vm5, %v14455_v18  ;;  %v14473_v25 = vpack.c.bf16 %v14471_v20, %v14472_v1  ;;  %v8999_v18 = vld [vmem:[%s13924_s3 + $0x58] sm:$0xff]  }
 0x374   : > { %7229 = vmatprep.subr.bf16.mxu0 %v8999_v18  ;;  %v14484_v18 = vld [vmem:[#allocation76_spill] sm:$0xff] }
 0x375   : > { %v12682_v5 = vpop.f32.mrb[76].mxu1 }
 0x376   : > { %v4520_v30 = vpop.f32.mrb[77].mxu1 }
 0x377   : > { %v12688_v41 = vpop.f32.mrb[78].mxu1  ;;  %v9000_v30 = vld [vmem:[%s13924_s3 + $0x18] sm:$0xff]  }
 0x378   : > { %v4523_v40 = vpop.f32.mrb[79].mxu1  ;;  %7230 = vmatpush3.bf16.msra.mxu0 %v9000_v30 }
 0x379   : > { %v14477_v40 = vld [vmem:[#allocation55_spill] sm:$0xff] }
 0x37a   : > { %7411 = vmatmul.mubr.msk.bf16.gmra.mrb[152].mxu1 %vm3533_vm5, %v14458_v33  ;;  %v14475_v33 = vld [vmem:[#allocation60_spill] sm:$0xff] }
 0x37b   : > { %7414 = vmatprep.mubr.msk.bf16.mxu1 %vm3533_vm5, %v14461_v57  ;;  %v4006_v45 = vpack.c.bf16 %v14475_v33, %v14474_v12  ;;  %v14476_v57 = vld [vmem:[#allocation56_spill] sm:$0xff]  ;;  %v14485_v12 = vld [vmem:[#allocation75_spill] sm:$0xff]  ;;  %v14486_v33 = vld [vmem:[#allocation22_spill] sm:$0xff] }
 0x37c   : > { %v14478_v58 = vpack.c.bf16 %v14476_v57, %v14477_v40  ;;  %v14488_v57 = vld [vmem:[#allocation23_spill] sm:$0xff] }
 0x381   : > { %v12702_v32 = vpop.f32.mrb[80].mxu1 }
 0x382   : > { %7415 = vmatmul.mubr.msk.bf16.gmra.mrb[156].mxu1 %vm3533_vm5, %v14464_v47  ;;  %v4528_v35 = vpop.f32.mrb[81].mxu1 }
 0x383   : > { %7418 = vmatprep.mubr.msk.bf16.mxu1 %vm3533_vm5, %v14467_v26  ;;  %v12704_v62 = vpop.f32.mrb[82].mxu1  ;;  %v4009_v26 = vpack.c.bf16 %v14480_v23, %v14479_v63  ;;  %v14481_v35 = vld [vmem:[#allocation64_spill] sm:$0xff]  ;;  %v14490_v63 = vld [vmem:[#allocation27_spill] sm:$0xff] }
 0x384   : > { %v4531_v6 = vpop.f32.mrb[83].mxu1 }
 0x385   : > { %v14482_v6 = vld [vmem:[#allocation67_spill] sm:$0xff] }
 0x386   : > { %v4012_v52 = vpack.c.bf16 %v14482_v6, %v14481_v35 }
 0x38a   : > { %7419 = vmatmul.mubr.msk.bf16.gmra.mrb[160].mxu1 %vm3533_vm5, %v14470_v19 }
 0x38b   : > { %7422 = vmatprep.mubr.msk.bf16.mxu1 %vm3533_vm5, %v14473_v25  ;;  %v14483_v25 = vld [vmem:[#allocation70_spill] sm:$0xff] }
 0x38c   : > { %v4015_v30 = vpack.c.bf16 %v14484_v18, %v14483_v25  ;;  %v14493_v25 = vld [vmem:[#allocation29_spill] sm:$0xff]  ;;  %v14494_v18 = vld [vmem:[#allocation84_spill] sm:$0xff] }
 0x38f   : > { %v12720_v4 = vpop.f32.mrb[84].mxu1 }
 0x390   : > { %v4536_v2 = vpop.f32.mrb[85].mxu1 }
 0x391   : > { %v12728_v16 = vpop.f32.mrb[86].mxu1  ;;  %v14487_v2 = vld [vmem:[#allocation79_spill] sm:$0xff] }
 0x392   : > { %7423 = vmatmul.mubr.msk.bf16.gmra.mrb[164].mxu1 %vm3533_vm5, %v14478_v58  ;;  %v4539_v47 = vpop.f32.mrb[87].mxu1  ;;  %v4021_v40 = vpack.c.bf16 %v14488_v57, %v14487_v2  ;;  %v14496_v57 = vld [vmem:[#allocation39_spill] sm:$0xff] }
 0x393   : > { %7426 = vmatprep.mubr.msk.bf16.mxu1 %vm3533_vm5, %v4006_v45  ;;  %v4018_v45 = vpack.c.bf16 %v14486_v33, %v14485_v12  ;;  %v14489_v47 = vld [vmem:[#allocation34_spill] sm:$0xff] }
 0x394   : > { %v4024_v23 = vpack.c.bf16 %v14490_v63, %v14489_v47  ;;  %v14498_v63 = vld [vmem:[#allocation48_spill] sm:$0xff] }
 0x39a   : > { %7427 = vmatmul.mubr.msk.bf16.gmra.mrb[168].mxu1 %vm3533_vm5, %v4009_v26 }
 0x39b   : > { %7430 = vmatprep.mubr.msk.bf16.mxu1 %vm3533_vm5, %v4012_v52  ;;  %v12737_v27 = vpop.f32.mrb[88].mxu1  ;;  %v14491_v52 = vld [vmem:[#allocation43_spill] sm:$0xff] }
 0x39c   : > { %v4544_v19 = vpop.f32.mrb[89].mxu1 }
 0x39d   : > { %v12739_v20 = vpop.f32.mrb[90].mxu1  ;;  %v14492_v19 = vld [vmem:[#allocation51_spill] sm:$0xff] }
 0x39e   : > { %v4547_v1 = vpop.f32.mrb[91].mxu1 }
 0x39f   : > { %v4027_v1 = vpack.c.bf16 %v14492_v19, %v14491_v52  ;;  %v14501_v52 = vld [vmem:[#allocation45_spill] sm:$0xff] }
 0x3a2   : > { %7431 = vmatmul.mubr.msk.bf16.gmra.mrb[172].mxu1 %vm3533_vm5, %v4015_v30  ;;  %v4030_v30 = vpack.c.bf16 %v14494_v18, %v14493_v25  ;;  %v14502_v25 = vld [vmem:[#allocation92_spill] sm:$0xff]  ;;  %v14503_v18 = vld [vmem:[#allocation93_spill] sm:$0xff] }
 0x3a3   : > { %7434 = vmatprep.mubr.msk.bf16.mxu1 %vm3533_vm5, %v4018_v45 }
 0x3a7   : > { %v12749_v58 = vpop.f32.mrb[92].mxu1 }
 0x3a8   : > { %v4552_v26 = vpop.f32.mrb[93].mxu1 }
 0x3a9   : > { %v12754_v35 = vpop.f32.mrb[94].mxu1 }
 0x3aa   : > { %7435 = vmatmul.mubr.msk.bf16.gmra.mrb[176].mxu1 %vm3533_vm5, %v4021_v40  ;;  %v4555_v6 = vpop.f32.mrb[95].mxu1  ;;  %v14497_v40 = vld [vmem:[#allocation52_spill] sm:$0xff] }
 0x3ab   : > { %7438 = vmatprep.mubr.msk.bf16.mxu1 %vm3533_vm5, %v4024_v23  ;;  %v4033_v47 = vpack.c.bf16 %v14497_v40, %v14496_v57  ;;  %v14499_v23 = vld [vmem:[#allocation87_spill] sm:$0xff]  ;;  %v14500_v6 = vld [vmem:[#allocation88_spill] sm:$0xff] }
 0x3ac   : > { %v4036_v26 = vpack.c.bf16 %v14499_v23, %v14498_v63  ;;  %v4039_v19 = vpack.c.bf16 %v14501_v52, %v14500_v6  ;;  %v14505_v40 = vld [vmem:[#allocation91_spill] sm:$0xff] }
 0x3ad   : > { %v14507_v23 = vld [vmem:[#allocation59_spill] sm:$0xff] }
 0x3b2   : > { %7439 = vmatmul.mubr.msk.bf16.gmra.mrb[180].mxu1 %vm3533_vm5, %v4027_v1 }
 0x3b3   : > { %7442 = vmatprep.mubr.msk.bf16.mxu1 %vm3533_vm5, %v4030_v30  ;;  %v12763_v12 = vpop.f32.mrb[96].mxu1  ;;  %v4042_v30 = vpack.c.bf16 %v14503_v18, %v14502_v25  ;;  %v9002_v25 = vld [vmem:[%s13924_s3 + $0x20] sm:$0xff]  }
 0x3b4   : > { %v4560_v33 = vpop.f32.mrb[97].mxu1 }
 0x3b5   : > { %v12765_v45 = vpop.f32.mrb[98].mxu1 }
 0x3b6   : > { %14495 = vst [vmem:[#allocation26_spill] sm:$0xff] %v12765_v45  ;;  %v4563_v2 = vpop.f32.mrb[99].mxu1  ;;  %v14517_v45 = vld [vmem:[#allocation109_spill] sm:$0xff] }
 0x3ba   : > { %7443 = vmatmul.mubr.msk.bf16.gmra.mrb[184].mxu1 %vm3533_vm5, %v4033_v47  ;;  %v14506_v47 = vld [vmem:[#allocation97_spill] sm:$0xff] }
 0x3bb   : > { %7446 = vmatprep.mubr.msk.bf16.mxu1 %vm3533_vm5, %v4036_v26  ;;  %v4045_v63 = vpack.c.bf16 %v14506_v47, %v14505_v40  ;;  %v14508_v26 = vld [vmem:[#allocation94_spill] sm:$0xff]  ;;  %v14513_v47 = vld [vmem:[#allocation100_spill] sm:$0xff] }
 0x3bc   : > { %v4048_v10 = vpack.c.bf16 %v14508_v26, %v14507_v23  ;;  %v14515_v23 = vld [vmem:[#allocation73_spill] sm:$0xff]  ;;  %v14516_v26 = vld [vmem:[#allocation103_spill] sm:$0xff] }
 0x3bf   : > { %v12775_v1 = vpop.f32.mrb[100].mxu1 }
 0x3c0   : > { %v4568_v33 = vpop.f32.mrb[101].mxu1 }
 0x3c1   : > { %v12780_v2 = vpop.f32.mrb[102].mxu1  ;;  %v14511_v33 = vld [vmem:[#allocation101_spill] sm:$0xff] }
 0x3c2   : > { %7447 = vmatmul.mubr.msk.bf16.gmra.mrb[188].mxu1 %vm3533_vm5, %v4039_v19  ;;  %14504 = vst [vmem:[#allocation80_spill] sm:$0xff] %v12780_v2  ;;  %v4571_v57 = vpop.f32.mrb[103].mxu1  ;;  %v9001_v19 = vld [vmem:[%s13924_s3 + $0x60] sm:$0xff]  }
 0x3c3   : > { %7450 = vmatprep.mubr.msk.bf16.mxu1 %vm3533_vm5, %v4042_v30  ;;  %v14512_v57 = vld [vmem:[#allocation71_spill] sm:$0xff]  ;;  %7231 = vmatprep.subr.bf16.mxu0 %v9001_v19 }
 0x3c4   : > { %v4051_v40 = vpack.c.bf16 %v14512_v57, %v14511_v33  ;;  %7232 = vmatpush3.bf16.msra.mxu0 %v9002_v25  ;;  %v14519_v33 = vld [vmem:[#allocation107_spill] sm:$0xff] }
 0x3c5   : > { %v14520_v57 = vld [vmem:[#allocation83_spill] sm:$0xff] }
 0x3ca   : > { %7451 = vmatmul.mubr.msk.bf16.gmra.mrb[192].mxu1 %vm3533_vm5, %v4045_v63 }
 0x3cb   : > { %7454 = vmatprep.mubr.msk.bf16.mxu1 %vm3533_vm5, %v4048_v10  ;;  %v12789_v6 = vpop.f32.mrb[104].mxu1  ;;  %v14514_v10 = vld [vmem:[#allocation77_spill] sm:$0xff] }
 0x3cc   : > { %14509 = vst [vmem:[#allocation35_spill] sm:$0xff] %v12789_v6  ;;  %v4576_v52 = vpop.f32.mrb[105].mxu1  ;;  %v4054_v63 = vpack.c.bf16 %v14514_v10, %v14513_v47  ;;  %v4066_v47 = vpack.c.bf16 %v12186_v39, %v12066_v15 }
 0x3cd   : > { %v12797_v18 = vpop.f32.mrb[106].mxu1  ;;  %v4057_v52 = vpack.c.bf16 %v14516_v26, %v14515_v23  ;;  %v4072_v23 = vpack.c.bf16 %v12606_v61, %v12012_v17  ;;  %v14522_v26 = vpack.c.bf16 %v14440_v29, %v12648_v38  ;;  %v9003_v61 = vld [vmem:[%s13924_s3 + $0x68] sm:$0xff]  }
 0x3ce   : > { %14510 = vst [vmem:[#allocation85_spill] sm:$0xff] %v12797_v18  ;;  %v4579_v30 = vpop.f32.mrb[107].mxu1  ;;  %v14518_v18 = vld [vmem:[#allocation18_spill] sm:$0xff]  ;;  %7233 = vmatprep.subr.bf16.mxu0 %v9003_v61  ;;  %v9004_v38 = vld [vmem:[%s13924_s3 + $0x28] sm:$0xff]  }
 0x3cf   : > { %v4060_v30 = vpack.c.bf16 %v14518_v18, %v14517_v45  ;;  %7234 = vmatpush3.bf16.msra.mxu0 %v9004_v38 }
 0x3d2   : > { %7455 = vmatmul.mubr.msk.bf16.gmra.mrb[196].mxu1 %vm3533_vm5, %v4051_v40  ;;  %v4063_v40 = vpack.c.bf16 %v14520_v57, %v14519_v33 }
 0x3d3   : > { %7458 = vmatprep.mubr.msk.bf16.mxu1 %vm3533_vm5, %v4054_v63  ;;  %v4069_v63 = vpack.c.bf16 %v12177_v56, %v12079_v11 }
 0x3d7   : > { %v12807_v6 = vpop.f32.mrb[108].mxu1 }
 0x3d8   : > { %v4584_v2 = vpop.f32.mrb[109].mxu1 }
 0x3d9   : > { %v12812_v19 = vpop.f32.mrb[110].mxu1 }
 0x3da   : > { %7459 = vmatmul.mubr.msk.bf16.gmra.mrb[200].mxu1 %vm3533_vm5, %v4057_v52  ;;  %v4587_v25 = vpop.f32.mrb[111].mxu1 }
 0x3db   : > { %7462 = vmatprep.mubr.msk.bf16.mxu1 %vm3533_vm5, %v4060_v30 }
 0x3e2   : > { %7463 = vmatmul.mubr.msk.bf16.gmra.mrb[204].mxu1 %vm3533_vm5, %v4063_v40 }
 0x3e3   : > { %7466 = vmatprep.mubr.msk.bf16.mxu1 %vm3533_vm5, %v4066_v47  ;;  %v12821_v10 = vpop.f32.mrb[112].mxu1 }
 0x3e4   : > { %v4592_v45 = vpop.f32.mrb[113].mxu1 }
 0x3e5   : > { %v12823_v2 = vpop.f32.mrb[114].mxu1 }
 0x3e6   : > { %14521 = vst [vmem:[#allocation47_spill] sm:$0xff] %v12823_v2  ;;  %v4595_v18 = vpop.f32.mrb[115].mxu1 }
 0x3ea   : > { %7467 = vmatmul.mubr.msk.bf16.gmra.mrb[208].mxu1 %vm3533_vm5, %v4069_v63 }
 0x3eb   : > { %7470 = vmatprep.mubr.msk.bf16.mxu1 %vm3533_vm5, %v4072_v23 }
 0x3ef   : > { %v12831_v15 = vpop.f32.mrb[116].mxu1 }
 0x3f0   : > { %v4600_v39 = vpop.f32.mrb[117].mxu1 }
 0x3f1   : > { %v12837_v52 = vpop.f32.mrb[118].mxu1 }
 0x3f2   : > { %7471 = vmatmul.mubr.msk.bf16.gmra.mrb[212].mxu1 %vm3533_vm5, %v14522_v26  ;;  %14523 = vst [vmem:[#allocation33_spill] sm:$0xff] %v12837_v52  ;;  %v4603_v30 = vpop.f32.mrb[119].mxu1  ;;  %v14540_v52 = vld [vmem:[#allocation36_spill] sm:$0xff] }
 0x3fb   : > { %v12839_v25 = vpop.f32.mrb[120].mxu1 }
 0x3fc   : > { %14524 = vst [vmem:[#allocation86_spill] sm:$0xff] %v12839_v25  ;;  %v4608_v11 = vpop.f32.mrb[121].mxu1 }
 0x3fd   : > { %v12841_v56 = vpop.f32.mrb[122].mxu1 }
 0x3fe   : > { %14525 = vst [vmem:[#allocation44_spill] sm:$0xff] %v12841_v56  ;;  %v4611_v17 = vpop.f32.mrb[123].mxu1 }
 0x407   : > { %v12849_v29 = vpop.f32.mrb[124].mxu1 }
 0x408   : > { %14526 = vst [vmem:[#allocation96_spill] sm:$0xff] %v12849_v29  ;;  %v4616_v33 = vpop.f32.mrb[125].mxu1 }
 0x409   : > { %v12851_v57 = vpop.f32.mrb[126].mxu1 }
 0x40a   : > { %14527 = vst [vmem:[#allocation89_spill] sm:$0xff] %v12851_v57  ;;  %v4619_v40 = vpop.f32.mrb[127].mxu1 }
 0x40b   : > { %v9005_v40 = vld [vmem:[%s13924_s3 + $0xc0] sm:$0xff]  }
 0x40c   : > { %7299 = vmatprep.subr.bf16.mxu1 %v9005_v40  ;;  %v14536_v40 = vld [vmem:[#allocation81_spill] sm:$0xff] }
 0x413   : > { %v12853_v47 = vpop.f32.mrb[128].mxu1 }
 0x414   : > { %14528 = vst [vmem:[#allocation46_spill] sm:$0xff] %v12853_v47  ;;  %v4624_v45 = vpop.f32.mrb[129].mxu1 }
 0x415   : > { %v12855_v18 = vpop.f32.mrb[130].mxu1 }
 0x416   : > { %14529 = vst [vmem:[#allocation90_spill] sm:$0xff] %v12855_v18  ;;  %v4627_v63 = vpop.f32.mrb[131].mxu1  ;;  %v14538_v18 = vld [vmem:[#allocation30_spill] sm:$0xff] }
 0x421   : > { %v12857_v23 = vpop.f32.mrb[132].mxu1 }
 0x422   : > { %14530 = vst [vmem:[#allocation99_spill] sm:$0xff] %v12857_v23  ;;  %v4632_v39 = vpop.f32.mrb[133].mxu1 }
 0x423   : > { %v12859_v26 = vpop.f32.mrb[134].mxu1  ;;  %v9006_v39 = vld [vmem:[%s13924_s3 + $0x80] sm:$0xff]  }
 0x424   : > { %14531 = vst [vmem:[#allocation74_spill] sm:$0xff] %v12859_v26  ;;  %v4635_v30 = vpop.f32.mrb[135].mxu1  ;;  %7300 = vmatpush3.bf16.msra.mxu1 %v9006_v39  ;;  %v14539_v39 = vld [vmem:[#allocation105_spill] sm:$0xff] }
 0x425   : > { %v9007_v30 = vld [vmem:[%s13924_s3 + $0x70] sm:$0xff]  }
 0x426   : > { %7235 = vmatprep.subr.bf16.mxu0 %v9007_v30 }
 0x42d   : > { %v12861_v11 = vpop.f32.mrb[136].mxu1 }
 0x42e   : > { %14532 = vst [vmem:[#allocation57_spill] sm:$0xff] %v12861_v11  ;;  %v4640_v17 = vpop.f32.mrb[137].mxu1 }
 0x42f   : > { %v12863_v61 = vpop.f32.mrb[138].mxu1  ;;  %v9008_v17 = vld [vmem:[%s13924_s3 + $0x30] sm:$0xff]  }
 0x430   : > { %14533 = vst [vmem:[#allocation95_spill] sm:$0xff] %v12863_v61  ;;  %v4643_v38 = vpop.f32.mrb[139].mxu1  ;;  %7236 = vmatpush3.bf16.msra.mxu0 %v9008_v17 }
 0x435   : > { %v12865_v33 = vpop.f32.mrb[140].mxu1 }
 0x436   : > { %14534 = vst [vmem:[#allocation106_spill] sm:$0xff] %v12865_v33  ;;  %v4648_v45 = vpop.f32.mrb[141].mxu1 }
 0x437   : > { %v12870_v63 = vpop.f32.mrb[142].mxu1  ;;  %v12884_v45 = vld [vmem:[%s13926_s5 + $0x1] ss:$0 sm:$0xff] }
 0x438   : > { %14535 = vst [vmem:[#allocation104_spill] sm:$0xff] %v12870_v63  ;;  %v4651_v38 = vpop.f32.mrb[143].mxu1  ;;  %v4375_v61 = vadd.f32 %v12884_v45, %v14536_v40  ;;  %v14537_v63 = vld [vmem:[#allocation69_spill] sm:$0xff]  ;;  %v4378_v26 = vadd.f32 %v12884_v45, %v14538_v18  ;;  %v4370_v30 = vadd.f32 %v12884_v45, %v14539_v39  ;;  %v4391_v18 = vadd.f32 %v12884_v45, %v14540_v52  ;;  %v9010_v52 = vld [vmem:[%s13924_s3 + $0x88] sm:$0xff]  }
 0x439   : > { %v4367_v11 = vadd.f32 %v12884_v45, %v14537_v63 }
 0x43d   : > { %v7404_v33 = vpop.f32.mrb[144].mxu1 }
 0x43e   : > { %v4696_v47 = vadd.f32 %v7404_v33, %v4375_v61  ;;  %v4687_v38 = vpop.f32.mrb[145].mxu1  ;;  %v14541_v61 = vld [vmem:[#allocation15_spill] sm:$0xff] }
 0x43f   : > { %v4688_v23 = vadd.f32 %v4687_v38, %v4367_v11  ;;  %v7405_v56 = vpop.f32.mrb[146].mxu1  ;;  %v4383_v11 = vadd.f32 %v12884_v45, %v14541_v61 }
 0x440   : > { %v4976_v57 = vmax.f32 %v4696_v47, 0.0  ;;  %v4699_v29 = vadd.f32 %v7405_v56, %v4378_v26  ;;  %v4690_v17 = vpop.f32.mrb[147].mxu1  ;;  %v14542_v47 = vld [vmem:[#allocation19_spill] sm:$0xff] }
 0x441   : > { %v4974_v25 = vmax.f32 %v4688_v23, 0.0  ;;  %v4691_v2 = vadd.f32 %v4690_v17, %v4370_v30  ;;  %v4394_v23 = vadd.f32 %v12884_v45, %v14542_v47 }
 0x442   : > { %5048 = vst.msk [vmem:[#allocation2 + $0x10] sm:$0xff] %vm3606_vm6, %v4976_v57  ;;  %v4977_v40 = vmax.f32 %v4699_v29, 0.0 }
 0x443   : > { %5046 = vst.msk [vmem:[#allocation2] sm:$0xff] %vm3606_vm6, %v4974_v25  ;;  %v4975_v63 = vmax.f32 %v4691_v2, 0.0  ;;  %v9009_v2 = vld [vmem:[%s13924_s3 + $0xc8] sm:$0xff]   ;;  %v14543_v25 = vld [vmem:[#allocation110_spill] sm:$0xff] }
 0x444   : > { %5049 = vst.msk [vmem:[#allocation2 + $0x18] sm:$0xff] %vm3606_vm6, %v4977_v40  ;;  %v4386_v29 = vadd.f32 %v12884_v45, %v14543_v25  ;;  %7301 = vmatprep.subr.bf16.mxu1 %v9009_v2  ;;  %v4407_v25 = vadd.f32 %v12884_v45, %v12222_v7  ;;  %v4410_v2 = vadd.f32 %v12884_v45, %v12234_v13 }
 0x445   : > { %5047 = vst.msk [vmem:[#allocation2 + $0x8] sm:$0xff] %vm3606_vm6, %v4975_v63  ;;  %v7408_v56 = vpop.f32.mrb[148].mxu1  ;;  %7302 = vmatpush3.bf16.msra.mxu1 %v9010_v52 }
 0x446   : > { %v4712_v26 = vadd.f32 %v7408_v56, %v4391_v18  ;;  %v4703_v57 = vpop.f32.mrb[149].mxu1 }
 0x447   : > { %v4704_v33 = vadd.f32 %v4703_v57, %v4383_v11  ;;  %v7409_v38 = vpop.f32.mrb[150].mxu1 }
 0x448   : > { %v4980_v39 = vmax.f32 %v4712_v26, 0.0  ;;  %v4715_v30 = vadd.f32 %v7409_v38, %v4394_v23  ;;  %v4706_v17 = vpop.f32.mrb[151].mxu1  ;;  %v14544_v23 = vld [vmem:[#allocation41_spill] sm:$0xff] }
 0x449   : > { %v4978_v40 = vmax.f32 %v4704_v33, 0.0  ;;  %v4707_v63 = vadd.f32 %v4706_v17, %v4386_v29  ;;  %v4399_v26 = vadd.f32 %v12884_v45, %v14544_v23  ;;  %v14545_v33 = vld [vmem:[#allocation111_spill] sm:$0xff]  ;;  %v5120_v23 = vld [vmem:[#allocation2 + $0x10] sm:$0xff] }
 0x44a   : > { %v5118_v18 = vld [vmem:[#allocation2] sm:$0xff]  ;;  %5052 = vst.msk [vmem:[#allocation2 + $0x30] sm:$0xff] %vm3606_vm6, %v4980_v39  ;;  %v4981_v61 = vmax.f32 %v4715_v30, 0.0  ;;  %v4402_v38 = vadd.f32 %v12884_v45, %v14545_v33 }
 0x44b   : > { %v5155_v56 = vld [vmem:[#allocation2 + $0x18] sm:$0xff]  ;;  %5050 = vst.msk [vmem:[#allocation2 + $0x20] sm:$0xff] %vm3606_vm6, %v4978_v40  ;;  %v4979_v47 = vmax.f32 %v4707_v63, 0.0 }
 0x44c   : > { %v5191_v11 = vmax.f32 %v5118_v18, %v5155_v56  ;;  %5053 = vst.msk [vmem:[#allocation2 + $0x38] sm:$0xff] %vm3606_vm6, %v4981_v61  ;;  %v5119_v61 = vld [vmem:[#allocation2 + $0x8] sm:$0xff] }
 0x44d   : > { %5051 = vst.msk [vmem:[#allocation2 + $0x28] sm:$0xff] %vm3606_vm6, %v4979_v47  ;;  %v7412_v57 = vpop.f32.mrb[152].mxu1 }
 0x44e   : > { %5227 = vst.msk [vmem:[#allocation3] sm:$0xff] %vm3606_vm6, %v5191_v11  ;;  %v4728_v52 = vadd.f32 %v7412_v57, %v4407_v25  ;;  %v4719_v29 = vpop.f32.mrb[153].mxu1  ;;  %v4423_v11 = vadd.f32 %v12884_v45, %v12316_v46  ;;  %v4415_v57 = vadd.f32 %v12884_v45, %v12271_v21  ;;  %v4418_v46 = vadd.f32 %v12884_v45, %v12283_v24 }
 0x44f   : > { %v4720_v7 = vadd.f32 %v4719_v29, %v4399_v26  ;;  %v7413_v39 = vpop.f32.mrb[154].mxu1  ;;  %v4426_v29 = vadd.f32 %v12884_v45, %v12324_v9 }
 0x450   : > { %v4984_v30 = vmax.f32 %v4728_v52, 0.0  ;;  %v4731_v17 = vadd.f32 %v7413_v39, %v4410_v2  ;;  %v4722_v40 = vpop.f32.mrb[155].mxu1 }
 0x451   : > { %v4982_v63 = vmax.f32 %v4720_v7, 0.0  ;;  %v4723_v18 = vadd.f32 %v4722_v40, %v4402_v38 }
 0x452   : > { %v5156_v56 = vld [vmem:[#allocation2 + $0x20] sm:$0xff]  ;;  %5056 = vst.msk [vmem:[#allocation2 + $0x50] sm:$0xff] %vm3606_vm6, %v4984_v30  ;;  %v4985_v47 = vmax.f32 %v4731_v17, 0.0 }
 0x453   : > { %v5192_v13 = vmax.f32 %v5119_v61, %v5156_v56  ;;  %5054 = vst.msk [vmem:[#allocation2 + $0x40] sm:$0xff] %vm3606_vm6, %v4982_v63  ;;  %v4983_v25 = vmax.f32 %v4723_v18, 0.0  ;;  %v5122_v40 = vld [vmem:[#allocation2 + $0x38] sm:$0xff] }
 0x454   : > { %v5157_v26 = vld [vmem:[#allocation2 + $0x28] sm:$0xff]  ;;  %5057 = vst.msk [vmem:[#allocation2 + $0x58] sm:$0xff] %vm3606_vm6, %v4985_v47 }
 0x455   : > { %5228 = vst.msk [vmem:[#allocation3 + $0x8] sm:$0xff] %vm3606_vm6, %v5192_v13  ;;  %v5193_v2 = vmax.f32 %v5120_v23, %v5157_v26  ;;  %5055 = vst.msk [vmem:[#allocation2 + $0x48] sm:$0xff] %vm3606_vm6, %v4983_v25  ;;  %v7416_v52 = vpop.f32.mrb[156].mxu1  ;;  %v5121_v13 = vld [vmem:[#allocation2 + $0x30] sm:$0xff] }
 0x456   : > { %v4744_v33 = vadd.f32 %v7416_v52, %v4423_v11  ;;  %v4735_v38 = vpop.f32.mrb[157].mxu1  ;;  %v4439_v11 = vadd.f32 %v12884_v45, %v12386_v14  ;;  %v4431_v52 = vadd.f32 %v12884_v45, %v12356_v31 }
 0x457   : > { %5229 = vst.msk [vmem:[#allocation3 + $0x10] sm:$0xff] %vm3606_vm6, %v5193_v2  ;;  %v4736_v7 = vadd.f32 %v4735_v38, %v4415_v57  ;;  %v7417_v39 = vpop.f32.mrb[158].mxu1 }
 0x458   : > { %v4988_v30 = vmax.f32 %v4744_v33, 0.0  ;;  %v4747_v21 = vadd.f32 %v7417_v39, %v4426_v29  ;;  %v4738_v17 = vpop.f32.mrb[159].mxu1 }
 0x459   : > { %v5159_v63 = vld [vmem:[#allocation2 + $0x50] sm:$0xff]  ;;  %v4986_v18 = vmax.f32 %v4736_v7, 0.0  ;;  %v4739_v61 = vadd.f32 %v4738_v17, %v4418_v46  ;;  %v4442_v46 = vadd.f32 %v12884_v45, %v12396_v34 }
 0x45a   : > { %v5195_v56 = vmax.f32 %v5122_v40, %v5159_v63  ;;  %v5123_v47 = vld [vmem:[#allocation2 + $0x40] sm:$0xff]  ;;  %5060 = vst.msk [vmem:[#allocation2 + $0x70] sm:$0xff] %vm3606_vm6, %v4988_v30  ;;  %v4989_v9 = vmax.f32 %v4747_v21, 0.0  ;;  %v4434_v30 = vadd.f32 %v12884_v45, %v12364_v36  ;;  %v9012_v36 = vld [vmem:[%s13924_s3 + $0x90] sm:$0xff]  }
 0x45b   : > { %v5160_v25 = vld [vmem:[#allocation2 + $0x58] sm:$0xff]  ;;  %5058 = vst.msk [vmem:[#allocation2 + $0x60] sm:$0xff] %vm3606_vm6, %v4986_v18  ;;  %v4987_v24 = vmax.f32 %v4739_v61, 0.0 }
 0x45c   : > { %5231 = vst.msk [vmem:[#allocation3 + $0x20] sm:$0xff] %vm3606_vm6, %v5195_v56  ;;  %v5196_v23 = vmax.f32 %v5123_v47, %v5160_v25  ;;  %v5158_v26 = vld [vmem:[#allocation2 + $0x48] sm:$0xff]  ;;  %5061 = vst.msk [vmem:[#allocation2 + $0x78] sm:$0xff] %vm3606_vm6, %v4989_v9  ;;  %v9011_v47 = vld [vmem:[%s13924_s3 + $0xd0] sm:$0xff]  }
 0x45d   : > { %v5263_v57 = vld [vmem:[#allocation3] ss:$2 sm:$0xff]  ;;  %v5311_v2 = vld [vmem:[#allocation3 + $0x1] ss:$2 sm:$0xff]  ;;  %v5194_v29 = vmax.f32 %v5121_v13, %v5158_v26  ;;  %5059 = vst.msk [vmem:[#allocation2 + $0x68] sm:$0xff] %vm3606_vm6, %v4987_v24  ;;  %v7420_v33 = vpop.f32.mrb[160].mxu1  ;;  %7303 = vmatprep.subr.bf16.mxu1 %v9011_v47 }
 0x45e   : > { %v5358_v38 = vmax.f32 %v5263_v57, %v5311_v2  ;;  %5232 = vst.msk [vmem:[#allocation3 + $0x28] sm:$0xff] %vm3606_vm6, %v5196_v23  ;;  %v4760_v14 = vadd.f32 %v7420_v33, %v4439_v11  ;;  %v4751_v7 = vpop.f32.mrb[161].mxu1  ;;  %v5265_v39 = vld [vmem:[#allocation3 + $0x10] ss:$2 sm:$0xf]  ;;  %v9013_v25 = vld [vmem:[%s13924_s3 + $0xd8] sm:$0xff]   ;;  %v4455_v57 = vadd.f32 %v12884_v45, %v12452_v3  ;;  %7304 = vmatpush3.bf16.msra.mxu1 %v9012_v36 }
 0x45f   : > { %5230 = vst.msk [vmem:[#allocation3 + $0x18] sm:$0xff] %vm3606_vm6, %v5194_v29  ;;  %v4752_v21 = vadd.f32 %v4751_v7, %v4431_v52  ;;  %v7421_v31 = vpop.f32.mrb[162].mxu1  ;;  %v5313_v17 = vld [vmem:[#allocation3 + $0x11] ss:$2 sm:$0xf]  ;;  %v9015_v23 = vld [vmem:[%s13924_s3 + $0x78] sm:$0xff]   ;;  %v4447_v29 = vadd.f32 %v12884_v45, %v12418_v44  ;;  %7305 = vmatprep.subr.bf16.mxu1 %v9013_v25  ;;  %v4458_v3 = vadd.f32 %v12884_v45, %v12460_v28 }
 0x460   : > { %5382 = vst.msk [vmem:[#allocation3] sm:$0xff] %vm3606_vm6, %v5358_v38  ;;  %v4992_v40 = vmax.f32 %v4760_v14, 0.0  ;;  %v4763_v63 = vadd.f32 %v7421_v31, %v4442_v46  ;;  %v4754_v18 = vpop.f32.mrb[163].mxu1  ;;  %v5359_v34 = vmax.f32 %v5265_v39, %v5313_v17  ;;  %v9016_v26 = vld [vmem:[%s13924_s3 + $0x38] sm:$0xff]   ;;  %7237 = vmatprep.subr.bf16.mxu0 %v9015_v23  ;;  %v5409_v17 = vld [vmem:[#allocation3 + $0x10] sm:$0xff] }
 0x461   : > { %v4990_v61 = vmax.f32 %v4752_v21, 0.0  ;;  %v4755_v56 = vadd.f32 %v4754_v18, %v4434_v30  ;;  %v9014_v52 = vld [vmem:[%s13924_s3 + $0x98] sm:$0xff]   ;;  %7238 = vmatpush3.bf16.msra.mxu0 %v9016_v26  ;;  %v4450_v30 = vadd.f32 %v12884_v45, %v12426_v59 }
 0x462   : > { %v5124_v9 = vld [vmem:[#allocation2 + $0x60] sm:$0xff]  ;;  %5064 = vst.msk [vmem:[#allocation2 + $0x90] sm:$0xff] %vm3606_vm6, %v4992_v40  ;;  %v4993_v13 = vmax.f32 %v4763_v63, 0.0  ;;  %7306 = vmatpush3.bf16.msra.mxu1 %v9014_v52 }
 0x463   : > { %5384 = vst.msk [vmem:[#allocation3 + $0x8] sm:$0xf] %vm5383_vm8, %v5359_v34  ;;  %v5161_v24 = vld [vmem:[#allocation2 + $0x78] sm:$0xff]  ;;  %v4991_v11 = vmax.f32 %v4755_v56, 0.0 }
 0x464   : > { %5062 = vst.msk [vmem:[#allocation2 + $0x80] sm:$0xff] %vm3606_vm6, %v4990_v61  ;;  %v5197_v2 = vmax.f32 %v5124_v9, %v5161_v24  ;;  %5065 = vst.msk [vmem:[#allocation2 + $0x98] sm:$0xff] %vm3606_vm6, %v4993_v13  ;;  %v5125_v9 = vld [vmem:[#allocation2 + $0x68] sm:$0xff] }
 0x465   : > { %5063 = vst.msk [vmem:[#allocation2 + $0x88] sm:$0xff] %vm3606_vm6, %v4991_v11  ;;  %v7424_v33 = vpop.f32.mrb[164].mxu1  ;;  %v5269_v38 = vld [vmem:[#allocation3 + $0x28] ss:$2 sm:$0xf]  ;;  %v5476_v11 = vrot.slane %v5409_v17, 1 }
 0x466   : > { %5233 = vst.msk [vmem:[#allocation3 + $0x30] sm:$0xff] %vm3606_vm6, %v5197_v2  ;;  %v4776_v46 = vadd.f32 %v7424_v33, %v4455_v57  ;;  %v4767_v14 = vpop.f32.mrb[165].mxu1  ;;  %v5267_v7 = vld [vmem:[#allocation3 + $0x18] ss:$2 sm:$0xff]  ;;  %v5315_v39 = vld [vmem:[#allocation3 + $0x19] ss:$2 sm:$0xff]  ;;  %v4471_v57 = vadd.f32 %v12884_v45, %v12520_v54  ;;  %v4474_v54 = vadd.f32 %v12884_v45, %v12528_v51 }
 0x467   : > { %v4768_v44 = vadd.f32 %v4767_v14, %v4447_v29  ;;  %v7425_v21 = vpop.f32.mrb[166].mxu1  ;;  %v5407_v31 = vld [vmem:[#allocation3] sm:$0xff]  ;;  %v5317_v40 = vld [vmem:[#allocation3 + $0x29] ss:$2 sm:$0xf]  ;;  %v5360_v63 = vmax.f32 %v5267_v7, %v5315_v39  ;;  %v5126_v2 = vld [vmem:[#allocation2 + $0x70] sm:$0xff] }
 0x468   : > { %v4996_v18 = vmax.f32 %v4776_v46, 0.0  ;;  %v4779_v34 = vadd.f32 %v7425_v21, %v4458_v3  ;;  %v4770_v61 = vpop.f32.mrb[167].mxu1  ;;  %v5361_v28 = vmax.f32 %v5269_v38, %v5317_v40  ;;  %v5473_v25 = vrot.slane %v5407_v31, 1  ;;  %v9018_v51 = vld [vmem:[%s13924_s3 + $0xa0] sm:$0xff]  }
 0x469   : > { %v4994_v56 = vmax.f32 %v4768_v44, 0.0  ;;  %v4771_v47 = vadd.f32 %v4770_v61, %v4450_v30  ;;  %5385 = vst.msk [vmem:[#allocation3 + $0x18] sm:$0xff] %vm3606_vm6, %v5360_v63  ;;  %v4463_v38 = vadd.f32 %v12884_v45, %v12488_v60  ;;  %v13002_v30 = vld [vmem:[#allocation3 + $0x28] sm:$0xff]  ;;  %v9017_v44 = vld [vmem:[%s13924_s3 + $0xe0] sm:$0xff]   ;;  %v4466_v60 = vadd.f32 %v12884_v45, %v12498_v53 }
 0x46a   : > { %v5408_v36 = vld [vmem:[#allocation3 + $0x8] sm:$0xff]  ;;  %5068 = vst.msk [vmem:[#allocation2 + $0xb0] sm:$0xff] %vm3606_vm6, %v4996_v18  ;;  %v4997_v59 = vmax.f32 %v4779_v34, 0.0  ;;  %7307 = vmatprep.subr.bf16.mxu1 %v9017_v44 }
 0x46b   : > { %v5162_v13 = vld [vmem:[#allocation2 + $0x80] sm:$0xff]  ;;  %v5474_v24 = vrot.slane %v5408_v36, 1  ;;  %5386 = vst.msk [vmem:[#allocation3 + $0x20] sm:$0xf] %vm5383_vm8, %v5361_v28  ;;  %v4995_v26 = vmax.f32 %v4771_v47, 0.0  ;;  %v5128_v34 = vld [vmem:[#allocation2 + $0x98] sm:$0xff]  ;;  %7308 = vmatpush3.bf16.msra.mxu1 %v9018_v51 }
 0x46c   : > { %v5198_v23 = vmax.f32 %v5125_v9, %v5162_v13  ;;  %5066 = vst.msk [vmem:[#allocation2 + $0xa0] sm:$0xff] %vm3606_vm6, %v4994_v56  ;;  %v5163_v52 = vld [vmem:[#allocation2 + $0x88] sm:$0xff]  ;;  %5069 = vst.msk [vmem:[#allocation2 + $0xb8] sm:$0xff] %vm3606_vm6, %v4997_v59  ;;  %v5481_v36 = vrot.slane %v13002_v30, 1 }
 0x46d   : > { %v5475_v29 = vsel %vm1719_vm4, %v5473_v25, %v5474_v24  ;;  %v5477_v33 = vsel %vm1719_vm4, %v5474_v24, %v5476_v11  ;;  %v5199_v3 = vmax.f32 %v5126_v2, %v5163_v52  ;;  %5067 = vst.msk [vmem:[#allocation2 + $0xa8] sm:$0xff] %vm3606_vm6, %v4995_v26  ;;  %v7428_v46 = vpop.f32.mrb[168].mxu1  ;;  %v5127_v11 = vld [vmem:[#allocation2 + $0x90] sm:$0xff] }
 0x46e   : > { %5234 = vst.msk [vmem:[#allocation3 + $0x38] sm:$0xff] %vm3606_vm6, %v5198_v23  ;;  %v8654_v14 = vpack.i.bf16 %v5477_v33, %v5475_v29  ;;  %v4792_v7 = vadd.f32 %v7428_v46, %v4471_v57  ;;  %v4783_v39 = vpop.f32.mrb[169].mxu1  ;;  %v4487_v57 = vadd.f32 %v12884_v45, %v12582_v22  ;;  %v4479_v46 = vadd.f32 %v12884_v45, %v12554_v0 }
 0x46f   : > { %5235 = vst.msk [vmem:[#allocation3 + $0x40] sm:$0xff] %vm3606_vm6, %v5199_v3  ;;  %v4784_v21 = vadd.f32 %v4783_v39, %v4463_v38  ;;  %v7429_v31 = vpop.f32.mrb[170].mxu1  ;;  %v4490_v39 = vadd.f32 %v12884_v45, %v12590_v42 }
 0x470   : > { %8655 = vrot.lane.b32.xlu1 %v8654_v14, %s9117_s13  ;;  %v5000_v17 = vmax.f32 %v4792_v7, 0.0  ;;  %v4795_v40 = vadd.f32 %v7429_v31, %v4474_v54  ;;  %v4786_v63 = vpop.f32.mrb[171].mxu1  ;;  %v13014_v18 = vld [vmem:[#allocation3 + $0x18] sm:$0xff]  ;;  %v4482_v31 = vadd.f32 %v12884_v45, %v12560_v55 }
 0x471   : > { %v5165_v61 = vld [vmem:[#allocation2 + $0xb0] sm:$0xff]  ;;  %v4998_v28 = vmax.f32 %v4784_v21, 0.0  ;;  %v4787_v53 = vadd.f32 %v4786_v63, %v4466_v60  ;;  %v5478_v47 = vrot.slane %v13014_v18, 1 }
 0x472   : > { %v13016_v56 = vld [vmem:[#allocation3 + $0x20] sm:$0xff]  ;;  %v5201_v9 = vmax.f32 %v5128_v34, %v5165_v61  ;;  %5072 = vst.msk [vmem:[#allocation2 + $0xd0] sm:$0xff] %vm3606_vm6, %v5000_v17  ;;  %v5001_v59 = vmax.f32 %v4795_v40, 0.0 }
 0x473   : > { %v5129_v13 = vld [vmem:[#allocation2 + $0xa0] sm:$0xff]  ;;  %v8649_v25 = vpack.i.bf16 %v13016_v56, %v13014_v18  ;;  %v5479_v24 = vrot.slane %v13016_v56, 1  ;;  %v5166_v23 = vld [vmem:[#allocation2 + $0xb8] sm:$0xff]  ;;  %5070 = vst.msk [vmem:[#allocation2 + $0xc0] sm:$0xff] %vm3606_vm6, %v4998_v28  ;;  %v4999_v26 = vmax.f32 %v4787_v53, 0.0 }
 0x474   : > { %5237 = vst.msk [vmem:[#allocation3 + $0x50] sm:$0xff] %vm3606_vm6, %v5201_v9  ;;  %v5202_v2 = vmax.f32 %v5129_v13, %v5166_v23  ;;  %v5164_v52 = vld [vmem:[#allocation2 + $0xa8] sm:$0xff]  ;;  %5073 = vst.msk [vmem:[#allocation2 + $0xd8] sm:$0xff] %vm3606_vm6, %v5001_v59  ;;  %v4503_v9 = vadd.f32 %v12884_v45, %v12654_v50  ;;  %v4495_v59 = vadd.f32 %v12884_v45, %v12614_v8 }
 0x475   : > { %8650 = vrot.lane.b32.xlu0 %v8649_v25, %s9117_s13  ;;  %v13031_v29 = vsel %vm1719_vm4, %v5478_v47, %v5479_v24  ;;  %v13034_v33 = vsel %vm1719_vm4, %v5479_v24, %v5481_v36  ;;  %v5271_v38 = vld [vmem:[#allocation3 + $0x30] ss:$2 sm:$0xff]  ;;  %v5319_v3 = vld [vmem:[#allocation3 + $0x31] ss:$2 sm:$0xff]  ;;  %v5200_v22 = vmax.f32 %v5127_v11, %v5164_v52  ;;  %5071 = vst.msk [vmem:[#allocation2 + $0xc8] sm:$0xff] %vm3606_vm6, %v4999_v26  ;;  %v7432_v14 = vpop.f32.mrb[172].mxu1 }
 0x476   : > { %v8664_v54 = vpack.i.bf16 %v13034_v33, %v13031_v29  ;;  %v5362_v7 = vmax.f32 %v5271_v38, %v5319_v3  ;;  %5238 = vst.msk [vmem:[#allocation3 + $0x58] sm:$0xff] %vm3606_vm6, %v5202_v2  ;;  %v4808_v44 = vadd.f32 %v7432_v14, %v4487_v57  ;;  %v4799_v60 = vpop.f32.mrb[173].mxu1  ;;  %v5273_v21 = vld [vmem:[#allocation3 + $0x40] ss:$2 sm:$0xf]  ;;  %v4506_v11 = vadd.f32 %v12884_v45, %v12656_v37 }
 0x477   : > { %5236 = vst.msk [vmem:[#allocation3 + $0x48] sm:$0xff] %vm3606_vm6, %v5200_v22  ;;  %v4800_v0 = vadd.f32 %v4799_v60, %v4479_v46  ;;  %v7433_v51 = vpop.f32.mrb[174].mxu1  ;;  %v5321_v17 = vld [vmem:[#allocation3 + $0x41] ss:$2 sm:$0xf]  ;;  %v4498_v52 = vadd.f32 %v12884_v45, %v12621_v48 }
 0x478   : > { %8665 = vrot.lane.b32.xlu1 %v8664_v54, %s9117_s13  ;;  %5387 = vst.msk [vmem:[#allocation3 + $0x30] sm:$0xff] %vm3606_vm6, %v5362_v7  ;;  %v5004_v40 = vmax.f32 %v4808_v44, 0.0  ;;  %v4811_v63 = vadd.f32 %v7433_v51, %v4490_v39  ;;  %v4802_v42 = vpop.f32.mrb[175].mxu1  ;;  %v5363_v34 = vmax.f32 %v5273_v21, %v5321_v17  ;;  %v13061_v57 = vld [vmem:[#allocation3 + $0x40] sm:$0xff] }
 0x479   : > { %v5002_v61 = vmax.f32 %v4800_v0, 0.0  ;;  %v4803_v28 = vadd.f32 %v4802_v42, %v4482_v31  ;;  %v5486_v31 = vrot.slane %v13061_v57, 1  ;;  %v9020_v42 = vld [vmem:[%s13924_s3 + $0xa8] sm:$0xff]  }
 0x47a   : > { %v5130_v53 = vld [vmem:[#allocation2 + $0xc0] sm:$0xff]  ;;  %5076 = vst.msk [vmem:[#allocation2 + $0xf0] sm:$0xff] %vm3606_vm6, %v5004_v40  ;;  %v5005_v47 = vmax.f32 %v4811_v63, 0.0  ;;  %v9019_v63 = vld [vmem:[%s13924_s3 + $0xe8] sm:$0xff]  }
 0x47b   : > { %5388 = vst.msk [vmem:[#allocation3 + $0x38] sm:$0xf] %vm5383_vm8, %v5363_v34  ;;  %v5167_v55 = vld [vmem:[#allocation2 + $0xd8] sm:$0xff]  ;;  %v5003_v36 = vmax.f32 %v4803_v28, 0.0  ;;  %v4519_v28 = vadd.f32 %v12884_v45, %v12682_v5  ;;  %7309 = vmatprep.subr.bf16.mxu1 %v9019_v63 }
 0x47c   : > { %5074 = vst.msk [vmem:[#allocation2 + $0xe0] sm:$0xff] %vm3606_vm6, %v5002_v61  ;;  %v5203_v13 = vmax.f32 %v5130_v53, %v5167_v55  ;;  %5077 = vst.msk [vmem:[#allocation2 + $0xf8] sm:$0xff] %vm3606_vm6, %v5005_v47  ;;  %v5131_v39 = vld [vmem:[#allocation2 + $0xc8] sm:$0xff]  ;;  %v5132_v53 = vld [vmem:[#allocation2 + $0xd0] sm:$0xff]  ;;  %7310 = vmatpush3.bf16.msra.mxu1 %v9020_v42 }
 0x47d   : > { %5075 = vst.msk [vmem:[#allocation2 + $0xe8] sm:$0xff] %vm3606_vm6, %v5003_v36  ;;  %v7436_v25 = vpop.f32.mrb[176].mxu1  ;;  %v5277_v24 = vld [vmem:[#allocation3 + $0x58] ss:$2 sm:$0xf] }
 0x47e   : > { %5239 = vst.msk [vmem:[#allocation3 + $0x60] sm:$0xff] %vm3606_vm6, %v5203_v13  ;;  %v4824_v23 = vadd.f32 %v7436_v25, %v4503_v9  ;;  %v4815_v26 = vpop.f32.mrb[177].mxu1  ;;  %v5275_v50 = vld [vmem:[#allocation3 + $0x48] ss:$2 sm:$0xff]  ;;  %v5323_v2 = vld [vmem:[#allocation3 + $0x49] ss:$2 sm:$0xff]  ;;  %v4511_v9 = vadd.f32 %v12884_v45, %v12670_v49  ;;  %v4522_v25 = vadd.f32 %v12884_v45, %v12688_v41  ;;  %v4514_v49 = vadd.f32 %v12884_v45, %v12672_v43 }
 0x47f   : > { %v4816_v38 = vadd.f32 %v4815_v26, %v4495_v59  ;;  %v7437_v8 = vpop.f32.mrb[178].mxu1  ;;  %v13065_v3 = vld [vmem:[#allocation3 + $0x30] sm:$0xff]  ;;  %v5325_v46 = vld [vmem:[#allocation3 + $0x59] ss:$2 sm:$0xf]  ;;  %v5364_v22 = vmax.f32 %v5275_v50, %v5323_v2 }
 0x480   : > { %v5008_v14 = vmax.f32 %v4824_v23, 0.0  ;;  %v4827_v54 = vadd.f32 %v7437_v8, %v4506_v11  ;;  %v4818_v37 = vpop.f32.mrb[179].mxu1  ;;  %v5365_v7 = vmax.f32 %v5277_v24, %v5325_v46  ;;  %v5483_v17 = vrot.slane %v13065_v3, 1  ;;  %v13102_v23 = vld [vmem:[#allocation3 + $0x58] sm:$0xff] }
 0x481   : > { %v5006_v44 = vmax.f32 %v4816_v38, 0.0  ;;  %v4819_v60 = vadd.f32 %v4818_v37, %v4498_v52  ;;  %5389 = vst.msk [vmem:[#allocation3 + $0x48] sm:$0xff] %vm3606_vm6, %v5364_v22  ;;  %v5491_v43 = vrot.slane %v13102_v23, 1 }
 0x482   : > { %v13067_v21 = vld [vmem:[#allocation3 + $0x38] sm:$0xff]  ;;  %5080 = vst.msk [vmem:[#allocation2 + $0x110] sm:$0xff] %vm3606_vm6, %v5008_v14  ;;  %v5009_v0 = vmax.f32 %v4827_v54, 0.0 }
 0x483   : > { %v5168_v48 = vld [vmem:[#allocation2 + $0xe0] sm:$0xff]  ;;  %v8659_v51 = vpack.i.bf16 %v13067_v21, %v13065_v3  ;;  %v5484_v40 = vrot.slane %v13067_v21, 1  ;;  %5390 = vst.msk [vmem:[#allocation3 + $0x50] sm:$0xf] %vm5383_vm8, %v5365_v7  ;;  %v5007_v61 = vmax.f32 %v4819_v60, 0.0  ;;  %v5134_v41 = vld [vmem:[#allocation2 + $0xf8] sm:$0xff] }
 0x484   : > { %v5204_v34 = vmax.f32 %v5131_v39, %v5168_v48  ;;  %5078 = vst.msk [vmem:[#allocation2 + $0x100] sm:$0xff] %vm3606_vm6, %v5006_v44  ;;  %v5169_v47 = vld [vmem:[#allocation2 + $0xe8] sm:$0xff]  ;;  %5081 = vst.msk [vmem:[#allocation2 + $0x118] sm:$0xff] %vm3606_vm6, %v5009_v0  ;;  %v5133_v48 = vld [vmem:[#allocation2 + $0xf0] sm:$0xff] }
 0x485   : > { %8660 = vrot.lane.b32.xlu0 %v8659_v51, %s9117_s13  ;;  %v13089_v55 = vsel %vm1719_vm4, %v5483_v17, %v5484_v40  ;;  %v13092_v36 = vsel %vm1719_vm4, %v5484_v40, %v5486_v31  ;;  %v5205_v13 = vmax.f32 %v5132_v53, %v5169_v47  ;;  %5079 = vst.msk [vmem:[#allocation2 + $0x108] sm:$0xff] %vm3606_vm6, %v5007_v61  ;;  %v7440_v5 = vpop.f32.mrb[180].mxu1 }
 0x486   : > { %5240 = vst.msk [vmem:[#allocation3 + $0x68] sm:$0xff] %vm3606_vm6, %v5204_v34  ;;  %v8674_v59 = vpack.i.bf16 %v13092_v36, %v13089_v55  ;;  %v4840_v24 = vadd.f32 %v7440_v5, %v4519_v28  ;;  %v4831_v11 = vpop.f32.mrb[181].mxu1  ;;  %v4535_v17 = vadd.f32 %v12884_v45, %v12720_v4  ;;  %v4527_v53 = vadd.f32 %v12884_v45, %v12702_v32 }
 0x487   : > { %5241 = vst.msk [vmem:[#allocation3 + $0x70] sm:$0xff] %vm3606_vm6, %v5205_v13  ;;  %v4832_v26 = vadd.f32 %v4831_v11, %v4511_v9  ;;  %v7441_v50 = vpop.f32.mrb[182].mxu1  ;;  %v4538_v5 = vadd.f32 %v12884_v45, %v12728_v16  ;;  %v4530_v11 = vadd.f32 %v12884_v45, %v12704_v62 }
 0x488   : > { %8675 = vrot.lane.b32.xlu1 %v8674_v59, %s9117_s13  ;;  %v5012_v2 = vmax.f32 %v4840_v24, 0.0  ;;  %v4843_v52 = vadd.f32 %v7441_v50, %v4522_v25  ;;  %v4834_v38 = vpop.f32.mrb[183].mxu1  ;;  %v13108_v8 = vld [vmem:[#allocation3 + $0x48] sm:$0xff] }
 0x489   : > { %v5171_v46 = vld [vmem:[#allocation2 + $0x110] sm:$0xff]  ;;  %v5010_v22 = vmax.f32 %v4832_v26, 0.0  ;;  %v4835_v14 = vadd.f32 %v4834_v38, %v4514_v49  ;;  %v5488_v37 = vrot.slane %v13108_v8, 1 }
 0x48a   : > { %v13110_v54 = vld [vmem:[#allocation3 + $0x50] sm:$0xff]  ;;  %v5207_v7 = vmax.f32 %v5134_v41, %v5171_v46  ;;  %5084 = vst.msk [vmem:[#allocation2 + $0x130] sm:$0xff] %vm3606_vm6, %v5012_v2  ;;  %v5013_v44 = vmax.f32 %v4843_v52, 0.0 }
 0x48b   : > { %v5135_v39 = vld [vmem:[#allocation2 + $0x100] sm:$0xff]  ;;  %v8669_v60 = vpack.i.bf16 %v13110_v54, %v13108_v8  ;;  %v5489_v31 = vrot.slane %v13110_v54, 1  ;;  %v5172_v0 = vld [vmem:[#allocation2 + $0x118] sm:$0xff]  ;;  %5082 = vst.msk [vmem:[#allocation2 + $0x120] sm:$0xff] %vm3606_vm6, %v5010_v22  ;;  %v5011_v51 = vmax.f32 %v4835_v14, 0.0 }
 0x48c   : > { %5243 = vst.msk [vmem:[#allocation3 + $0x80] sm:$0xff] %vm3606_vm6, %v5207_v7  ;;  %v5208_v40 = vmax.f32 %v5135_v39, %v5172_v0  ;;  %v5170_v63 = vld [vmem:[#allocation2 + $0x108] sm:$0xff]  ;;  %5085 = vst.msk [vmem:[#allocation2 + $0x138] sm:$0xff] %vm3606_vm6, %v5013_v44  ;;  %v9021_v7 = vld [vmem:[%s13924_s3 + $0xf0] sm:$0xff]   ;;  %v4543_v44 = vadd.f32 %v12884_v45, %v12737_v27  ;;  %v4546_v27 = vadd.f32 %v12884_v45, %v12739_v20 }
 0x48d   : > { %8670 = vrot.lane.b32.xlu0 %v8669_v60, %s9117_s13  ;;  %v13125_v42 = vsel %vm1719_vm4, %v5488_v37, %v5489_v31  ;;  %v13128_v34 = vsel %vm1719_vm4, %v5489_v31, %v5491_v43  ;;  %v5279_v61 = vld [vmem:[#allocation3 + $0x60] ss:$2 sm:$0xff]  ;;  %v5327_v28 = vld [vmem:[#allocation3 + $0x61] ss:$2 sm:$0xff]  ;;  %v5206_v4 = vmax.f32 %v5133_v48, %v5170_v63  ;;  %5083 = vst.msk [vmem:[#allocation2 + $0x128] sm:$0xff] %vm3606_vm6, %v5011_v51  ;;  %v7444_v47 = vpop.f32.mrb[184].mxu1 }
 0x48e   : > { %v8684_v9 = vpack.i.bf16 %v13128_v34, %v13125_v42  ;;  %v5366_v13 = vmax.f32 %v5279_v61, %v5327_v28  ;;  %5244 = vst.msk [vmem:[#allocation3 + $0x88] sm:$0xff] %vm3606_vm6, %v5208_v40  ;;  %v4856_v59 = vadd.f32 %v7444_v47, %v4535_v17  ;;  %v4847_v25 = vpop.f32.mrb[185].mxu1  ;;  %v5281_v24 = vld [vmem:[#allocation3 + $0x70] ss:$2 sm:$0xf]  ;;  %v4551_v37 = vadd.f32 %v12884_v45, %v12749_v58  ;;  %v13155_v39 = vld [vmem:[%s13924_s3 + $0x100] sm:$0xff]  }
 0x48f   : > { %5242 = vst.msk [vmem:[#allocation3 + $0x78] sm:$0xff] %vm3606_vm6, %v5206_v4  ;;  %v4848_v32 = vadd.f32 %v4847_v25, %v4527_v53  ;;  %v7445_v49 = vpop.f32.mrb[186].mxu1  ;;  %v5329_v26 = vld [vmem:[#allocation3 + $0x71] ss:$2 sm:$0xf]  ;;  %v4554_v48 = vadd.f32 %v12884_v45, %v12754_v35  ;;  %7311 = vmatprep.subr.bf16.mxu1 %v9021_v7  ;;  %7474 = vmatprep.subr.bf16.mxu0 %v13155_v39 }
 0x490   : > { %8685 = vrot.lane.b32.xlu1 %v8684_v9, %s9117_s13  ;;  %5391 = vst.msk [vmem:[#allocation3 + $0x60] sm:$0xff] %vm3606_vm6, %v5366_v13  ;;  %v5016_v50 = vmax.f32 %v4856_v59, 0.0  ;;  %v4859_v2 = vadd.f32 %v7445_v49, %v4538_v5  ;;  %v4850_v16 = vpop.f32.mrb[187].mxu1  ;;  %v5367_v52 = vmax.f32 %v5281_v24, %v5329_v26  ;;  %v9023_v58 = vld [vmem:[%s13924_s3 + $0xb0] sm:$0xff]  }
 0x491   : > { %v5014_v38 = vmax.f32 %v4848_v32, 0.0  ;;  %v4851_v41 = vadd.f32 %v4850_v16, %v4530_v11  ;;  %v13166_v17 = vld [vmem:[#allocation3 + $0x70] sm:$0xff]  ;;  %7312 = vmatpush3.bf16.msra.mxu1 %v9023_v58  ;;  %v5588_v58 = vrot.slane %v13014_v18, 2 }
 0x492   : > { %v5136_v46 = vld [vmem:[#allocation2 + $0x120] sm:$0xff]  ;;  %5088 = vst.msk [vmem:[#allocation2 + $0x150] sm:$0xff] %vm3606_vm6, %v5016_v50  ;;  %v5017_v22 = vmax.f32 %v4859_v2, 0.0  ;;  %v5496_v11 = vrot.slane %v13166_v17, 1  ;;  %v14546_v7 = vld [vmem:[#allocation80_spill] sm:$0xff] }
 0x493   : > { %5392 = vst.msk [vmem:[#allocation3 + $0x68] sm:$0xf] %vm5383_vm8, %v5367_v52  ;;  %v5173_v62 = vld [vmem:[#allocation2 + $0x138] sm:$0xff]  ;;  %v5015_v14 = vmax.f32 %v4851_v41, 0.0  ;;  %v5138_v41 = vld [vmem:[#allocation2 + $0x130] sm:$0xff] }
 0x494   : > { %5086 = vst.msk [vmem:[#allocation2 + $0x140] sm:$0xff] %vm3606_vm6, %v5014_v38  ;;  %v5209_v43 = vmax.f32 %v5136_v46, %v5173_v62  ;;  %5089 = vst.msk [vmem:[#allocation2 + $0x158] sm:$0xff] %vm3606_vm6, %v5017_v22  ;;  %v5137_v20 = vld [vmem:[#allocation2 + $0x128] sm:$0xff]  ;;  %v4567_v38 = vadd.f32 %v12884_v45, %v12775_v1 }
 0x495   : > { %5087 = vst.msk [vmem:[#allocation2 + $0x148] sm:$0xff] %vm3606_vm6, %v5015_v14  ;;  %v7448_v60 = vpop.f32.mrb[188].mxu1  ;;  %v5285_v31 = vld [vmem:[#allocation3 + $0x88] ss:$2 sm:$0xf]  ;;  %v4559_v14 = vadd.f32 %v12884_v45, %v12763_v12  ;;  %v9024_v12 = vld [vmem:[%s13924_s3 + $0xf8] sm:$0xff]  }
 0x496   : > { %5245 = vst.msk [vmem:[#allocation3 + $0x90] sm:$0xff] %vm3606_vm6, %v5209_v43  ;;  %v4872_v0 = vadd.f32 %v7448_v60, %v4551_v37  ;;  %v4863_v51 = vpop.f32.mrb[189].mxu1  ;;  %v5283_v40 = vld [vmem:[#allocation3 + $0x78] ss:$2 sm:$0xff]  ;;  %v5331_v63 = vld [vmem:[#allocation3 + $0x79] ss:$2 sm:$0xff]  ;;  %7313 = vmatprep.subr.bf16.mxu1 %v9024_v12 }
 0x497   : > { %v4864_v61 = vadd.f32 %v4863_v51, %v4543_v44  ;;  %v7449_v28 = vpop.f32.mrb[190].mxu1  ;;  %v13171_v53 = vld [vmem:[#allocation3 + $0x60] sm:$0xff]  ;;  %v5333_v4 = vld [vmem:[#allocation3 + $0x89] ss:$2 sm:$0xf]  ;;  %v5368_v35 = vmax.f32 %v5283_v40, %v5331_v63  ;;  %v4570_v44 = vadd.f32 %v12884_v45, %v14546_v7 }
 0x498   : > { %v5020_v47 = vmax.f32 %v4872_v0, 0.0  ;;  %v4875_v9 = vadd.f32 %v7449_v28, %v4554_v48  ;;  %v4866_v13 = vpop.f32.mrb[191].mxu1  ;;  %v5369_v5 = vmax.f32 %v5285_v31, %v5333_v4  ;;  %v5493_v50 = vrot.slane %v13171_v53, 1  ;;  %v9025_v0 = vld [vmem:[%s13924_s3 + $0xb8] sm:$0xff]  }
 0x499   : > { %v5018_v59 = vmax.f32 %v4864_v61, 0.0  ;;  %v4867_v25 = vadd.f32 %v4866_v13, %v4546_v27  ;;  %5393 = vst.msk [vmem:[#allocation3 + $0x78] sm:$0xff] %vm3606_vm6, %v5368_v35  ;;  %v5589_v48 = vrot.slane %v13016_v56, 2  ;;  %v14547_v51 = vld [vmem:[#allocation26_spill] sm:$0xff]  ;;  %7314 = vmatpush3.bf16.msra.mxu1 %v9025_v0 }
 0x49a   : > { %v13173_v24 = vld [vmem:[#allocation3 + $0x68] sm:$0xff]  ;;  %5092 = vst.msk [vmem:[#allocation2 + $0x170] sm:$0xff] %vm3606_vm6, %v5020_v47  ;;  %v5021_v49 = vmax.f32 %v4875_v9, 0.0  ;;  %v4562_v40 = vadd.f32 %v12884_v45, %v14547_v51  ;;  %v14549_v51 = vld [vmem:[#allocation85_spill] sm:$0xff] }
 0x49b   : > { %v5174_v32 = vld [vmem:[#allocation2 + $0x140] sm:$0xff]  ;;  %v8679_v26 = vpack.i.bf16 %v13173_v24, %v13171_v53  ;;  %v5494_v2 = vrot.slane %v13173_v24, 1  ;;  %5394 = vst.msk [vmem:[#allocation3 + $0x80] sm:$0xf] %vm5383_vm8, %v5369_v5  ;;  %v5019_v52 = vmax.f32 %v4867_v25, 0.0  ;;  %v5140_v4 = vld [vmem:[#allocation2 + $0x158] sm:$0xff] }
 0x49c   : > { %v5210_v16 = vmax.f32 %v5137_v20, %v5174_v32  ;;  %5090 = vst.msk [vmem:[#allocation2 + $0x160] sm:$0xff] %vm3606_vm6, %v5018_v59  ;;  %v5175_v46 = vld [vmem:[#allocation2 + $0x148] sm:$0xff]  ;;  %5093 = vst.msk [vmem:[#allocation2 + $0x178] sm:$0xff] %vm3606_vm6, %v5021_v49  ;;  %v5591_v5 = vrot.slane %v13002_v30, 2  ;;  %v13223_v32 = vsel %vm2104_vm3, %v5588_v58, %v5589_v48 }
 0x49d   : > { %8680 = vrot.lane.b32.xlu0 %v8679_v26, %s9117_s13  ;;  %v13189_v22 = vsel %vm1719_vm4, %v5493_v50, %v5494_v2  ;;  %v13192_v62 = vsel %vm1719_vm4, %v5494_v2, %v5496_v11  ;;  %v5211_v37 = vmax.f32 %v5138_v41, %v5175_v46  ;;  %5091 = vst.msk [vmem:[#allocation2 + $0x168] sm:$0xff] %vm3606_vm6, %v5019_v52  ;;  %v7452_v1 = vpop.f32.mrb[192].mxu1  ;;  %v13225_v49 = vld [vmem:[#allocation3 + $0x88] sm:$0xff]  ;;  %v5139_v26 = vld [vmem:[#allocation2 + $0x150] sm:$0xff] }
 0x49e   : > { %5246 = vst.msk [vmem:[#allocation3 + $0x98] sm:$0xff] %vm3606_vm6, %v5210_v16  ;;  %v8694_v43 = vpack.i.bf16 %v13192_v62, %v13189_v22  ;;  %v4888_v60 = vadd.f32 %v7452_v1, %v4567_v38  ;;  %v4879_v31 = vpop.f32.mrb[193].mxu1  ;;  %v13229_v30 = vsel %vm2104_vm3, %v5589_v48, %v5591_v5  ;;  %v4583_v38 = vadd.f32 %v12884_v45, %v12807_v6  ;;  %v14548_v1 = vld [vmem:[#allocation35_spill] sm:$0xff] }
 0x49f   : > { %5247 = vst.msk [vmem:[#allocation3 + $0xa0] sm:$0xff] %vm3606_vm6, %v5211_v37  ;;  %v4880_v63 = vadd.f32 %v4879_v31, %v4559_v14  ;;  %v7453_v27 = vpop.f32.mrb[194].mxu1  ;;  %v13245_v31 = vld [vmem:[%s13926_s5 + $0x1] ss:$0 sm:$0xff] }
 0x4a0   : > { %8695 = vrot.lane.b32.xlu1 %v8694_v43, %s9117_s13  ;;  %v5024_v18 = vmax.f32 %v4888_v60, 0.0  ;;  %v4891_v61 = vadd.f32 %v7453_v27, %v4570_v44  ;;  %v4882_v56 = vpop.f32.mrb[195].mxu1  ;;  %v13214_v28 = vld [vmem:[#allocation3 + $0x78] sm:$0xff]  ;;  %v4575_v43 = vadd.f32 %v12884_v45, %v14548_v1  ;;  %v5501_v60 = vrot.slane %v13225_v49, 1 }
 0x4a1   : > { %v5177_v35 = vld [vmem:[#allocation2 + $0x170] sm:$0xff]  ;;  %v5022_v47 = vmax.f32 %v4880_v63, 0.0  ;;  %v4883_v9 = vadd.f32 %v4882_v56, %v4562_v40  ;;  %v5498_v16 = vrot.slane %v13214_v28, 1  ;;  %v4586_v58 = vadd.f32 %v13245_v31, %v12812_v19 }
 0x4a2   : > { %v13216_v13 = vld [vmem:[#allocation3 + $0x80] sm:$0xff]  ;;  %v5213_v59 = vmax.f32 %v5140_v4, %v5177_v35  ;;  %5096 = vst.msk [vmem:[#allocation2 + $0x190] sm:$0xff] %vm3606_vm6, %v5024_v18  ;;  %v5025_v11 = vmax.f32 %v4891_v61, 0.0  ;;  %v8699_v45 = vpack.i.bf16 %v13229_v30, %v13223_v32  ;;  %v4578_v40 = vadd.f32 %v13245_v31, %v14549_v51 }
 0x4a3   : > { %v5141_v25 = vld [vmem:[#allocation2 + $0x160] sm:$0xff]  ;;  %v8689_v20 = vpack.i.bf16 %v13216_v13, %v13214_v28  ;;  %v5178_v50 = vld [vmem:[#allocation2 + $0x178] sm:$0xff]  ;;  %5094 = vst.msk [vmem:[#allocation2 + $0x180] sm:$0xff] %vm3606_vm6, %v5022_v47  ;;  %v5023_v2 = vmax.f32 %v4883_v9, 0.0  ;;  %v5499_v52 = vrot.slane %v13216_v13, 1 }
 0x4a4   : > { %5249 = vst.msk [vmem:[#allocation3 + $0xb0] sm:$0xff] %vm3606_vm6, %v5213_v59  ;;  %v5214_v41 = vmax.f32 %v5141_v25, %v5178_v50  ;;  %v5176_v46 = vld [vmem:[#allocation2 + $0x168] sm:$0xff]  ;;  %5097 = vst.msk [vmem:[#allocation2 + $0x198] sm:$0xff] %vm3606_vm6, %v5025_v11  ;;  %v4599_v50 = vadd.f32 %v13245_v31, %v12831_v15  ;;  %v5594_v15 = vrot.slane %v13067_v21, 2 }
 0x4a5   : > { %8690 = vrot.lane.b32.xlu0 %v8689_v20, %s9117_s13  ;;  %v5287_v14 = vld [vmem:[#allocation3 + $0x90] ss:$2 sm:$0xff]  ;;  %v5335_v37 = vld [vmem:[#allocation3 + $0x91] ss:$2 sm:$0xff]  ;;  %v5212_v7 = vmax.f32 %v5139_v26, %v5176_v46  ;;  %5095 = vst.msk [vmem:[#allocation2 + $0x188] sm:$0xff] %vm3606_vm6, %v5023_v2  ;;  %v7456_v44 = vpop.f32.mrb[196].mxu1  ;;  %v13256_v18 = vsel %vm1719_vm4, %v5498_v16, %v5499_v52  ;;  %v13259_v19 = vsel %vm1719_vm4, %v5499_v52, %v5501_v60 }
 0x4a6   : > { %v5370_v6 = vmax.f32 %v5287_v14, %v5335_v37  ;;  %5250 = vst.msk [vmem:[#allocation3 + $0xb8] sm:$0xff] %vm3606_vm6, %v5214_v41  ;;  %v4904_v48 = vadd.f32 %v7456_v44, %v4583_v38  ;;  %v4895_v12 = vpop.f32.mrb[197].mxu1  ;;  %v5289_v0 = vld [vmem:[#allocation3 + $0xa0] ss:$2 sm:$0xf]  ;;  %v8709_v11 = vpack.i.bf16 %v13259_v19, %v13256_v18  ;;  %v4591_v16 = vadd.f32 %v13245_v31, %v12821_v10  ;;  %v14550_v41 = vld [vmem:[#allocation33_spill] sm:$0xff] }
 0x4a7   : > { %5248 = vst.msk [vmem:[#allocation3 + $0xa8] sm:$0xff] %vm3606_vm6, %v5212_v7  ;;  %v4896_v63 = vadd.f32 %v4895_v12, %v4575_v43  ;;  %v7457_v27 = vpop.f32.mrb[198].mxu1  ;;  %v5337_v61 = vld [vmem:[#allocation3 + $0xa1] ss:$2 sm:$0xf]  ;;  %v4602_v46 = vadd.f32 %v13245_v31, %v14550_v41 }
 0x4a8   : > { %5395 = vst.msk [vmem:[#allocation3 + $0x90] sm:$0xff] %vm3606_vm6, %v5370_v6  ;;  %v5028_v56 = vmax.f32 %v4904_v48, 0.0  ;;  %v4907_v4 = vadd.f32 %v7457_v27, %v4586_v58  ;;  %v4898_v35 = vpop.f32.mrb[199].mxu1  ;;  %v5371_v47 = vmax.f32 %v5289_v0, %v5337_v61  ;;  %v14551_v7 = vld [vmem:[#allocation47_spill] sm:$0xff]  ;;  %v5593_v0 = vrot.slane %v13065_v3, 2 }
 0x4a9   : > { %8700 = vrot.lane.b32.xlu0 %v8699_v45, %s9117_s13  ;;  %v5026_v9 = vmax.f32 %v4896_v63, 0.0  ;;  %v4899_v5 = vadd.f32 %v4898_v35, %v4578_v40  ;;  %v4594_v44 = vadd.f32 %v13245_v31, %v14551_v7  ;;  %v5596_v61 = vrot.slane %v13061_v57, 2 }
 0x4aa   : > { %v5142_v59 = vld [vmem:[#allocation2 + $0x180] sm:$0xff]  ;;  %5100 = vst.msk [vmem:[#allocation2 + $0x1b0] sm:$0xff] %vm3606_vm6, %v5028_v56  ;;  %v5029_v25 = vmax.f32 %v4907_v4, 0.0  ;;  %v13292_v3 = vsel %vm2104_vm3, %v5593_v0, %v5594_v15 }
 0x4ab   : > { %5396 = vst.msk [vmem:[#allocation3 + $0x98] sm:$0xf] %vm5383_vm8, %v5371_v47  ;;  %v5179_v20 = vld [vmem:[#allocation2 + $0x198] sm:$0xff]  ;;  %v5027_v26 = vmax.f32 %v4899_v5, 0.0 }
 0x4ac   : > { %5098 = vst.msk [vmem:[#allocation2 + $0x1a0] sm:$0xff] %vm3606_vm6, %v5026_v9  ;;  %v5215_v2 = vmax.f32 %v5142_v59, %v5179_v20  ;;  %5101 = vst.msk [vmem:[#allocation2 + $0x1b8] sm:$0xff] %vm3606_vm6, %v5029_v25  ;;  %v5143_v56 = vld [vmem:[#allocation2 + $0x188] sm:$0xff]  ;;  %v13295_v9 = vld [vmem:[#allocation3 + $0xa0] sm:$0xff]  ;;  %v13299_v59 = vsel %vm2104_vm3, %v5594_v15, %v5596_v61 }
 0x4ad   : > { %8710 = vrot.lane.b32.xlu0 %v8709_v11, %s9117_s13  ;;  %5099 = vst.msk [vmem:[#allocation2 + $0x1a8] sm:$0xff] %vm3606_vm6, %v5027_v26  ;;  %v7460_v52 = vpop.f32.mrb[200].mxu1  ;;  %v5293_v38 = vld [vmem:[#allocation3 + $0xb8] ss:$2 sm:$0xf]  ;;  %v14553_v26 = vld [vmem:[#allocation96_spill] sm:$0xff] }
 0x4ae   : > { %5251 = vst.msk [vmem:[#allocation3 + $0xc0] sm:$0xff] %vm3606_vm6, %v5215_v2  ;;  %v4920_v14 = vadd.f32 %v7460_v52, %v4599_v50  ;;  %v4911_v37 = vpop.f32.mrb[201].mxu1  ;;  %v5291_v1 = vld [vmem:[#allocation3 + $0xa8] ss:$2 sm:$0xff]  ;;  %v5339_v43 = vld [vmem:[#allocation3 + $0xa9] ss:$2 sm:$0xff]  ;;  %v4615_v50 = vadd.f32 %v13245_v31, %v14553_v26 }
 0x4af   : > { %v4912_v60 = vadd.f32 %v4911_v37, %v4591_v16  ;;  %v7461_v10 = vpop.f32.mrb[202].mxu1  ;;  %v5341_v6 = vld [vmem:[#allocation3 + $0xb9] ss:$2 sm:$0xf]  ;;  %v5372_v58 = vmax.f32 %v5291_v1, %v5339_v43  ;;  %v13282_v27 = vld [vmem:[#allocation3 + $0x90] sm:$0xff]  ;;  %v5598_v52 = vrot.slane %v13108_v8, 2  ;;  %v8714_v8 = vpack.i.bf16 %v13299_v59, %v13292_v3 }
 0x4b0   : > { %v5032_v48 = vmax.f32 %v4920_v14, 0.0  ;;  %v4923_v12 = vadd.f32 %v7461_v10, %v4602_v46  ;;  %v4914_v45 = vpop.f32.mrb[203].mxu1  ;;  %v5373_v51 = vmax.f32 %v5293_v38, %v5341_v6  ;;  %v14552_v11 = vld [vmem:[#allocation86_spill] sm:$0xff]  ;;  %v5144_v2 = vld [vmem:[#allocation2 + $0x190] sm:$0xff]  ;;  %v5503_v46 = vrot.slane %v13282_v27, 1 }
 0x4b1   : > { %v5030_v40 = vmax.f32 %v4912_v60, 0.0  ;;  %v4915_v63 = vadd.f32 %v4914_v45, %v4594_v44  ;;  %5397 = vst.msk [vmem:[#allocation3 + $0xa8] sm:$0xff] %vm3606_vm6, %v5372_v58  ;;  %v4607_v20 = vadd.f32 %v13245_v31, %v14552_v11  ;;  %v5506_v14 = vrot.slane %v13295_v9, 1  ;;  %v14554_v15 = vld [vmem:[#allocation89_spill] sm:$0xff]  ;;  %v14555_v44 = vld [vmem:[#allocation44_spill] sm:$0xff] }
 0x4b2   : > { %v13284_v21 = vld [vmem:[#allocation3 + $0x98] sm:$0xff]  ;;  %5104 = vst.msk [vmem:[#allocation2 + $0x1d0] sm:$0xff] %vm3606_vm6, %v5032_v48  ;;  %v5033_v35 = vmax.f32 %v4923_v12, 0.0  ;;  %v5599_v37 = vrot.slane %v13110_v54, 2  ;;  %v4618_v1 = vadd.f32 %v13245_v31, %v14554_v15  ;;  %v4610_v60 = vadd.f32 %v13245_v31, %v14555_v44  ;;  %v5145_v26 = vld [vmem:[#allocation2 + $0x1b0] sm:$0xff] }
 0x4b3   : > { %v5180_v4 = vld [vmem:[#allocation2 + $0x1a0] sm:$0xff]  ;;  %v8704_v47 = vpack.i.bf16 %v13284_v21, %v13282_v27  ;;  %5398 = vst.msk [vmem:[#allocation3 + $0xb0] sm:$0xf] %vm5383_vm8, %v5373_v51  ;;  %v5031_v57 = vmax.f32 %v4915_v63, 0.0  ;;  %v5504_v25 = vrot.slane %v13284_v21, 1  ;;  %v5146_v51 = vld [vmem:[#allocation2 + $0x1b8] sm:$0xff] }
 0x4b4   : > { %v5216_v5 = vmax.f32 %v5143_v56, %v5180_v4  ;;  %5102 = vst.msk [vmem:[#allocation2 + $0x1c0] sm:$0xff] %vm3606_vm6, %v5030_v40  ;;  %v5181_v16 = vld [vmem:[#allocation2 + $0x1a8] sm:$0xff]  ;;  %5105 = vst.msk [vmem:[#allocation2 + $0x1d8] sm:$0xff] %vm3606_vm6, %v5033_v35  ;;  %v13333_v4 = vsel %vm2104_vm3, %v5598_v52, %v5599_v37  ;;  %v5601_v35 = vrot.slane %v13102_v23, 2 }
 0x4b5   : > { %8705 = vrot.lane.b32.xlu1 %v8704_v47, %s9117_s13  ;;  %v5217_v38 = vmax.f32 %v5144_v2, %v5181_v16  ;;  %5103 = vst.msk [vmem:[#allocation2 + $0x1c8] sm:$0xff] %vm3606_vm6, %v5031_v57  ;;  %v7464_v41 = vpop.f32.mrb[204].mxu1  ;;  %v13322_v58 = vsel %vm1719_vm4, %v5503_v46, %v5504_v25  ;;  %v13325_v54 = vsel %vm1719_vm4, %v5504_v25, %v5506_v14 }
 0x4b6   : > { %5252 = vst.msk [vmem:[#allocation3 + $0xc8] sm:$0xff] %vm3606_vm6, %v5216_v5  ;;  %v4936_v43 = vadd.f32 %v7464_v41, %v4615_v50  ;;  %v4927_v7 = vpop.f32.mrb[205].mxu1  ;;  %14556 = vst [vmem:[#allocation68_spill] sm:$0xff] %v13322_v58  ;;  %v8724_v11 = vpack.i.bf16 %v13325_v54, %v13322_v58  ;;  %v13345_v23 = vsel %vm2104_vm3, %v5599_v37, %v5601_v35 }
 0x4b7   : > { %5253 = vst.msk [vmem:[#allocation3 + $0xd0] sm:$0xff] %vm3606_vm6, %v5217_v38  ;;  %v4928_v10 = vadd.f32 %v4927_v7, %v4607_v20  ;;  %v7465_v6 = vpop.f32.mrb[206].mxu1  ;;  %14557 = vst [vmem:[#allocation62_spill] sm:$0xff] %v13325_v54  ;;  %v13341_v20 = vld [vmem:[#allocation3 + $0xb8] sm:$0xff]  ;;  %v14558_v38 = vld [vmem:[#allocation99_spill] sm:$0xff] }
 0x4b8   : > { %v5036_v48 = vmax.f32 %v4936_v43, 0.0  ;;  %v4939_v12 = vadd.f32 %v7465_v6, %v4618_v1  ;;  %v4930_v45 = vpop.f32.mrb[207].mxu1  ;;  %v13328_v0 = vld [vmem:[#allocation3 + $0xa8] sm:$0xff]  ;;  %v4631_v41 = vadd.f32 %v13245_v31, %v14558_v38  ;;  %v14559_v1 = vld [vmem:[#allocation46_spill] sm:$0xff]  ;;  %v5511_v44 = vrot.slane %v13341_v20, 1 }
 0x4b9   : > { %8715 = vrot.lane.b32.xlu1 %v8714_v8, %s9117_s13  ;;  %v5183_v40 = vld [vmem:[#allocation2 + $0x1d0] sm:$0xff]  ;;  %v5034_v63 = vmax.f32 %v4928_v10, 0.0  ;;  %v4931_v61 = vadd.f32 %v4930_v45, %v4610_v60  ;;  %v5508_v16 = vrot.slane %v13328_v0, 1  ;;  %v4623_v43 = vadd.f32 %v13245_v31, %v14559_v1  ;;  %v14560_v10 = vld [vmem:[#allocation74_spill] sm:$0xff] }
 0x4ba   : > { %v13330_v56 = vld [vmem:[#allocation3 + $0xb0] sm:$0xff]  ;;  %v5219_v47 = vmax.f32 %v5146_v51, %v5183_v40  ;;  %5108 = vst.msk [vmem:[#allocation2 + $0x1f0] sm:$0xff] %vm3606_vm6, %v5036_v48  ;;  %v5037_v57 = vmax.f32 %v4939_v12, 0.0  ;;  %v4634_v6 = vadd.f32 %v13245_v31, %v14560_v10  ;;  %v8729_v45 = vpack.i.bf16 %v13345_v23, %v13333_v4  ;;  %v14561_v40 = vld [vmem:[#allocation90_spill] sm:$0xff] }
 0x4bb   : > { %v5147_v5 = vld [vmem:[#allocation2 + $0x1c0] sm:$0xff]  ;;  %v8719_v25 = vpack.i.bf16 %v13330_v56, %v13328_v0  ;;  %v5184_v50 = vld [vmem:[#allocation2 + $0x1d8] sm:$0xff]  ;;  %5106 = vst.msk [vmem:[#allocation2 + $0x1e0] sm:$0xff] %vm3606_vm6, %v5034_v63  ;;  %v5035_v2 = vmax.f32 %v4931_v61, 0.0  ;;  %v5509_v52 = vrot.slane %v13330_v56, 1  ;;  %v4626_v63 = vadd.f32 %v13245_v31, %v14561_v40 }
 0x4bc   : > { %5255 = vst.msk [vmem:[#allocation3 + $0xe0] sm:$0xff] %vm3606_vm6, %v5219_v47  ;;  %v5220_v46 = vmax.f32 %v5147_v5, %v5184_v50  ;;  %v5182_v14 = vld [vmem:[#allocation2 + $0x1c8] sm:$0xff]  ;;  %5109 = vst.msk [vmem:[#allocation2 + $0x1f8] sm:$0xff] %vm3606_vm6, %v5037_v57 }
 0x4bd   : > { %8720 = vrot.lane.b32.xlu0 %v8719_v25, %s9117_s13  ;;  %8725 = vrot.lane.b32.xlu1 %v8724_v11, %s9117_s13  ;;  %v5295_v15 = vld [vmem:[#allocation3 + $0xc0] ss:$2 sm:$0xff]  ;;  %v5343_v37 = vld [vmem:[#allocation3 + $0xc1] ss:$2 sm:$0xff]  ;;  %v5218_v7 = vmax.f32 %v5145_v26, %v5182_v14  ;;  %5107 = vst.msk [vmem:[#allocation2 + $0x1e8] sm:$0xff] %vm3606_vm6, %v5035_v2  ;;  %v7468_v8 = vpop.f32.mrb[208].mxu1  ;;  %v13368_v47 = vsel %vm1719_vm4, %v5508_v16, %v5509_v52 }
 0x4be   : > { %v5374_v60 = vmax.f32 %v5295_v15, %v5343_v37  ;;  %5256 = vst.msk [vmem:[#allocation3 + $0xe8] sm:$0xff] %vm3606_vm6, %v5220_v46  ;;  %v4952_v48 = vadd.f32 %v7468_v8, %v4631_v41  ;;  %v4943_v12 = vpop.f32.mrb[209].mxu1  ;;  %v5297_v51 = vld [vmem:[#allocation3 + $0xd0] ss:$2 sm:$0xf]  ;;  %14562 = vst [vmem:[#allocation28_spill] sm:$0xff] %v13368_v47  ;;  %v13371_v5 = vsel %vm1719_vm4, %v5509_v52, %v5511_v44 }
 0x4bf   : > { %5254 = vst.msk [vmem:[#allocation3 + $0xd8] sm:$0xff] %vm3606_vm6, %v5218_v7  ;;  %v4944_v61 = vadd.f32 %v4943_v12, %v4623_v43  ;;  %v7469_v35 = vpop.f32.mrb[210].mxu1  ;;  %14563 = vst [vmem:[#allocation65_spill] sm:$0xff] %v13371_v5  ;;  %v5345_v57 = vld [vmem:[#allocation3 + $0xd1] ss:$2 sm:$0xf]  ;;  %v8739_v16 = vpack.i.bf16 %v13371_v5, %v13368_v47 }
 0x4c0   : > { %5399 = vst.msk [vmem:[#allocation3 + $0xc0] sm:$0xff] %vm3606_vm6, %v5374_v60  ;;  %v5040_v25 = vmax.f32 %v4952_v48, 0.0  ;;  %v4955_v11 = vadd.f32 %v7469_v35, %v4634_v6  ;;  %v4946_v26 = vpop.f32.mrb[211].mxu1  ;;  %v5375_v50 = vmax.f32 %v5297_v51, %v5345_v57  ;;  %v14564_v15 = vld [vmem:[#allocation106_spill] sm:$0xff]  ;;  %v14565_v43 = vld [vmem:[#allocation57_spill] sm:$0xff]  ;;  %v14566_v60 = vld [vmem:[#allocation104_spill] sm:$0xff] }
 0x4c1   : > { %8730 = vrot.lane.b32.xlu0 %v8729_v45, %s9117_s13  ;;  %v5038_v2 = vmax.f32 %v4944_v61, 0.0  ;;  %v4947_v38 = vadd.f32 %v4946_v26, %v4626_v63  ;;  %v4647_v37 = vadd.f32 %v13245_v31, %v14564_v15  ;;  %v4639_v7 = vadd.f32 %v13245_v31, %v14565_v43  ;;  %v14567_v40 = vld [vmem:[#allocation95_spill] sm:$0xff] }
 0x4c2   : > { %v5148_v41 = vld [vmem:[#allocation2 + $0x1e0] sm:$0xff]  ;;  %5112 = vst.msk [vmem:[#allocation2 + $0x210] sm:$0xff] %vm3606_vm6, %v5040_v25  ;;  %v5041_v46 = vmax.f32 %v4955_v11, 0.0  ;;  %v4650_v10 = vadd.f32 %v13245_v31, %v14566_v60  ;;  %v5604_v12 = vrot.slane %v13173_v24, 2  ;;  %v4642_v63 = vadd.f32 %v13245_v31, %v14567_v40 }
 0x4c3   : > { %5400 = vst.msk [vmem:[#allocation3 + $0xc8] sm:$0xf] %vm5383_vm8, %v5375_v50  ;;  %v5185_v52 = vld [vmem:[#allocation2 + $0x1f8] sm:$0xff]  ;;  %v5039_v14 = vmax.f32 %v4947_v38, 0.0 }
 0x4c4   : > { %5110 = vst.msk [vmem:[#allocation2 + $0x200] sm:$0xff] %vm3606_vm6, %v5038_v2  ;;  %v5221_v1 = vmax.f32 %v5148_v41, %v5185_v52  ;;  %5113 = vst.msk [vmem:[#allocation2 + $0x218] sm:$0xff] %vm3606_vm6, %v5041_v46  ;;  %v5603_v2 = vrot.slane %v13171_v53, 2  ;;  %v5149_v31 = vld [vmem:[#allocation2 + $0x1e8] sm:$0xff] }
 0x4c5   : > { %8740 = vrot.lane.b32.xlu0 %v8739_v16, %s9117_s13  ;;  %5111 = vst.msk [vmem:[#allocation2 + $0x208] sm:$0xff] %vm3606_vm6, %v5039_v14  ;;  %v7472_v8 = vpop.f32.mrb[212].mxu1  ;;  %v5301_v44 = vld [vmem:[#allocation3 + $0xe8] ss:$2 sm:$0xf]  ;;  %v5606_v14 = vrot.slane %v13166_v17, 2 }
 0x4c6   : > { %5257 = vst.msk [vmem:[#allocation3 + $0xf0] sm:$0xff] %vm3606_vm6, %v5221_v1  ;;  %v4968_v6 = vadd.f32 %v7472_v8, %v4647_v37  ;;  %v4959_v48 = vpop.f32.mrb[213].mxu1  ;;  %v5299_v45 = vld [vmem:[#allocation3 + $0xd8] ss:$2 sm:$0xff]  ;;  %v5347_v51 = vld [vmem:[#allocation3 + $0xd9] ss:$2 sm:$0xff]  ;;  %v13404_v43 = vsel %vm2104_vm3, %v5603_v2, %v5604_v12 }
 0x4c7   : > { %v4960_v61 = vadd.f32 %v4959_v48, %v4639_v7  ;;  %v7473_v35 = vpop.f32.mrb[214].mxu1  ;;  %v5349_v57 = vld [vmem:[#allocation3 + $0xe9] ss:$2 sm:$0xf]  ;;  %v5376_v25 = vmax.f32 %v5299_v45, %v5347_v51  ;;  %v13394_v16 = vld [vmem:[#allocation3 + $0xc0] sm:$0xff]  ;;  %v13407_v7 = vld [vmem:[#allocation3 + $0xd0] sm:$0xff] }
 0x4c8   : > { %v5044_v11 = vmax.f32 %v4968_v6, 0.0  ;;  %v4971_v26 = vadd.f32 %v7473_v35, %v4650_v10  ;;  %v4962_v50 = vpop.f32.mrb[215].mxu1  ;;  %v5377_v38 = vmax.f32 %v5301_v44, %v5349_v57  ;;  %v13411_v44 = vsel %vm2104_vm3, %v5604_v12, %v5606_v14  ;;  %v5150_v10 = vld [vmem:[#allocation2 + $0x1f0] sm:$0xff]  ;;  %v13441_v14 = vld [vmem:[#allocation3 + $0xe8] sm:$0xff] }
 0x4c9   : > { %v5042_v41 = vmax.f32 %v4960_v61, 0.0  ;;  %v4963_v46 = vadd.f32 %v4962_v50, %v4642_v63  ;;  %5401 = vst.msk [vmem:[#allocation3 + $0xd8] sm:$0xff] %vm3606_vm6, %v5376_v25  ;;  %v5513_v45 = vrot.slane %v13394_v16, 1  ;;  %v5516_v51 = vrot.slane %v13407_v7, 1 }
 0x4ca   : > { %v13396_v52 = vld [vmem:[#allocation3 + $0xc8] sm:$0xff]  ;;  %5116 = vst.msk [vmem:[#allocation2 + $0x230] sm:$0xff] %vm3606_vm6, %v5044_v11  ;;  %v5045_v37 = vmax.f32 %v4971_v26, 0.0  ;;  %v8744_v12 = vpack.i.bf16 %v13411_v44, %v13404_v43  ;;  %v5608_v61 = vrot.slane %v13214_v28, 2  ;;  %v5609_v35 = vrot.slane %v13216_v13, 2 }
 0x4cb   : > { %v5186_v15 = vld [vmem:[#allocation2 + $0x200] sm:$0xff]  ;;  %v8734_v1 = vpack.i.bf16 %v13396_v52, %v13394_v16  ;;  %5402 = vst.msk [vmem:[#allocation3 + $0xe0] sm:$0xf] %vm5383_vm8, %v5377_v38  ;;  %v5043_v17 = vmax.f32 %v4963_v46, 0.0  ;;  %v5514_v60 = vrot.slane %v13396_v52, 1  ;;  %v5152_v25 = vld [vmem:[#allocation2 + $0x218] sm:$0xff] }
 0x4cc   : > { %v5222_v8 = vmax.f32 %v5149_v31, %v5186_v15  ;;  %5114 = vst.msk [vmem:[#allocation2 + $0x220] sm:$0xff] %vm3606_vm6, %v5042_v41  ;;  %v5187_v6 = vld [vmem:[#allocation2 + $0x208] sm:$0xff]  ;;  %5117 = vst.msk [vmem:[#allocation2 + $0x238] sm:$0xff] %vm3606_vm6, %v5045_v37  ;;  %v5611_v50 = vrot.slane %v13225_v49, 2  ;;  %v5151_v31 = vld [vmem:[#allocation2 + $0x210] sm:$0xff]  ;;  %v13444_v37 = vsel %vm2104_vm3, %v5608_v61, %v5609_v35  ;;  %v5631_v54 = vrot.slane %v13441_v14, 2 }
 0x4cd   : > { %8735 = vrot.lane.b32.xlu1 %v8734_v1, %s9117_s13  ;;  %v5223_v48 = vmax.f32 %v5150_v10, %v5187_v6  ;;  %5115 = vst.msk [vmem:[#allocation2 + $0x228] sm:$0xff] %vm3606_vm6, %v5043_v17  ;;  %v13424_v40 = vsel %vm1719_vm4, %v5513_v45, %v5514_v60  ;;  %v13427_v63 = vsel %vm1719_vm4, %v5514_v60, %v5516_v51  ;;  %v5521_v45 = vrot.slane %v13441_v14, 1 }
 0x4ce   : > { %5258 = vst.msk [vmem:[#allocation3 + $0xf8] sm:$0xff] %vm3606_vm6, %v5222_v8  ;;  %14568 = vst [vmem:[#allocation102_spill] sm:$0xff] %v13424_v40  ;;  %v8754_v46 = vpack.i.bf16 %v13427_v63, %v13424_v40  ;;  %v13447_v1 = vsel %vm2104_vm3, %v5609_v35, %v5611_v50  ;;  %v5618_v51 = vrot.slane %v13328_v0, 2  ;;  %v9044_v40 = vld [vmem:[#allocation3 + $0x10] sm:$0xff] }
 0x4cf   : > { %5259 = vst.msk [vmem:[#allocation3 + $0x100] sm:$0xff] %vm3606_vm6, %v5223_v48  ;;  %14569 = vst [vmem:[#allocation98_spill] sm:$0xff] %v13427_v63  ;;  %v8759_v61 = vpack.i.bf16 %v13447_v1, %v13444_v37  ;;  %v5586_v5 = vrot.slane %v9044_v40, 2 }
 0x4d0   : > { %v13432_v57 = vld [vmem:[#allocation3 + $0xd8] sm:$0xff] }
 0x4d1   : > { %8745 = vrot.lane.b32.xlu1 %v8744_v12, %s9117_s13  ;;  %14570 = vst [vmem:[#allocation82_spill] sm:$0xff] %v13432_v57  ;;  %v5189_v11 = vld [vmem:[#allocation2 + $0x230] sm:$0xff]  ;;  %v5518_v49 = vrot.slane %v13432_v57, 1 }
 0x4d2   : > { %v13434_v26 = vld [vmem:[#allocation3 + $0xe0] sm:$0xff]  ;;  %v5225_v2 = vmax.f32 %v5152_v25, %v5189_v11 }
 0x4d3   : > { %14571 = vst [vmem:[#allocation72_spill] sm:$0xff] %v13434_v26  ;;  %v5153_v38 = vld [vmem:[#allocation2 + $0x220] sm:$0xff]  ;;  %v8749_v41 = vpack.i.bf16 %v13434_v26, %v13432_v57  ;;  %v5190_v15 = vld [vmem:[#allocation2 + $0x238] sm:$0xff]  ;;  %v5519_v8 = vrot.slane %v13434_v26, 1  ;;  %v5629_v40 = vrot.slane %v13434_v26, 2 }
 0x4d4   : > { %5261 = vst.msk [vmem:[#allocation3 + $0x110] sm:$0xff] %vm3606_vm6, %v5225_v2  ;;  %v5226_v17 = vmax.f32 %v5153_v38, %v5190_v15  ;;  %v5188_v60 = vld [vmem:[#allocation2 + $0x228] sm:$0xff]  ;;  %v5619_v2 = vrot.slane %v13330_v56, 2 }
 0x4d5   : > { %8750 = vrot.lane.b32.xlu0 %v8749_v41, %s9117_s13  ;;  %8755 = vrot.lane.b32.xlu1 %v8754_v46, %s9117_s13  ;;  %v5303_v10 = vld [vmem:[#allocation3 + $0xf0] ss:$2 sm:$0xff]  ;;  %v5351_v6 = vld [vmem:[#allocation3 + $0xf1] ss:$2 sm:$0xff]  ;;  %v5224_v48 = vmax.f32 %v5151_v31, %v5188_v60  ;;  %v13461_v11 = vsel %vm1719_vm4, %v5518_v49, %v5519_v8  ;;  %v13464_v50 = vsel %vm1719_vm4, %v5519_v8, %v5521_v45  ;;  %v5621_v41 = vrot.slane %v13341_v20, 2 }
 0x4d6   : > { %v5378_v12 = vmax.f32 %v5303_v10, %v5351_v6  ;;  %5262 = vst.msk [vmem:[#allocation3 + $0x118] sm:$0xff] %vm3606_vm6, %v5226_v17  ;;  %v5305_v35 = vld [vmem:[#allocation3 + $0x100] ss:$2 sm:$0xf]  ;;  %14572 = vst [vmem:[#allocation63_spill] sm:$0xff] %v13461_v11  ;;  %v8769_v46 = vpack.i.bf16 %v13464_v50, %v13461_v11  ;;  %v13474_v31 = vsel %vm2104_vm3, %v5618_v51, %v5619_v2 }
 0x4d7   : > { %v5353_v25 = vld [vmem:[#allocation3 + $0x101] ss:$2 sm:$0xf]  ;;  %5260 = vst.msk [vmem:[#allocation3 + $0x108] sm:$0xff] %vm3606_vm6, %v5224_v48  ;;  %14573 = vst [vmem:[#allocation78_spill] sm:$0xff] %v13464_v50  ;;  %v13477_v15 = vsel %vm2104_vm3, %v5619_v2, %v5621_v41  ;;  %v5614_v48 = vrot.slane %v13284_v21, 2 }
 0x4d8   : > { %v5379_v38 = vmax.f32 %v5305_v35, %v5353_v25  ;;  %5403 = vst.msk [vmem:[#allocation3 + $0xf0] sm:$0xff] %vm3606_vm6, %v5378_v12  ;;  %v13480_v49 = vld [vmem:[#allocation3 + $0x100] sm:$0xff]  ;;  %v8779_v20 = vpack.i.bf16 %v13477_v15, %v13474_v31  ;;  %v5624_v12 = vrot.slane %v13396_v52, 2  ;;  %v5613_v35 = vrot.slane %v13282_v27, 2  ;;  %v9043_v50 = vld [vmem:[#allocation3 + $0x8] sm:$0xff] }
 0x4d9   : > { %8760 = vrot.lane.b32.xlu0 %v8759_v61, %s9117_s13  ;;  %v5616_v25 = vrot.slane %v13295_v9, 2  ;;  %v9042_v2 = vld [vmem:[#allocation3] sm:$0xff]  ;;  %v5623_v41 = vrot.slane %v13394_v16, 2 }
 0x4da   : > { %5404 = vst.msk [vmem:[#allocation3 + $0xf8] sm:$0xf] %vm5383_vm8, %v5379_v38  ;;  %v5583_v38 = vrot.slane %v9042_v2, 2  ;;  %v13502_v9 = vsel %vm2104_vm3, %v5613_v35, %v5614_v48 }
 0x4db   : > { %v13516_v35 = vsel %vm2104_vm3, %v5623_v41, %v5624_v12 }
 0x4dd   : > { %8770 = vrot.lane.b32.xlu0 %v8769_v46, %s9117_s13  ;;  %v5309_v8 = vld [vmem:[#allocation3 + $0x118] ss:$2 sm:$0xf]  ;;  %v5357_v17 = vld [vmem:[#allocation3 + $0x119] ss:$2 sm:$0xf] }
 0x4de   : > { %v5307_v60 = vld [vmem:[#allocation3 + $0x108] ss:$2 sm:$0xff]  ;;  %v5355_v10 = vld [vmem:[#allocation3 + $0x109] ss:$2 sm:$0xff]  ;;  %v5381_v45 = vmax.f32 %v5309_v8, %v5357_v17 }
 0x4df   : > { %v13484_v6 = vld [vmem:[#allocation3 + $0xf0] sm:$0xff]  ;;  %v5380_v51 = vmax.f32 %v5307_v60, %v5355_v10  ;;  %v5719_v10 = vrot.slane %v13480_v49, 1 }
 0x4e0   : > { %5406 = vst.msk [vmem:[#allocation3 + $0x110] sm:$0xf] %vm5383_vm8, %v5381_v45  ;;  %v5716_v17 = vrot.slane %v13484_v6, 1  ;;  %v5584_v45 = vrot.slane %v9043_v50, 2 }
 0x4e1   : > { %8780 = vrot.lane.b32.xlu0 %v8779_v20, %s9117_s13  ;;  %v13489_v61 = vld [vmem:[#allocation3 + $0xf8] sm:$0xff]  ;;  %5405 = vst.msk [vmem:[#allocation3 + $0x108] sm:$0xff] %vm3606_vm6, %v5380_v51  ;;  %v13505_v20 = vsel %vm2104_vm3, %v5614_v48, %v5616_v25  ;;  %v5626_v51 = vrot.slane %v13407_v7, 2 }
 0x4e2   : > { %v8656_v46 = vpop.permute.xlu1 %8655  ;;  %v8764_v8 = vpack.i.bf16 %v13489_v61, %v13484_v6  ;;  %v5717_v60 = vrot.slane %v13489_v61, 1  ;;  %v5585_v41 = vsel %vm2104_vm3, %v5583_v38, %v5584_v45 }
 0x4e3   : > { %v8658_v47 = vunpack.i.h.bf16 %v8656_v46  ;;  %v8657_v48 = vunpack.i.l.bf16 %v8656_v46  ;;  %v13521_v7 = vsel %vm2104_vm3, %v5624_v12, %v5626_v51  ;;  %v5587_v46 = vsel %vm2104_vm3, %v5584_v45, %v5586_v5 }
 0x4e4   : > { %8765 = vrot.lane.b32.xlu1 %v8764_v8, %s9117_s13  ;;  %v13510_v11 = vsel %vm1719_vm4, %v5716_v17, %v5717_v60  ;;  %v13513_v63 = vsel %vm1719_vm4, %v5717_v60, %v5719_v10  ;;  %v8774_v8 = vpack.i.bf16 %v13505_v20, %v13502_v9  ;;  %v13525_v17 = vld [vmem:[#allocation3 + $0x118] sm:$0xff]  ;;  %v5628_v60 = vrot.slane %v13432_v57, 2 }
 0x4e5   : > { %14574 = vst [vmem:[#allocation108_spill] sm:$0xff] %v13510_v11  ;;  %14575 = vst [vmem:[#allocation112_spill] sm:$0xff] %v13513_v63  ;;  %v8789_v25 = vpack.i.bf16 %v13513_v63, %v13510_v11  ;;  %v8784_v12 = vpack.i.bf16 %v13521_v7, %v13516_v35  ;;  %v5836_v58 = vsel %vm3606_vm6, %v9043_v50, %v8658_v47  ;;  %v5812_v5 = vrot.slane %v13525_v17, 1 }
 0x4e6   : > { %v5835_v26 = vsel %vm3606_vm6, %v9042_v2, %v8657_v48  ;;  %v13548_v57 = vsel %vm2104_vm3, %v5628_v60, %v5629_v40  ;;  %v13552_v50 = vsel %vm2104_vm3, %v5629_v40, %v5631_v54  ;;  %v5742_v2 = vrot.slane %v13489_v61, 2 }
 0x4e7   : > { %v8651_v10 = vpop.permute.xlu0 %8650  ;;  %8790 = vrot.lane.b32.xlu0 %v8789_v25, %s9117_s13  ;;  %v13535_v51 = vld [vmem:[#allocation3 + $0x110] sm:$0xff]  ;;  %v5899_v48 = vpack.c.bf16 %v5836_v58, %v5835_v26  ;;  %v8794_v54 = vpack.i.bf16 %v13552_v50, %v13548_v57 }
 0x4e8   : > { %v8653_v63 = vunpack.i.h.bf16 %v8651_v10  ;;  %v8652_v11 = vunpack.i.l.bf16 %v8651_v10  ;;  %8775 = vrot.lane.b32.xlu1 %v8774_v8, %s9117_s13  ;;  %v13540_v25 = vld [vmem:[#allocation3 + $0x108] sm:$0xff]  ;;  %v5810_v38 = vrot.slane %v13535_v51, 1 }
 0x4e9   : > { %v5809_v10 = vrot.slane %v13540_v25, 1 }
 0x4ea   : > { %v5855_v45 = vsel %vm3606_vm6, %v5585_v41, %v8652_v11  ;;  %v5856_v8 = vsel %vm3606_vm6, %v5587_v46, %v8653_v63  ;;  %v5813_v47 = vsel %vm1719_vm4, %v5810_v38, %v5812_v5  ;;  %v9026_v63 = vld [vmem:[%s13924_s3 + $0x108] sm:$0xff]   ;;  %v5741_v41 = vrot.slane %v13484_v6, 2  ;;  %v8666_v40 = vpop.permute.xlu1 %8665 }
 0x4eb   : > { %v5900_v14 = vpack.c.bf16 %v5856_v8, %v5855_v45  ;;  %v5811_v11 = vsel %vm1719_vm4, %v5809_v10, %v5810_v38  ;;  %v5744_v46 = vrot.slane %v13480_v49, 2  ;;  %v9027_v49 = vld [vmem:[%s13924_s3 + $0x110] sm:$0xff]   ;;  %v9028_v38 = vld [vmem:[%s13924_s3 + $0x118] sm:$0xff]   ;;  %v8667_v5 = vunpack.i.l.bf16 %v8666_v40 }
 0x4ec   : > { %8785 = vrot.lane.b32.xlu1 %v8784_v12, %s9117_s13  ;;  %v8799_v60 = vpack.i.bf16 %v5813_v47, %v5811_v11  ;;  %v13566_v58 = vsel %vm2104_vm3, %v5741_v41, %v5742_v2 }
 0x4ed   : > { %6295 = vmatprep.mubr.bf16.mxu0 %v5900_v14  ;;  %v13569_v26 = vsel %vm2104_vm3, %v5742_v2, %v5744_v46  ;;  %v9045_v14 = vld [vmem:[#allocation3 + $0x18] sm:$0xff]  ;;  %v9046_v2 = vld [vmem:[#allocation3 + $0x20] sm:$0xff] }
 0x4ee   : > { %6296 = vmatmul.mubr.bf16.vlgmr.msra.gmra.mrb[208].mxu0 %v5899_v48  ;;  %8800 = vrot.lane.b32.xlu0 %v8799_v60, %s9117_s13  ;;  %v8804_v12 = vpack.i.bf16 %v13569_v26, %v13566_v58  ;;  %v5837_v47 = vsel %vm3606_vm6, %v9045_v14, %v8667_v5  ;;  %v9048_v5 = vld [vmem:[#allocation3 + $0x38] sm:$0xff] }
 0x4ef   : > { %7475 = vmatpush3.bf16.msra.mxu0 %v13155_v39  ;;  %v8668_v39 = vunpack.i.h.bf16 %v8666_v40  ;;  %v9047_v40 = vld [vmem:[#allocation3 + $0x30] sm:$0xff] }
 0x4f0   : > { %8795 = vrot.lane.b32.xlu1 %v8794_v54, %s9117_s13  ;;  %7476 = vmatprep.subr.bf16.mxu0 %v9026_v63 }
 0x4f1   : > { %v5838_v48 = vsel %vm3606_vm6, %v9046_v2, %v8668_v39  ;;  %v5936_v39 = vpack.c.bf16 %v13569_v26, %v13566_v58 }
 0x4f3   : > { %7477 = vmatpush3.bf16.msra.mxu0 %v9026_v63 }
 0x4f4   : > { %8805 = vrot.lane.b32.xlu1 %v8804_v12, %s9117_s13  ;;  %7478 = vmatprep.subr.bf16.mxu0 %v9027_v49  ;;  %s9057_s13 = scalar_lea.vmem %s9056_s20, 32 }
 0x4f5   : > { %p9059_p1 = scmp.lt.s32.totalorder %s9057_s13, %s9051_s17 }
 0x4f7   : > { %v8661_v45 = vpop.permute.xlu0 %8660  ;;  %7479 = vmatpush3.bf16.msra.mxu0 %v9027_v49  ;;  %v5904_v49 = vpack.c.bf16 %v5838_v48, %v5837_v47  ;;  %p9060_p2 = por %p9059_p1, %p9058_p0 }
 0x4f8   : > { %v8663_v8 = vunpack.i.h.bf16 %v8661_v45  ;;  %v8662_v10 = vunpack.i.l.bf16 %v8661_v45  ;;  %7480 = vmatprep.subr.bf16.mxu0 %v9028_v38 }
 0x4f9   : > { %p9061_p3 = pnand %p9060_p2, %p9054_p13 }
 0x4fa   : > { %v8676_v11 = vpop.permute.xlu1 %8675  ;;  %v5857_v63 = vsel %vm3606_vm6, %v13223_v32, %v8662_v10  ;;  %v5858_v60 = vsel %vm3606_vm6, %v13229_v30, %v8663_v8 }
 0x4fb   : > { %v8678_v41 = vunpack.i.h.bf16 %v8676_v11  ;;  %v8677_v46 = vunpack.i.l.bf16 %v8676_v11  ;;  %v5905_v54 = vpack.c.bf16 %v5858_v60, %v5857_v63  ;;  %7481 = vmatpush3.bf16.msra.mxu0 %v9028_v38 }
 0x4fd   : > { %6303 = vmatprep.mubr.bf16.mxu0 %v5905_v54  ;;  %v5839_v12 = vsel %vm3606_vm6, %v9047_v40, %v8677_v46  ;;  %v5840_v45 = vsel %vm3606_vm6, %v9048_v5, %v8678_v41  ;;  %v9049_v46 = vld [vmem:[#allocation3 + $0x48] sm:$0xff] }
 0x4fe   : > { %6304 = vmatmul.mubr.bf16.gmra.mrb[212].mxu0 %v5904_v49  ;;  %v5902_v32 = vpack.c.bf16 %v5840_v45, %v5839_v12  ;;  %v9050_v49 = vld [vmem:[#allocation3 + $0x50] sm:$0xff] }
 0x4ff   : > { %v8671_v10 = vpop.permute.xlu0 %8670 }
 0x500   : > { %v8673_v14 = vunpack.i.h.bf16 %v8671_v10  ;;  %v8672_v30 = vunpack.i.l.bf16 %v8671_v10  ;;  %6408 = vmatprep.mubr.bf16.mxu1 %v5902_v32 }
 0x502   : > { %v5859_v38 = vsel %vm3606_vm6, %v13292_v3, %v8672_v30  ;;  %v5860_v8 = vsel %vm3606_vm6, %v13299_v59, %v8673_v14  ;;  %v8686_v2 = vpop.permute.xlu1 %8685 }
 0x503   : > { %v5909_v47 = vpack.c.bf16 %v5860_v8, %v5859_v38  ;;  %v8688_v48 = vunpack.i.h.bf16 %v8686_v2  ;;  %v8687_v11 = vunpack.i.l.bf16 %v8686_v2 }
 0x505   : > { %6311 = vmatprep.mubr.bf16.mxu0 %v5909_v47  ;;  %v5841_v54 = vsel %vm3606_vm6, %v9049_v46, %v8687_v11  ;;  %v5842_v40 = vsel %vm3606_vm6, %v9050_v49, %v8688_v48 }
 0x506   : > { %6312 = vmatmul.mubr.bf16.gmra.mrb[216].mxu0 %v5902_v32  ;;  %v5907_v10 = vpack.c.bf16 %v5842_v40, %v5841_v54 }
 0x50f   : > { %v8681_v63 = vpop.permute.xlu0 %8680 }
 0x510   : > { %v8683_v60 = vunpack.i.h.bf16 %v8681_v63  ;;  %v8682_v41 = vunpack.i.l.bf16 %v8681_v63 }
 0x512   : > { %v8696_v12 = vpop.permute.xlu1 %8695  ;;  %v5861_v5 = vsel %vm3606_vm6, %v13333_v4, %v8682_v41  ;;  %v5862_v45 = vsel %vm3606_vm6, %v13345_v23, %v8683_v60 }
 0x513   : > { %v5913_v32 = vpack.c.bf16 %v5862_v45, %v5861_v5  ;;  %v8698_v14 = vunpack.i.h.bf16 %v8696_v12  ;;  %v8697_v30 = vunpack.i.l.bf16 %v8696_v12 }
 0x515   : > { %6319 = vmatprep.mubr.bf16.mxu0 %v5913_v32  ;;  %v5843_v2 = vsel %vm3606_vm6, %v13171_v53, %v8697_v30  ;;  %v5844_v48 = vsel %vm3606_vm6, %v13173_v24, %v8698_v14 }
 0x516   : > { %6320 = vmatmul.mubr.bf16.gmra.mrb[220].mxu0 %v5907_v10  ;;  %v5911_v49 = vpack.c.bf16 %v5844_v48, %v5843_v2 }
 0x517   : > { %v8691_v38 = vpop.permute.xlu0 %8690 }
 0x518   : > { %v8693_v8 = vunpack.i.h.bf16 %v8691_v38  ;;  %v8692_v47 = vunpack.i.l.bf16 %v8691_v38 }
 0x51a   : > { %v5863_v11 = vsel %vm3606_vm6, %v13404_v43, %v8692_v47  ;;  %v5864_v63 = vsel %vm3606_vm6, %v13411_v44, %v8693_v8 }
 0x51b   : > { %v8701_v60 = vpop.permute.xlu0 %8700  ;;  %v5917_v41 = vpack.c.bf16 %v5864_v63, %v5863_v11 }
 0x51c   : > { %v8703_v46 = vunpack.i.h.bf16 %v8701_v60  ;;  %v8702_v54 = vunpack.i.l.bf16 %v8701_v60 }
 0x51d   : > { %6327 = vmatprep.mubr.bf16.mxu0 %v5917_v41 }
 0x51e   : > { %v5876_v40 = vsel %vm3606_vm6, %v13034_v33, %v8703_v46  ;;  %v5875_v53 = vsel %vm3606_vm6, %v13031_v29, %v8702_v54  ;;  %6328 = vmatmul.mubr.bf16.gmra.mrb[224].mxu0 %v5911_v49 }
 0x51f   : > { %v5901_v24 = vpack.c.bf16 %v5876_v40, %v5875_v53  ;;  %v8711_v12 = vpop.permute.xlu0 %8710 }
 0x520   : > { %v8713_v5 = vunpack.i.h.bf16 %v8711_v12  ;;  %v8712_v45 = vunpack.i.l.bf16 %v8711_v12 }
 0x521   : > { %6409 = vmatmul.mubr.bf16.vlgmr.msra.gmra.mrb[216].mxu1 %v5901_v24 }
 0x522   : > { %6416 = vmatprep.mubr.bf16.mxu1 %v5907_v10  ;;  %v5845_v38 = vsel %vm3606_vm6, %v13214_v28, %v8712_v45  ;;  %v5846_v8 = vsel %vm3606_vm6, %v13216_v13, %v8713_v5 }
 0x523   : > { %v5915_v11 = vpack.c.bf16 %v5846_v8, %v5845_v38 }
 0x527   : > { %v8706_v32 = vpop.permute.xlu1 %8705 }
 0x528   : > { %v8708_v14 = vunpack.i.h.bf16 %v8706_v32  ;;  %v8707_v30 = vunpack.i.l.bf16 %v8706_v32 }
 0x52a   : > { %v5865_v33 = vsel %vm3606_vm6, %v13444_v37, %v8707_v30  ;;  %v5866_v29 = vsel %vm3606_vm6, %v13447_v1, %v8708_v14 }
 0x52b   : > { %v8716_v47 = vpop.permute.xlu1 %8715  ;;  %v5921_v2 = vpack.c.bf16 %v5866_v29, %v5865_v33 }
 0x52c   : > { %v8718_v10 = vunpack.i.h.bf16 %v8716_v47  ;;  %v8717_v48 = vunpack.i.l.bf16 %v8716_v47 }
 0x52d   : > { %6335 = vmatprep.mubr.bf16.mxu0 %v5921_v2 }
 0x52e   : > { %6336 = vmatmul.mubr.bf16.gmra.mrb[228].mxu0 %v5915_v11  ;;  %v5877_v63 = vsel %vm3606_vm6, %v13089_v55, %v8717_v48  ;;  %v5878_v28 = vsel %vm3606_vm6, %v13092_v36, %v8718_v10 }
 0x52f   : > { %v8721_v13 = vpop.permute.xlu0 %8720  ;;  %v8726_v60 = vpop.permute.xlu1 %8725  ;;  %v5906_v41 = vpack.c.bf16 %v5878_v28, %v5877_v63 }
 0x530   : > { %v8723_v46 = vunpack.i.h.bf16 %v8721_v13  ;;  %v8722_v54 = vunpack.i.l.bf16 %v8721_v13  ;;  %v8728_v40 = vunpack.i.h.bf16 %v8726_v60  ;;  %v8727_v53 = vunpack.i.l.bf16 %v8726_v60 }
 0x531   : > { %6417 = vmatmul.mubr.bf16.gmra.mrb[220].mxu1 %v5906_v41 }
 0x532   : > { %6424 = vmatprep.mubr.bf16.mxu1 %v5911_v49  ;;  %v5867_v24 = vsel %vm3606_vm6, %v13502_v9, %v8722_v54  ;;  %v5868_v12 = vsel %vm3606_vm6, %v13505_v20, %v8723_v46  ;;  %v5847_v55 = vsel %vm3606_vm6, %v13282_v27, %v8727_v53  ;;  %v5848_v36 = vsel %vm3606_vm6, %v13284_v21, %v8728_v40 }
 0x533   : > { %v8731_v5 = vpop.permute.xlu0 %8730  ;;  %v5925_v45 = vpack.c.bf16 %v5868_v12, %v5867_v24  ;;  %v5919_v32 = vpack.c.bf16 %v5848_v36, %v5847_v55 }
 0x534   : > { %v8733_v14 = vunpack.i.h.bf16 %v8731_v5  ;;  %v8732_v30 = vunpack.i.l.bf16 %v8731_v5 }
 0x535   : > { %6343 = vmatprep.mubr.bf16.mxu0 %v5925_v45 }
 0x536   : > { %6344 = vmatmul.mubr.bf16.gmra.mrb[232].mxu0 %v5919_v32  ;;  %v5879_v49 = vsel %vm3606_vm6, %v13125_v42, %v8732_v30  ;;  %v5880_v38 = vsel %vm3606_vm6, %v13128_v34, %v8733_v14 }
 0x537   : > { %v5910_v8 = vpack.c.bf16 %v5880_v38, %v5879_v49  ;;  %v8741_v33 = vpop.permute.xlu0 %8740 }
 0x538   : > { %v8743_v27 = vunpack.i.h.bf16 %v8741_v33  ;;  %v8742_v29 = vunpack.i.l.bf16 %v8741_v33 }
 0x539   : > { %6425 = vmatmul.mubr.bf16.gmra.mrb[224].mxu1 %v5910_v8 }
 0x53a   : > { %6432 = vmatprep.mubr.bf16.mxu1 %v5915_v11  ;;  %v5849_v10 = vsel %vm3606_vm6, %v13328_v0, %v8742_v29  ;;  %v5850_v48 = vsel %vm3606_vm6, %v13330_v56, %v8743_v27 }
 0x53b   : > { %v5923_v60 = vpack.c.bf16 %v5850_v48, %v5849_v10  ;;  %v14577_v10 = vld [vmem:[#allocation72_spill] sm:$0xff] }
 0x53f   : > { %v8736_v21 = vpop.permute.xlu1 %8735 }
 0x540   : > { %v8738_v47 = vunpack.i.h.bf16 %v8736_v21  ;;  %v8737_v2 = vunpack.i.l.bf16 %v8736_v21 }
 0x542   : > { %v5869_v42 = vsel %vm3606_vm6, %v13474_v31, %v8737_v2  ;;  %v5870_v34 = vsel %vm3606_vm6, %v13477_v15, %v8738_v47  ;;  %v14576_v47 = vld [vmem:[#allocation82_spill] sm:$0xff] }
 0x543   : > { %v8746_v63 = vpop.permute.xlu1 %8745  ;;  %v5929_v28 = vpack.c.bf16 %v5870_v34, %v5869_v42 }
 0x544   : > { %v8748_v11 = vunpack.i.h.bf16 %v8746_v63  ;;  %v8747_v13 = vunpack.i.l.bf16 %v8746_v63 }
 0x545   : > { %6351 = vmatprep.mubr.bf16.mxu0 %v5929_v28 }
 0x546   : > { %6352 = vmatmul.mubr.bf16.gmra.mrb[236].mxu0 %v5923_v60  ;;  %v5881_v41 = vsel %vm3606_vm6, %v13189_v22, %v8747_v13  ;;  %v5882_v0 = vsel %vm3606_vm6, %v13192_v62, %v8748_v11 }
 0x547   : > { %v8751_v56 = vpop.permute.xlu0 %8750  ;;  %v8756_v46 = vpop.permute.xlu1 %8755  ;;  %v5914_v54 = vpack.c.bf16 %v5882_v0, %v5881_v41  ;;  %v14578_v41 = vld [vmem:[#allocation68_spill] sm:$0xff] }
 0x548   : > { %v8753_v40 = vunpack.i.h.bf16 %v8751_v56  ;;  %v8752_v53 = vunpack.i.l.bf16 %v8751_v56  ;;  %v8758_v24 = vunpack.i.h.bf16 %v8756_v46  ;;  %v8757_v12 = vunpack.i.l.bf16 %v8756_v46  ;;  %v14579_v56 = vld [vmem:[#allocation62_spill] sm:$0xff] }
 0x549   : > { %6433 = vmatmul.mubr.bf16.gmra.mrb[228].mxu1 %v5914_v54 }
 0x54a   : > { %6440 = vmatprep.mubr.bf16.mxu1 %v5919_v32  ;;  %v5871_v55 = vsel %vm3606_vm6, %v13516_v35, %v8752_v53  ;;  %v5872_v36 = vsel %vm3606_vm6, %v13521_v7, %v8753_v40  ;;  %v5851_v22 = vsel %vm3606_vm6, %v13394_v16, %v8757_v12  ;;  %v5852_v62 = vsel %vm3606_vm6, %v13396_v52, %v8758_v24  ;;  %v14580_v12 = vld [vmem:[#allocation28_spill] sm:$0xff] }
 0x54b   : > { %v8761_v5 = vpop.permute.xlu0 %8760  ;;  %v5933_v45 = vpack.c.bf16 %v5872_v36, %v5871_v55  ;;  %v5927_v14 = vpack.c.bf16 %v5852_v62, %v5851_v22  ;;  %v5908_v24 = vpack.c.bf16 %v13345_v23, %v13333_v4  ;;  %v5912_v22 = vpack.c.bf16 %v13411_v44, %v13404_v43 }
 0x54c   : > { %v8763_v30 = vunpack.i.h.bf16 %v8761_v5  ;;  %v8762_v49 = vunpack.i.l.bf16 %v8761_v5  ;;  %v5916_v23 = vpack.c.bf16 %v13447_v1, %v13444_v37 }
 0x54d   : > { %6359 = vmatprep.mubr.bf16.mxu0 %v5933_v45 }
 0x54e   : > { %6360 = vmatmul.mubr.bf16.gmra.mrb[240].mxu0 %v5927_v14  ;;  %v5883_v32 = vsel %vm3606_vm6, %v13256_v18, %v8762_v49  ;;  %v5884_v38 = vsel %vm3606_vm6, %v13259_v19, %v8763_v30  ;;  %v14582_v49 = vld [vmem:[#allocation102_spill] sm:$0xff] }
 0x54f   : > { %v5918_v8 = vpack.c.bf16 %v5884_v38, %v5883_v32  ;;  %v8771_v33 = vpop.permute.xlu0 %8770  ;;  %v14583_v38 = vld [vmem:[#allocation98_spill] sm:$0xff] }
 0x550   : > { %v8773_v16 = vunpack.i.h.bf16 %v8771_v33  ;;  %v8772_v27 = vunpack.i.l.bf16 %v8771_v33 }
 0x551   : > { %6441 = vmatmul.mubr.bf16.gmra.mrb[232].mxu1 %v5918_v8  ;;  %v5920_v8 = vpack.c.bf16 %v13505_v20, %v13502_v9  ;;  %v5924_v9 = vpack.c.bf16 %v13477_v15, %v13474_v31 }
 0x552   : > { %6448 = vmatprep.mubr.bf16.mxu1 %v5923_v60  ;;  %v5853_v2 = vsel %vm3606_vm6, %v14576_v47, %v8772_v27  ;;  %v5854_v48 = vsel %vm3606_vm6, %v14577_v10, %v8773_v16  ;;  %v5903_v60 = vpack.c.bf16 %v13299_v59, %v13292_v3  ;;  %v14581_v59 = vld [vmem:[#allocation65_spill] sm:$0xff] }
 0x553   : > { %v5931_v11 = vpack.c.bf16 %v5854_v48, %v5853_v2  ;;  %v8781_v13 = vpop.permute.xlu0 %8780  ;;  %v5928_v48 = vpack.c.bf16 %v13521_v7, %v13516_v35  ;;  %v14586_v35 = vld [vmem:[#allocation108_spill] sm:$0xff] }
 0x554   : > { %v8783_v40 = vunpack.i.h.bf16 %v8781_v13  ;;  %v8782_v53 = vunpack.i.l.bf16 %v8781_v13  ;;  %v5826_v13 = vrot.slane %v13540_v25, 2 }
 0x556   : > { %v8766_v52 = vpop.permute.xlu1 %8765  ;;  %v5887_v3 = vsel %vm3606_vm6, %v14580_v12, %v8782_v53  ;;  %v5888_v55 = vsel %vm3606_vm6, %v14581_v59, %v8783_v40 }
 0x557   : > { %v8768_v29 = vunpack.i.h.bf16 %v8766_v52  ;;  %v8767_v21 = vunpack.i.l.bf16 %v8766_v52  ;;  %v5926_v5 = vpack.c.bf16 %v5888_v55, %v5887_v3 }
 0x559   : > { %v5873_v18 = vsel %vm3606_vm6, %v13548_v57, %v8767_v21  ;;  %v5874_v19 = vsel %vm3606_vm6, %v13552_v50, %v8768_v29  ;;  %v8791_v62 = vpop.permute.xlu0 %8790 }
 0x55a   : > { %v8776_v42 = vpop.permute.xlu1 %8775  ;;  %v5937_v34 = vpack.c.bf16 %v5874_v19, %v5873_v18  ;;  %v8793_v30 = vunpack.i.h.bf16 %v8791_v62  ;;  %v8792_v4 = vunpack.i.l.bf16 %v8791_v62 }
 0x55b   : > { %v8778_v63 = vunpack.i.h.bf16 %v8776_v42  ;;  %v8777_v28 = vunpack.i.l.bf16 %v8776_v42 }
 0x55c   : > { %6367 = vmatprep.mubr.bf16.mxu0 %v5937_v34  ;;  %v5895_v33 = vsel %vm3606_vm6, %v13484_v6, %v8792_v4  ;;  %v5896_v16 = vsel %vm3606_vm6, %v13489_v61, %v8793_v30  ;;  %v14584_v6 = vld [vmem:[#allocation63_spill] sm:$0xff]  ;;  %v14585_v61 = vld [vmem:[#allocation78_spill] sm:$0xff] }
 0x55d   : > { %6368 = vmatmul.mubr.bf16.gmra.mrb[244].mxu0 %v5931_v11  ;;  %v5885_v0 = vsel %vm3606_vm6, %v14578_v41, %v8777_v28  ;;  %v5886_v46 = vsel %vm3606_vm6, %v14579_v56, %v8778_v63  ;;  %v5935_v29 = vpack.c.bf16 %v5896_v16, %v5895_v33  ;;  %v5932_v63 = vpack.c.bf16 %v13552_v50, %v13548_v57  ;;  %v14587_v28 = vld [vmem:[#allocation112_spill] sm:$0xff] }
 0x55e   : > { %7482 = vmatprep.mubr.msk.bf16.mxu0 %vm3606_vm6, %v5903_v60  ;;  %v5922_v54 = vpack.c.bf16 %v5886_v46, %v5885_v0  ;;  %v8786_v36 = vpop.permute.xlu1 %8785  ;;  %v5827_v60 = vrot.slane %v13535_v51, 2  ;;  %v5829_v41 = vrot.slane %v13525_v17, 2 }
 0x55f   : > { %v8788_v45 = vunpack.i.h.bf16 %v8786_v36 }
 0x560   : > { %6449 = vmatmul.mubr.bf16.gmra.mrb[236].mxu1 %v5922_v54  ;;  %v8801_v27 = vpop.permute.xlu0 %8800  ;;  %v5828_v50 = vsel %vm2104_vm3, %v5826_v13, %v5827_v60  ;;  %v5830_v0 = vsel %vm2104_vm3, %v5827_v60, %v5829_v41 }
 0x561   : > { %6456 = vmatprep.mubr.bf16.mxu1 %v5927_v14  ;;  %v8787_v14 = vunpack.i.l.bf16 %v8786_v36  ;;  %v5890_v43 = vsel %vm3606_vm6, %v14583_v38, %v8788_v45  ;;  %v8803_v21 = vunpack.i.h.bf16 %v8801_v27  ;;  %v8802_v47 = vunpack.i.l.bf16 %v8801_v27 }
 0x562   : > { %v8796_v44 = vpop.permute.xlu1 %8795  ;;  %v5940_v56 = vpack.c.bf16 %v5830_v0, %v5828_v50  ;;  %v9120_v45 = vmov 0.0  }
 0x563   : > { %v5889_v32 = vsel %vm3606_vm6, %v14582_v49, %v8787_v14  ;;  %v8798_v1 = vunpack.i.h.bf16 %v8796_v44  ;;  %v8797_v52 = vunpack.i.l.bf16 %v8796_v44  ;;  %v5897_v18 = vsel %vm3606_vm6, %v13540_v25, %v8802_v47  ;;  %7502 = vmatprep.subr.bf16.mxu0 %v9120_v45  ;;  %v13750_v44 = vld [vmem:[%s13926_s5 + $0x2] ss:$0 sm:$0xff] }
 0x564   : > { %v5930_v37 = vpack.c.bf16 %v5890_v43, %v5889_v32  ;;  %v5898_v19 = vsel %vm3606_vm6, %v13535_v51, %v8803_v21 }
 0x565   : > { %7483 = vmatmul.mubr.msk.bf16.vlgmr.msra.gmra.mrb[248].mxu0 %vm3606_vm6, %v5908_v24  ;;  %v5891_v20 = vsel %vm3606_vm6, %v14584_v6, %v8797_v52  ;;  %v5892_v2 = vsel %vm3606_vm6, %v14585_v61, %v8798_v1  ;;  %v5939_v34 = vpack.c.bf16 %v5898_v19, %v5897_v18  ;;  %v9030_v52 = vld [vmem:[%s13925_s4 + $0x8] sm:$0xff]   ;;  %v9031_v6 = vld [vmem:[%s13925_s4 + $0x10] sm:$0xff]   ;;  %v9033_v18 = vld [vmem:[%s13925_s4 + $0x20] sm:$0xff]  }
 0x566   : > { %7486 = vmatprep.mubr.msk.bf16.mxu0 %vm3606_vm6, %v5912_v22  ;;  %v8806_v10 = vpop.permute.xlu1 %8805  ;;  %v5934_v31 = vpack.c.bf16 %v5892_v2, %v5891_v20 }
 0x567   : > { %v8808_v15 = vunpack.i.h.bf16 %v8806_v10  ;;  %v8807_v42 = vunpack.i.l.bf16 %v8806_v10 }
 0x568   : > { %6457 = vmatmul.mubr.bf16.gmra.mrb[240].mxu1 %v5926_v5  ;;  %v9029_v5 = vld [vmem:[%s13925_s4] sm:$0xff]  }
 0x569   : > { %6464 = vmatprep.mubr.bf16.mxu1 %v5931_v11  ;;  %v5893_v7 = vsel %vm3606_vm6, %v14586_v35, %v8807_v42  ;;  %v5894_v11 = vsel %vm3606_vm6, %v14587_v28, %v8808_v15  ;;  %7503 = vmatpush3.bf16.msra.mxu0 %v9029_v5 }
 0x56a   : > { %v5938_v57 = vpack.c.bf16 %v5894_v11, %v5893_v7  ;;  %7504 = vmatprep.subr.bf16.mxu0 %v9120_v45 }
 0x56d   : > { %7487 = vmatmul.mubr.msk.bf16.gmra.mrb[252].mxu0 %vm3606_vm6, %v5916_v23 }
 0x56e   : > { %7490 = vmatprep.mubr.msk.bf16.mxu0 %vm3606_vm6, %v5920_v8  ;;  %7505 = vmatpush3.bf16.msra.mxu0 %v9030_v52 }
 0x56f   : > { %7506 = vmatprep.subr.bf16.mxu0 %v9120_v45 }
 0x570   : > { %6465 = vmatmul.mubr.bf16.gmra.mrb[244].mxu1 %v5930_v37 }
 0x571   : > { %6472 = vmatprep.mubr.bf16.mxu1 %v5935_v29 }
 0x572   : > { %7507 = vmatpush3.bf16.msra.mxu0 %v9031_v6 }
 0x573   : > { %7508 = vmatprep.subr.bf16.mxu0 %v9120_v45 }
 0x575   : > { %7491 = vmatmul.mubr.msk.bf16.gmra.mrb[0].mxu0 %vm3606_vm6, %v5924_v9 }
 0x576   : > { %7494 = vmatprep.mubr.msk.bf16.mxu0 %vm3606_vm6, %v5928_v48  ;;  %v9032_v48 = vld [vmem:[%s13925_s4 + $0x18] sm:$0xff]  }
 0x577   : > { %7509 = vmatpush3.bf16.msra.mxu0 %v9032_v48 }
 0x578   : > { %6473 = vmatmul.mubr.bf16.gmra.mrb[248].mxu1 %v5934_v31  ;;  %7510 = vmatprep.subr.bf16.mxu0 %v9120_v45 }
 0x579   : > { %6480 = vmatprep.mubr.bf16.mxu1 %v5939_v34  ;;  %v9034_v34 = vld [vmem:[%s13925_s4 + $0x28] sm:$0xff]  }
 0x57b   : > { %7511 = vmatpush3.bf16.msra.mxu0 %v9033_v18 }
 0x57c   : > { %7512 = vmatprep.subr.bf16.mxu0 %v9120_v45 }
 0x57d   : > { %7495 = vmatmul.mubr.msk.bf16.gmra.mrb[4].mxu0 %vm3606_vm6, %v5932_v63 }
 0x57e   : > { %7498 = vmatprep.mubr.msk.bf16.mxu0 %vm3606_vm6, %v5936_v39 }
 0x57f   : > { %7513 = vmatpush3.bf16.msra.mxu0 %v9034_v34 }
 0x580   : > { %6481 = vmatmul.mubr.bf16.gmra.mrb[252].mxu1 %v5938_v57  ;;  %v9035_v57 = vld [vmem:[%s13925_s4 + $0x30] sm:$0xff]   ;;  %7514 = vmatprep.subr.bf16.mxu0 %v9120_v45 }
 0x583   : > { %7515 = vmatpush3.bf16.msra.mxu0 %v9035_v57 }
 0x584   : > { %7516 = vmatprep.subr.bf16.mxu0 %v9120_v45 }
 0x585   : > { %7499 = vmatmul.mubr.msk.bf16.gmra.mrb[8].mxu0 %vm3606_vm6, %v5940_v56 }
 0x586   : > { %7518 = vmatprep.mubr.msk.bf16.mxu0 %vm9121_vm9, %v9120_v45 }
 0x5c1   : > { %v7239_v25 = vpop.f32.mrb[208].mxu0 }
 0x5c2   : > { %v7240_v51 = vpop.f32.mrb[209].mxu0 }
 0x5c3   : > { %v7241_v46 = vadd.f32 %v7240_v51, %v7239_v25  ;;  %v7242_v54 = vpop.f32.mrb[210].mxu0 }
 0x5c4   : > { %v7243_v40 = vpop.f32.mrb[211].mxu0 }
 0x5c5   : > { %v7244_v17 = vadd.f32 %v7243_v40, %v7242_v54  ;;  %v6298_v29 = vadd.f32 %v7241_v46, %v13750_v44 }
 0x5c7   : > { %v6301_v20 = vadd.f32 %v7244_v17, %v13750_v44  ;;  %v9036_v17 = vld [vmem:[%s13925_s4 + $0x38] sm:$0xff]  }
 0x5c8   : > { %7517 = vmatpush3.bf16.msra.mxu0 %v9036_v17 }
 0x5d1   : > { %v7245_v53 = vpop.f32.mrb[212].mxu0 }
 0x5d2   : > { %v7246_v24 = vpop.f32.mrb[213].mxu0 }
 0x5d3   : > { %v7247_v58 = vadd.f32 %v7246_v24, %v7245_v53  ;;  %v7248_v26 = vpop.f32.mrb[214].mxu0 }
 0x5d4   : > { %v7249_v39 = vpop.f32.mrb[215].mxu0 }
 0x5d5   : > { %v13732_v12 = vadd.f32 %v7249_v39, %v7248_v26  ;;  %v6306_v11 = vadd.f32 %v7247_v58, %v13750_v44 }
 0x5d7   : > { %v6309_v50 = vadd.f32 %v13732_v12, %v13750_v44 }
 0x5d9   : > { %v7251_v3 = vpop.f32.mrb[216].mxu0 }
 0x5da   : > { %v7252_v59 = vpop.f32.mrb[217].mxu0 }
 0x5db   : > { %v13734_v55 = vadd.f32 %v7252_v59, %v7251_v3  ;;  %v7254_v36 = vpop.f32.mrb[218].mxu0 }
 0x5dc   : > { %v7255_v22 = vpop.f32.mrb[219].mxu0 }
 0x5dd   : > { %v13736_v62 = vadd.f32 %v7255_v22, %v7254_v36  ;;  %v6314_v39 = vadd.f32 %v13734_v55, %v13750_v44 }
 0x5df   : > { %v6317_v36 = vadd.f32 %v13736_v62, %v13750_v44 }
 0x5e9   : > { %v7257_v14 = vpop.f32.mrb[220].mxu0 }
 0x5ea   : > { %v7258_v30 = vpop.f32.mrb[221].mxu0 }
 0x5eb   : > { %v13743_v4 = vadd.f32 %v7258_v30, %v7257_v14  ;;  %v7260_v23 = vpop.f32.mrb[222].mxu0 }
 0x5ec   : > { %v7261_v49 = vpop.f32.mrb[223].mxu0 }
 0x5ed   : > { %v13745_v32 = vadd.f32 %v7261_v49, %v7260_v23 }
 0x5ef   : > { %v6325_v52 = vadd.f32 %v13745_v32, %v13750_v44 }
 0x5f1   : > { %v7263_v38 = vpop.f32.mrb[224].mxu0 }
 0x5f2   : > { %v7264_v43 = vpop.f32.mrb[225].mxu0 }
 0x5f3   : > { %v13752_v8 = vadd.f32 %v7264_v43, %v7263_v38  ;;  %v7266_v33 = vpop.f32.mrb[226].mxu0 }
 0x5f4   : > { %v7267_v16 = vpop.f32.mrb[227].mxu0  ;;  %v7315_v27 = vpop.f32.mrb[216].mxu1 }
 0x5f5   : > { %v13754_v37 = vadd.f32 %v7267_v16, %v7266_v33  ;;  %v7316_v1 = vpop.f32.mrb[217].mxu1  ;;  %v6322_v16 = vadd.f32 %v13743_v4, %v13750_v44 }
 0x5f6   : > { %v7317_v21 = vadd.f32 %v7316_v1, %v7315_v27  ;;  %v7318_v47 = vpop.f32.mrb[218].mxu1 }
 0x5f7   : > { %v7319_v9 = vpop.f32.mrb[219].mxu1 }
 0x5f8   : > { %v7320_v61 = vadd.f32 %v7319_v9, %v7318_v47  ;;  %v13765_v2 = vadd.f32 %v7317_v21, %v6298_v29 }
 0x5fa   : > { %v13768_v10 = vadd.f32 %v7320_v61, %v6301_v20 }
 0x601   : > { %v7269_v19 = vpop.f32.mrb[228].mxu0 }
 0x602   : > { %v7270_v31 = vpop.f32.mrb[229].mxu0 }
 0x603   : > { %v13778_v15 = vadd.f32 %v7270_v31, %v7269_v19  ;;  %v7272_v42 = vpop.f32.mrb[230].mxu0  ;;  %v6330_v31 = vadd.f32 %v13752_v8, %v13750_v44 }
 0x604   : > { %v7273_v63 = vpop.f32.mrb[231].mxu0  ;;  %v7321_v35 = vpop.f32.mrb[220].mxu1 }
 0x605   : > { %v13784_v7 = vadd.f32 %v7273_v63, %v7272_v42  ;;  %v7322_v28 = vpop.f32.mrb[221].mxu1  ;;  %v6333_v63 = vadd.f32 %v13754_v37, %v13750_v44 }
 0x606   : > { %v7323_v13 = vadd.f32 %v7322_v28, %v7321_v35  ;;  %v7324_v60 = vpop.f32.mrb[222].mxu1 }
 0x607   : > { %v7325_v41 = vpop.f32.mrb[223].mxu1 }
 0x608   : > { %v7326_v0 = vadd.f32 %v7325_v41, %v7324_v60  ;;  %v13792_v56 = vadd.f32 %v7323_v13, %v6306_v11 }
 0x609   : > { %v7275_v25 = vpop.f32.mrb[232].mxu0 }
 0x60a   : > { %v7276_v51 = vpop.f32.mrb[233].mxu0  ;;  %v13795_v46 = vadd.f32 %v7326_v0, %v6309_v50 }
 0x60b   : > { %v13797_v54 = vadd.f32 %v7276_v51, %v7275_v25  ;;  %v7278_v40 = vpop.f32.mrb[234].mxu0  ;;  %v6338_v51 = vadd.f32 %v13778_v15, %v13750_v44 }
 0x60c   : > { %v7279_v53 = vpop.f32.mrb[235].mxu0  ;;  %v7327_v24 = vpop.f32.mrb[224].mxu1 }
 0x60d   : > { %v13803_v58 = vadd.f32 %v7279_v53, %v7278_v40  ;;  %v7328_v26 = vpop.f32.mrb[225].mxu1  ;;  %v6341_v53 = vadd.f32 %v13784_v7, %v13750_v44  ;;  %v6346_v7 = vadd.f32 %v13797_v54, %v13750_v44 }
 0x60e   : > { %v7329_v12 = vadd.f32 %v7328_v26, %v7327_v24  ;;  %v7330_v3 = vpop.f32.mrb[226].mxu1 }
 0x60f   : > { %v7331_v59 = vpop.f32.mrb[227].mxu1 }
 0x610   : > { %v7332_v22 = vadd.f32 %v7331_v59, %v7330_v3  ;;  %v13809_v5 = vadd.f32 %v7329_v12, %v6314_v39 }
 0x612   : > { %v13811_v14 = vadd.f32 %v7332_v22, %v6317_v36 }
 0x619   : > { %v7281_v30 = vpop.f32.mrb[236].mxu0 }
 0x61a   : > { %v7282_v45 = vpop.f32.mrb[237].mxu0 }
 0x61b   : > { %v13813_v23 = vadd.f32 %v7282_v45, %v7281_v30  ;;  %v7284_v49 = vpop.f32.mrb[238].mxu0 }
 0x61c   : > { %v7285_v38 = vpop.f32.mrb[239].mxu0  ;;  %v7333_v43 = vpop.f32.mrb[228].mxu1 }
 0x61d   : > { %v13815_v55 = vadd.f32 %v7285_v38, %v7284_v49  ;;  %v7334_v33 = vpop.f32.mrb[229].mxu1 }
 0x61e   : > { %v7335_v27 = vadd.f32 %v7334_v33, %v7333_v43  ;;  %v7336_v62 = vpop.f32.mrb[230].mxu1 }
 0x61f   : > { %v7337_v1 = vpop.f32.mrb[231].mxu1 }
 0x620   : > { %v7338_v29 = vadd.f32 %v7337_v1, %v7336_v62  ;;  %v6435_v21 = vadd.f32 %v7335_v27, %v6322_v16 }
 0x621   : > { %v7287_v47 = vpop.f32.mrb[240].mxu0 }
 0x622   : > { %v7288_v9 = vpop.f32.mrb[241].mxu0  ;;  %v13821_v6 = vadd.f32 %v7338_v29, %v6325_v52 }
 0x623   : > { %v13823_v20 = vadd.f32 %v7288_v9, %v7287_v47  ;;  %v7290_v61 = vpop.f32.mrb[242].mxu0 }
 0x624   : > { %v7291_v48 = vpop.f32.mrb[243].mxu0  ;;  %v7339_v18 = vpop.f32.mrb[232].mxu1 }
 0x625   : > { %v13825_v19 = vadd.f32 %v7291_v48, %v7290_v61  ;;  %v7340_v4 = vpop.f32.mrb[233].mxu1 }
 0x626   : > { %v7341_v42 = vadd.f32 %v7340_v4, %v7339_v18  ;;  %v7342_v34 = vpop.f32.mrb[234].mxu1 }
 0x627   : > { %v7343_v32 = vpop.f32.mrb[235].mxu1 }
 0x628   : > { %v7344_v35 = vadd.f32 %v7343_v32, %v7342_v34  ;;  %v13831_v28 = vadd.f32 %v7341_v42, %v6330_v31 }
 0x62a   : > { %v13833_v11 = vadd.f32 %v7344_v35, %v6333_v63  ;;  %v6354_v35 = vadd.f32 %v13813_v23, %v13750_v44 }
 0x630   : > { %v7293_v13 = vpop.f32.mrb[244].mxu0 }
 0x631   : > { %v7294_v60 = vpop.f32.mrb[245].mxu0 }
 0x632   : > { %v13835_v41 = vadd.f32 %v7294_v60, %v7293_v13  ;;  %v7296_v57 = vpop.f32.mrb[246].mxu0 }
 0x633   : > { %v7297_v50 = vpop.f32.mrb[247].mxu0  ;;  %v7345_v0 = vpop.f32.mrb[236].mxu1 }
 0x634   : > { %v13837_v25 = vadd.f32 %v7297_v50, %v7296_v57  ;;  %v7346_v8 = vpop.f32.mrb[237].mxu1 }
 0x635   : > { %v7347_v40 = vadd.f32 %v7346_v8, %v7345_v0  ;;  %v7348_v37 = vpop.f32.mrb[238].mxu1 }
 0x636   : > { %v7349_v17 = vpop.f32.mrb[239].mxu1 }
 0x637   : > { %v7350_v24 = vadd.f32 %v7349_v17, %v7348_v37  ;;  %v6451_v26 = vadd.f32 %v7347_v40, %v6338_v51 }
 0x638   : > { %v7484_v39 = vpop.f32.mrb[248].mxu0 }
 0x639   : > { %v6532_v12 = vadd.f32 %v7484_v39, %v13792_v56  ;;  %v6523_v3 = vpop.f32.mrb[249].mxu0  ;;  %v6454_v59 = vadd.f32 %v7350_v24, %v6341_v53 }
 0x63a   : > { %v6524_v36 = vadd.f32 %v6523_v3, %v13765_v2  ;;  %v7485_v22 = vpop.f32.mrb[250].mxu0  ;;  %v6349_v2 = vadd.f32 %v13803_v58, %v13750_v44 }
 0x63b   : > { %v6604_v30 = vmax.f32 %v6532_v12, 0.0  ;;  %v6535_v45 = vadd.f32 %v7485_v22, %v13795_v46  ;;  %v7351_v15 = vpop.f32.mrb[240].mxu1  ;;  %v6526_v49 = vpop.f32.mrb[251].mxu0 }
 0x63c   : > { %v6602_v38 = vmax.f32 %v6524_v36, 0.0  ;;  %v6527_v43 = vadd.f32 %v6526_v49, %v13768_v10  ;;  %v7352_v33 = vpop.f32.mrb[241].mxu1 }
 0x63d   : > { %v6605_v16 = vmax.f32 %v6535_v45, 0.0  ;;  %v7353_v27 = vadd.f32 %v7352_v33, %v7351_v15  ;;  %v7354_v56 = vpop.f32.mrb[242].mxu1 }
 0x63e   : > { %v6663_v62 = vmax.f32 %v6602_v38, %v6604_v30  ;;  %v6603_v1 = vmax.f32 %v6527_v43, 0.0  ;;  %v7355_v52 = vpop.f32.mrb[243].mxu1 }
 0x63f   : > { %v7356_v29 = vadd.f32 %v7355_v52, %v7354_v56  ;;  %v6459_v46 = vadd.f32 %v7353_v27, %v6346_v7 }
 0x640   : > { %6673 = vst [vmem:[#allocation5] sm:$0xff] %v6663_v62  ;;  %v6664_v47 = vmax.f32 %v6603_v1, %v6605_v16  ;;  %v7488_v9 = vpop.f32.mrb[252].mxu0 }
 0x641   : > { %v6548_v61 = vadd.f32 %v7488_v9, %v6435_v21  ;;  %v6539_v10 = vpop.f32.mrb[253].mxu0  ;;  %v13851_v48 = vadd.f32 %v7356_v29, %v6349_v2 }
 0x642   : > { %6674 = vst [vmem:[#allocation5 + $0x8] sm:$0xff] %v6664_v47  ;;  %v6540_v54 = vadd.f32 %v6539_v10, %v13809_v5  ;;  %v7489_v18 = vpop.f32.mrb[254].mxu0  ;;  %v6357_v5 = vadd.f32 %v13815_v55, %v13750_v44  ;;  %v6362_v55 = vadd.f32 %v13823_v20, %v13750_v44  ;;  %v6370_v47 = vadd.f32 %v13835_v41, %v13750_v44 }
 0x643   : > { %v6608_v4 = vmax.f32 %v6548_v61, 0.0  ;;  %v6551_v31 = vadd.f32 %v7489_v18, %v13821_v6  ;;  %v7357_v42 = vpop.f32.mrb[244].mxu1  ;;  %v6542_v34 = vpop.f32.mrb[255].mxu0  ;;  %v6373_v18 = vadd.f32 %v13837_v25, %v13750_v44 }
 0x644   : > { %v6606_v32 = vmax.f32 %v6540_v54, 0.0  ;;  %v6543_v58 = vadd.f32 %v6542_v34, %v13811_v14  ;;  %v7358_v63 = vpop.f32.mrb[245].mxu1 }
 0x645   : > { %v6609_v21 = vmax.f32 %v6551_v31, 0.0  ;;  %v7359_v13 = vadd.f32 %v7358_v63, %v7357_v42  ;;  %v7360_v60 = vpop.f32.mrb[246].mxu1 }
 0x646   : > { %v6665_v57 = vmax.f32 %v6606_v32, %v6608_v4  ;;  %v6607_v50 = vmax.f32 %v6543_v58, 0.0  ;;  %v7361_v0 = vpop.f32.mrb[247].mxu1 }
 0x647   : > { %v7362_v8 = vadd.f32 %v7361_v0, %v7360_v60  ;;  %v6467_v6 = vadd.f32 %v7359_v13, %v6354_v35 }
 0x648   : > { %6675 = vst [vmem:[#allocation5 + $0x10] sm:$0xff] %v6665_v57  ;;  %v6666_v51 = vmax.f32 %v6607_v50, %v6609_v21  ;;  %v7492_v40 = vpop.f32.mrb[0].mxu0 }
 0x649   : > { %v6564_v37 = vadd.f32 %v7492_v40, %v6451_v26  ;;  %v6470_v14 = vadd.f32 %v7362_v8, %v6357_v5  ;;  %v6555_v17 = vpop.f32.mrb[1].mxu0  ;;  %v6365_v26 = vadd.f32 %v13825_v19, %v13750_v44  ;;  %v6683_v5 = vld [vmem:[#allocation5] ss:$2 sm:$0x1f] }
 0x64a   : > { %6676 = vst [vmem:[#allocation5 + $0x18] sm:$0xff] %v6666_v51  ;;  %v6556_v23 = vadd.f32 %v6555_v17, %v13831_v28  ;;  %v7493_v24 = vpop.f32.mrb[2].mxu0  ;;  %v6693_v40 = vld [vmem:[#allocation5 + $0x1] ss:$2 sm:$0x1f] }
 0x64b   : > { %v6612_v53 = vmax.f32 %v6564_v37, 0.0  ;;  %v7363_v39 = vpop.f32.mrb[248].mxu1  ;;  %v6567_v12 = vadd.f32 %v7493_v24, %v6454_v59  ;;  %v6558_v3 = vpop.f32.mrb[3].mxu0 }
 0x64c   : > { %v7364_v36 = vpop.f32.mrb[249].mxu1  ;;  %v6610_v22 = vmax.f32 %v6556_v23, 0.0  ;;  %v6559_v30 = vadd.f32 %v6558_v3, %v13833_v11 }
 0x64d   : > { %v7365_v45 = vadd.f32 %v7364_v36, %v7363_v39  ;;  %v7366_v15 = vpop.f32.mrb[250].mxu1  ;;  %v6613_v49 = vmax.f32 %v6567_v12, 0.0  ;;  %v6702_v12 = vmax.f32 %v6683_v5, %v6693_v40 }
 0x64e   : > { %v7367_v38 = vpop.f32.mrb[251].mxu1  ;;  %v6667_v43 = vmax.f32 %v6610_v22, %v6612_v53  ;;  %v6611_v28 = vmax.f32 %v6559_v30, 0.0 }
 0x64f   : > { %v7368_v33 = vadd.f32 %v7367_v38, %v7366_v15  ;;  %v6475_v7 = vadd.f32 %v7365_v45, %v6362_v55  ;;  %v6708_v22 = vsel %vm6707_vm10, %v6702_v12, 0.0 }
 0x650   : > { %v7496_v59 = vpop.f32.mrb[4].mxu0  ;;  %6677 = vst [vmem:[#allocation5 + $0x20] sm:$0xff] %v6667_v43  ;;  %v6668_v16 = vmax.f32 %v6611_v28, %v6613_v49 }
 0x651   : > { %v6580_v27 = vadd.f32 %v7496_v59, %v6467_v6  ;;  %v6478_v56 = vadd.f32 %v7368_v33, %v6365_v26  ;;  %v6571_v20 = vpop.f32.mrb[5].mxu0  ;;  %v6685_v44 = vld [vmem:[#allocation5 + $0x10] ss:$2 sm:$0x1f] }
 0x652   : > { %6678 = vst [vmem:[#allocation5 + $0x28] sm:$0xff] %v6668_v16  ;;  %v6572_v11 = vadd.f32 %v6571_v20, %v6459_v46  ;;  %v7497_v1 = vpop.f32.mrb[6].mxu0  ;;  %v6695_v8 = vld [vmem:[#allocation5 + $0x11] ss:$2 sm:$0x1f] }
 0x653   : > { %v6616_v62 = vmax.f32 %v6580_v27, 0.0  ;;  %v7369_v52 = vpop.f32.mrb[252].mxu1  ;;  %v6583_v2 = vadd.f32 %v7497_v1, %v6470_v14  ;;  %v6574_v29 = vpop.f32.mrb[7].mxu0  ;;  %v6703_v53 = vmax.f32 %v6685_v44, %v6695_v8 }
 0x654   : > { %v7370_v19 = vpop.f32.mrb[253].mxu1  ;;  %v6614_v9 = vmax.f32 %v6572_v11, 0.0  ;;  %v6575_v61 = vadd.f32 %v6574_v29, %v13851_v48 }
 0x655   : > { %v7371_v10 = vadd.f32 %v7370_v19, %v7369_v52  ;;  %v7372_v54 = vpop.f32.mrb[254].mxu1  ;;  %v6617_v4 = vmax.f32 %v6583_v2, 0.0  ;;  %v6709_v36 = vsel %vm6707_vm10, %v6703_v53, 0.0  ;;  %v253_v2 = vld [vmem:[%s13926_s5 + $0x3] sm:$0x1] }
 0x656   : > { %v7373_v31 = vpop.f32.mrb[255].mxu1  ;;  %v6669_v42 = vmax.f32 %v6614_v9, %v6616_v62  ;;  %v6615_v46 = vmax.f32 %v6575_v61, 0.0  ;;  %v6710_v45 = vadd.f32 %v6709_v36, %v6708_v22 }
 0x657   : > { %v7374_v34 = vadd.f32 %v7373_v31, %v7372_v54  ;;  %v6483_v32 = vadd.f32 %v7371_v10, %v6370_v47 }
 0x658   : > { %v7500_v58 = vpop.f32.mrb[8].mxu0  ;;  %6679 = vst [vmem:[#allocation5 + $0x30] sm:$0xff] %v6669_v42  ;;  %v6670_v63 = vmax.f32 %v6615_v46, %v6617_v4 }
 0x659   : > { %v6596_v35 = vadd.f32 %v7500_v58, %v6483_v32  ;;  %v6587_v21 = vpop.f32.mrb[9].mxu0  ;;  %v6486_v41 = vadd.f32 %v7374_v34, %v6373_v18  ;;  %v6687_v14 = vld [vmem:[#allocation5 + $0x20] ss:$2 sm:$0x1f] }
 0x65a   : > { %v6588_v13 = vadd.f32 %v6587_v21, %v6475_v7  ;;  %6680 = vst [vmem:[#allocation5 + $0x38] sm:$0xff] %v6670_v63  ;;  %v7501_v60 = vpop.f32.mrb[10].mxu0  ;;  %v6697_v17 = vld [vmem:[#allocation5 + $0x21] ss:$2 sm:$0x1f] }
 0x65b   : > { %v6620_v48 = vmax.f32 %v6596_v35, 0.0  ;;  %v6599_v50 = vadd.f32 %v7501_v60, %v6486_v41  ;;  %v6590_v0 = vpop.f32.mrb[11].mxu0  ;;  %v6704_v3 = vmax.f32 %v6687_v14, %v6697_v17 }
 0x65c   : > { %v6618_v57 = vmax.f32 %v6588_v13, 0.0  ;;  %v6591_v25 = vadd.f32 %v6590_v0, %v6478_v56 }
 0x65d   : > { %v6621_v51 = vmax.f32 %v6599_v50, 0.0  ;;  %v6711_v30 = vsel %vm6707_vm10, %v6704_v3, 0.0 }
 0x65e   : > { %v6671_v6 = vmax.f32 %v6618_v57, %v6620_v48  ;;  %v6619_v37 = vmax.f32 %v6591_v25, 0.0  ;;  %v6712_v26 = vadd.f32 %v6711_v30, %v6710_v45 }
 0x660   : > { %6681 = vst [vmem:[#allocation5 + $0x40] sm:$0xff] %v6671_v6  ;;  %v6672_v23 = vmax.f32 %v6619_v37, %v6621_v51 }
 0x661   : > { %v6689_v24 = vld [vmem:[#allocation5 + $0x30] ss:$2 sm:$0x1f]  ;;  %v6699_v39 = vld [vmem:[#allocation5 + $0x31] ss:$2 sm:$0x1f] }
 0x662   : > { %6682 = vst [vmem:[#allocation5 + $0x48] sm:$0xff] %v6672_v23  ;;  %v6705_v55 = vmax.f32 %v6689_v24, %v6699_v39 }
 0x664   : > { %v6713_v15 = vsel %vm6707_vm10, %v6705_v55, 0.0 }
 0x665   : > { %v6714_v28 = vadd.f32 %v6713_v15, %v6712_v26 }
 0x669   : > { %v6691_v49 = vld [vmem:[#allocation5 + $0x40] ss:$2 sm:$0x1f]  ;;  %v6701_v38 = vld [vmem:[#allocation5 + $0x41] ss:$2 sm:$0x1f] }
 0x66a   : > { %v6706_v43 = vmax.f32 %v6691_v49, %v6701_v38 }
 0x66c   : > { %v6715_v33 = vsel %vm6707_vm10, %v6706_v43, 0.0 }
 0x66d   : > { %v6716_v7 = vadd.f32 %v6715_v33, %v6714_v28 }
 0x66f   : > { %v6717_v59 = vsel %vm6707_vm10, %v6716_v7, 0.0 }
 0x670   : > { %v6718_v16 = vrot.slane %v6717_v59, 4 }
 0x672   : > { %v6719_v27 = vadd.f32 %v6718_v16, %v6717_v59 }
 0x674   : > { %v6720_v56 = vrot.slane %v6719_v27, 2 }
 0x676   : > { %v6721_v20 = vadd.f32 %v6720_v56, %v6719_v27 }
 0x678   : > { %v6722_v62 = vrot.slane %v6721_v20, 1 }
 0x67a   : > { %v6723_v11 = vadd.f32 %v6722_v62, %v6721_v20 }
 0x67c   : > { %v6724_v1 = vmul.f32 0.04, %v6723_v11 }
 0x67e   : > { %v6725_v52 = vpack.c.bf16 %v6724_v1, %v6724_v1 }
 0x680   : > { %7519 = vmatmul.mubr.bf16.vlgmr.msra.gmra.mrb[12].mxu0 %v6725_v52 }
 0x753   : > { %v6824_v29 = vpop.f32.mrb[12].mxu0 }
 0x754   : > { %v6825_v19 = vadd.f32 %v6824_v29, %v253_v2  ;;  %v7520_v47 = vpop.f32.mrb[13].mxu0 }
 0x755   : > { %v6827_v9 = vpop.f32.mrb[14].mxu0 }
 0x756   : > { %v7521_v61 = vpop.f32.mrb[15].mxu0  ;;  %6831 = vst.msk [vmem:[%s243_s12] sm:$0x1] %vm6830_vm11, %v6825_v19 }
 0x757   : > { %9064 = shalt.err (!%p9061_p3)
}
 0x758   : > { %s9065_s26 = scalar_lea.hbm %s13879_s16, 16  ;;  %s9069_s9 = scalar_lea.hbm %s13927_s6, 32 }
 0x759   : > { %p9066_p4 = scmp.ne.s32.totalorder %s13879_s16, %s9065_s26  ;;  %p9070_p9 = scmp.lt.u32.totalorder %s13879_s16, %s13927_s6 }
 0x75a   : > { %p9071_p10 = scmp.lt.u32.totalorder %s9069_s9, %s9065_s26  ;;  %p9073_p12 = scmp.lt.u32.totalorder %s9065_s26, %s13879_s16 }
 0x75b   : > { %p9067_p7 = pnand %p9066_p4, %p9196_p5 }
 0x75c   : > { %p9072_p11 = por %p9071_p10, %p9070_p9 }
 0x75d   : > { %p9068_p8 = pneg %p9067_p7 }
 0x75e   : > { %p9074_p13 = por %p9073_p12, %p9072_p11 }
 0x760   : > { %p9075_p0 = pnand %p9074_p13, %p9068_p8 }
 0x762   : > { %9078 = shalt.err (!%p9075_p0)
}
 0x763   : > { %7523 = dma.vmem_to_hbm [thread:$0]  (%p9196_p5), %s13881_s15, 16, %s13879_s16, %s6833_s25  }
 0x764 PF: > { %p7529_p1 = scmp.ge.s32.totalorder %s9113_s24, 2  ;;  %s6857_s12 = sand.u32 1, %s9101_s21  }
 0x765   : > { %s6858_s14 = scalar_lea.sflag [#allocation7], %s6857_s12 }
 0x766   : > { %p7526_p2 = pnand %p7529_p1, %p9200_p6 }
 0x768   : > { %9096 = dma.done.wait (!%p7526_p2), %s6858_s14, 16  }
 0x769   : > { %9098 = vsyncadd (!%p7526_p2), %s6858_s14, 4294967280  ;;  %p16_p3 = scmp.ge.s32.totalorder %s9183_s27, 4   ;;  %s14588_s21 = smov %s9105_s22 }
 0x76a   : > { %s14589_s22 = smov %s9109_s23  ;;  %s14590_s23 = smov %s9194_s30 }
 0x76b   : > { %s14591_s24 = smov %s9183_s27  ;;  %18 = sbr.rel (!%p16_p3) target bundleno = 3 (0x3), region = 137 }
 0x772   :  { %6862 = vsyncpa [#allocation7], 1 }
 0x773   :  { %6864 = vsyncpa [#allocation7 + $0x1], 1 }

</bundles_post_ra>
